<compile_context>
chip_gen: v6e
topology: v6e:2x2x1
jax: 0.10.0
libtpu: 0.0.40
codegen_flags: <defaults>
</compile_context>

<pallas_src>
import jax
import jax.numpy as jnp
from jax.experimental import pallas as pl
from jax.experimental.pallas import tpu as pltpu

LANE = 128   # feature dims are zero-padded to one full lane group
SUB = 16     # node-count padding (multiple of 16 keeps bf16 sublane tiling clean)


def _silu(x):
    return x * jax.nn.sigmoid(x)


def gcl_forward(h, row, col, edge_attr, edge_mask, node_mask, params,
                normalization_factor, *, edge_tile=512):
    """Pallas GCL forward (attention=True, normalization=None, aggregation='sum').

    Returns (h_new [N, out_nf] f32, mij [E, hidden_nf] f32).
    """
    f32, bf16, i32 = jnp.float32, jnp.bfloat16, jnp.int32

    n_nodes, in_nf = h.shape
    n_edges = row.shape[0]
    hidden_nf = params["w2"].shape[0]
    out_nf = params["wn2"].shape[1]
    edges_in_d = edge_attr.shape[1]
    assert in_nf == out_nf, "residual requires input_nf == output_nf"
    assert max(hidden_nf, in_nf, out_nf) <= LANE

    n_pad = ((n_nodes + SUB - 1) // SUB) * SUB
    e_pad = ((n_edges + edge_tile - 1) // edge_tile) * edge_tile
    n_tiles = e_pad // edge_tile

    def pad2(x, rows, cols, dtype):
        r, c = x.shape
        return jnp.pad(x, ((0, rows - r), (0, cols - c))).astype(dtype)

    # ---- node-side residents (f32 for the residual / final output) ---------
    h_p = pad2(h, n_pad, LANE, f32)
    nmask = pad2(node_mask, n_pad, 1, f32)

    # ---- per-edge streamed operands (tiny: ~40 B/edge total) ---------------
    EPK = max(8, ((edges_in_d + 1 + 7) // 8) * 8)       # edge_attr cols + mask
    epack = jnp.zeros((e_pad, EPK), f32)                # zeros => padded edges masked
    if edges_in_d:
        epack = epack.at[:n_edges, :edges_in_d].set(edge_attr.astype(f32))
    epack = epack.at[:n_edges, edges_in_d].set(edge_mask[:, 0].astype(f32))

    row_i = row.astype(i32)
    col_i = col.astype(i32)
    rowS = jnp.zeros((1, e_pad), i32).at[0, :n_edges].set(row_i)   # scatter layout
    gidx = jnp.zeros((e_pad, 2), i32)                              # gather layout
    gidx = gidx.at[:n_edges, 0].set(row_i)
    gidx = gidx.at[:n_edges, 1].set(col_i)

    # ---- resident weights (bf16, zero-padded to 128x128) --------------------
    w1s = pad2(params["w1s"], LANE, LANE, bf16)
    w1t = pad2(params["w1t"], LANE, LANE, bf16)
    w2 = pad2(params["w2"], LANE, LANE, bf16)
    wn1x = pad2(params["wn1x"], LANE, LANE, bf16)
    wn1a = pad2(params["wn1a"], LANE, LANE, bf16)
    wn2 = pad2(params["wn2"], LANE, LANE, bf16)

    # ---- packed biases / attention row / W1e rows (one resident block) ------
    #   row 0: b1   row 1: b2   row 2: bn1   row 3: bn2   row 4: wa
    #   rows 5..5+edges_in_d-1: rows of W1e (edge_attr part of first edge layer)
    pack_rows = max(8, ((5 + edges_in_d + 7) // 8) * 8)
    pack = jnp.zeros((pack_rows, LANE), f32)
    pack = pack.at[0, :hidden_nf].set(params["b1"][0])
    pack = pack.at[1, :hidden_nf].set(params["b2"][0])
    pack = pack.at[2, :hidden_nf].set(params["bn1"][0])
    pack = pack.at[3, :out_nf].set(params["bn2"][0])
    pack = pack.at[4, :hidden_nf].set(params["wa"][:, 0])
    if edges_in_d:
        pack = pack.at[5:5 + edges_in_d, :hidden_nf].set(params["w1e"].astype(f32))

    # SMEM scalars: [1/normalization_factor, attention bias ba]
    scal = jnp.array([[1.0 / normalization_factor, 0.0]], f32)
    scal = scal.at[0, 1].set(params["ba"][0, 0].astype(f32))

    def kernel(scal_ref, epack_ref, rows_ref, gidx_ref, h_ref, nmask_ref,
               w1s_ref, w1t_ref, w2_ref, wn1x_ref, wn1a_ref, wn2_ref, pack_ref,
               mij_out_ref, h_out_ref,
               agg_ref, us_ref, ut_ref):
        e = pl.program_id(0)
        n_e = pl.num_programs(0)
        te = mij_out_ref.shape[0]
        npd = agg_ref.shape[0]

        pack_v = pack_ref[...]
        b1, b2 = pack_v[0:1, :], pack_v[1:2, :]
        bn1, bn2 = pack_v[2:3, :], pack_v[3:4, :]
        wa = pack_v[4:5, :]

        # -- once: zero the aggregate; pre-transform node features through the
        #    source/target halves of the first edge-MLP layer (b1 folded in).
        @pl.when(e == 0)
        def _():
            agg_ref[...] = jnp.zeros_like(agg_ref)
            h_bf = h_ref[...].astype(jnp.bfloat16)
            us_ref[...] = (jnp.dot(h_bf, w1s_ref[...],
                                   preferred_element_type=jnp.float32)
                           + b1).astype(jnp.bfloat16)
            ut_ref[...] = jnp.dot(h_bf, w1t_ref[...],
                                  preferred_element_type=jnp.float32
                                  ).astype(jnp.bfloat16)

        # -- in-kernel gather of u_s[row] / u_t[col] via exact one-hot matmuls
        gidx_v = gidx_ref[...]
        iota_g = jax.lax.broadcasted_iota(jnp.int32, (te, npd), 1)
        oh_row = (iota_g == gidx_v[:, 0:1]).astype(jnp.bfloat16)     # [TE, Np]
        oh_col = (iota_g == gidx_v[:, 1:2]).astype(jnp.bfloat16)
        pre1 = (jnp.dot(oh_row, us_ref[...], preferred_element_type=jnp.float32)
                + jnp.dot(oh_col, ut_ref[...], preferred_element_type=jnp.float32))

        # edge_attr contribution: tiny K handled on the VPU (broadcast mul-add)
        ep = epack_ref[...]
        for k in range(edges_in_d):                       # static, small
            pre1 = pre1 + ep[:, k:k + 1] * pack_v[5 + k:6 + k, :]

        # -- edge MLP tail: SiLU -> Linear -> SiLU (bf16 MXU, f32 accumulate)
        hmid = _silu(pre1).astype(jnp.bfloat16)
        mij = _silu(jnp.dot(hmid, w2_ref[...],
                            preferred_element_type=jnp.float32) + b2)
        mij_out_ref[...] = mij.astype(jnp.bfloat16)       # lane-dense bf16 store

        # -- attention gate on VPU/XLU (no width-1 MXU matmul)
        ba = scal_ref[0, 1]
        att = jax.nn.sigmoid(jnp.sum(mij * wa, axis=-1, keepdims=True) + ba)
        emask = ep[:, edges_in_d:edges_in_d + 1]
        edge_feat = mij * att * emask                     # f32 [TE, LANE]

        # -- segment-sum for this tile: exact one-hot scatter with hi/lo bf16
        #    split of edge_feat (two bf16 MXU passes, f32 accumulation).
        rows_v = rows_ref[...]                            # [1, TE] int32
        iota_s = jax.lax.broadcasted_iota(jnp.int32, (npd, te), 0)
        oh_s = (iota_s == rows_v).astype(jnp.bfloat16)    # [Np, TE]
        ef_hi = edge_feat.astype(jnp.bfloat16)
        ef_lo = (edge_feat - ef_hi.astype(jnp.float32)).astype(jnp.bfloat16)
        agg_ref[...] += (
            jnp.dot(oh_s, ef_hi, preferred_element_type=jnp.float32)
            + jnp.dot(oh_s, ef_lo, preferred_element_type=jnp.float32))

        # -- node MLP + residual + node mask, once after the last edge tile
        @pl.when(e == n_e - 1)
        def _():
            inv = scal_ref[0, 0]
            hloc = h_ref[...]
            agg_bf = (agg_ref[...] * inv).astype(jnp.bfloat16)
            h_bf = hloc.astype(jnp.bfloat16)
            n1 = _silu(
                jnp.dot(h_bf, wn1x_ref[...], preferred_element_type=jnp.float32)
                + jnp.dot(agg_bf, wn1a_ref[...], preferred_element_type=jnp.float32)
                + bn1).astype(jnp.bfloat16)
            out = hloc + jnp.dot(n1, wn2_ref[...],
                                 preferred_element_type=jnp.float32) + bn2
            h_out_ref[...] = out * nmask_ref[...]

    const = lambda shape: pl.BlockSpec(shape, lambda e: (0, 0))
    in_specs = [
        pl.BlockSpec(memory_space=pltpu.MemorySpace.SMEM),   # [1/norm, ba]
        pl.BlockSpec((edge_tile, EPK), lambda e: (e, 0)),    # edge_attr+mask pack
        pl.BlockSpec((1, edge_tile), lambda e: (0, e)),      # row ids (scatter layout)
        pl.BlockSpec((edge_tile, 2), lambda e: (e, 0)),      # row/col ids (gather layout)
        const((n_pad, LANE)),                                # h (resident)
        const((n_pad, 1)),                                   # node mask
        const((LANE, LANE)), const((LANE, LANE)),            # w1s, w1t
        const((LANE, LANE)),                                 # w2
        const((LANE, LANE)), const((LANE, LANE)), const((LANE, LANE)),  # node MLP
        const((pack_rows, LANE)),                            # bias / att / w1e pack
    ]
    out_specs = (
        pl.BlockSpec((edge_tile, LANE), lambda e: (e, 0)),   # mij (bf16, lane-dense)
        pl.BlockSpec((n_pad, LANE), lambda e: (0, 0)),       # h_out (resident)
    )

    mij_p, h_out_p = pl.pallas_call(
        kernel,
        grid=(n_tiles,),
        in_specs=in_specs,
        out_specs=out_specs,
        out_shape=(jax.ShapeDtypeStruct((e_pad, LANE), bf16),
                   jax.ShapeDtypeStruct((n_pad, LANE), f32)),
        scratch_shapes=[pltpu.VMEM((n_pad, LANE), f32),      # agg accumulator
                        pltpu.VMEM((n_pad, LANE), bf16),     # u_s = h@W1s + b1
                        pltpu.VMEM((n_pad, LANE), bf16)],    # u_t = h@W1t
        compiler_params=pltpu.CompilerParams(
            dimension_semantics=("arbitrary",),
            vmem_limit_bytes=48 * 1024 * 1024),
    )(scal, epack, rowS, gidx, h_p, nmask,
      w1s, w1t, w2, wn1x, wn1a, wn2, pack)

    return (h_out_p[:n_nodes, :out_nf],
            mij_p[:n_edges, :hidden_nf].astype(f32))


# ------------------------- pure-JAX f32 reference ---------------------------
def gcl_reference(h, row, col, edge_attr, edge_mask, node_mask, params,
                  normalization_factor):
    src, tgt = h[row], h[col]
    w1 = jnp.concatenate([params["w1s"], params["w1t"], params["w1e"]], axis=0)
    edge_in = jnp.concatenate([src, tgt, edge_attr], axis=1)
    hmid = _silu(edge_in @ w1 + params["b1"])
    mij = _silu(hmid @ params["w2"] + params["b2"])
    att = jax.nn.sigmoid(mij @ params["wa"] + params["ba"])
    edge_feat = mij * att * edge_mask
    agg = jnp.zeros((h.shape[0], mij.shape[1]), jnp.float32).at[row].add(edge_feat)
    agg = agg / normalization_factor                 # aggregation_method == 'sum'
    wn1 = jnp.concatenate([params["wn1x"], params["wn1a"]], axis=0)
    node_in = jnp.concatenate([h, agg], axis=1)
    n1 = _silu(node_in @ wn1 + params["bn1"])
    out = h + (n1 @ params["wn2"] + params["bn2"])
    return out * node_mask, mij


if __name__ == "__main__":
    # Small GCL config: input_nf == output_nf (residual), SiLU activation,
    # attention=True, normalization=None, aggregation='sum'.
    # E chosen so the grid has 3 edge tiles (exercises the multi-tile path).
    N, E = 50, 1200
    IN_NF = OUT_NF = 32
    HIDDEN_NF = 32
    EDGES_IN_D = 2
    NORM_FACTOR = 100.0

    key = jax.random.PRNGKey(0)
    ks = jax.random.split(key, 20)

    h = jax.random.normal(ks[0], (N, IN_NF), jnp.float32)
    row = jax.random.randint(ks[1], (E,), 0, N, jnp.int32)
    col = jax.random.randint(ks[2], (E,), 0, N, jnp.int32)
    edge_attr = jax.random.normal(ks[3], (E, EDGES_IN_D), jnp.float32)
    edge_mask = jax.random.bernoulli(ks[4], 0.8, (E, 1)).astype(jnp.float32)
    node_mask = jax.random.bernoulli(ks[5], 0.9, (N, 1)).astype(jnp.float32)

    def init(k, shape, scale=0.1):
        return scale * jax.random.normal(k, shape, jnp.float32)

    params = {
        # edge_mlp: Linear(2*IN_NF+EDGES_IN_D -> H), SiLU, Linear(H -> H), SiLU
        "w1s": init(ks[6], (IN_NF, HIDDEN_NF)),
        "w1t": init(ks[7], (IN_NF, HIDDEN_NF)),
        "w1e": init(ks[8], (EDGES_IN_D, HIDDEN_NF)),
        "b1": init(ks[9], (1, HIDDEN_NF)),
        "w2": init(ks[10], (HIDDEN_NF, HIDDEN_NF)),
        "b2": init(ks[11], (1, HIDDEN_NF)),
        # att_mlp: Linear(H -> 1), Sigmoid
        "wa": init(ks[12], (HIDDEN_NF, 1)),
        "ba": init(ks[13], (1, 1)),
        # node_mlp: Linear(H+IN_NF -> H), SiLU, Linear(H -> OUT_NF)
        "wn1x": init(ks[14], (IN_NF, HIDDEN_NF)),
        "wn1a": init(ks[15], (HIDDEN_NF, HIDDEN_NF)),
        "bn1": init(ks[16], (1, HIDDEN_NF)),
        "wn2": init(ks[17], (HIDDEN_NF, OUT_NF)),
        "bn2": init(ks[18], (1, OUT_NF)),
    }

    h_new, mij = gcl_forward(h, row, col, edge_attr, edge_mask, node_mask,
                             params, NORM_FACTOR, edge_tile=512)
    jax.block_until_ready((h_new, mij))

    h_ref, mij_ref = gcl_reference(h, row, col, edge_attr, edge_mask,
                                   node_mask, params, NORM_FACTOR)
    # Kernel streams / multiplies in bf16 (f32 accumulation); tolerance reflects
    # bf16 input rounding vs. the pure-f32 reference.
    assert jnp.allclose(h_new, h_ref, atol=3e-2, rtol=3e-2), "h mismatch"
    assert jnp.allclose(mij, mij_ref, atol=3e-2, rtol=3e-2), "mij mismatch"

    print("KERNEL_OK")
</pallas_src>

<mosaic_0001>
module attributes {stable_mosaic.version = 11 : i64} {
  func.func @kernel(%arg0: i32, %arg1: memref<1x2xf32, #tpu.memory_space<smem>>, %arg2: memref<512x8xf32, #tpu.memory_space<vmem>>, %arg3: memref<1x512xi32, #tpu.memory_space<vmem>>, %arg4: memref<512x2xi32, #tpu.memory_space<vmem>>, %arg5: memref<64x128xf32, #tpu.memory_space<vmem>>, %arg6: memref<64x1xf32, #tpu.memory_space<vmem>>, %arg7: memref<128x128xbf16, #tpu.memory_space<vmem>>, %arg8: memref<128x128xbf16, #tpu.memory_space<vmem>>, %arg9: memref<128x128xbf16, #tpu.memory_space<vmem>>, %arg10: memref<128x128xbf16, #tpu.memory_space<vmem>>, %arg11: memref<128x128xbf16, #tpu.memory_space<vmem>>, %arg12: memref<128x128xbf16, #tpu.memory_space<vmem>>, %arg13: memref<8x128xf32, #tpu.memory_space<vmem>>, %arg14: memref<512x128xbf16, #tpu.memory_space<vmem>>, %arg15: memref<64x128xf32, #tpu.memory_space<vmem>>, %arg16: memref<64x128xf32, #tpu.memory_space<vmem>>, %arg17: memref<64x128xbf16, #tpu.memory_space<vmem>>, %arg18: memref<64x128xbf16, #tpu.memory_space<vmem>>) attributes {dimension_semantics = [#tpu.dimension_semantics<arbitrary>], iteration_bounds = array<i64: 3>, scalar_prefetch = 0 : i64, scratch_operands = 3 : i64, tpu.core_type = #tpu.core_type<tc>, window_params = [{transform_indices = @transform_0, window_bounds = array<i64: 1, 2>}, {transform_indices = @transform_1, window_bounds = array<i64: 512, 8>}, {transform_indices = @transform_2, window_bounds = array<i64: 1, 512>}, {transform_indices = @transform_3, window_bounds = array<i64: 512, 2>}, {pipeline_mode = #tpu.pipeline_mode<synchronous>, transform_indices = @transform_4, window_bounds = array<i64: 64, 128>}, {pipeline_mode = #tpu.pipeline_mode<synchronous>, transform_indices = @transform_5, window_bounds = array<i64: 64, 1>}, {pipeline_mode = #tpu.pipeline_mode<synchronous>, transform_indices = @transform_6, window_bounds = array<i64: 128, 128>}, {pipeline_mode = #tpu.pipeline_mode<synchronous>, transform_indices = @transform_7, window_bounds = array<i64: 128, 128>}, {pipeline_mode = #tpu.pipeline_mode<synchronous>, transform_indices = @transform_8, window_bounds = array<i64: 128, 128>}, {pipeline_mode = #tpu.pipeline_mode<synchronous>, transform_indices = @transform_9, window_bounds = array<i64: 128, 128>}, {pipeline_mode = #tpu.pipeline_mode<synchronous>, transform_indices = @transform_10, window_bounds = array<i64: 128, 128>}, {pipeline_mode = #tpu.pipeline_mode<synchronous>, transform_indices = @transform_11, window_bounds = array<i64: 128, 128>}, {pipeline_mode = #tpu.pipeline_mode<synchronous>, transform_indices = @transform_12, window_bounds = array<i64: 8, 128>}, {transform_indices = @transform_13, window_bounds = array<i64: 512, 128>}, {pipeline_mode = #tpu.pipeline_mode<synchronous>, transform_indices = @transform_14, window_bounds = array<i64: 64, 128>}]} {
    %c0 = arith.constant 0 : index
    %c0_0 = arith.constant 0 : index
    %0 = vector.load %arg13[%c0, %c0_0] : memref<8x128xf32, #tpu.memory_space<vmem>>, vector<8x128xf32>
    %1 = vector.extract_strided_slice %0 {offsets = [0, 0], sizes = [1, 128], strides = [1, 1]} : vector<8x128xf32> to vector<1x128xf32>
    %2 = vector.extract_strided_slice %0 {offsets = [1, 0], sizes = [1, 128], strides = [1, 1]} : vector<8x128xf32> to vector<1x128xf32>
    %3 = vector.extract_strided_slice %0 {offsets = [2, 0], sizes = [1, 128], strides = [1, 1]} : vector<8x128xf32> to vector<1x128xf32>
    %4 = vector.extract_strided_slice %0 {offsets = [3, 0], sizes = [1, 128], strides = [1, 1]} : vector<8x128xf32> to vector<1x128xf32>
    %5 = vector.extract_strided_slice %0 {offsets = [4, 0], sizes = [1, 128], strides = [1, 1]} : vector<8x128xf32> to vector<1x128xf32>
    %c0_i32 = arith.constant 0 : i32
    %6 = arith.cmpi eq, %arg0, %c0_i32 : i32
    %7 = arith.extui %6 : i1 to i32
    %c0_i32_1 = arith.constant 0 : i32
    %8 = arith.cmpi ne, %7, %c0_i32_1 : i32
    scf.if %8 {
      %cst_30 = arith.constant 0.000000e+00 : f32
      %97 = vector.broadcast %cst_30 : f32 to vector<64x128xf32>
      %c0_31 = arith.constant 0 : index
      %c0_32 = arith.constant 0 : index
      %98 = vector.load %arg16[%c0_31, %c0_32] : memref<64x128xf32, #tpu.memory_space<vmem>>, vector<64x128xf32>
      tpu.vector_store %arg16[%c0_31, %c0_32], %97 {strides = array<i32>} : memref<64x128xf32, #tpu.memory_space<vmem>>, vector<64x128xf32>,
      %c0_33 = arith.constant 0 : index
      %c0_34 = arith.constant 0 : index
      %99 = vector.load %arg5[%c0_33, %c0_34] : memref<64x128xf32, #tpu.memory_space<vmem>>, vector<64x128xf32>
      %100 = arith.truncf %99 : vector<64x128xf32> to vector<64x128xbf16>
      %c0_35 = arith.constant 0 : index
      %c0_36 = arith.constant 0 : index
      %101 = vector.load %arg7[%c0_35, %c0_36] : memref<128x128xbf16, #tpu.memory_space<vmem>>, vector<128x128xbf16>
      %cst_37 = arith.constant dense<0.000000e+00> : vector<64x128xf32>
      %102 = tpu.matmul %100, %101, %cst_37 {dimension_numbers = #tpu.dot_dimension_numbers<[1], [0], [0], [1], [0, 0, 1, 1], [], []>} : vector<64x128xbf16>, vector<128x128xbf16>, vector<64x128xf32> -> vector<64x128xf32>
      %103 = vector.broadcast %1 : vector<1x128xf32> to vector<64x128xf32>
      %104 = arith.addf %102, %103 : vector<64x128xf32>
      %105 = arith.truncf %104 : vector<64x128xf32> to vector<64x128xbf16>
      %c0_38 = arith.constant 0 : index
      %c0_39 = arith.constant 0 : index
      %106 = vector.load %arg17[%c0_38, %c0_39] : memref<64x128xbf16, #tpu.memory_space<vmem>>, vector<64x128xbf16>
      tpu.vector_store %arg17[%c0_38, %c0_39], %105 {strides = array<i32>} : memref<64x128xbf16, #tpu.memory_space<vmem>>, vector<64x128xbf16>,
      %c0_40 = arith.constant 0 : index
      %c0_41 = arith.constant 0 : index
      %107 = vector.load %arg8[%c0_40, %c0_41] : memref<128x128xbf16, #tpu.memory_space<vmem>>, vector<128x128xbf16>
      %cst_42 = arith.constant dense<0.000000e+00> : vector<64x128xf32>
      %108 = tpu.matmul %100, %107, %cst_42 {dimension_numbers = #tpu.dot_dimension_numbers<[1], [0], [0], [1], [0, 0, 1, 1], [], []>} : vector<64x128xbf16>, vector<128x128xbf16>, vector<64x128xf32> -> vector<64x128xf32>
      %109 = arith.truncf %108 : vector<64x128xf32> to vector<64x128xbf16>
      %c0_43 = arith.constant 0 : index
      %c0_44 = arith.constant 0 : index
      %110 = vector.load %arg18[%c0_43, %c0_44] : memref<64x128xbf16, #tpu.memory_space<vmem>>, vector<64x128xbf16>
      tpu.vector_store %arg18[%c0_43, %c0_44], %109 {strides = array<i32>} : memref<64x128xbf16, #tpu.memory_space<vmem>>, vector<64x128xbf16>,
    } else {
    }
    %c0_2 = arith.constant 0 : index
    %c0_3 = arith.constant 0 : index
    %9 = vector.load %arg4[%c0_2, %c0_3] : memref<512x2xi32, #tpu.memory_space<vmem>>, vector<512x2xi32>
    %10 = tpu.iota {dimensions = array<i32: 1>} : vector<512x64xi32>
    %11 = vector.extract_strided_slice %9 {offsets = [0, 0], sizes = [512, 1], strides = [1, 1]} : vector<512x2xi32> to vector<512x1xi32>
    %12 = vector.broadcast %11 : vector<512x1xi32> to vector<512x64xi32>
    %13 = arith.cmpi eq, %10, %12 : vector<512x64xi32>
    %14 = arith.extui %13 : vector<512x64xi1> to vector<512x64xi32>
    %15 = arith.sitofp %14 : vector<512x64xi32> to vector<512x64xf32>
    %16 = arith.truncf %15 : vector<512x64xf32> to vector<512x64xbf16>
    %17 = vector.extract_strided_slice %9 {offsets = [0, 1], sizes = [512, 1], strides = [1, 1]} : vector<512x2xi32> to vector<512x1xi32>
    %18 = vector.broadcast %17 : vector<512x1xi32> to vector<512x64xi32>
    %19 = arith.cmpi eq, %10, %18 : vector<512x64xi32>
    %20 = arith.extui %19 : vector<512x64xi1> to vector<512x64xi32>
    %21 = arith.sitofp %20 : vector<512x64xi32> to vector<512x64xf32>
    %22 = arith.truncf %21 : vector<512x64xf32> to vector<512x64xbf16>
    %c0_4 = arith.constant 0 : index
    %c0_5 = arith.constant 0 : index
    %23 = vector.load %arg17[%c0_4, %c0_5] : memref<64x128xbf16, #tpu.memory_space<vmem>>, vector<64x128xbf16>
    %cst = arith.constant dense<0.000000e+00> : vector<512x128xf32>
    %24 = tpu.matmul %16, %23, %cst {dimension_numbers = #tpu.dot_dimension_numbers<[1], [0], [0], [1], [0, 0, 1, 1], [], []>} : vector<512x64xbf16>, vector<64x128xbf16>, vector<512x128xf32> -> vector<512x128xf32>
    %c0_6 = arith.constant 0 : index
    %c0_7 = arith.constant 0 : index
    %25 = vector.load %arg18[%c0_6, %c0_7] : memref<64x128xbf16, #tpu.memory_space<vmem>>, vector<64x128xbf16>
    %cst_8 = arith.constant dense<0.000000e+00> : vector<512x128xf32>
    %26 = tpu.matmul %22, %25, %cst_8 {dimension_numbers = #tpu.dot_dimension_numbers<[1], [0], [0], [1], [0, 0, 1, 1], [], []>} : vector<512x64xbf16>, vector<64x128xbf16>, vector<512x128xf32> -> vector<512x128xf32>
    %27 = arith.addf %24, %26 : vector<512x128xf32>
    %c0_9 = arith.constant 0 : index
    %c0_10 = arith.constant 0 : index
    %28 = vector.load %arg2[%c0_9, %c0_10] : memref<512x8xf32, #tpu.memory_space<vmem>>, vector<512x8xf32>
    %29 = vector.extract_strided_slice %28 {offsets = [0, 0], sizes = [512, 1], strides = [1, 1]} : vector<512x8xf32> to vector<512x1xf32>
    %30 = vector.extract_strided_slice %0 {offsets = [5, 0], sizes = [1, 128], strides = [1, 1]} : vector<8x128xf32> to vector<1x128xf32>
    %31 = vector.broadcast %29 : vector<512x1xf32> to vector<512x128xf32>
    %32 = vector.broadcast %30 : vector<1x128xf32> to vector<512x128xf32>
    %33 = arith.mulf %31, %32 : vector<512x128xf32>
    %34 = arith.addf %27, %33 : vector<512x128xf32>
    %35 = vector.extract_strided_slice %28 {offsets = [0, 1], sizes = [512, 1], strides = [1, 1]} : vector<512x8xf32> to vector<512x1xf32>
    %36 = vector.extract_strided_slice %0 {offsets = [6, 0], sizes = [1, 128], strides = [1, 1]} : vector<8x128xf32> to vector<1x128xf32>
    %37 = vector.broadcast %35 : vector<512x1xf32> to vector<512x128xf32>
    %38 = vector.broadcast %36 : vector<1x128xf32> to vector<512x128xf32>
    %39 = arith.mulf %37, %38 : vector<512x128xf32>
    %40 = arith.addf %34, %39 : vector<512x128xf32>
    %41 = arith.negf %40 : vector<512x128xf32>
    %42 = math.exp %41 : vector<512x128xf32>
    %cst_11 = arith.constant 1.000000e+00 : f32
    %43 = vector.broadcast %cst_11 : f32 to vector<512x128xf32>
    %44 = arith.addf %43, %42 : vector<512x128xf32>
    %45 = arith.divf %43, %44 : vector<512x128xf32>
    %46 = arith.mulf %40, %45 : vector<512x128xf32>
    %47 = arith.truncf %46 : vector<512x128xf32> to vector<512x128xbf16>
    %c0_12 = arith.constant 0 : index
    %c0_13 = arith.constant 0 : index
    %48 = vector.load %arg9[%c0_12, %c0_13] : memref<128x128xbf16, #tpu.memory_space<vmem>>, vector<128x128xbf16>
    %cst_14 = arith.constant dense<0.000000e+00> : vector<512x128xf32>
    %49 = tpu.matmul %47, %48, %cst_14 {dimension_numbers = #tpu.dot_dimension_numbers<[1], [0], [0], [1], [0, 0, 1, 1], [], []>} : vector<512x128xbf16>, vector<128x128xbf16>, vector<512x128xf32> -> vector<512x128xf32>
    %50 = vector.broadcast %2 : vector<1x128xf32> to vector<512x128xf32>
    %51 = arith.addf %49, %50 : vector<512x128xf32>
    %52 = arith.negf %51 : vector<512x128xf32>
    %53 = math.exp %52 : vector<512x128xf32>
    %cst_15 = arith.constant 1.000000e+00 : f32
    %54 = vector.broadcast %cst_15 : f32 to vector<512x128xf32>
    %55 = arith.addf %54, %53 : vector<512x128xf32>
    %56 = arith.divf %54, %55 : vector<512x128xf32>
    %57 = arith.mulf %51, %56 : vector<512x128xf32>
    %58 = arith.truncf %57 : vector<512x128xf32> to vector<512x128xbf16>
    %c0_16 = arith.constant 0 : index
    %c0_17 = arith.constant 0 : index
    %59 = vector.load %arg14[%c0_16, %c0_17] : memref<512x128xbf16, #tpu.memory_space<vmem>>, vector<512x128xbf16>
    tpu.vector_store %arg14[%c0_16, %c0_17], %58 {strides = array<i32>} : memref<512x128xbf16, #tpu.memory_space<vmem>>, vector<512x128xbf16>,
    %c0_18 = arith.constant 0 : index
    %c1 = arith.constant 1 : index
    %60 = memref.load %arg1[%c0_18, %c1] : memref<1x2xf32, #tpu.memory_space<smem>>
    %61 = vector.broadcast %5 : vector<1x128xf32> to vector<512x128xf32>
    %62 = arith.mulf %57, %61 : vector<512x128xf32>
    %cst_19 = arith.constant dense<0.000000e+00> : vector<512xf32>
    %63 = vector.multi_reduction <add>, %62, %cst_19 [1] : vector<512x128xf32> to vector<512xf32>
    %64 = vector.shape_cast %63 : vector<512xf32> to vector<512x1xf32>
    %65 = vector.broadcast %60 : f32 to vector<512x1xf32>
    %66 = arith.addf %64, %65 : vector<512x1xf32>
    %67 = arith.negf %66 : vector<512x1xf32>
    %68 = math.exp %67 : vector<512x1xf32>
    %cst_20 = arith.constant 1.000000e+00 : f32
    %69 = vector.broadcast %cst_20 : f32 to vector<512x1xf32>
    %70 = arith.addf %69, %68 : vector<512x1xf32>
    %71 = arith.divf %69, %70 : vector<512x1xf32>
    %72 = vector.extract_strided_slice %28 {offsets = [0, 2], sizes = [512, 1], strides = [1, 1]} : vector<512x8xf32> to vector<512x1xf32>
    %73 = vector.broadcast %71 : vector<512x1xf32> to vector<512x128xf32>
    %74 = arith.mulf %57, %73 : vector<512x128xf32>
    %75 = vector.broadcast %72 : vector<512x1xf32> to vector<512x128xf32>
    %76 = arith.mulf %74, %75 : vector<512x128xf32>
    %c0_21 = arith.constant 0 : index
    %c0_22 = arith.constant 0 : index
    %77 = vector.load %arg3[%c0_21, %c0_22] : memref<1x512xi32, #tpu.memory_space<vmem>>, vector<1x512xi32>
    %78 = tpu.iota {dimensions = array<i32: 0>} : vector<64x512xi32>
    %79 = vector.broadcast %77 : vector<1x512xi32> to vector<64x512xi32>
    %80 = arith.cmpi eq, %78, %79 : vector<64x512xi32>
    %81 = arith.extui %80 : vector<64x512xi1> to vector<64x512xi32>
    %82 = arith.sitofp %81 : vector<64x512xi32> to vector<64x512xf32>
    %83 = arith.truncf %82 : vector<64x512xf32> to vector<64x512xbf16>
    %84 = arith.truncf %76 : vector<512x128xf32> to vector<512x128xbf16>
    %85 = arith.extf %84 : vector<512x128xbf16> to vector<512x128xf32>
    %86 = arith.subf %76, %85 : vector<512x128xf32>
    %87 = arith.truncf %86 : vector<512x128xf32> to vector<512x128xbf16>
    %c0_23 = arith.constant 0 : index
    %c0_24 = arith.constant 0 : index
    %88 = vector.load %arg16[%c0_23, %c0_24] : memref<64x128xf32, #tpu.memory_space<vmem>>, vector<64x128xf32>
    %cst_25 = arith.constant dense<0.000000e+00> : vector<64x128xf32>
    %89 = tpu.matmul %83, %84, %cst_25 {dimension_numbers = #tpu.dot_dimension_numbers<[1], [0], [0], [1], [0, 0, 1, 1], [], []>} : vector<64x512xbf16>, vector<512x128xbf16>, vector<64x128xf32> -> vector<64x128xf32>
    %cst_26 = arith.constant dense<0.000000e+00> : vector<64x128xf32>
    %90 = tpu.matmul %83, %87, %cst_26 {dimension_numbers = #tpu.dot_dimension_numbers<[1], [0], [0], [1], [0, 0, 1, 1], [], []>} : vector<64x512xbf16>, vector<512x128xbf16>, vector<64x128xf32> -> vector<64x128xf32>
    %91 = arith.addf %89, %90 : vector<64x128xf32>
    %92 = arith.addf %88, %91 : vector<64x128xf32>
    %c0_27 = arith.constant 0 : index
    %c0_28 = arith.constant 0 : index
    %93 = vector.load %arg16[%c0_27, %c0_28] : memref<64x128xf32, #tpu.memory_space<vmem>>, vector<64x128xf32>
    tpu.vector_store %arg16[%c0_27, %c0_28], %92 {strides = array<i32>} : memref<64x128xf32, #tpu.memory_space<vmem>>, vector<64x128xf32>,
    %c2_i32 = arith.constant 2 : i32
    %94 = arith.cmpi eq, %arg0, %c2_i32 : i32
    %95 = arith.extui %94 : i1 to i32
    %c0_i32_29 = arith.constant 0 : i32
    %96 = arith.cmpi ne, %95, %c0_i32_29 : i32
    scf.if %96 {
      %c0_30 = arith.constant 0 : index
      %c0_31 = arith.constant 0 : index
      %97 = memref.load %arg1[%c0_30, %c0_31] : memref<1x2xf32, #tpu.memory_space<smem>>
      %c0_32 = arith.constant 0 : index
      %c0_33 = arith.constant 0 : index
      %98 = vector.load %arg5[%c0_32, %c0_33] : memref<64x128xf32, #tpu.memory_space<vmem>>, vector<64x128xf32>
      %c0_34 = arith.constant 0 : index
      %c0_35 = arith.constant 0 : index
      %99 = vector.load %arg16[%c0_34, %c0_35] : memref<64x128xf32, #tpu.memory_space<vmem>>, vector<64x128xf32>
      %100 = vector.broadcast %97 : f32 to vector<64x128xf32>
      %101 = arith.mulf %99, %100 : vector<64x128xf32>
      %102 = arith.truncf %101 : vector<64x128xf32> to vector<64x128xbf16>
      %103 = arith.truncf %98 : vector<64x128xf32> to vector<64x128xbf16>
      %c0_36 = arith.constant 0 : index
      %c0_37 = arith.constant 0 : index
      %104 = vector.load %arg10[%c0_36, %c0_37] : memref<128x128xbf16, #tpu.memory_space<vmem>>, vector<128x128xbf16>
      %cst_38 = arith.constant dense<0.000000e+00> : vector<64x128xf32>
      %105 = tpu.matmul %103, %104, %cst_38 {dimension_numbers = #tpu.dot_dimension_numbers<[1], [0], [0], [1], [0, 0, 1, 1], [], []>} : vector<64x128xbf16>, vector<128x128xbf16>, vector<64x128xf32> -> vector<64x128xf32>
      %c0_39 = arith.constant 0 : index
      %c0_40 = arith.constant 0 : index
      %106 = vector.load %arg11[%c0_39, %c0_40] : memref<128x128xbf16, #tpu.memory_space<vmem>>, vector<128x128xbf16>
      %cst_41 = arith.constant dense<0.000000e+00> : vector<64x128xf32>
      %107 = tpu.matmul %102, %106, %cst_41 {dimension_numbers = #tpu.dot_dimension_numbers<[1], [0], [0], [1], [0, 0, 1, 1], [], []>} : vector<64x128xbf16>, vector<128x128xbf16>, vector<64x128xf32> -> vector<64x128xf32>
      %108 = arith.addf %105, %107 : vector<64x128xf32>
      %109 = vector.broadcast %3 : vector<1x128xf32> to vector<64x128xf32>
      %110 = arith.addf %108, %109 : vector<64x128xf32>
      %111 = arith.negf %110 : vector<64x128xf32>
      %112 = math.exp %111 : vector<64x128xf32>
      %cst_42 = arith.constant 1.000000e+00 : f32
      %113 = vector.broadcast %cst_42 : f32 to vector<64x128xf32>
      %114 = arith.addf %113, %112 : vector<64x128xf32>
      %115 = arith.divf %113, %114 : vector<64x128xf32>
      %116 = arith.mulf %110, %115 : vector<64x128xf32>
      %117 = arith.truncf %116 : vector<64x128xf32> to vector<64x128xbf16>
      %c0_43 = arith.constant 0 : index
      %c0_44 = arith.constant 0 : index
      %118 = vector.load %arg12[%c0_43, %c0_44] : memref<128x128xbf16, #tpu.memory_space<vmem>>, vector<128x128xbf16>
      %cst_45 = arith.constant dense<0.000000e+00> : vector<64x128xf32>
      %119 = tpu.matmul %117, %118, %cst_45 {dimension_numbers = #tpu.dot_dimension_numbers<[1], [0], [0], [1], [0, 0, 1, 1], [], []>} : vector<64x128xbf16>, vector<128x128xbf16>, vector<64x128xf32> -> vector<64x128xf32>
      %120 = arith.addf %98, %119 : vector<64x128xf32>
      %121 = vector.broadcast %4 : vector<1x128xf32> to vector<64x128xf32>
      %122 = arith.addf %120, %121 : vector<64x128xf32>
      %c0_46 = arith.constant 0 : index
      %c0_47 = arith.constant 0 : index
      %123 = vector.load %arg6[%c0_46, %c0_47] : memref<64x1xf32, #tpu.memory_space<vmem>>, vector<64x1xf32>
      %124 = vector.broadcast %123 : vector<64x1xf32> to vector<64x128xf32>
      %125 = arith.mulf %122, %124 : vector<64x128xf32>
      %c0_48 = arith.constant 0 : index
      %c0_49 = arith.constant 0 : index
      %126 = vector.load %arg15[%c0_48, %c0_49] : memref<64x128xf32, #tpu.memory_space<vmem>>, vector<64x128xf32>
      tpu.vector_store %arg15[%c0_48, %c0_49], %125 {strides = array<i32>} : memref<64x128xf32, #tpu.memory_space<vmem>>, vector<64x128xf32>,
    } else {
    }
    return
  }
  func.func @transform_0(%arg0: i32) -> (i32, i32) {
    %c0_i32 = arith.constant 0 : i32
    %c0_i32_0 = arith.constant 0 : i32
    %c0_i32_1 = arith.constant 0 : i32
    return %c0_i32, %c0_i32_0 : i32, i32
  }
  func.func @transform_1(%arg0: i32) -> (i32, i32) {
    %c0_i32 = arith.constant 0 : i32
    %c0_i32_0 = arith.constant 0 : i32
    return %arg0, %c0_i32 : i32, i32
  }
  func.func @transform_2(%arg0: i32) -> (i32, i32) {
    %c0_i32 = arith.constant 0 : i32
    %c0_i32_0 = arith.constant 0 : i32
    return %c0_i32, %arg0 : i32, i32
  }
  func.func @transform_3(%arg0: i32) -> (i32, i32) {
    %c0_i32 = arith.constant 0 : i32
    %c0_i32_0 = arith.constant 0 : i32
    return %arg0, %c0_i32 : i32, i32
  }
  func.func @transform_4(%arg0: i32) -> (i32, i32) {
    %c0_i32 = arith.constant 0 : i32
    %c0_i32_0 = arith.constant 0 : i32
    %c0_i32_1 = arith.constant 0 : i32
    return %c0_i32, %c0_i32_0 : i32, i32
  }
  func.func @transform_5(%arg0: i32) -> (i32, i32) {
    %c0_i32 = arith.constant 0 : i32
    %c0_i32_0 = arith.constant 0 : i32
    %c0_i32_1 = arith.constant 0 : i32
    return %c0_i32, %c0_i32_0 : i32, i32
  }
  func.func @transform_6(%arg0: i32) -> (i32, i32) {
    %c0_i32 = arith.constant 0 : i32
    %c0_i32_0 = arith.constant 0 : i32
    %c0_i32_1 = arith.constant 0 : i32
    return %c0_i32, %c0_i32_0 : i32, i32
  }
  func.func @transform_7(%arg0: i32) -> (i32, i32) {
    %c0_i32 = arith.constant 0 : i32
    %c0_i32_0 = arith.constant 0 : i32
    %c0_i32_1 = arith.constant 0 : i32
    return %c0_i32, %c0_i32_0 : i32, i32
  }
  func.func @transform_8(%arg0: i32) -> (i32, i32) {
    %c0_i32 = arith.constant 0 : i32
    %c0_i32_0 = arith.constant 0 : i32
    %c0_i32_1 = arith.constant 0 : i32
    return %c0_i32, %c0_i32_0 : i32, i32
  }
  func.func @transform_9(%arg0: i32) -> (i32, i32) {
    %c0_i32 = arith.constant 0 : i32
    %c0_i32_0 = arith.constant 0 : i32
    %c0_i32_1 = arith.constant 0 : i32
    return %c0_i32, %c0_i32_0 : i32, i32
  }
  func.func @transform_10(%arg0: i32) -> (i32, i32) {
    %c0_i32 = arith.constant 0 : i32
    %c0_i32_0 = arith.constant 0 : i32
    %c0_i32_1 = arith.constant 0 : i32
    return %c0_i32, %c0_i32_0 : i32, i32
  }
  func.func @transform_11(%arg0: i32) -> (i32, i32) {
    %c0_i32 = arith.constant 0 : i32
    %c0_i32_0 = arith.constant 0 : i32
    %c0_i32_1 = arith.constant 0 : i32
    return %c0_i32, %c0_i32_0 : i32, i32
  }
  func.func @transform_12(%arg0: i32) -> (i32, i32) {
    %c0_i32 = arith.constant 0 : i32
    %c0_i32_0 = arith.constant 0 : i32
    %c0_i32_1 = arith.constant 0 : i32
    return %c0_i32, %c0_i32_0 : i32, i32
  }
  func.func @transform_13(%arg0: i32) -> (i32, i32) {
    %c0_i32 = arith.constant 0 : i32
    %c0_i32_0 = arith.constant 0 : i32
    return %arg0, %c0_i32 : i32, i32
  }
  func.func @transform_14(%arg0: i32) -> (i32, i32) {
    %c0_i32 = arith.constant 0 : i32
    %c0_i32_0 = arith.constant 0 : i32
    %c0_i32_1 = arith.constant 0 : i32
    return %c0_i32, %c0_i32_0 : i32, i32
  }
}

</mosaic_0001>

<bundles_post_ra>
// kernel: tpu_custom_call.1
= control target key start
LH: loop header
LB: loop body
LE: loop exit
PB: predicated region body
PF: predicated region fallthrough
CT: control target
= control target key end

     0   :  { %s14065_s0 = inlined_call_operand.vmem [shape: f32[1,2], index: 0, kind: input, shape index: {}]   ;;  %s14066_s1 = inlined_call_operand.vmem [shape: f32[1536,8], index: 1, kind: input, shape index: {}]   ;;  %s14067_s2 = inlined_call_operand.vmem [shape: s32[1,1536], index: 2, kind: input, shape index: {}]   ;;  %s14068_s3 = inlined_call_operand.vmem [shape: s32[1536,2], index: 3, kind: input, shape index: {}]   ;;  %s14069_s4 = inlined_call_operand.vmem [shape: f32[64,128], index: 4, kind: input, shape index: {}]   ;;  %s14070_s5 = inlined_call_operand.vmem [shape: f32[64,1], index: 5, kind: input, shape index: {}]   ;;  %s14071_s6 = inlined_call_operand.vmem [shape: bf16[128,128], index: 6, kind: input, shape index: {}]   ;;  %s14072_s7 = inlined_call_operand.vmem [shape: bf16[128,128], index: 7, kind: input, shape index: {}]   ;;  %s14073_s8 = inlined_call_operand.vmem [shape: bf16[128,128], index: 8, kind: input, shape index: {}]   ;;  %s14074_s9 = inlined_call_operand.vmem [shape: bf16[128,128], index: 9, kind: input, shape index: {}]   ;;  %s14075_s10 = inlined_call_operand.vmem [shape: bf16[128,128], index: 10, kind: input, shape index: {}]   ;;  %s14076_s11 = inlined_call_operand.vmem [shape: bf16[128,128], index: 11, kind: input, shape index: {}]   ;;  %s14077_s12 = inlined_call_operand.vmem [shape: f32[8,128], index: 12, kind: input, shape index: {}]   ;;  %s14078_s13 = inlined_call_operand.hbm [shape: bf16[1536,128], index: 13, kind: output, shape index: {0}]   ;;  %s14079_s14 = inlined_call_operand.hbm [shape: f32[64,128], index: 14, kind: output, shape index: {1}]  }
   0x1   :  { %14192 = sst [smem:[#allocation92_spill]] %s14065_s0 }
   0x2   :  { %14193 = sst [smem:[#allocation93_spill]] %s14077_s12 }
   0x3   :  { %20 = vsyncpa [#allocation7], 0 }
   0x4   :  { %21 = vsyncpa [#allocation6], 0 }
   0x5   :  { %23 = vsyncpa [#allocation6 + $0x1], 0 }
   0x6   :  { %24 = vsyncpa [#allocation10], 0  ;;  %s10385_s29 = smov 0   ;;  %s10387_s30 = smov 0  }
   0x7   :  { %s10389_s15 = smov 0   ;;  %s10391_s16 = smov 0  }
   0x8 LB: > { %14194 = sst [smem:[#allocation14_spill]] %s10282_s29  ;;  %s10406_s17 = sadd.s32 4294967295, %s10294_s16   ;;  %s10294_s16 = sphi %s10391_s16, %s14475_s16   ;;  %s10290_s15 = sphi %s10389_s15, %s14477_s15   ;;  %s10286_s30 = sphi %s10387_s30, %s14479_s30   ;;  %s10282_s29 = sphi %s10385_s29, %s14478_s29  }
   0x9   : > { %14195 = sst [smem:[#allocation15_spill]] %s10290_s15  ;;  %s7491_s18 = sadd.s32 4294967294, %s10294_s16  }
   0xa   : > { %s10410_s19 = sadd.s32 1, %s10294_s16   ;;  %s325_s20 = sadd.s32 1, %s10290_s15 }
   0xb   : > { %14196 = sst [smem:[#allocation16_spill]] %s10410_s19  ;;  %s322_s21 = ssub.s32 %s10294_s16, %s10410_s19 }
   0xc   : > { %p335_p0 = scmp.ne.s32.totalorder %s10290_s15, %s10286_s30  ;;  %p323_p1 = scmp.eq.s32.totalorder %s322_s21, 0 }
   0xd   : > { %p14080_p2 = scmp.eq.s32.totalorder %s10406_s17, 2  ;;  %p341_p3 = scmp.ne.s32.totalorder %s10286_s30, %s10282_s29 }
   0xe   : > { %p342_p4 = scmp.eq.s32.totalorder %s7491_s18, 2  ;;  %p7492_p7 = scmp.ge.s32.totalorder %s10294_s16, 1 }
   0xf   : > { %s10421_s22 = scalar_select %p323_p1, %s10290_s15, %s325_s20  }
  0x10   : > { %p10425_p5 = por %p14080_p2, %p335_p0  ;;  %p10429_p6 = por %p342_p4, %p341_p3 }
  0x11   : > { %14197 = sst [smem:[#allocation17_spill]] %s10421_s22  ;;  %p370_p8 = scmp.lt.s32.totalorder %s10294_s16, 4 }
  0x12   : > { %s14199_s24 = scalar_select %p10429_p6, 1, 0 }
  0x13   : > { %p9165_p10 = scmp.eq.s32.totalorder %s10406_s17, 0  ;;  %p10437_p11 = pnand %p7492_p7, %p370_p8 }
  0x14   : > { %14200 = sst [smem:[#allocation18_spill]] %s14199_s24 }
  0x15   : > { %s14202_s0 = sld [smem:[#allocation92_spill]]  ;;  %p9157_p12 = pneg %p10437_p11 }
  0x17   : > { %p9158_p13 = pnand %p9165_p10, %p9157_p12 }
  0x19   : > { %p10189_p1 = pneg %p9158_p13 }
  0x1b   : > { %s383_s28 = sshll.u32 %s14202_s0, 4  ;;  %s384_s28 = int_to_ptr.vmem [resolvable:$true] %s383_s28 }
  0x1c   : > { %s10187_s18 = scalar_lea.vmem %s384_s28, 16  ;;  %p10195_p2 = scmp.lt.s32.totalorder %s384_s28, %s384_s28 }
  0x1d   : > { %p10188_p0 = scmp.ne.s32.totalorder %s384_s28, %s10187_s18  ;;  %p10196_p7 = scmp.lt.s32.totalorder %s10187_s18, %s10187_s18 }
  0x1f   : > { %p10190_p3 = pnand %p10189_p1, %p10188_p0  ;;  %p10197_p8 = por %p10196_p7, %p10195_p2 }
  0x21   : > { %p10191_p4 = pneg %p10190_p3 }
  0x23   : > { %p10198_p9 = pnand %p10197_p8, %p10191_p4 }
  0x25   : > { %10201 = shalt.err (!%p10198_p9)
}
  0x26   : > { %s10296_s20 = smov [#allocation5]   ;;  %449 = sbr.rel (%p10437_p11) target bundleno = 2466 (0x9a2), region = 72 }
  0x27   : > { %9160 = dma.vmem_to_smem (!%p9158_p13), %s384_s28, 16, %s10296_s20, [#allocation7]  }
  0x2b   : > { %10269 = dma.done.wait (%p9165_p10), [#allocation7], 16  }
  0x2c   : > { %10271 = vsyncadd (%p9165_p10), [#allocation7], 4294967280 }
  0x2d   : > { %455 = sfence }
  0x2e   : > { %s14086_s21 = sand.u32 1, %s10286_s30   ;;  %s7498_s26 = sshll.u32 %s10406_s17, 6 }
  0x2f   : > { %s14203_s12 = sld [smem:[#allocation93_spill]]  ;;  %s7497_s25 = sshll.u32 %s14086_s21, 8 }
  0x30   : > { %p506_p2 = scmp.lt.s32.totalorder %s7498_s26, 191  ;;  %s7500_s28 = sshll.u32 %s10406_s17, 2 }
  0x31   : > { %p512_p9 = scmp.lt.s32.totalorder %s7500_s28, 11  ;;  %p14205_p10 = scmp.ne.s32.totalorder %s10406_s17, 0 }
  0x32   : > { %s14481_s26 = smov (!%p506_p2, %s7498_s26), 191 }
  0x33   : > { %s7499_s20 = sshll.u32 %s14481_s26, 3  ;;  %s14483_s28 = smov (!%p512_p9, %s7500_s28), 11 }
  0x34   : > { %s10467_s15 = scalar_lea.vmem %s14066_s1, %s7499_s20  ;;  %s10472_s29 = scalar_lea.vmem %s14068_s3, %s7499_s20 }
  0x35   : > { %v10459_v0 = vld [vmem:[%s14203_s12] sm:$0xff]  ;;  %s10480_s12 = scalar_lea.vmem [#allocation8], %s7497_s25  ;;  %528 = sbr.rel (%p14205_p10) target bundleno = 303 (0x12f), region = 80 }
  0x36   : > { %14204 = vst [vmem:[#allocation19_spill] sm:$0xff] %v10459_v0 }
  0x3a   : > { %v9215_v1 = vld [vmem:[%s14071_s6 + $0x38] sm:$0xff]   ;;  %v10297_v2 = vmov 0.0   ;;  %v9217_v4 = vld [vmem:[%s14071_s6 + $0x30] sm:$0xff]   ;;  %v9219_v6 = vld [vmem:[%s14071_s6 + $0x28] sm:$0xff]   ;;  %v565_v30 = vlaneseq }
  0x3b   : > { %529 = vst [vmem:[#allocation2 + $0x30] sm:$0xff] %v10297_v2  ;;  %530 = vst [vmem:[#allocation2] sm:$0xff] %v10297_v2  ;;  %v9216_v3 = vld [vmem:[%s14072_s7 + $0x38] sm:$0xff]   ;;  %8787 = vmatprep.subr.bf16.mxu0 %v9215_v1  ;;  %v9218_v5 = vld [vmem:[%s14072_s7 + $0x30] sm:$0xff]  }
  0x3c   : > { %531 = vst [vmem:[#allocation2 + $0x18] sm:$0xff] %v10297_v2  ;;  %532 = vst [vmem:[#allocation2 + $0x10] sm:$0xff] %v10297_v2  ;;  %8811 = vmatprep.subr.bf16.mxu1 %v9216_v3  ;;  %8788 = vmatpush3.bf16.msra.mxu0 %v9215_v1  ;;  %v9220_v7 = vld [vmem:[%s14072_s7 + $0x28] sm:$0xff]   ;;  %v9221_v8 = vld [vmem:[%s14071_s6 + $0x20] sm:$0xff]   ;;  %v566_v31 = vshrl.u32 %v565_v30, 7 }
  0x3d   : > { %533 = vst [vmem:[#allocation2 + $0x8] sm:$0xff] %v10297_v2  ;;  %534 = vst [vmem:[#allocation2 + $0x20] sm:$0xff] %v10297_v2  ;;  %8812 = vmatpush3.bf16.msra.mxu1 %v9216_v3  ;;  %8789 = vmatprep.subr.bf16.mxu0 %v9217_v4  ;;  %v9222_v9 = vld [vmem:[%s14072_s7 + $0x20] sm:$0xff]   ;;  %v9223_v10 = vld [vmem:[%s14071_s6 + $0x18] sm:$0xff]  }
  0x3e   : > { %535 = vst [vmem:[#allocation2 + $0x28] sm:$0xff] %v10297_v2  ;;  %536 = vst [vmem:[#allocation2 + $0x38] sm:$0xff] %v10297_v2  ;;  %8813 = vmatprep.subr.bf16.mxu1 %v9218_v5  ;;  %v9224_v11 = vld [vmem:[%s14072_s7 + $0x18] sm:$0xff]   ;;  %v9225_v12 = vld [vmem:[%s14071_s6 + $0x10] sm:$0xff]   ;;  %v567_v32 = vsub.s32 0, %v566_v31 }
  0x3f   : > { %v537_v13 = vld [vmem:[%s14069_s4] sm:$0xff]  ;;  %v538_v14 = vld [vmem:[%s14069_s4 + $0x8] sm:$0xff]  ;;  %v9226_v15 = vld [vmem:[%s14072_s7 + $0x10] sm:$0xff]  }
  0x40   : > { %8790 = vmatpush3.bf16.msra.mxu0 %v9217_v4  ;;  %v545_v16 = vpack.c.bf16 %v538_v14, %v537_v13  ;;  %v9227_v17 = vld [vmem:[%s14071_s6 + $0x8] sm:$0xff]   ;;  %v9229_v19 = vld [vmem:[%s14071_s6] sm:$0xff]   ;;  %v539_v21 = vld [vmem:[%s14069_s4 + $0x10] sm:$0xff]  ;;  %v568_v34 = vrot.slane %v10459_v0, %v567_v32 }
  0x41   : > { %8814 = vmatpush3.bf16.msra.mxu1 %v9218_v5  ;;  %8791 = vmatprep.subr.bf16.mxu0 %v9219_v6  ;;  %v9228_v18 = vld [vmem:[%s14072_s7 + $0x8] sm:$0xff]   ;;  %v9230_v20 = vld [vmem:[%s14072_s7] sm:$0xff]   ;;  %v540_v22 = vld [vmem:[%s14069_s4 + $0x18] sm:$0xff] }
  0x42   : > { %8815 = vmatprep.subr.bf16.mxu1 %v9220_v7  ;;  %8803 = vmatprep.mubr.bf16.mxu0 %v545_v16  ;;  %v541_v23 = vld [vmem:[%s14069_s4 + $0x20] sm:$0xff]  ;;  %v542_v24 = vld [vmem:[%s14069_s4 + $0x28] sm:$0xff]  ;;  %v546_v25 = vpack.c.bf16 %v540_v22, %v539_v21  ;;  %v543_v27 = vld [vmem:[%s14069_s4 + $0x30] sm:$0xff] }
  0x43   : > { %8827 = vmatprep.mubr.bf16.mxu1 %v545_v16  ;;  %v547_v26 = vpack.c.bf16 %v542_v24, %v541_v23  ;;  %v544_v28 = vld [vmem:[%s14069_s4 + $0x38] sm:$0xff] }
  0x44   : > { %8792 = vmatpush3.bf16.msra.mxu0 %v9219_v6  ;;  %v548_v29 = vpack.c.bf16 %v544_v28, %v543_v27 }
  0x45   : > { %8816 = vmatpush3.bf16.msra.mxu1 %v9220_v7  ;;  %8793 = vmatprep.subr.bf16.mxu0 %v9221_v8 }
  0x46   : > { %8817 = vmatprep.subr.bf16.mxu1 %v9222_v9 }
  0x48   : > { %8794 = vmatpush3.bf16.msra.mxu0 %v9221_v8 }
  0x49   : > { %8818 = vmatpush3.bf16.msra.mxu1 %v9222_v9  ;;  %8795 = vmatprep.subr.bf16.mxu0 %v9223_v10 }
  0x4a   : > { %8819 = vmatprep.subr.bf16.mxu1 %v9224_v11 }
  0x4c   : > { %8796 = vmatpush3.bf16.msra.mxu0 %v9223_v10 }
  0x4d   : > { %8820 = vmatpush3.bf16.msra.mxu1 %v9224_v11  ;;  %8797 = vmatprep.subr.bf16.mxu0 %v9225_v12 }
  0x4e   : > { %8821 = vmatprep.subr.bf16.mxu1 %v9226_v15 }
  0x50   : > { %8798 = vmatpush3.bf16.msra.mxu0 %v9225_v12 }
  0x51   : > { %8822 = vmatpush3.bf16.msra.mxu1 %v9226_v15  ;;  %8799 = vmatprep.subr.bf16.mxu0 %v9227_v17 }
  0x52   : > { %8823 = vmatprep.subr.bf16.mxu1 %v9228_v18 }
  0x54   : > { %8800 = vmatpush3.bf16.msra.mxu0 %v9227_v17 }
  0x55   : > { %8824 = vmatpush3.bf16.msra.mxu1 %v9228_v18  ;;  %8801 = vmatprep.subr.bf16.mxu0 %v9229_v19 }
  0x56   : > { %8825 = vmatprep.subr.bf16.mxu1 %v9230_v20 }
  0x58   : > { %8802 = vmatpush3.bf16.msra.mxu0 %v9229_v19 }
  0x59   : > { %8826 = vmatpush3.bf16.msra.mxu1 %v9230_v20 }
  0x5b   : > { %8804 = vmatmul.mubr.bf16.vlgmr.msra.gmra.mxu0 %v546_v25 }
  0x5c   : > { %8828 = vmatmul.mubr.bf16.vlgmr.msra.gmra.mxu1 %v546_v25  ;;  %8807 = vmatprep.mubr.bf16.mxu0 %v547_v26 }
  0x5d   : > { %8831 = vmatprep.mubr.bf16.mxu1 %v547_v26 }
  0x63   : > { %8808 = vmatmul.mubr.bf16.gmra.mxu0 %v548_v29 }
  0x64   : > { %8832 = vmatmul.mubr.bf16.gmra.mxu1 %v548_v29 }
 0x11b   : > { %v8805_v33 = vpop.f32.mrf.mxu0 }
 0x11c   : > { %v8829_v35 = vpop.f32.mrf.mxu1  ;;  %v660_v39 = vadd.f32 %v8805_v33, %v568_v34 }
 0x11d   : > { %v651_v36 = vpop.f32.mrf.mxu0 }
 0x11e   : > { %v820_v37 = vpop.f32.mrf.mxu1  ;;  %v652_v44 = vadd.f32 %v651_v36, %v568_v34 }
 0x11f   : > { %v8806_v38 = vpop.f32.mrf.mxu0 }
 0x120   : > { %v663_v40 = vadd.f32 %v8806_v38, %v568_v34  ;;  %v8830_v41 = vpop.f32.mrf.mxu1 }
 0x121   : > { %v8246_v42 = vpack.c.bf16 %v8830_v41, %v8829_v35  ;;  %v654_v43 = vpop.f32.mrf.mxu0 }
 0x122   : > { %v8226_v45 = vpack.c.bf16 %v663_v40, %v660_v39  ;;  %v655_v46 = vadd.f32 %v654_v43, %v568_v34  ;;  %v823_v47 = vpop.f32.mrf.mxu1 }
 0x123   : > { %8421 = vst [vmem:[#allocation4 + $0x8] sm:$0xff] %v8246_v42   ;;  %v8241_v48 = vpack.c.bf16 %v823_v47, %v820_v37  ;;  %v8809_v49 = vpop.f32.mrf.mxu0 }
 0x124   : > { %8418 = vst [vmem:[#allocation3 + $0x8] sm:$0xff] %v8226_v45   ;;  %v8221_v50 = vpack.c.bf16 %v655_v46, %v652_v44  ;;  %v8833_v51 = vpop.f32.mrf.mxu1  ;;  %v676_v55 = vadd.f32 %v8809_v49, %v568_v34 }
 0x125   : > { %8242 = vst [vmem:[#allocation4] sm:$0xff] %v8241_v48   ;;  %v667_v52 = vpop.f32.mrf.mxu0 }
 0x126   : > { %8222 = vst [vmem:[#allocation3] sm:$0xff] %v8221_v50   ;;  %v836_v53 = vpop.f32.mrf.mxu1  ;;  %v668_v60 = vadd.f32 %v667_v52, %v568_v34 }
 0x127   : > { %v8810_v54 = vpop.f32.mrf.mxu0 }
 0x128   : > { %v679_v56 = vadd.f32 %v8810_v54, %v568_v34  ;;  %v8834_v57 = vpop.f32.mrf.mxu1 }
 0x129   : > { %v8256_v58 = vpack.c.bf16 %v8834_v57, %v8833_v51  ;;  %v670_v59 = vpop.f32.mrf.mxu0 }
 0x12a   : > { %v8236_v61 = vpack.c.bf16 %v679_v56, %v676_v55  ;;  %v671_v62 = vadd.f32 %v670_v59, %v568_v34  ;;  %v839_v63 = vpop.f32.mrf.mxu1 }
 0x12b   : > { %8423 = vst [vmem:[#allocation4 + $0x18] sm:$0xff] %v8256_v58   ;;  %v8251_v1 = vpack.c.bf16 %v839_v63, %v836_v53 }
 0x12c   : > { %8420 = vst [vmem:[#allocation3 + $0x18] sm:$0xff] %v8236_v61   ;;  %v8231_v2 = vpack.c.bf16 %v671_v62, %v668_v60 }
 0x12d   : > { %8422 = vst [vmem:[#allocation4 + $0x10] sm:$0xff] %v8251_v1  }
 0x12e   : > { %8419 = vst [vmem:[#allocation3 + $0x10] sm:$0xff] %v8231_v2  }
 0x12f PF: > { %v10558_v3 = vld [vmem:[%s10472_s29 + $0x10] sm:$0xff]  ;;  %v10561_v4 = vld [vmem:[%s10472_s29] sm:$0xff]  ;;  %v14087_v5 = vmov 0   ;;  %v10568_v6 = vld [vmem:[%s10472_s29 + $0x18] sm:$0xff]  ;;  %v14101_v0 = vlaneseq  ;;  %vm1829_vm4 = vcmask 523264   ;;  %s7936_s21 = sld [smem:[#allocation5 + $0x1]]  ;;  %s14307_s20 = scalar_lea.vmem %s14067_s2, %s14483_s28 }
 0x130   : > { %9232 = vset.pattern.permute.xlu1 %v14087_v5  ;;  %9231 = vset.pattern.permute.xlu0 %v14087_v5  ;;  %v10571_v7 = vld [vmem:[%s10472_s29 + $0x8] sm:$0xff]  ;;  %v10579_v9 = vld [vmem:[%s10472_s29 + $0x20] sm:$0xff]  ;;  %v10584_v10 = vld [vmem:[%s10472_s29 + $0x38] sm:$0xff]  ;;  %p8097_p11 = scmp.ne.s32.totalorder %s10406_s17, 2 }
 0x131   : > { %964 = vperm.xlu1 %9232, %v10558_v3   ;;  %958 = vperm.xlu0 %9231, %v10561_v4   ;;  %v10576_v8 = vld [vmem:[%s10472_s29 + $0x28] sm:$0xff]  ;;  %v10587_v11 = vld [vmem:[%s10472_s29 + $0x30] sm:$0xff]  ;;  %v10595_v13 = vld [vmem:[%s10472_s29 + $0x40] sm:$0xff] }
 0x132   : > { %v10592_v12 = vld [vmem:[%s10472_s29 + $0x48] sm:$0xff]  ;;  %v10600_v14 = vld [vmem:[%s10472_s29 + $0x58] sm:$0xff]  ;;  %v10603_v15 = vld [vmem:[%s10472_s29 + $0x50] sm:$0xff] }
 0x133   : > { %v9269_v16 = vld [vmem:[#allocation3 + $0x18] sm:$0xff]   ;;  %v10608_v17 = vld [vmem:[%s10472_s29 + $0x68] sm:$0xff]  ;;  %v10611_v19 = vld [vmem:[%s10472_s29 + $0x60] sm:$0xff] }
 0x134   : > { %8907 = vmatprep.subr.bf16.mxu1 %v9269_v16  ;;  %v10614_v20 = vld [vmem:[%s10472_s29 + $0x78] sm:$0xff]  ;;  %v10617_v21 = vld [vmem:[%s10472_s29 + $0x70] sm:$0xff]  ;;  %v9271_v22 = vld [vmem:[#allocation3 + $0x8] sm:$0xff]  }
 0x135   : > { %967 = vperm.xlu1 %9232, %v10568_v6   ;;  %961 = vperm.xlu0 %9231, %v10571_v7   ;;  %v9270_v18 = vld [vmem:[#allocation3 + $0x10] sm:$0xff]   ;;  %v9272_v23 = vld [vmem:[#allocation3] sm:$0xff]   ;;  %v10622_v24 = vld [vmem:[%s10472_s29 + $0x88] sm:$0xff] }
 0x136   : > { %8908 = vmatpush3.bf16.msra.mxu1 %v9269_v16  ;;  %v10625_v25 = vld [vmem:[%s10472_s29 + $0x80] sm:$0xff]  ;;  %v10632_v26 = vld [vmem:[%s10472_s29 + $0x98] sm:$0xff]  ;;  %v10635_v27 = vld [vmem:[%s10472_s29 + $0x90] sm:$0xff] }
 0x137   : > { %8909 = vmatprep.subr.bf16.mxu1 %v9270_v18  ;;  %v10640_v28 = vld [vmem:[%s10472_s29 + $0xa8] sm:$0xff]  ;;  %v10643_v29 = vld [vmem:[%s10472_s29 + $0xa0] sm:$0xff]  ;;  %v10648_v30 = vld [vmem:[%s10472_s29 + $0xb8] sm:$0xff] }
 0x138   : > { %v10651_v31 = vld [vmem:[%s10472_s29 + $0xb0] sm:$0xff]  ;;  %v10656_v32 = vld [vmem:[%s10472_s29 + $0xc8] sm:$0xff]  ;;  %v10659_v33 = vld [vmem:[%s10472_s29 + $0xc0] sm:$0xff] }
 0x139   : > { %973 = vperm.xlu1 %9232, %v10576_v8   ;;  %970 = vperm.xlu0 %9231, %v10579_v9   ;;  %v10664_v34 = vld [vmem:[%s10472_s29 + $0xd8] sm:$0xff]  ;;  %v10667_v35 = vld [vmem:[%s10472_s29 + $0xd0] sm:$0xff]  ;;  %v10672_v36 = vld [vmem:[%s10472_s29 + $0xe8] sm:$0xff] }
 0x13a   : > { %8910 = vmatpush3.bf16.msra.mxu1 %v9270_v18  ;;  %v10675_v37 = vld [vmem:[%s10472_s29 + $0xe0] sm:$0xff]  ;;  %v10680_v38 = vld [vmem:[%s10472_s29 + $0xf8] sm:$0xff]  ;;  %v10683_v39 = vld [vmem:[%s10472_s29 + $0xf0] sm:$0xff] }
 0x13b   : > { %8911 = vmatprep.subr.bf16.mxu1 %v9271_v22  ;;  %v10688_v40 = vld [vmem:[%s10472_s29 + $0x108] sm:$0xff]  ;;  %v10691_v41 = vld [vmem:[%s10472_s29 + $0x100] sm:$0xff]  ;;  %v10696_v42 = vld [vmem:[%s10472_s29 + $0x118] sm:$0xff] }
 0x13c   : > { %v10699_v43 = vld [vmem:[%s10472_s29 + $0x110] sm:$0xff]  ;;  %v10704_v44 = vld [vmem:[%s10472_s29 + $0x128] sm:$0xff]  ;;  %v10707_v45 = vld [vmem:[%s10472_s29 + $0x120] sm:$0xff] }
 0x13d   : > { %979 = vperm.xlu1 %9232, %v10584_v10   ;;  %976 = vperm.xlu0 %9231, %v10587_v11   ;;  %v10712_v46 = vld [vmem:[%s10472_s29 + $0x138] sm:$0xff]  ;;  %v10715_v47 = vld [vmem:[%s10472_s29 + $0x130] sm:$0xff]  ;;  %v10720_v48 = vld [vmem:[%s10472_s29 + $0x148] sm:$0xff] }
 0x13e   : > { %8912 = vmatpush3.bf16.msra.mxu1 %v9271_v22  ;;  %v10723_v49 = vld [vmem:[%s10472_s29 + $0x140] sm:$0xff]  ;;  %v10728_v50 = vld [vmem:[%s10472_s29 + $0x158] sm:$0xff]  ;;  %v10731_v51 = vld [vmem:[%s10472_s29 + $0x150] sm:$0xff] }
 0x13f   : > { %8913 = vmatprep.subr.bf16.mxu1 %v9272_v23  ;;  %v10736_v52 = vld [vmem:[%s10472_s29 + $0x168] sm:$0xff]  ;;  %v10739_v53 = vld [vmem:[%s10472_s29 + $0x160] sm:$0xff]  ;;  %v10744_v54 = vld [vmem:[%s10472_s29 + $0x178] sm:$0xff] }
 0x140   : > { %v10747_v55 = vld [vmem:[%s10472_s29 + $0x170] sm:$0xff]  ;;  %v10752_v56 = vld [vmem:[%s10472_s29 + $0x188] sm:$0xff]  ;;  %v10755_v57 = vld [vmem:[%s10472_s29 + $0x180] sm:$0xff] }
 0x141   : > { %985 = vperm.xlu1 %9232, %v10592_v12   ;;  %982 = vperm.xlu0 %9231, %v10595_v13   ;;  %v10760_v58 = vld [vmem:[%s10472_s29 + $0x198] sm:$0xff]  ;;  %v10763_v59 = vld [vmem:[%s10472_s29 + $0x190] sm:$0xff]  ;;  %v10768_v60 = vld [vmem:[%s10472_s29 + $0x1a8] sm:$0xff] }
 0x142   : > { %8914 = vmatpush3.bf16.msra.mxu1 %v9272_v23  ;;  %14206 = vst [vmem:[#allocation20_spill] sm:$0xff] %v10768_v60  ;;  %v10771_v61 = vld [vmem:[%s10472_s29 + $0x1a0] sm:$0xff]  ;;  %v10776_v62 = vld [vmem:[%s10472_s29 + $0x1b8] sm:$0xff]  ;;  %v10779_v63 = vld [vmem:[%s10472_s29 + $0x1b0] sm:$0xff] }
 0x143   : > { %14207 = vst [vmem:[#allocation21_spill] sm:$0xff] %v10771_v61  ;;  %14208 = vst [vmem:[#allocation22_spill] sm:$0xff] %v10776_v62  ;;  %v10784_v1 = vld [vmem:[%s10472_s29 + $0x1c8] sm:$0xff]  ;;  %v10787_v2 = vld [vmem:[%s10472_s29 + $0x1c0] sm:$0xff] }
 0x144   : > { %14209 = vst [vmem:[#allocation23_spill] sm:$0xff] %v10779_v63  ;;  %14210 = vst [vmem:[#allocation24_spill] sm:$0xff] %v10784_v1  ;;  %v10792_v16 = vld [vmem:[%s10472_s29 + $0x1d8] sm:$0xff]  ;;  %v10795_v18 = vld [vmem:[%s10472_s29 + $0x1d0] sm:$0xff] }
 0x145   : > { %991 = vperm.xlu1 %9232, %v10600_v14   ;;  %988 = vperm.xlu0 %9231, %v10603_v15   ;;  %14211 = vst [vmem:[#allocation25_spill] sm:$0xff] %v10787_v2  ;;  %14212 = vst [vmem:[#allocation26_spill] sm:$0xff] %v10792_v16  ;;  %v9273_v22 = vld [vmem:[#allocation4 + $0x18] sm:$0xff]   ;;  %v10800_v23 = vld [vmem:[%s10472_s29 + $0x1e8] sm:$0xff] }
 0x146   : > { %14213 = vst [vmem:[#allocation27_spill] sm:$0xff] %v10795_v18  ;;  %14214 = vst [vmem:[#allocation28_spill] sm:$0xff] %v10800_v23  ;;  %v10803_v5 = vld [vmem:[%s10472_s29 + $0x1e0] sm:$0xff]  ;;  %8835 = vmatprep.subr.bf16.mxu0 %v9273_v22 }
 0x147   : > { %14215 = vst [vmem:[#allocation29_spill] sm:$0xff] %v10803_v5  ;;  %8836 = vmatpush3.bf16.msra.mxu0 %v9273_v22  ;;  %v9275_v22 = vld [vmem:[#allocation4 + $0x8] sm:$0xff]  }
 0x149   : > { %997 = vperm.xlu1 %9232, %v10608_v17   ;;  %994 = vperm.xlu0 %9231, %v10611_v19  }
 0x14d   : > { %1003 = vperm.xlu1 %9232, %v10614_v20   ;;  %1000 = vperm.xlu0 %9231, %v10617_v21  }
 0x151   : > { %1009 = vperm.xlu1 %9232, %v10622_v24   ;;  %1006 = vperm.xlu0 %9231, %v10625_v25  }
 0x155   : > { %1015 = vperm.xlu1 %9232, %v10632_v26   ;;  %1012 = vperm.xlu0 %9231, %v10635_v27  }
 0x159   : > { %1021 = vperm.xlu1 %9232, %v10640_v28   ;;  %1018 = vperm.xlu0 %9231, %v10643_v29  }
 0x15d   : > { %1027 = vperm.xlu1 %9232, %v10648_v30   ;;  %1024 = vperm.xlu0 %9231, %v10651_v31  }
 0x161   : > { %1033 = vperm.xlu1 %9232, %v10656_v32   ;;  %1030 = vperm.xlu0 %9231, %v10659_v33  }
 0x165   : > { %1039 = vperm.xlu1 %9232, %v10664_v34   ;;  %1036 = vperm.xlu0 %9231, %v10667_v35  }
 0x169   : > { %1045 = vperm.xlu1 %9232, %v10672_v36   ;;  %1042 = vperm.xlu0 %9231, %v10675_v37  }
 0x16d   : > { %1051 = vperm.xlu1 %9232, %v10680_v38   ;;  %1048 = vperm.xlu0 %9231, %v10683_v39  }
 0x171   : > { %1057 = vperm.xlu1 %9232, %v10688_v40   ;;  %1054 = vperm.xlu0 %9231, %v10691_v41  }
 0x175   : > { %1063 = vperm.xlu1 %9232, %v10696_v42   ;;  %1060 = vperm.xlu0 %9231, %v10699_v43  }
 0x179   : > { %1069 = vperm.xlu1 %9232, %v10704_v44   ;;  %1066 = vperm.xlu0 %9231, %v10707_v45  }
 0x17d   : > { %1075 = vperm.xlu1 %9232, %v10712_v46   ;;  %1072 = vperm.xlu0 %9231, %v10715_v47  }
 0x181   : > { %1081 = vperm.xlu1 %9232, %v10720_v48   ;;  %1078 = vperm.xlu0 %9231, %v10723_v49  }
 0x185   : > { %1087 = vperm.xlu1 %9232, %v10728_v50   ;;  %1084 = vperm.xlu0 %9231, %v10731_v51  }
 0x189   : > { %1093 = vperm.xlu1 %9232, %v10736_v52   ;;  %1090 = vperm.xlu0 %9231, %v10739_v53  }
 0x18d   : > { %1099 = vperm.xlu1 %9232, %v10744_v54   ;;  %1096 = vperm.xlu0 %9231, %v10747_v55  }
 0x191   : > { %1105 = vperm.xlu1 %9232, %v10752_v56   ;;  %1102 = vperm.xlu0 %9231, %v10755_v57  }
 0x195   : > { %1111 = vperm.xlu1 %9232, %v10760_v58   ;;  %1108 = vperm.xlu0 %9231, %v10763_v59  }
 0x199   : > { %1117 = vperm.xlu1 %9232, %v10768_v60   ;;  %1114 = vperm.xlu0 %9231, %v10771_v61   ;;  %v10299_v60 = vmov 0.0  }
 0x19d   : > { %1123 = vperm.xlu1 %9232, %v10776_v62   ;;  %1120 = vperm.xlu0 %9231, %v10779_v63   ;;  %v10811_v62 = vld [vmem:[%s10472_s29 + $0x1f0] sm:$0xff] }
 0x19e   : > { %14217 = vst [vmem:[#allocation31_spill] sm:$0xff] %v10811_v62 }
 0x1a1   : > { %1129 = vperm.xlu1 %9232, %v10784_v1   ;;  %1126 = vperm.xlu0 %9231, %v10787_v2   ;;  %v9274_v1 = vld [vmem:[#allocation4 + $0x10] sm:$0xff]   ;;  %v10808_v2 = vld [vmem:[%s10472_s29 + $0x1f8] sm:$0xff] }
 0x1a2   : > { %14216 = vst [vmem:[#allocation30_spill] sm:$0xff] %v10808_v2  ;;  %8837 = vmatprep.subr.bf16.mxu0 %v9274_v1 }
 0x1a3   : > { %8838 = vmatpush3.bf16.msra.mxu0 %v9274_v1  ;;  %v14105_v1 = vmov 1  }
 0x1a4   : > { %8839 = vmatprep.subr.bf16.mxu0 %v9275_v22 }
 0x1a5   : > { %1135 = vperm.xlu1 %9232, %v10792_v16   ;;  %1132 = vperm.xlu0 %9231, %v10795_v18   ;;  %v10814_v16 = vand.u32 127, %v14101_v0 }
 0x1a7   : > { %8840 = vmatpush3.bf16.msra.mxu0 %v9275_v22 }
 0x1a9   : > { %1141 = vperm.xlu1 %9232, %v10800_v23   ;;  %1138 = vperm.xlu0 %9231, %v10803_v5  }
 0x1ac   : > { %v965_v18 = vpop.permute.xlu1 %964  ;;  %v959_v63 = vpop.permute.xlu0 %958 }
 0x1ad   : > { %vm1149_vm0 = vcmp.eq.s32.totalorder %v10814_v16, %v959_v63  ;;  %1147 = vperm.xlu1 %9232, %v10808_v2   ;;  %1144 = vperm.xlu0 %9231, %v10811_v62   ;;  %vm1151_vm1 = vcmp.eq.s32.totalorder %v10814_v16, %v965_v18  ;;  %v9276_v63 = vld [vmem:[#allocation4] sm:$0xff]  }
 0x1ae   : > { %v7536_v0 = vsel %vm1149_vm0, 1.0, %v10299_v60  ;;  %v7538_v2 = vsel %vm1151_vm1, 1.0, %v10299_v60  ;;  %8841 = vmatprep.subr.bf16.mxu0 %v9276_v63 }
 0x1af   : > { %8842 = vmatpush3.bf16.msra.mxu0 %v9276_v63 }
 0x1b0   : > { %v968_v23 = vpop.permute.xlu1 %967  ;;  %v962_v5 = vpop.permute.xlu0 %961 }
 0x1b1   : > { %vm1152_vm2 = vcmp.eq.s32.totalorder %v10814_v16, %v968_v23  ;;  %vm1150_vm3 = vcmp.eq.s32.totalorder %v10814_v16, %v962_v5  ;;  %9234 = vset.pattern.permute.xlu1 %v14105_v1  ;;  %9233 = vset.pattern.permute.xlu0 %v14105_v1 }
 0x1b2   : > { %v7539_v18 = vsel %vm1152_vm2, 1.0, %v10299_v60  ;;  %1377 = vperm.xlu1 %9234, %v10571_v7   ;;  %1374 = vperm.xlu0 %9233, %v10561_v4   ;;  %v7537_v22 = vsel %vm1150_vm3, 1.0, %v10299_v60 }
 0x1b3   : > { %v1342_v23 = vpack.c.bf16 %v7539_v18, %v7538_v2  ;;  %v1341_v62 = vpack.c.bf16 %v7537_v22, %v7536_v0 }
 0x1b4   : > { %v974_v5 = vpop.permute.xlu1 %973  ;;  %v971_v61 = vpop.permute.xlu0 %970 }
 0x1b5   : > { %vm1154_vm5 = vcmp.eq.s32.totalorder %v10814_v16, %v974_v5  ;;  %vm1153_vm6 = vcmp.eq.s32.totalorder %v10814_v16, %v971_v61  ;;  %8915 = vmatprep.mubr.msk.bf16.mxu1 %vm1829_vm4, %v1341_v62 }
 0x1b6   : > { %v7541_v1 = vsel %vm1154_vm5, 1.0, %v10299_v60  ;;  %v7540_v7 = vsel %vm1153_vm6, 1.0, %v10299_v60  ;;  %1380 = vperm.xlu1 %9234, %v10558_v3   ;;  %1383 = vperm.xlu0 %9233, %v10568_v6  }
 0x1b7   : > { %v1343_v4 = vpack.c.bf16 %v7541_v1, %v7540_v7  ;;  %8916 = vmatmul.mubr.msk.bf16.vlgmr.msra.gmra.mxu1 %vm1829_vm4, %v1342_v23 }
 0x1b8   : > { %v980_v0 = vpop.permute.xlu1 %979  ;;  %v977_v2 = vpop.permute.xlu0 %976 }
 0x1b9   : > { %vm1156_vm7 = vcmp.eq.s32.totalorder %v10814_v16, %v980_v0  ;;  %vm1155_vm8 = vcmp.eq.s32.totalorder %v10814_v16, %v977_v2  ;;  %8919 = vmatprep.mubr.msk.bf16.mxu1 %vm1829_vm4, %v1343_v4 }
 0x1ba   : > { %v7543_v61 = vsel %vm1156_vm7, 1.0, %v10299_v60  ;;  %v7542_v62 = vsel %vm1155_vm8, 1.0, %v10299_v60  ;;  %1386 = vperm.xlu1 %9234, %v10579_v9   ;;  %1389 = vperm.xlu0 %9233, %v10576_v8  }
 0x1bb   : > { %v1344_v3 = vpack.c.bf16 %v7543_v61, %v7542_v62 }
 0x1bc   : > { %v986_v6 = vpop.permute.xlu1 %985  ;;  %v983_v1 = vpop.permute.xlu0 %982 }
 0x1bd   : > { %vm1158_vm9 = vcmp.eq.s32.totalorder %v10814_v16, %v986_v6  ;;  %vm1157_vm10 = vcmp.eq.s32.totalorder %v10814_v16, %v983_v1 }
 0x1be   : > { %v7545_v63 = vsel %vm1158_vm9, 1.0, %v10299_v60  ;;  %v7544_v18 = vsel %vm1157_vm10, 1.0, %v10299_v60  ;;  %1392 = vperm.xlu1 %9234, %v10587_v11   ;;  %1395 = vperm.xlu0 %9233, %v10584_v10  }
 0x1bf   : > { %v1345_v22 = vpack.c.bf16 %v7545_v63, %v7544_v18  ;;  %8920 = vmatmul.mubr.msk.bf16.gmra.mxu1 %vm1829_vm4, %v1344_v3 }
 0x1c0   : > { %v992_v9 = vpop.permute.xlu1 %991  ;;  %v989_v8 = vpop.permute.xlu0 %988 }
 0x1c1   : > { %vm1160_vm11 = vcmp.eq.s32.totalorder %v10814_v16, %v992_v9  ;;  %vm1159_vm12 = vcmp.eq.s32.totalorder %v10814_v16, %v989_v8  ;;  %8923 = vmatprep.mubr.msk.bf16.mxu1 %vm1829_vm4, %v1345_v22 }
 0x1c2   : > { %v7547_v23 = vsel %vm1160_vm11, 1.0, %v10299_v60  ;;  %v7546_v5 = vsel %vm1159_vm12, 1.0, %v10299_v60  ;;  %1398 = vperm.xlu1 %9234, %v10595_v13   ;;  %1401 = vperm.xlu0 %9233, %v10592_v12  }
 0x1c3   : > { %v1346_v10 = vpack.c.bf16 %v7547_v23, %v7546_v5 }
 0x1c4   : > { %v998_v11 = vpop.permute.xlu1 %997  ;;  %v995_v7 = vpop.permute.xlu0 %994 }
 0x1c5   : > { %vm1162_vm13 = vcmp.eq.s32.totalorder %v10814_v16, %v998_v11  ;;  %vm1161_vm14 = vcmp.eq.s32.totalorder %v10814_v16, %v995_v7 }
 0x1c6   : > { %v7549_v4 = vsel %vm1162_vm13, 1.0, %v10299_v60  ;;  %v7548_v0 = vsel %vm1161_vm14, 1.0, %v10299_v60  ;;  %1404 = vperm.xlu1 %9234, %v10603_v15   ;;  %1407 = vperm.xlu0 %9233, %v10600_v14  }
 0x1c7   : > { %v1347_v2 = vpack.c.bf16 %v7549_v4, %v7548_v0  ;;  %8924 = vmatmul.mubr.msk.bf16.gmra.mxu1 %vm1829_vm4, %v1346_v10 }
 0x1c8   : > { %v1004_v13 = vpop.permute.xlu1 %1003  ;;  %v1001_v12 = vpop.permute.xlu0 %1000 }
 0x1c9   : > { %vm1164_vm15 = vcmp.eq.s32.totalorder %v10814_v16, %v1004_v13  ;;  %vm1163_vm0 = vcmp.eq.s32.totalorder %v10814_v16, %v1001_v12  ;;  %8927 = vmatprep.mubr.msk.bf16.mxu1 %vm1829_vm4, %v1347_v2 }
 0x1ca   : > { %v7551_v61 = vsel %vm1164_vm15, 1.0, %v10299_v60  ;;  %v7550_v62 = vsel %vm1163_vm0, 1.0, %v10299_v60  ;;  %1410 = vperm.xlu1 %9234, %v10611_v19   ;;  %1413 = vperm.xlu0 %9233, %v10608_v17  }
 0x1cb   : > { %v1348_v14 = vpack.c.bf16 %v7551_v61, %v7550_v62 }
 0x1cc   : > { %v1010_v15 = vpop.permute.xlu1 %1009  ;;  %v1007_v3 = vpop.permute.xlu0 %1006 }
 0x1cd   : > { %vm1166_vm1 = vcmp.eq.s32.totalorder %v10814_v16, %v1010_v15  ;;  %vm1165_vm2 = vcmp.eq.s32.totalorder %v10814_v16, %v1007_v3 }
 0x1ce   : > { %v7553_v6 = vsel %vm1166_vm1, 1.0, %v10299_v60  ;;  %v7552_v1 = vsel %vm1165_vm2, 1.0, %v10299_v60  ;;  %1416 = vperm.xlu1 %9234, %v10617_v21   ;;  %1419 = vperm.xlu0 %9233, %v10614_v20  }
 0x1cf   : > { %v1349_v63 = vpack.c.bf16 %v7553_v6, %v7552_v1  ;;  %8928 = vmatmul.mubr.msk.bf16.gmra.mxu1 %vm1829_vm4, %v1348_v14 }
 0x1d0   : > { %v1016_v19 = vpop.permute.xlu1 %1015  ;;  %v1013_v17 = vpop.permute.xlu0 %1012 }
 0x1d1   : > { %vm1168_vm3 = vcmp.eq.s32.totalorder %v10814_v16, %v1016_v19  ;;  %vm1167_vm5 = vcmp.eq.s32.totalorder %v10814_v16, %v1013_v17  ;;  %8931 = vmatprep.mubr.msk.bf16.mxu1 %vm1829_vm4, %v1349_v63 }
 0x1d2   : > { %v7555_v18 = vsel %vm1168_vm3, 1.0, %v10299_v60  ;;  %v7554_v22 = vsel %vm1167_vm5, 1.0, %v10299_v60  ;;  %1422 = vperm.xlu1 %9234, %v10625_v25   ;;  %1425 = vperm.xlu0 %9233, %v10622_v24  }
 0x1d3   : > { %v1350_v20 = vpack.c.bf16 %v7555_v18, %v7554_v22 }
 0x1d4   : > { %v1022_v21 = vpop.permute.xlu1 %1021  ;;  %v1019_v9 = vpop.permute.xlu0 %1018 }
 0x1d5   : > { %vm1170_vm6 = vcmp.eq.s32.totalorder %v10814_v16, %v1022_v21  ;;  %vm1169_vm7 = vcmp.eq.s32.totalorder %v10814_v16, %v1019_v9 }
 0x1d6   : > { %v7557_v8 = vsel %vm1170_vm6, 1.0, %v10299_v60  ;;  %v7556_v23 = vsel %vm1169_vm7, 1.0, %v10299_v60  ;;  %1428 = vperm.xlu1 %9234, %v10635_v27   ;;  %1431 = vperm.xlu0 %9233, %v10632_v26  }
 0x1d7   : > { %v1351_v5 = vpack.c.bf16 %v7557_v8, %v7556_v23  ;;  %8932 = vmatmul.mubr.msk.bf16.gmra.mxu1 %vm1829_vm4, %v1350_v20 }
 0x1d8   : > { %v1028_v25 = vpop.permute.xlu1 %1027  ;;  %v1025_v24 = vpop.permute.xlu0 %1024 }
 0x1d9   : > { %vm1172_vm8 = vcmp.eq.s32.totalorder %v10814_v16, %v1028_v25  ;;  %vm1171_vm9 = vcmp.eq.s32.totalorder %v10814_v16, %v1025_v24  ;;  %8935 = vmatprep.mubr.msk.bf16.mxu1 %vm1829_vm4, %v1351_v5 }
 0x1da   : > { %v7559_v10 = vsel %vm1172_vm8, 1.0, %v10299_v60  ;;  %v7558_v11 = vsel %vm1171_vm9, 1.0, %v10299_v60  ;;  %1434 = vperm.xlu1 %9234, %v10643_v29   ;;  %1437 = vperm.xlu0 %9233, %v10640_v28  }
 0x1db   : > { %v1352_v26 = vpack.c.bf16 %v7559_v10, %v7558_v11 }
 0x1dc   : > { %v1034_v27 = vpop.permute.xlu1 %1033  ;;  %v1031_v7 = vpop.permute.xlu0 %1030 }
 0x1dd   : > { %vm1174_vm10 = vcmp.eq.s32.totalorder %v10814_v16, %v1034_v27  ;;  %vm1173_vm11 = vcmp.eq.s32.totalorder %v10814_v16, %v1031_v7 }
 0x1de   : > { %v7561_v4 = vsel %vm1174_vm10, 1.0, %v10299_v60  ;;  %v7560_v0 = vsel %vm1173_vm11, 1.0, %v10299_v60  ;;  %1440 = vperm.xlu1 %9234, %v10651_v31   ;;  %1443 = vperm.xlu0 %9233, %v10648_v30  }
 0x1df   : > { %v1353_v2 = vpack.c.bf16 %v7561_v4, %v7560_v0  ;;  %8936 = vmatmul.mubr.msk.bf16.gmra.mxu1 %vm1829_vm4, %v1352_v26 }
 0x1e0   : > { %v1040_v29 = vpop.permute.xlu1 %1039  ;;  %v1037_v28 = vpop.permute.xlu0 %1036 }
 0x1e1   : > { %vm1176_vm12 = vcmp.eq.s32.totalorder %v10814_v16, %v1040_v29  ;;  %vm1175_vm13 = vcmp.eq.s32.totalorder %v10814_v16, %v1037_v28  ;;  %8939 = vmatprep.mubr.msk.bf16.mxu1 %vm1829_vm4, %v1353_v2 }
 0x1e2   : > { %v7563_v13 = vsel %vm1176_vm12, 1.0, %v10299_v60  ;;  %v7562_v12 = vsel %vm1175_vm13, 1.0, %v10299_v60  ;;  %1446 = vperm.xlu1 %9234, %v10659_v33   ;;  %1449 = vperm.xlu0 %9233, %v10656_v32  }
 0x1e3   : > { %v1354_v30 = vpack.c.bf16 %v7563_v13, %v7562_v12 }
 0x1e4   : > { %v1046_v31 = vpop.permute.xlu1 %1045  ;;  %v1043_v61 = vpop.permute.xlu0 %1042 }
 0x1e5   : > { %vm1178_vm14 = vcmp.eq.s32.totalorder %v10814_v16, %v1046_v31  ;;  %vm1177_vm15 = vcmp.eq.s32.totalorder %v10814_v16, %v1043_v61 }
 0x1e6   : > { %v7565_v62 = vsel %vm1178_vm14, 1.0, %v10299_v60  ;;  %v7564_v14 = vsel %vm1177_vm15, 1.0, %v10299_v60  ;;  %1452 = vperm.xlu1 %9234, %v10667_v35   ;;  %1455 = vperm.xlu0 %9233, %v10664_v34  }
 0x1e7   : > { %v1355_v15 = vpack.c.bf16 %v7565_v62, %v7564_v14  ;;  %8940 = vmatmul.mubr.msk.bf16.gmra.mxu1 %vm1829_vm4, %v1354_v30 }
 0x1e8   : > { %v1052_v33 = vpop.permute.xlu1 %1051  ;;  %v1049_v32 = vpop.permute.xlu0 %1048 }
 0x1e9   : > { %vm1180_vm0 = vcmp.eq.s32.totalorder %v10814_v16, %v1052_v33  ;;  %vm1179_vm1 = vcmp.eq.s32.totalorder %v10814_v16, %v1049_v32  ;;  %8943 = vmatprep.mubr.msk.bf16.mxu1 %vm1829_vm4, %v1355_v15 }
 0x1ea   : > { %v7567_v3 = vsel %vm1180_vm0, 1.0, %v10299_v60  ;;  %v7566_v6 = vsel %vm1179_vm1, 1.0, %v10299_v60  ;;  %1458 = vperm.xlu1 %9234, %v10675_v37   ;;  %1461 = vperm.xlu0 %9233, %v10672_v36  }
 0x1eb   : > { %v1356_v34 = vpack.c.bf16 %v7567_v3, %v7566_v6 }
 0x1ec   : > { %v1058_v35 = vpop.permute.xlu1 %1057  ;;  %v1055_v1 = vpop.permute.xlu0 %1054 }
 0x1ed   : > { %vm1182_vm2 = vcmp.eq.s32.totalorder %v10814_v16, %v1058_v35  ;;  %vm1181_vm3 = vcmp.eq.s32.totalorder %v10814_v16, %v1055_v1 }
 0x1ee   : > { %v7569_v63 = vsel %vm1182_vm2, 1.0, %v10299_v60  ;;  %v7568_v19 = vsel %vm1181_vm3, 1.0, %v10299_v60  ;;  %1464 = vperm.xlu1 %9234, %v10683_v39   ;;  %1467 = vperm.xlu0 %9233, %v10680_v38  }
 0x1ef   : > { %v1357_v17 = vpack.c.bf16 %v7569_v63, %v7568_v19  ;;  %8944 = vmatmul.mubr.msk.bf16.gmra.mxu1 %vm1829_vm4, %v1356_v34  ;;  %v14218_v34 = vld [vmem:[#allocation21_spill] sm:$0xff] }
 0x1f0   : > { %v1064_v37 = vpop.permute.xlu1 %1063  ;;  %v1061_v36 = vpop.permute.xlu0 %1060 }
 0x1f1   : > { %vm1184_vm5 = vcmp.eq.s32.totalorder %v10814_v16, %v1064_v37  ;;  %vm1183_vm6 = vcmp.eq.s32.totalorder %v10814_v16, %v1061_v36  ;;  %8947 = vmatprep.mubr.msk.bf16.mxu1 %vm1829_vm4, %v1357_v17  ;;  %v14220_v17 = vld [vmem:[#allocation23_spill] sm:$0xff]  ;;  %v14221_v37 = vld [vmem:[#allocation22_spill] sm:$0xff] }
 0x1f2   : > { %v7571_v18 = vsel %vm1184_vm5, 1.0, %v10299_v60  ;;  %v7570_v22 = vsel %vm1183_vm6, 1.0, %v10299_v60  ;;  %1470 = vperm.xlu1 %9234, %v10691_v41   ;;  %1473 = vperm.xlu0 %9233, %v10688_v40  }
 0x1f3   : > { %v1358_v38 = vpack.c.bf16 %v7571_v18, %v7570_v22 }
 0x1f4   : > { %v1070_v39 = vpop.permute.xlu1 %1069  ;;  %v1067_v20 = vpop.permute.xlu0 %1066 }
 0x1f5   : > { %vm1186_vm7 = vcmp.eq.s32.totalorder %v10814_v16, %v1070_v39  ;;  %vm1185_vm8 = vcmp.eq.s32.totalorder %v10814_v16, %v1067_v20  ;;  %v14222_v20 = vld [vmem:[#allocation25_spill] sm:$0xff] }
 0x1f6   : > { %v7573_v21 = vsel %vm1186_vm7, 1.0, %v10299_v60  ;;  %v7572_v9 = vsel %vm1185_vm8, 1.0, %v10299_v60  ;;  %1476 = vperm.xlu1 %9234, %v10699_v43   ;;  %1479 = vperm.xlu0 %9233, %v10696_v42  }
 0x1f7   : > { %v1359_v8 = vpack.c.bf16 %v7573_v21, %v7572_v9  ;;  %8948 = vmatmul.mubr.msk.bf16.gmra.mxu1 %vm1829_vm4, %v1358_v38  ;;  %v14223_v21 = vld [vmem:[#allocation24_spill] sm:$0xff] }
 0x1f8   : > { %v1076_v41 = vpop.permute.xlu1 %1075  ;;  %v1073_v40 = vpop.permute.xlu0 %1072 }
 0x1f9   : > { %vm1188_vm9 = vcmp.eq.s32.totalorder %v10814_v16, %v1076_v41  ;;  %vm1187_vm10 = vcmp.eq.s32.totalorder %v10814_v16, %v1073_v40  ;;  %8951 = vmatprep.mubr.msk.bf16.mxu1 %vm1829_vm4, %v1359_v8 }
 0x1fa   : > { %v7575_v23 = vsel %vm1188_vm9, 1.0, %v10299_v60  ;;  %v7574_v5 = vsel %vm1187_vm10, 1.0, %v10299_v60  ;;  %1482 = vperm.xlu1 %9234, %v10707_v45   ;;  %1485 = vperm.xlu0 %9233, %v10704_v44  }
 0x1fb   : > { %v1360_v42 = vpack.c.bf16 %v7575_v23, %v7574_v5  ;;  %v14224_v5 = vld [vmem:[#allocation27_spill] sm:$0xff] }
 0x1fc   : > { %v1082_v43 = vpop.permute.xlu1 %1081  ;;  %v1079_v25 = vpop.permute.xlu0 %1078 }
 0x1fd   : > { %vm1190_vm11 = vcmp.eq.s32.totalorder %v10814_v16, %v1082_v43  ;;  %vm1189_vm12 = vcmp.eq.s32.totalorder %v10814_v16, %v1079_v25 }
 0x1fe   : > { %v7577_v24 = vsel %vm1190_vm11, 1.0, %v10299_v60  ;;  %v7576_v10 = vsel %vm1189_vm12, 1.0, %v10299_v60  ;;  %1488 = vperm.xlu1 %9234, %v10715_v47   ;;  %1491 = vperm.xlu0 %9233, %v10712_v46  }
 0x1ff   : > { %v1361_v11 = vpack.c.bf16 %v7577_v24, %v7576_v10  ;;  %8952 = vmatmul.mubr.msk.bf16.gmra.mxu1 %vm1829_vm4, %v1360_v42  ;;  %v14225_v42 = vld [vmem:[#allocation26_spill] sm:$0xff] }
 0x200   : > { %v1088_v45 = vpop.permute.xlu1 %1087  ;;  %v1085_v44 = vpop.permute.xlu0 %1084 }
 0x201   : > { %vm1192_vm13 = vcmp.eq.s32.totalorder %v10814_v16, %v1088_v45  ;;  %vm1191_vm14 = vcmp.eq.s32.totalorder %v10814_v16, %v1085_v44  ;;  %8955 = vmatprep.mubr.msk.bf16.mxu1 %vm1829_vm4, %v1361_v11  ;;  %v14226_v45 = vld [vmem:[#allocation29_spill] sm:$0xff]  ;;  %v14227_v44 = vld [vmem:[#allocation28_spill] sm:$0xff] }
 0x202   : > { %v7579_v26 = vsel %vm1192_vm13, 1.0, %v10299_v60  ;;  %v7578_v27 = vsel %vm1191_vm14, 1.0, %v10299_v60  ;;  %1494 = vperm.xlu1 %9234, %v10723_v49   ;;  %1497 = vperm.xlu0 %9233, %v10720_v48  }
 0x203   : > { %v1362_v46 = vpack.c.bf16 %v7579_v26, %v7578_v27 }
 0x204   : > { %v1094_v47 = vpop.permute.xlu1 %1093  ;;  %v1091_v7 = vpop.permute.xlu0 %1090 }
 0x205   : > { %vm1194_vm15 = vcmp.eq.s32.totalorder %v10814_v16, %v1094_v47  ;;  %vm1193_vm0 = vcmp.eq.s32.totalorder %v10814_v16, %v1091_v7  ;;  %v14228_v47 = vld [vmem:[#allocation31_spill] sm:$0xff]  ;;  %v14229_v7 = vld [vmem:[#allocation30_spill] sm:$0xff] }
 0x206   : > { %v7581_v4 = vsel %vm1194_vm15, 1.0, %v10299_v60  ;;  %v7580_v0 = vsel %vm1193_vm0, 1.0, %v10299_v60  ;;  %1500 = vperm.xlu1 %9234, %v10731_v51   ;;  %1503 = vperm.xlu0 %9233, %v10728_v50  }
 0x207   : > { %v1363_v2 = vpack.c.bf16 %v7581_v4, %v7580_v0  ;;  %8956 = vmatmul.mubr.msk.bf16.gmra.mxu1 %vm1829_vm4, %v1362_v46 }
 0x208   : > { %v1100_v49 = vpop.permute.xlu1 %1099  ;;  %v1097_v48 = vpop.permute.xlu0 %1096 }
 0x209   : > { %vm1196_vm1 = vcmp.eq.s32.totalorder %v10814_v16, %v1100_v49  ;;  %vm1195_vm2 = vcmp.eq.s32.totalorder %v10814_v16, %v1097_v48  ;;  %8959 = vmatprep.mubr.msk.bf16.mxu1 %vm1829_vm4, %v1363_v2  ;;  %v2624_v49 = vld [vmem:[%s10467_s15] sm:$0xff]  ;;  %v2625_v48 = vld [vmem:[%s10467_s15 + $0x8] sm:$0xff] }
 0x20a   : > { %v7583_v29 = vsel %vm1196_vm1, 1.0, %v10299_v60  ;;  %v7582_v28 = vsel %vm1195_vm2, 1.0, %v10299_v60  ;;  %1506 = vperm.xlu1 %9234, %v10739_v53   ;;  %1509 = vperm.xlu0 %9233, %v10736_v52  }
 0x20b   : > { %v1364_v50 = vpack.c.bf16 %v7583_v29, %v7582_v28 }
 0x20c   : > { %v1106_v51 = vpop.permute.xlu1 %1105  ;;  %v1103_v13 = vpop.permute.xlu0 %1102 }
 0x20d   : > { %vm1198_vm3 = vcmp.eq.s32.totalorder %v10814_v16, %v1106_v51  ;;  %vm1197_vm5 = vcmp.eq.s32.totalorder %v10814_v16, %v1103_v13 }
 0x20e   : > { %v7585_v12 = vsel %vm1198_vm3, 1.0, %v10299_v60  ;;  %v7584_v30 = vsel %vm1197_vm5, 1.0, %v10299_v60  ;;  %1512 = vperm.xlu1 %9234, %v10747_v55   ;;  %1515 = vperm.xlu0 %9233, %v10744_v54  }
 0x20f   : > { %v1365_v31 = vpack.c.bf16 %v7585_v12, %v7584_v30  ;;  %8960 = vmatmul.mubr.msk.bf16.gmra.mxu1 %vm1829_vm4, %v1364_v50  ;;  %v14230_v50 = vmov 0   ;;  %v2626_v30 = vld [vmem:[%s10467_s15 + $0x10] sm:$0xff] }
 0x210   : > { %v1112_v53 = vpop.permute.xlu1 %1111  ;;  %v1109_v52 = vpop.permute.xlu0 %1108 }
 0x211   : > { %vm1200_vm6 = vcmp.eq.s32.totalorder %v10814_v16, %v1112_v53  ;;  %vm1199_vm7 = vcmp.eq.s32.totalorder %v10814_v16, %v1109_v52  ;;  %8963 = vmatprep.mubr.msk.bf16.mxu1 %vm1829_vm4, %v1365_v31 }
 0x212   : > { %v7587_v61 = vsel %vm1200_vm6, 1.0, %v10299_v60  ;;  %v7586_v62 = vsel %vm1199_vm7, 1.0, %v10299_v60  ;;  %1518 = vperm.xlu1 %9234, %v10755_v57   ;;  %1521 = vperm.xlu0 %9233, %v10752_v56  }
 0x213   : > { %v1366_v54 = vpack.c.bf16 %v7587_v61, %v7586_v62 }
 0x214   : > { %v1118_v55 = vpop.permute.xlu1 %1117  ;;  %v1115_v14 = vpop.permute.xlu0 %1114 }
 0x215   : > { %vm1202_vm8 = vcmp.eq.s32.totalorder %v10814_v16, %v1118_v55  ;;  %vm1201_vm9 = vcmp.eq.s32.totalorder %v10814_v16, %v1115_v14 }
 0x216   : > { %v7589_v15 = vsel %vm1202_vm8, 1.0, %v10299_v60  ;;  %v7588_v33 = vsel %vm1201_vm9, 1.0, %v10299_v60  ;;  %1524 = vperm.xlu1 %9234, %v10763_v59   ;;  %1527 = vperm.xlu0 %9233, %v10760_v58   ;;  %v14219_v59 = vld [vmem:[#allocation20_spill] sm:$0xff] }
 0x217   : > { %v1367_v32 = vpack.c.bf16 %v7589_v15, %v7588_v33  ;;  %8964 = vmatmul.mubr.msk.bf16.gmra.mxu1 %vm1829_vm4, %v1366_v54  ;;  %v2627_v54 = vld [vmem:[%s10467_s15 + $0x18] sm:$0xff]  ;;  %v11065_v15 = vld [vmem:[%s10467_s15 + $0x20] sm:$0xff] }
 0x218   : > { %v1124_v57 = vpop.permute.xlu1 %1123  ;;  %v1121_v56 = vpop.permute.xlu0 %1120 }
 0x219   : > { %vm1204_vm10 = vcmp.eq.s32.totalorder %v10814_v16, %v1124_v57  ;;  %vm1203_vm11 = vcmp.eq.s32.totalorder %v10814_v16, %v1121_v56  ;;  %8967 = vmatprep.mubr.msk.bf16.mxu1 %vm1829_vm4, %v1367_v32  ;;  %v11073_v56 = vld [vmem:[%s10467_s15 + $0x28] sm:$0xff] }
 0x21a   : > { %v7591_v3 = vsel %vm1204_vm10, 1.0, %v10299_v60  ;;  %v7590_v6 = vsel %vm1203_vm11, 1.0, %v10299_v60  ;;  %1530 = vperm.xlu1 %9234, %v14218_v34   ;;  %1533 = vperm.xlu0 %9233, %v14219_v59   ;;  %v11077_v34 = vld [vmem:[%s10467_s15 + $0x30] sm:$0xff] }
 0x21b   : > { %v1368_v58 = vpack.c.bf16 %v7591_v3, %v7590_v6 }
 0x21c   : > { %v1130_v35 = vpop.permute.xlu1 %1129  ;;  %v1127_v1 = vpop.permute.xlu0 %1126 }
 0x21d   : > { %vm1206_vm12 = vcmp.eq.s32.totalorder %v10814_v16, %v1130_v35  ;;  %vm1205_vm13 = vcmp.eq.s32.totalorder %v10814_v16, %v1127_v1 }
 0x21e   : > { %v7593_v63 = vsel %vm1206_vm12, 1.0, %v10299_v60  ;;  %v7592_v19 = vsel %vm1205_vm13, 1.0, %v10299_v60  ;;  %1536 = vperm.xlu1 %9234, %v14220_v17   ;;  %1539 = vperm.xlu0 %9233, %v14221_v37  }
 0x21f   : > { %v1369_v36 = vpack.c.bf16 %v7593_v63, %v7592_v19  ;;  %8968 = vmatmul.mubr.msk.bf16.gmra.mxu1 %vm1829_vm4, %v1368_v58  ;;  %v11087_v19 = vld [vmem:[%s10467_s15 + $0x38] sm:$0xff] }
 0x220   : > { %v1136_v18 = vpop.permute.xlu1 %1135  ;;  %v1133_v22 = vpop.permute.xlu0 %1132 }
 0x221   : > { %vm1208_vm14 = vcmp.eq.s32.totalorder %v10814_v16, %v1136_v18  ;;  %vm1207_vm15 = vcmp.eq.s32.totalorder %v10814_v16, %v1133_v22  ;;  %8971 = vmatprep.mubr.msk.bf16.mxu1 %vm1829_vm4, %v1369_v36  ;;  %v14231_v36 = vmov 1  }
 0x222   : > { %v7595_v38 = vsel %vm1208_vm14, 1.0, %v10299_v60  ;;  %v7594_v39 = vsel %vm1207_vm15, 1.0, %v10299_v60  ;;  %1542 = vperm.xlu1 %9234, %v14222_v20   ;;  %1545 = vperm.xlu0 %9233, %v14223_v21  }
 0x223   : > { %v1370_v9 = vpack.c.bf16 %v7595_v38, %v7594_v39  ;;  %v11097_v39 = vld [vmem:[%s10467_s15 + $0x48] sm:$0xff] }
 0x224   : > { %v1142_v8 = vpop.permute.xlu1 %1141  ;;  %v1139_v41 = vpop.permute.xlu0 %1138 }
 0x225   : > { %vm1210_vm0 = vcmp.eq.s32.totalorder %v10814_v16, %v1142_v8  ;;  %vm1209_vm1 = vcmp.eq.s32.totalorder %v10814_v16, %v1139_v41 }
 0x226   : > { %v7597_v40 = vsel %vm1210_vm0, 1.0, %v10299_v60  ;;  %v7596_v23 = vsel %vm1209_vm1, 1.0, %v10299_v60  ;;  %1548 = vperm.xlu1 %9234, %v14224_v5   ;;  %1551 = vperm.xlu0 %9233, %v14225_v42  }
 0x227   : > { %v1371_v43 = vpack.c.bf16 %v7597_v40, %v7596_v23  ;;  %8972 = vmatmul.mubr.msk.bf16.gmra.mxu1 %vm1829_vm4, %v1370_v9  ;;  %v11106_v40 = vld [vmem:[%s10467_s15 + $0x68] sm:$0xff] }
 0x228   : > { %v1148_v25 = vpop.permute.xlu1 %1147  ;;  %v1145_v24 = vpop.permute.xlu0 %1144 }
 0x229   : > { %vm1212_vm2 = vcmp.eq.s32.totalorder %v10814_v16, %v1148_v25  ;;  %vm1211_vm3 = vcmp.eq.s32.totalorder %v10814_v16, %v1145_v24  ;;  %8975 = vmatprep.mubr.msk.bf16.mxu1 %vm1829_vm4, %v1371_v43  ;;  %v11115_v24 = vld [vmem:[%s10467_s15 + $0x88] sm:$0xff] }
 0x22a   : > { %v7599_v10 = vsel %vm1212_vm2, 1.0, %v10299_v60  ;;  %v7598_v11 = vsel %vm1211_vm3, 1.0, %v10299_v60  ;;  %1554 = vperm.xlu1 %9234, %v14226_v45   ;;  %1557 = vperm.xlu0 %9233, %v14227_v44  }
 0x22b   : > { %v1372_v26 = vpack.c.bf16 %v7599_v10, %v7598_v11 }
 0x22d   : > { %v1378_v27 = vpop.permute.xlu1 %1377  ;;  %v1375_v46 = vpop.permute.xlu0 %1374 }
 0x22e   : > { %vm1566_vm5 = vcmp.eq.s32.totalorder %v10814_v16, %v1378_v27  ;;  %vm1565_vm6 = vcmp.eq.s32.totalorder %v10814_v16, %v1375_v46  ;;  %1560 = vperm.xlu1 %9234, %v14228_v47   ;;  %1563 = vperm.xlu0 %9233, %v14229_v7   ;;  %v11125_v27 = vld [vmem:[%s10467_s15 + $0xa8] sm:$0xff] }
 0x22f   : > { %8976 = vmatmul.mubr.msk.bf16.gmra.mxu1 %vm1829_vm4, %v1372_v26  ;;  %v7600_v4 = vsel %vm1565_vm6, 1.0, %v10299_v60  ;;  %v7601_v0 = vsel %vm1566_vm5, 1.0, %v10299_v60 }
 0x230   : > { %v1757_v2 = vpack.c.bf16 %v7601_v0, %v7600_v4 }
 0x231   : > { %v1381_v29 = vpop.permute.xlu1 %1380  ;;  %v1384_v28 = vpop.permute.xlu0 %1383 }
 0x232   : > { %vm1567_vm7 = vcmp.eq.s32.totalorder %v10814_v16, %v1381_v29  ;;  %vm1568_vm8 = vcmp.eq.s32.totalorder %v10814_v16, %v1384_v28  ;;  %9235 = vset.pattern.permute.xlu1 %v14230_v50  ;;  %8843 = vmatprep.mubr.msk.bf16.mxu0 %vm1829_vm4, %v1757_v2  ;;  %v11135_v2 = vld [vmem:[%s10467_s15 + $0xc8] sm:$0xff] }
 0x233   : > { %v7602_v51 = vsel %vm1567_vm7, 1.0, %v10299_v60  ;;  %v7603_v13 = vsel %vm1568_vm8, 1.0, %v10299_v60  ;;  %2690 = vperm.xlu1 %9235, %v2624_v49   ;;  %3145 = vperm.xlu0 %9233, %v2625_v48  }
 0x234   : > { %v1758_v12 = vpack.c.bf16 %v7603_v13, %v7602_v51  ;;  %v11145_v13 = vld [vmem:[%s10467_s15 + $0xe8] sm:$0xff] }
 0x235   : > { %v1387_v31 = vpop.permute.xlu1 %1386  ;;  %v1390_v53 = vpop.permute.xlu0 %1389 }
 0x236   : > { %vm1569_vm9 = vcmp.eq.s32.totalorder %v10814_v16, %v1387_v31  ;;  %vm1570_vm10 = vcmp.eq.s32.totalorder %v10814_v16, %v1390_v53  ;;  %8844 = vmatmul.mubr.msk.bf16.vlgmr.msra.gmra.mxu0 %vm1829_vm4, %v1758_v12  ;;  %v11151_v12 = vld [vmem:[%s10467_s15 + $0x40] sm:$0xff] }
 0x237   : > { %v7604_v52 = vsel %vm1569_vm9, 1.0, %v10299_v60  ;;  %v7605_v61 = vsel %vm1570_vm10, 1.0, %v10299_v60  ;;  %2700 = vperm.xlu1 %9235, %v2626_v30   ;;  %9237 = vset.pattern.permute.xlu0 %v14230_v50 }
 0x238   : > { %v1759_v62 = vpack.c.bf16 %v7605_v61, %v7604_v52  ;;  %2695 = vperm.xlu0 %9237, %v2625_v48  }
 0x239   : > { %v1393_v55 = vpop.permute.xlu1 %1392  ;;  %v1396_v14 = vpop.permute.xlu0 %1395 }
 0x23a   : > { %vm1571_vm11 = vcmp.eq.s32.totalorder %v10814_v16, %v1393_v55  ;;  %vm1572_vm12 = vcmp.eq.s32.totalorder %v10814_v16, %v1396_v14  ;;  %8847 = vmatprep.mubr.msk.bf16.mxu0 %vm1829_vm4, %v1759_v62  ;;  %v11159_v62 = vld [vmem:[%s10467_s15 + $0x108] sm:$0xff] }
 0x23b   : > { %v7606_v33 = vsel %vm1571_vm11, 1.0, %v10299_v60  ;;  %v7607_v32 = vsel %vm1572_vm12, 1.0, %v10299_v60  ;;  %2705 = vperm.xlu1 %9235, %v2627_v54  }
 0x23c   : > { %v1760_v57 = vpack.c.bf16 %v7607_v32, %v7606_v33  ;;  %2710 = vperm.xlu0 %9237, %v11065_v15  }
 0x23d   : > { %v1399_v3 = vpop.permute.xlu1 %1398  ;;  %v1402_v6 = vpop.permute.xlu0 %1401 }
 0x23e   : > { %vm1573_vm13 = vcmp.eq.s32.totalorder %v10814_v16, %v1399_v3  ;;  %vm1574_vm14 = vcmp.eq.s32.totalorder %v10814_v16, %v1402_v6  ;;  %8848 = vmatmul.mubr.msk.bf16.gmra.mxu0 %vm1829_vm4, %v1760_v57  ;;  %v11169_v57 = vld [vmem:[%s10467_s15 + $0x128] sm:$0xff] }
 0x23f   : > { %v7608_v59 = vsel %vm1573_vm13, 1.0, %v10299_v60  ;;  %v7609_v58 = vsel %vm1574_vm14, 1.0, %v10299_v60  ;;  %2715 = vperm.xlu1 %9235, %v11073_v56  }
 0x240   : > { %v1761_v35 = vpack.c.bf16 %v7609_v58, %v7608_v59  ;;  %2720 = vperm.xlu0 %9237, %v11077_v34  }
 0x241   : > { %v1405_v1 = vpop.permute.xlu1 %1404  ;;  %v1408_v63 = vpop.permute.xlu0 %1407 }
 0x242   : > { %vm1575_vm15 = vcmp.eq.s32.totalorder %v10814_v16, %v1405_v1  ;;  %vm1576_vm0 = vcmp.eq.s32.totalorder %v10814_v16, %v1408_v63  ;;  %8851 = vmatprep.mubr.msk.bf16.mxu0 %vm1829_vm4, %v1761_v35  ;;  %v2665_v1 = vld [vmem:[%s10467_s15 + $0x148] sm:$0xff] }
 0x243   : > { %v7610_v17 = vsel %vm1575_vm15, 1.0, %v10299_v60  ;;  %v7611_v37 = vsel %vm1576_vm0, 1.0, %v10299_v60  ;;  %9236 = vset.pattern.permute.xlu1 %v14231_v36 }
 0x244   : > { %v1762_v18 = vpack.c.bf16 %v7611_v37, %v7610_v17  ;;  %3141 = vperm.xlu1 %9236, %v2624_v49   ;;  %2725 = vperm.xlu0 %9237, %v11087_v19  }
 0x245   : > { %v1411_v22 = vpop.permute.xlu1 %1410  ;;  %v1414_v38 = vpop.permute.xlu0 %1413 }
 0x246   : > { %vm1577_vm1 = vcmp.eq.s32.totalorder %v10814_v16, %v1411_v22  ;;  %vm1578_vm2 = vcmp.eq.s32.totalorder %v10814_v16, %v1414_v38  ;;  %8852 = vmatmul.mubr.msk.bf16.gmra.mxu0 %vm1829_vm4, %v1762_v18  ;;  %v2669_v22 = vld [vmem:[%s10467_s15 + $0x168] sm:$0xff] }
 0x247   : > { %v7612_v20 = vsel %vm1577_vm1, 1.0, %v10299_v60  ;;  %v7613_v21 = vsel %vm1578_vm2, 1.0, %v10299_v60 }
 0x248   : > { %v1763_v9 = vpack.c.bf16 %v7613_v21, %v7612_v20  ;;  %3149 = vperm.xlu1 %9236, %v2626_v30   ;;  %2735 = vperm.xlu0 %9237, %v11097_v39  }
 0x249   : > { %v1417_v8 = vpop.permute.xlu1 %1416  ;;  %v1420_v41 = vpop.permute.xlu0 %1419 }
 0x24a   : > { %vm1579_vm3 = vcmp.eq.s32.totalorder %v10814_v16, %v1417_v8  ;;  %vm1580_vm5 = vcmp.eq.s32.totalorder %v10814_v16, %v1420_v41  ;;  %8855 = vmatprep.mubr.msk.bf16.mxu0 %vm1829_vm4, %v1763_v9  ;;  %v2673_v41 = vld [vmem:[%s10467_s15 + $0x188] sm:$0xff] }
 0x24b   : > { %v7614_v23 = vsel %vm1579_vm3, 1.0, %v10299_v60  ;;  %v7615_v5 = vsel %vm1580_vm5, 1.0, %v10299_v60 }
 0x24c   : > { %v1764_v42 = vpack.c.bf16 %v7615_v5, %v7614_v23  ;;  %3153 = vperm.xlu1 %9236, %v2627_v54   ;;  %2755 = vperm.xlu0 %9237, %v11106_v40   ;;  %v2634_v54 = vld [vmem:[%s10467_s15 + $0x50] sm:$0xff] }
 0x24d   : > { %v1423_v43 = vpop.permute.xlu1 %1422  ;;  %v1426_v25 = vpop.permute.xlu0 %1425 }
 0x24e   : > { %vm1581_vm6 = vcmp.eq.s32.totalorder %v10814_v16, %v1423_v43  ;;  %vm1582_vm7 = vcmp.eq.s32.totalorder %v10814_v16, %v1426_v25  ;;  %8856 = vmatmul.mubr.msk.bf16.gmra.mxu0 %vm1829_vm4, %v1764_v42  ;;  %v11202_v42 = vld [vmem:[%s10467_s15 + $0x60] sm:$0xff] }
 0x24f   : > { %v7616_v10 = vsel %vm1581_vm6, 1.0, %v10299_v60  ;;  %v7617_v11 = vsel %vm1582_vm7, 1.0, %v10299_v60 }
 0x250   : > { %v1765_v45 = vpack.c.bf16 %v7617_v11, %v7616_v10  ;;  %3157 = vperm.xlu1 %9236, %v11065_v15   ;;  %2775 = vperm.xlu0 %9237, %v11115_v24   ;;  %v2677_v10 = vld [vmem:[%s10467_s15 + $0x1a8] sm:$0xff] }
 0x251   : > { %v1429_v44 = vpop.permute.xlu1 %1428  ;;  %v1432_v26 = vpop.permute.xlu0 %1431 }
 0x252   : > { %vm1583_vm8 = vcmp.eq.s32.totalorder %v10814_v16, %v1429_v44  ;;  %vm1584_vm9 = vcmp.eq.s32.totalorder %v10814_v16, %v1432_v26  ;;  %8859 = vmatprep.mubr.msk.bf16.mxu0 %vm1829_vm4, %v1765_v45  ;;  %v2638_v26 = vld [vmem:[%s10467_s15 + $0x70] sm:$0xff] }
 0x253   : > { %v7618_v46 = vsel %vm1583_vm8, 1.0, %v10299_v60  ;;  %v7619_v47 = vsel %vm1584_vm9, 1.0, %v10299_v60 }
 0x254   : > { %v1766_v7 = vpack.c.bf16 %v7619_v47, %v7618_v46  ;;  %3161 = vperm.xlu1 %9236, %v11073_v56   ;;  %2795 = vperm.xlu0 %9237, %v11125_v27   ;;  %v11175_v56 = vld [vmem:[%s10467_s15 + $0x58] sm:$0xff] }
 0x255   : > { %v1435_v4 = vpop.permute.xlu1 %1434  ;;  %v1438_v0 = vpop.permute.xlu0 %1437 }
 0x256   : > { %vm1585_vm10 = vcmp.eq.s32.totalorder %v10814_v16, %v1435_v4  ;;  %vm1586_vm11 = vcmp.eq.s32.totalorder %v10814_v16, %v1438_v0  ;;  %8860 = vmatmul.mubr.msk.bf16.gmra.mxu0 %vm1829_vm4, %v1766_v7  ;;  %v2681_v7 = vld [vmem:[%s10467_s15 + $0x1c8] sm:$0xff] }
 0x257   : > { %v7620_v49 = vsel %vm1585_vm10, 1.0, %v10299_v60  ;;  %v7621_v48 = vsel %vm1586_vm11, 1.0, %v10299_v60 }
 0x258   : > { %v1767_v29 = vpack.c.bf16 %v7621_v48, %v7620_v49  ;;  %3169 = vperm.xlu1 %9236, %v11087_v19   ;;  %2815 = vperm.xlu0 %9237, %v11135_v2   ;;  %v11220_v48 = vld [vmem:[%s10467_s15 + $0x78] sm:$0xff] }
 0x259   : > { %v1441_v28 = vpop.permute.xlu1 %1440  ;;  %v1444_v51 = vpop.permute.xlu0 %1443 }
 0x25a   : > { %vm1587_vm12 = vcmp.eq.s32.totalorder %v10814_v16, %v1441_v28  ;;  %vm1588_vm13 = vcmp.eq.s32.totalorder %v10814_v16, %v1444_v51  ;;  %8863 = vmatprep.mubr.msk.bf16.mxu0 %vm1829_vm4, %v1767_v29  ;;  %v2685_v28 = vld [vmem:[%s10467_s15 + $0x1e8] sm:$0xff] }
 0x25b   : > { %v7622_v30 = vsel %vm1587_vm12, 1.0, %v10299_v60  ;;  %v7623_v31 = vsel %vm1588_vm13, 1.0, %v10299_v60 }
 0x25c   : > { %v1768_v53 = vpack.c.bf16 %v7623_v31, %v7622_v30  ;;  %9238 = vset.pattern.permute.xlu1 %v14230_v50  ;;  %2835 = vperm.xlu0 %9237, %v11145_v13  }
 0x25d   : > { %2730 = vperm.xlu1 %9238, %v11151_v12   ;;  %v1447_v52 = vpop.permute.xlu1 %1446  ;;  %v1450_v61 = vpop.permute.xlu0 %1449 }
 0x25e   : > { %vm1589_vm14 = vcmp.eq.s32.totalorder %v10814_v16, %v1447_v52  ;;  %vm1590_vm15 = vcmp.eq.s32.totalorder %v10814_v16, %v1450_v61  ;;  %8864 = vmatmul.mubr.msk.bf16.gmra.mxu0 %vm1829_vm4, %v1768_v53 }
 0x25f   : > { %v7624_v55 = vsel %vm1589_vm14, 1.0, %v10299_v60  ;;  %v7625_v14 = vsel %vm1590_vm15, 1.0, %v10299_v60 }
 0x260   : > { %v1769_v15 = vpack.c.bf16 %v7625_v14, %v7624_v55  ;;  %2855 = vperm.xlu0 %9237, %v11159_v62  }
 0x261   : > { %2740 = vperm.xlu1 %9238, %v2634_v54   ;;  %v1453_v33 = vpop.permute.xlu1 %1452  ;;  %v1456_v32 = vpop.permute.xlu0 %1455 }
 0x262   : > { %vm1591_vm0 = vcmp.eq.s32.totalorder %v10814_v16, %v1453_v33  ;;  %vm1592_vm1 = vcmp.eq.s32.totalorder %v10814_v16, %v1456_v32  ;;  %8867 = vmatprep.mubr.msk.bf16.mxu0 %vm1829_vm4, %v1769_v15 }
 0x263   : > { %v7626_v3 = vsel %vm1591_vm0, 1.0, %v10299_v60  ;;  %v7627_v6 = vsel %vm1592_vm1, 1.0, %v10299_v60 }
 0x264   : > { %v1770_v59 = vpack.c.bf16 %v7627_v6, %v7626_v3  ;;  %2875 = vperm.xlu0 %9237, %v11169_v57  }
 0x265   : > { %2745 = vperm.xlu1 %9238, %v11175_v56   ;;  %v1459_v58 = vpop.permute.xlu1 %1458  ;;  %v1462_v35 = vpop.permute.xlu0 %1461 }
 0x266   : > { %vm1593_vm2 = vcmp.eq.s32.totalorder %v10814_v16, %v1459_v58  ;;  %vm1594_vm3 = vcmp.eq.s32.totalorder %v10814_v16, %v1462_v35  ;;  %8868 = vmatmul.mubr.msk.bf16.gmra.mxu0 %vm1829_vm4, %v1770_v59  ;;  %v2640_v59 = vld [vmem:[%s10467_s15 + $0x80] sm:$0xff]  ;;  %v9277_v35 = vld [vmem:[%s14073_s8 + $0x38] sm:$0xff]  }
 0x267   : > { %v7628_v63 = vsel %vm1593_vm2, 1.0, %v10299_v60  ;;  %v7629_v19 = vsel %vm1594_vm3, 1.0, %v10299_v60  ;;  %8979 = vmatprep.subr.bf16.mxu0 %v9277_v35 }
 0x268   : > { %v1771_v17 = vpack.c.bf16 %v7629_v19, %v7628_v63  ;;  %2895 = vperm.xlu0 %9237, %v2665_v1   ;;  %8980 = vmatpush3.bf16.msra.mxu0 %v9277_v35  ;;  %v2651_v35 = vld [vmem:[%s10467_s15 + $0xd8] sm:$0xff] }
 0x269   : > { %9239 = vset.pattern.permute.xlu1 %v14231_v36  ;;  %v1465_v37 = vpop.permute.xlu1 %1464  ;;  %v1468_v18 = vpop.permute.xlu0 %1467 }
 0x26a   : > { %vm1595_vm5 = vcmp.eq.s32.totalorder %v10814_v16, %v1465_v37  ;;  %vm1596_vm6 = vcmp.eq.s32.totalorder %v10814_v16, %v1468_v18  ;;  %3177 = vperm.xlu1 %9239, %v11097_v39   ;;  %8871 = vmatprep.mubr.msk.bf16.mxu0 %vm1829_vm4, %v1771_v17  ;;  %v2642_v17 = vld [vmem:[%s10467_s15 + $0x90] sm:$0xff] }
 0x26b   : > { %v7630_v38 = vsel %vm1595_vm5, 1.0, %v10299_v60  ;;  %v7631_v20 = vsel %vm1596_vm6, 1.0, %v10299_v60  ;;  %v9278_v18 = vld [vmem:[%s14073_s8 + $0x30] sm:$0xff]  }
 0x26c   : > { %v1772_v21 = vpack.c.bf16 %v7631_v20, %v7630_v38  ;;  %2915 = vperm.xlu0 %9237, %v2669_v22   ;;  %8981 = vmatprep.subr.bf16.mxu0 %v9278_v18 }
 0x26d   : > { %v1471_v9 = vpop.permute.xlu1 %1470  ;;  %v1474_v8 = vpop.permute.xlu0 %1473  ;;  %8982 = vmatpush3.bf16.msra.mxu0 %v9278_v18 }
 0x26e   : > { %vm1597_vm7 = vcmp.eq.s32.totalorder %v10814_v16, %v1471_v9  ;;  %vm1598_vm8 = vcmp.eq.s32.totalorder %v10814_v16, %v1474_v8  ;;  %3181 = vperm.xlu1 %9239, %v2634_v54   ;;  %8872 = vmatmul.mubr.msk.bf16.gmra.mxu0 %vm1829_vm4, %v1772_v21  ;;  %v2643_v21 = vld [vmem:[%s10467_s15 + $0x98] sm:$0xff]  ;;  %v9279_v8 = vld [vmem:[%s14073_s8 + $0x28] sm:$0xff]  }
 0x26f   : > { %v7632_v39 = vsel %vm1597_vm7, 1.0, %v10299_v60  ;;  %v7633_v23 = vsel %vm1598_vm8, 1.0, %v10299_v60  ;;  %8983 = vmatprep.subr.bf16.mxu0 %v9279_v8 }
 0x270   : > { %v1773_v5 = vpack.c.bf16 %v7633_v23, %v7632_v39  ;;  %2935 = vperm.xlu0 %9237, %v2673_v41  }
 0x271   : > { %v1477_v43 = vpop.permute.xlu1 %1476  ;;  %v1480_v25 = vpop.permute.xlu0 %1479  ;;  %8984 = vmatpush3.bf16.msra.mxu0 %v9279_v8 }
 0x272   : > { %vm1599_vm9 = vcmp.eq.s32.totalorder %v10814_v16, %v1477_v43  ;;  %vm1600_vm10 = vcmp.eq.s32.totalorder %v10814_v16, %v1480_v25  ;;  %9240 = vset.pattern.permute.xlu1 %v14230_v50  ;;  %8875 = vmatprep.mubr.msk.bf16.mxu0 %vm1829_vm4, %v1773_v5  ;;  %v9280_v43 = vld [vmem:[%s14073_s8 + $0x20] sm:$0xff]  }
 0x273   : > { %v7634_v11 = vsel %vm1599_vm9, 1.0, %v10299_v60  ;;  %v7635_v45 = vsel %vm1600_vm10, 1.0, %v10299_v60  ;;  %2750 = vperm.xlu1 %9240, %v11202_v42   ;;  %8985 = vmatprep.subr.bf16.mxu0 %v9280_v43 }
 0x274   : > { %v1774_v44 = vpack.c.bf16 %v7635_v45, %v7634_v11  ;;  %2955 = vperm.xlu0 %9237, %v2677_v10  }
 0x275   : > { %v1483_v46 = vpop.permute.xlu1 %1482  ;;  %v1486_v47 = vpop.permute.xlu0 %1485  ;;  %8986 = vmatpush3.bf16.msra.mxu0 %v9280_v43 }
 0x276   : > { %vm1601_vm11 = vcmp.eq.s32.totalorder %v10814_v16, %v1483_v46  ;;  %vm1602_vm12 = vcmp.eq.s32.totalorder %v10814_v16, %v1486_v47  ;;  %8876 = vmatmul.mubr.msk.bf16.gmra.mxu0 %vm1829_vm4, %v1774_v44  ;;  %v9281_v46 = vld [vmem:[%s14073_s8 + $0x18] sm:$0xff]  }
 0x277   : > { %v7636_v4 = vsel %vm1601_vm11, 1.0, %v10299_v60  ;;  %v7637_v0 = vsel %vm1602_vm12, 1.0, %v10299_v60  ;;  %2760 = vperm.xlu1 %9240, %v2638_v26   ;;  %8987 = vmatprep.subr.bf16.mxu0 %v9281_v46 }
 0x278   : > { %v1775_v49 = vpack.c.bf16 %v7637_v0, %v7636_v4  ;;  %2975 = vperm.xlu0 %9237, %v2681_v7  }
 0x279   : > { %v1489_v29 = vpop.permute.xlu1 %1488  ;;  %v1492_v51 = vpop.permute.xlu0 %1491  ;;  %8988 = vmatpush3.bf16.msra.mxu0 %v9281_v46 }
 0x27a   : > { %vm1603_vm13 = vcmp.eq.s32.totalorder %v10814_v16, %v1489_v29  ;;  %8879 = vmatprep.mubr.msk.bf16.mxu0 %vm1829_vm4, %v1775_v49  ;;  %vm1604_vm14 = vcmp.eq.s32.totalorder %v10814_v16, %v1492_v51  ;;  %v2644_v49 = vld [vmem:[%s10467_s15 + $0xa0] sm:$0xff] }
 0x27b   : > { %v7638_v30 = vsel %vm1603_vm13, 1.0, %v10299_v60  ;;  %2765 = vperm.xlu1 %9240, %v11220_v48   ;;  %v7639_v31 = vsel %vm1604_vm14, 1.0, %v10299_v60 }
 0x27c   : > { %2995 = vperm.xlu0 %9237, %v2685_v28   ;;  %v1776_v53 = vpack.c.bf16 %v7639_v31, %v7638_v30 }
 0x27d   : > { %v1495_v52 = vpop.permute.xlu1 %1494  ;;  %v1498_v61 = vpop.permute.xlu0 %1497 }
 0x27e   : > { %vm1605_vm15 = vcmp.eq.s32.totalorder %v10814_v16, %v1495_v52  ;;  %vm1606_vm0 = vcmp.eq.s32.totalorder %v10814_v16, %v1498_v61  ;;  %8880 = vmatmul.mubr.msk.bf16.gmra.mxu0 %vm1829_vm4, %v1776_v53  ;;  %v2646_v53 = vld [vmem:[%s10467_s15 + $0xb0] sm:$0xff]  ;;  %v2647_v52 = vld [vmem:[%s10467_s15 + $0xb8] sm:$0xff] }
 0x27f   : > { %v7640_v54 = vsel %vm1605_vm15, 1.0, %v10299_v60  ;;  %9241 = vset.pattern.permute.xlu1 %v14231_v36  ;;  %v7641_v55 = vsel %vm1606_vm0, 1.0, %v10299_v60 }
 0x280   : > { %3193 = vperm.xlu1 %9241, %v11106_v40   ;;  %9265 = vset.pattern.permute.xlu0 %v14231_v36  ;;  %v1777_v14 = vpack.c.bf16 %v7641_v55, %v7640_v54 }
 0x281   : > { %v1501_v15 = vpop.permute.xlu1 %1500  ;;  %3165 = vperm.xlu0 %9265, %v11077_v34   ;;  %v1504_v33 = vpop.permute.xlu0 %1503 }
 0x282   : > { %vm1607_vm1 = vcmp.eq.s32.totalorder %v10814_v16, %v1501_v15  ;;  %vm1608_vm2 = vcmp.eq.s32.totalorder %v10814_v16, %v1504_v33  ;;  %8883 = vmatprep.mubr.msk.bf16.mxu0 %vm1829_vm4, %v1777_v14  ;;  %v9283_v15 = vld [vmem:[%s14073_s8 + $0x8] sm:$0xff]  }
 0x283   : > { %v7642_v32 = vsel %vm1607_vm1, 1.0, %v10299_v60  ;;  %v7643_v3 = vsel %vm1608_vm2, 1.0, %v10299_v60 }
 0x284   : > { %3197 = vperm.xlu1 %9241, %v2638_v26   ;;  %v1778_v40 = vpack.c.bf16 %v7643_v3, %v7642_v32  ;;  %v2648_v32 = vld [vmem:[%s10467_s15 + $0xc0] sm:$0xff] }
 0x285   : > { %v1507_v6 = vpop.permute.xlu1 %1506  ;;  %3173 = vperm.xlu0 %9265, %v11151_v12   ;;  %v1510_v34 = vpop.permute.xlu0 %1509 }
 0x286   : > { %vm1609_vm3 = vcmp.eq.s32.totalorder %v10814_v16, %v1507_v6  ;;  %vm1610_vm5 = vcmp.eq.s32.totalorder %v10814_v16, %v1510_v34  ;;  %8884 = vmatmul.mubr.msk.bf16.gmra.mxu0 %vm1829_vm4, %v1778_v40 }
 0x287   : > { %v7644_v58 = vsel %vm1609_vm3, 1.0, %v10299_v60  ;;  %v7645_v1 = vsel %vm1610_vm5, 1.0, %v10299_v60 }
 0x288   : > { %9242 = vset.pattern.permute.xlu1 %v14230_v50  ;;  %v1779_v12 = vpack.c.bf16 %v7645_v1, %v7644_v58 }
 0x289   : > { %2770 = vperm.xlu1 %9242, %v2640_v59   ;;  %v1513_v63 = vpop.permute.xlu1 %1512  ;;  %3185 = vperm.xlu0 %9265, %v11175_v56   ;;  %v1516_v19 = vpop.permute.xlu0 %1515 }
 0x28a   : > { %vm1611_vm6 = vcmp.eq.s32.totalorder %v10814_v16, %v1513_v63  ;;  %vm1612_vm7 = vcmp.eq.s32.totalorder %v10814_v16, %v1516_v19  ;;  %8887 = vmatprep.mubr.msk.bf16.mxu0 %vm1829_vm4, %v1779_v12 }
 0x28b   : > { %v7646_v37 = vsel %vm1611_vm6, 1.0, %v10299_v60  ;;  %v7647_v22 = vsel %vm1612_vm7, 1.0, %v10299_v60 }
 0x28c   : > { %v1780_v56 = vpack.c.bf16 %v7647_v22, %v7646_v37  ;;  %v2652_v37 = vld [vmem:[%s10467_s15 + $0xe0] sm:$0xff] }
 0x28d   : > { %2780 = vperm.xlu1 %9242, %v2642_v17   ;;  %v1519_v38 = vpop.permute.xlu1 %1518  ;;  %3189 = vperm.xlu0 %9265, %v11202_v42   ;;  %v1522_v20 = vpop.permute.xlu0 %1521 }
 0x28e   : > { %vm1613_vm8 = vcmp.eq.s32.totalorder %v10814_v16, %v1519_v38  ;;  %vm1614_vm9 = vcmp.eq.s32.totalorder %v10814_v16, %v1522_v20  ;;  %8888 = vmatmul.mubr.msk.bf16.gmra.mxu0 %vm1829_vm4, %v1780_v56 }
 0x28f   : > { %v7648_v9 = vsel %vm1613_vm8, 1.0, %v10299_v60  ;;  %v7649_v41 = vsel %vm1614_vm9, 1.0, %v10299_v60 }
 0x290   : > { %v1781_v39 = vpack.c.bf16 %v7649_v41, %v7648_v9  ;;  %v11355_v9 = vld [vmem:[%s10467_s15 + $0x118] sm:$0xff] }
 0x291   : > { %2785 = vperm.xlu1 %9242, %v2643_v21   ;;  %v1525_v23 = vpop.permute.xlu1 %1524  ;;  %3201 = vperm.xlu0 %9265, %v11220_v48   ;;  %v1528_v5 = vpop.permute.xlu0 %1527  ;;  %v9282_v48 = vld [vmem:[%s14073_s8 + $0x10] sm:$0xff]  }
 0x292   : > { %vm1615_vm10 = vcmp.eq.s32.totalorder %v10814_v16, %v1525_v23  ;;  %vm1616_vm11 = vcmp.eq.s32.totalorder %v10814_v16, %v1528_v5  ;;  %8891 = vmatprep.mubr.msk.bf16.mxu0 %vm1829_vm4, %v1781_v39  ;;  %8989 = vmatprep.subr.bf16.mxu0 %v9282_v48  ;;  %v11363_v39 = vld [vmem:[%s10467_s15 + $0x120] sm:$0xff]  ;;  %v11369_v5 = vld [vmem:[%s10467_s15 + $0x138] sm:$0xff] }
 0x293   : > { %v7650_v42 = vsel %vm1615_vm10, 1.0, %v10299_v60  ;;  %v7651_v25 = vsel %vm1616_vm11, 1.0, %v10299_v60  ;;  %8990 = vmatpush3.bf16.msra.mxu0 %v9282_v48 }
 0x294   : > { %v1782_v10 = vpack.c.bf16 %v7651_v25, %v7650_v42  ;;  %8991 = vmatprep.subr.bf16.mxu0 %v9283_v15  ;;  %v11379_v25 = vld [vmem:[%s10467_s15 + $0x140] sm:$0xff] }
 0x295   : > { %9243 = vset.pattern.permute.xlu1 %v14231_v36  ;;  %v1531_v11 = vpop.permute.xlu1 %1530  ;;  %3205 = vperm.xlu0 %9265, %v2640_v59   ;;  %v1534_v45 = vpop.permute.xlu0 %1533  ;;  %v9284_v59 = vld [vmem:[%s14073_s8] sm:$0xff]  }
 0x296   : > { %vm1617_vm12 = vcmp.eq.s32.totalorder %v10814_v16, %v1531_v11  ;;  %3209 = vperm.xlu1 %9243, %v11115_v24   ;;  %vm1618_vm13 = vcmp.eq.s32.totalorder %v10814_v16, %v1534_v45  ;;  %8892 = vmatmul.mubr.msk.bf16.gmra.mxu0 %vm1829_vm4, %v1782_v10  ;;  %v11387_v45 = vld [vmem:[%s10467_s15 + $0x158] sm:$0xff] }
 0x297   : > { %v7652_v44 = vsel %vm1617_vm12, 1.0, %v10299_v60  ;;  %v7653_v26 = vsel %vm1618_vm13, 1.0, %v10299_v60  ;;  %8992 = vmatpush3.bf16.msra.mxu0 %v9283_v15 }
 0x298   : > { %v1783_v47 = vpack.c.bf16 %v7653_v26, %v7652_v44  ;;  %8993 = vmatprep.subr.bf16.mxu0 %v9284_v59  ;;  %v11389_v44 = vpop.f32.mrf.mxu1 }
 0x299   : > { %v1537_v7 = vpop.permute.xlu1 %1536  ;;  %3217 = vperm.xlu0 %9265, %v2643_v21   ;;  %v1540_v24 = vpop.permute.xlu0 %1539  ;;  %v2650_v21 = vld [vmem:[%s10467_s15 + $0xd0] sm:$0xff] }
 0x29a   : > { %vm1619_vm14 = vcmp.eq.s32.totalorder %v10814_v16, %v1537_v7  ;;  %3213 = vperm.xlu1 %9243, %v2642_v17   ;;  %vm1620_vm15 = vcmp.eq.s32.totalorder %v10814_v16, %v1540_v24  ;;  %8895 = vmatprep.mubr.msk.bf16.mxu0 %vm1829_vm4, %v1783_v47  ;;  %v11400_v47 = vpop.f32.mrf.mxu1  ;;  %v2654_v24 = vld [vmem:[%s10467_s15 + $0xf0] sm:$0xff] }
 0x29b   : > { %v7654_v4 = vsel %vm1619_vm14, 1.0, %v10299_v60  ;;  %v7655_v0 = vsel %vm1620_vm15, 1.0, %v10299_v60  ;;  %8994 = vmatpush3.bf16.msra.mxu0 %v9284_v59 }
 0x29c   : > { %v1784_v29 = vpack.c.bf16 %v7655_v0, %v7654_v4  ;;  %v11409_v0 = vld [vmem:[%s10467_s15 + $0x178] sm:$0xff] }
 0x29d   : > { %v1543_v28 = vpop.permute.xlu1 %1542  ;;  %3221 = vperm.xlu0 %9265, %v2644_v49   ;;  %v1546_v51 = vpop.permute.xlu0 %1545 }
 0x29e   : > { %vm1621_vm0 = vcmp.eq.s32.totalorder %v10814_v16, %v1543_v28  ;;  %9244 = vset.pattern.permute.xlu1 %v14230_v50  ;;  %vm1622_vm1 = vcmp.eq.s32.totalorder %v10814_v16, %v1546_v51  ;;  %8896 = vmatmul.mubr.msk.bf16.gmra.mxu0 %vm1829_vm4, %v1784_v29  ;;  %v11419_v28 = vld [vmem:[%s10467_s15 + $0x180] sm:$0xff] }
 0x29f   : > { %v7656_v30 = vsel %vm1621_vm0, 1.0, %v10299_v60  ;;  %2790 = vperm.xlu1 %9244, %v2644_v49   ;;  %v7657_v31 = vsel %vm1622_vm1, 1.0, %v10299_v60  ;;  %v11411_v49 = vpop.f32.mrf.mxu1 }
 0x2a0   : > { %v1785_v61 = vpack.c.bf16 %v7657_v31, %v7656_v30 }
 0x2a1   : > { %v1549_v54 = vpop.permute.xlu1 %1548  ;;  %3233 = vperm.xlu0 %9265, %v2647_v52   ;;  %v1552_v55 = vpop.permute.xlu0 %1551 }
 0x2a2   : > { %vm1623_vm2 = vcmp.eq.s32.totalorder %v10814_v16, %v1549_v54  ;;  %vm1624_vm3 = vcmp.eq.s32.totalorder %v10814_v16, %v1552_v55  ;;  %8899 = vmatprep.mubr.msk.bf16.mxu0 %vm1829_vm4, %v1785_v61  ;;  %v11421_v51 = vpop.f32.mrf.mxu1  ;;  %v2676_v55 = vld [vmem:[%s10467_s15 + $0x1a0] sm:$0xff] }
 0x2a3   : > { %v7658_v14 = vsel %vm1623_vm2, 1.0, %v10299_v60  ;;  %2800 = vperm.xlu1 %9244, %v2646_v53   ;;  %v7659_v33 = vsel %vm1624_vm3, 1.0, %v10299_v60 }
 0x2a4   : > { %v1786_v3 = vpack.c.bf16 %v7659_v33, %v7658_v14 }
 0x2a5   : > { %v1555_v40 = vpop.permute.xlu1 %1554  ;;  %3237 = vperm.xlu0 %9265, %v2648_v32   ;;  %v1558_v6 = vpop.permute.xlu0 %1557 }
 0x2a6   : > { %vm1625_vm5 = vcmp.eq.s32.totalorder %v10814_v16, %v1555_v40  ;;  %vm1626_vm6 = vcmp.eq.s32.totalorder %v10814_v16, %v1558_v6  ;;  %8900 = vmatmul.mubr.msk.bf16.gmra.mxu0 %vm1829_vm4, %v1786_v3  ;;  %v2658_v6 = vld [vmem:[%s10467_s15 + $0x110] sm:$0xff] }
 0x2a7   : > { %v7660_v34 = vsel %vm1625_vm5, 1.0, %v10299_v60  ;;  %2805 = vperm.xlu1 %9244, %v2647_v52   ;;  %v7661_v58 = vsel %vm1626_vm6, 1.0, %v10299_v60  ;;  %v11431_v52 = vpop.f32.mrf.mxu1 }
 0x2a8   : > { %v1787_v1 = vpack.c.bf16 %v7661_v58, %v7660_v34  ;;  %v2680_v34 = vld [vmem:[%s10467_s15 + $0x1c0] sm:$0xff] }
 0x2a9   : > { %v1561_v12 = vpop.permute.xlu1 %1560  ;;  %3249 = vperm.xlu0 %9265, %v2651_v35   ;;  %v1564_v63 = vpop.permute.xlu0 %1563 }
 0x2aa   : > { %vm1627_vm7 = vcmp.eq.s32.totalorder %v10814_v16, %v1561_v12  ;;  %vm1628_vm8 = vcmp.eq.s32.totalorder %v10814_v16, %v1564_v63  ;;  %8903 = vmatprep.mubr.msk.bf16.mxu0 %vm1829_vm4, %v1787_v1  ;;  %v2655_v16 = vld [vmem:[%s10467_s15 + $0xf8] sm:$0xff]  ;;  %v11441_v14 = vpop.f32.mrf.mxu1 }
 0x2ab   : > { %v7662_v19 = vsel %vm1627_vm7, 1.0, %v10299_v60  ;;  %9245 = vset.pattern.permute.xlu1 %v14231_v36  ;;  %v7663_v17 = vsel %vm1628_vm8, 1.0, %v10299_v60  ;;  %v11345_v60 = vld [vmem:[%s10467_s15 + $0x100] sm:$0xff]  ;;  %v2683_v1 = vld [vmem:[%s10467_s15 + $0x1d8] sm:$0xff] }
 0x2ac   : > { %3225 = vperm.xlu1 %9245, %v11125_v27   ;;  %v1788_v18 = vpack.c.bf16 %v7663_v17, %v7662_v19  ;;  %v2684_v17 = vld [vmem:[%s10467_s15 + $0x1e0] sm:$0xff] }
 0x2ad   : > { %3253 = vperm.xlu0 %9265, %v2652_v37  }
 0x2ae   : > { %v11336_v22 = vpop.permute.xlu1 %2690  ;;  %v11338_v56 = vpop.permute.xlu0 %3145  ;;  %8904 = vmatmul.mubr.msk.bf16.gmra.mxu0 %vm1829_vm4, %v1788_v18 }
 0x2b0   : > { %3229 = vperm.xlu1 %9245, %v2646_v53   ;;  %v11429_v53 = vld [vmem:[%s10467_s15 + $0x198] sm:$0xff] }
 0x2b1   : > { %3265 = vperm.xlu0 %9265, %v2655_v16   ;;  %14233 = vst [vmem:[#allocation20_spill] sm:$0xff] %v11429_v53 }
 0x2b2   : > { %v11342_v38 = vpop.permute.xlu1 %2700 }
 0x2b3   : > { %v11347_v27 = vpop.permute.xlu0 %2695 }
 0x2b4   : > { %9246 = vset.pattern.permute.xlu1 %v14230_v50 }
 0x2b5   : > { %2810 = vperm.xlu1 %9246, %v2648_v32   ;;  %3269 = vperm.xlu0 %9265, %v11345_v60   ;;  %v2679_v32 = vld [vmem:[%s10467_s15 + $0x1b8] sm:$0xff] }
 0x2b6   : > { %v11351_v20 = vpop.permute.xlu1 %2705 }
 0x2b7   : > { %v11357_v8 = vpop.permute.xlu0 %2710 }
 0x2b9   : > { %2820 = vperm.xlu1 %9246, %v2650_v21   ;;  %3281 = vperm.xlu0 %9265, %v11355_v9  }
 0x2ba   : > { %v11360_v41 = vpop.permute.xlu1 %2715 }
 0x2bb   : > { %v11365_v23 = vpop.permute.xlu0 %2720 }
 0x2bd   : > { %2825 = vperm.xlu1 %9246, %v2651_v35   ;;  %3285 = vperm.xlu0 %9265, %v11363_v39  }
 0x2bf   : > { %v11371_v42 = vpop.permute.xlu1 %3141  ;;  %v11373_v43 = vpop.permute.xlu0 %2725 }
 0x2c1   : > { %9247 = vset.pattern.permute.xlu1 %v14231_v36  ;;  %3297 = vperm.xlu0 %9265, %v11369_v5  }
 0x2c2   : > { %3241 = vperm.xlu1 %9247, %v11135_v2   ;;  %v11398_v2 = vld [vmem:[%s10467_s15 + $0x160] sm:$0xff] }
 0x2c3   : > { %v11381_v10 = vpop.permute.xlu1 %3149  ;;  %v11383_v11 = vpop.permute.xlu0 %2735 }
 0x2c5   : > { %3301 = vperm.xlu0 %9265, %v11379_v25  }
 0x2c6   : > { %3245 = vperm.xlu1 %9247, %v2650_v21  }
 0x2c7   : > { %v11391_v26 = vpop.permute.xlu1 %3153  ;;  %v11393_v46 = vpop.permute.xlu0 %2755 }
 0x2c9   : > { %3313 = vperm.xlu0 %9265, %v11387_v45  }
 0x2ca   : > { %9248 = vset.pattern.permute.xlu1 %v14230_v50 }
 0x2cb   : > { %2830 = vperm.xlu1 %9248, %v2652_v37   ;;  %v11402_v7 = vpop.permute.xlu1 %3157  ;;  %v11405_v4 = vpop.permute.xlu0 %2775 }
 0x2cd   : > { %3317 = vperm.xlu0 %9265, %v11398_v2  }
 0x2cf   : > { %2840 = vperm.xlu1 %9248, %v2654_v24   ;;  %v11413_v48 = vpop.permute.xlu1 %3161  ;;  %v11415_v29 = vpop.permute.xlu0 %2795 }
 0x2d1   : > { %3329 = vperm.xlu0 %9265, %v11409_v0  }
 0x2d3   : > { %2845 = vperm.xlu1 %9248, %v2655_v16   ;;  %v11423_v30 = vpop.permute.xlu1 %3169  ;;  %v11425_v31 = vpop.permute.xlu0 %2815  ;;  %v14240_v16 = vlaneseq }
 0x2d4   : > { %14232 = vst [vmem:[#allocation21_spill] sm:$0xff] %v11425_v31 }
 0x2d5   : > { %3333 = vperm.xlu0 %9265, %v11419_v28  }
 0x2d7   : > { %9249 = vset.pattern.permute.xlu1 %v14231_v36  ;;  %v11437_v54 = vpop.permute.xlu0 %2835 }
 0x2d8   : > { %3257 = vperm.xlu1 %9249, %v11145_v13   ;;  %v11435_v61 = vpop.permute.xlu1 %2730  ;;  %14234 = vst [vmem:[#allocation23_spill] sm:$0xff] %v11437_v54  ;;  %v11448_v13 = vpop.f32.mrf.mxu1 }
 0x2d9   : > { %3345 = vperm.xlu0 %9265, %v11429_v53  }
 0x2da   : > { %v11458_v59 = vpop.f32.mrf.mxu1 }
 0x2db   : > { %v11445_v33 = vpop.permute.xlu0 %2855 }
 0x2dc   : > { %3261 = vperm.xlu1 %9249, %v2654_v24   ;;  %v11443_v15 = vpop.permute.xlu1 %2740  ;;  %14235 = vst [vmem:[#allocation22_spill] sm:$0xff] %v11445_v33  ;;  %v11465_v12 = vpop.f32.mrf.mxu1  ;;  %v2687_v24 = vld [vmem:[%s10467_s15 + $0x1f8] sm:$0xff] }
 0x2dd   : > { %3349 = vperm.xlu0 %9265, %v2676_v55  }
 0x2de   : > { %v11473_v37 = vpop.f32.mrf.mxu1 }
 0x2df   : > { %v11453_v40 = vpop.permute.xlu0 %2875 }
 0x2e0   : > { %9250 = vset.pattern.permute.xlu1 %v14230_v50  ;;  %v11451_v3 = vpop.permute.xlu1 %2745  ;;  %14236 = vst [vmem:[#allocation25_spill] sm:$0xff] %v11453_v40 }
 0x2e1   : > { %2850 = vperm.xlu1 %9250, %v11345_v60   ;;  %3361 = vperm.xlu0 %9265, %v2679_v32   ;;  %v11478_v60 = vshrl.u32 %v14240_v16, 7 }
 0x2e3   : > { %v11460_v58 = vpop.permute.xlu0 %2895  ;;  %14241 = vst [vmem:[#allocation29_spill] sm:$0xff] %v11478_v60  ;;  %v3010_v32 = vsub.s32 5, %v11478_v60 }
 0x2e4   : > { %14237 = vst [vmem:[#allocation24_spill] sm:$0xff] %v11460_v58 }
 0x2e5   : > { %2860 = vperm.xlu1 %9250, %v2658_v6   ;;  %v11462_v35 = vpop.permute.xlu1 %3177  ;;  %3365 = vperm.xlu0 %9265, %v2680_v34  }
 0x2e7   : > { %v11467_v63 = vpop.permute.xlu0 %2915 }
 0x2e8   : > { %14238 = vst [vmem:[#allocation27_spill] sm:$0xff] %v11467_v63 }
 0x2e9   : > { %2865 = vperm.xlu1 %9250, %v11355_v9   ;;  %v11470_v19 = vpop.permute.xlu1 %3181  ;;  %3377 = vperm.xlu0 %9265, %v2683_v1   ;;  %v11485_v9 = vpop.f32.mrf.mxu1 }
 0x2eb   : > { %v11475_v18 = vpop.permute.xlu0 %2935  ;;  %v11492_v1 = vpop.f32.mrf.mxu1 }
 0x2ec   : > { %14239 = vst [vmem:[#allocation26_spill] sm:$0xff] %v11475_v18 }
 0x2ed   : > { %9251 = vset.pattern.permute.xlu1 %v14231_v36  ;;  %3381 = vperm.xlu0 %9265, %v2684_v17   ;;  %v3398_v17 = vsub.s32 6, %v11478_v60  ;;  %v11503_v58 = vpop.f32.mrf.mxu1 }
 0x2ee   : > { %3273 = vperm.xlu1 %9251, %v11159_v62   ;;  %v11482_v21 = vpop.permute.xlu1 %2750  ;;  %v14244_v62 = vld [vmem:[#allocation19_spill] sm:$0xff] }
 0x2ef   : > { %v11487_v55 = vpop.permute.xlu0 %2955  ;;  %v11498_v18 = vrot.slane %v14244_v62, %v3010_v32  ;;  %v11513_v32 = vld [vmem:[%s10467_s15 + $0x130] sm:$0xff] }
 0x2f0   : > { %14242 = vst [vmem:[#allocation28_spill] sm:$0xff] %v11487_v55 }
 0x2f1   : > { %3393 = vperm.xlu0 %9265, %v2687_v24   ;;  %v11508_v24 = vrot.slane %v14244_v62, %v3398_v17  ;;  %v3012_v33 = vmul.f32 %v11498_v18, %v11336_v22  ;;  %v3015_v17 = vmul.f32 %v11498_v18, %v11351_v20 }
 0x2f2   : > { %3277 = vperm.xlu1 %9251, %v2658_v6   ;;  %v11490_v34 = vpop.permute.xlu1 %2760  ;;  %v3014_v6 = vmul.f32 %v11498_v18, %v11342_v38 }
 0x2f3   : > { %v11495_v16 = vpop.permute.xlu0 %2975  ;;  %v3402_v54 = vmul.f32 %v11508_v24, %v11381_v10  ;;  %v3403_v20 = vmul.f32 %v11508_v24, %v11391_v26 }
 0x2f4   : > { %14243 = vst [vmem:[#allocation31_spill] sm:$0xff] %v11495_v16 }
 0x2f6   : > { %9252 = vset.pattern.permute.xlu1 %v14230_v50  ;;  %v11501_v63 = vpop.permute.xlu1 %2765  ;;  %v8845_v55 = vpop.f32.mrf.mxu0 }
 0x2f7   : > { %v2378_v60 = vadd.f32 %v11389_v44, %v8845_v55  ;;  %2870 = vperm.xlu1 %9252, %v11363_v39   ;;  %v11515_v40 = vpop.permute.xlu0 %2995  ;;  %v3013_v39 = vmul.f32 %v11498_v18, %v11347_v27  ;;  %v11526_v55 = vpop.f32.mrf.mxu1 }
 0x2f8   : > { %v1960_v16 = vpop.f32.mrf.mxu0  ;;  %14245 = vst [vmem:[#allocation30_spill] sm:$0xff] %v11515_v40  ;;  %v3400_v40 = vmul.f32 %v11508_v24, %v11371_v42 }
 0x2f9   : > { %v3078_v53 = vadd.f32 %v3014_v6, %v2378_v60  ;;  %v2370_v38 = vadd.f32 %v11400_v47, %v1960_v16  ;;  %v11548_v26 = vpop.f32.mrf.mxu1 }
 0x2fa   : > { %v8846_v44 = vpop.f32.mrf.mxu0 }
 0x2fb   : > { %v11530_v62 = vadd.f32 %v3402_v54, %v3078_v53  ;;  %v3076_v22 = vadd.f32 %v3012_v33, %v2370_v38  ;;  %v2381_v10 = vadd.f32 %v11411_v49, %v8846_v44  ;;  %2880 = vperm.xlu1 %9252, %v11513_v32   ;;  %v11534_v47 = vpop.permute.xlu1 %3193  ;;  %v3401_v53 = vmul.f32 %v11508_v24, %v11338_v56 }
 0x2fc   : > { %v1963_v60 = vpop.f32.mrf.mxu0  ;;  %v3166_v27 = vpop.permute.xlu0 %3165  ;;  %v3016_v49 = vmul.f32 %v11498_v18, %v11357_v8  ;;  %v3018_v54 = vmul.f32 %v11498_v18, %v11365_v23  ;;  %v3019_v56 = vmul.f32 %v11498_v18, %v11373_v43 }
 0x2fd   : > { %v7738_v16 = vmul.f32 -1.442695, %v11530_v62  ;;  %v11539_v6 = vadd.f32 %v3400_v40, %v3076_v22  ;;  %v3079_v31 = vadd.f32 %v3015_v17, %v2381_v10  ;;  %v2373_v42 = vadd.f32 %v11421_v51, %v1963_v60 }
 0x2fe   : > { %v8849_v33 = vpop.f32.mrf.mxu0  ;;  %v3406_v23 = vmul.f32 %v11508_v24, %v3166_v27 }
 0x2ff   : > { %9285 = vpow2.f32 %v7738_v16  ;;  %v7736_v38 = vmul.f32 -1.442695, %v11539_v6  ;;  %v11551_v40 = vadd.f32 %v3403_v20, %v3079_v31  ;;  %v3077_v17 = vadd.f32 %v3013_v39, %v2373_v42  ;;  %2885 = vperm.xlu1 %9252, %v11369_v5   ;;  %v11554_v51 = vpop.permute.xlu1 %3197 }
 0x300   : > { %v2394_v8 = vadd.f32 %v11431_v52, %v8849_v33  ;;  %v1976_v44 = vpop.f32.mrf.mxu0  ;;  %v3174_v22 = vpop.permute.xlu0 %3173  ;;  %v3017_v5 = vmul.f32 %v11498_v18, %v11360_v41  ;;  %v3404_v39 = vmul.f32 %v11508_v24, %v11402_v7  ;;  %v11579_v41 = vmul.f32 %v11498_v18, %v11393_v46 }
 0x301   : > { %9287 = vpow2.f32 %v7736_v38  ;;  %v7739_v10 = vmul.f32 -1.442695, %v11551_v40  ;;  %v11561_v60 = vadd.f32 %v3401_v53, %v3077_v17  ;;  %v2386_v31 = vadd.f32 %v11441_v14, %v1976_v44  ;;  %v11568_v52 = vpop.f32.mrf.mxu1 }
 0x302   : > { %v3082_v43 = vadd.f32 %v3018_v54, %v2394_v8  ;;  %v8850_v20 = vpop.f32.mrf.mxu0  ;;  %v11575_v14 = vmul.f32 %v11498_v18, %v11383_v11  ;;  %v11583_v7 = vmul.f32 %v11498_v18, %v11405_v4  ;;  %v3407_v54 = vmul.f32 %v11508_v24, %v11423_v30 }
 0x303   : > { %9289 = vpow2.f32 %v7739_v10  ;;  %v7737_v27 = vmul.f32 -1.442695, %v11561_v60  ;;  %v3080_v16 = vadd.f32 %v3016_v49, %v2386_v31  ;;  %v2397_v42 = vadd.f32 %v11448_v13, %v8850_v20  ;;  %9253 = vset.pattern.permute.xlu1 %v14231_v36  ;;  %v11598_v44 = vpop.f32.mrf.mxu1 }
 0x304   : > { %v11585_v53 = vadd.f32 %v3406_v23, %v3082_v43  ;;  %3289 = vperm.xlu1 %9253, %v11169_v57   ;;  %v2771_v49 = vpop.permute.xlu1 %2770  ;;  %v1979_v13 = vpop.f32.mrf.mxu0  ;;  %v3405_v46 = vmul.f32 %v11508_v24, %v11413_v48  ;;  %v3020_v4 = vmul.f32 %v11498_v18, %v11435_v61  ;;  %v3022_v30 = vmul.f32 %v11498_v18, %v11443_v15 }
 0x305   : > { %9291 = vpow2.f32 %v7737_v27  ;;  %v11590_v11 = vadd.f32 %v3404_v39, %v3080_v16  ;;  %v3083_v33 = vadd.f32 %v3019_v56, %v2397_v42  ;;  %v3186_v38 = vpop.permute.xlu0 %3185  ;;  %v2389_v57 = vadd.f32 %v11458_v59, %v1979_v13  ;;  %v11624_v16 = vpop.f32.mrf.mxu1 }
 0x306   : > { %v7742_v17 = vmul.f32 -1.442695, %v11585_v53  ;;  %v8853_v8 = vpop.f32.mrf.mxu0  ;;  %v3023_v48 = vmul.f32 %v11498_v18, %v11451_v3  ;;  %v3409_v61 = vmul.f32 %v11508_v24, %v11462_v35  ;;  %v3410_v15 = vmul.f32 %v11508_v24, %v11470_v19 }
 0x307   : > { %v7740_v23 = vmul.f32 -1.442695, %v11590_v11  ;;  %v11603_v56 = vadd.f32 %v3407_v54, %v3083_v33  ;;  %v2410_v10 = vadd.f32 %v11465_v12, %v8853_v8  ;;  %v3081_v59 = vadd.f32 %v3017_v5, %v2389_v57 }
 0x308   : > { %9293 = vpow2.f32 %v7742_v17  ;;  %3293 = vperm.xlu1 %9253, %v11513_v32   ;;  %v11611_v31 = vpop.permute.xlu1 %2780  ;;  %v1992_v39 = vpop.f32.mrf.mxu0  ;;  %v11618_v3 = vmul.f32 %v11498_v18, %v11482_v21  ;;  %v3408_v32 = vmul.f32 %v11508_v24, %v3174_v22  ;;  %v3411_v13 = vmul.f32 %v11508_v24, %v3186_v38 }
 0x309   : > { %9295 = vpow2.f32 %v7740_v23  ;;  %v7743_v43 = vmul.f32 -1.442695, %v11603_v56  ;;  %v3086_v12 = vadd.f32 %v3022_v30, %v2410_v10  ;;  %v3190_v20 = vpop.permute.xlu0 %3189  ;;  %v11620_v35 = vadd.f32 %v3405_v46, %v3081_v59  ;;  %v11648_v59 = vld [vmem:[%s10467_s15 + $0x150] sm:$0xff] }
 0x30a   : > { %v2402_v5 = vadd.f32 %v11473_v37, %v1992_v39  ;;  %v8854_v27 = vpop.f32.mrf.mxu0  ;;  %v3026_v21 = vmul.f32 %v11498_v18, %v11490_v34  ;;  %v3027_v33 = vmul.f32 %v11498_v18, %v11501_v63  ;;  %v11651_v39 = vmul.f32 %v11498_v18, %v2771_v49 }
 0x30b   : > { %9297 = vpow2.f32 %v7743_v43  ;;  %v11626_v19 = vadd.f32 %v3410_v15, %v3086_v12  ;;  %v2413_v42 = vadd.f32 %v11485_v9, %v8854_v27  ;;  %v7741_v37 = vmul.f32 -1.442695, %v11620_v35  ;;  %v11656_v43 = vpop.f32.mrf.mxu1 }
 0x30c   : > { %v9286_v54 = vpop.eup %9285  ;;  %v3084_v22 = vadd.f32 %v3020_v4, %v2402_v5  ;;  %9254 = vset.pattern.permute.xlu1 %v14230_v50  ;;  %v2786_v46 = vpop.permute.xlu1 %2785  ;;  %v11638_v9 = vmul.f32 %v11508_v24, %v11534_v47  ;;  %v3414_v4 = vmul.f32 %v11508_v24, %v11554_v51  ;;  %v3412_v5 = vmul.f32 %v11508_v24, %v3190_v20 }
 0x30d   : > { %v1995_v17 = vpop.f32.mrf.mxu0  ;;  %v3722_v57 = vadd.f32 1.0, %v9286_v54  ;;  %v7746_v38 = vmul.f32 -1.442695, %v11626_v19  ;;  %v3087_v8 = vadd.f32 %v3023_v48, %v2413_v42  ;;  %2890 = vperm.xlu1 %9254, %v11379_v25   ;;  %v3202_v34 = vpop.permute.xlu0 %3201  ;;  %9299 = vpow2.f32 %v7741_v37 }
 0x30e   : > { %v9288_v63 = vpop.eup %9287  ;;  %v11644_v30 = vadd.f32 %v3408_v32, %v3084_v22  ;;  %v2405_v23 = vadd.f32 %v11492_v1, %v1995_v17  ;;  %v3415_v22 = vmul.f32 %v11508_v24, %v3202_v34 }
 0x30f   : > { %v8857_v10 = vpop.f32.mrf.mxu0  ;;  %v3720_v47 = vadd.f32 1.0, %v9288_v63  ;;  %v11653_v48 = vadd.f32 %v3411_v13, %v3087_v8  ;;  %9301 = vrcp.f32 %v3722_v57  ;;  %v2436_v57 = vpop.f32.mrf.mxu1 }
 0x310   : > { %v2426_v25 = vadd.f32 %v11503_v58, %v8857_v10  ;;  %v9290_v15 = vpop.eup %9289  ;;  %v7744_v51 = vmul.f32 -1.442695, %v11644_v30  ;;  %v3085_v12 = vadd.f32 %v11575_v14, %v2405_v23  ;;  %9303 = vpow2.f32 %v7746_v38 }
 0x311   : > { %v2008_v1 = vpop.f32.mrf.mxu0  ;;  %v3723_v32 = vadd.f32 1.0, %v9290_v15  ;;  %v7747_v49 = vmul.f32 -1.442695, %v11653_v48  ;;  %2900 = vperm.xlu1 %9254, %v11648_v59   ;;  %v11663_v42 = vpop.permute.xlu1 %3209  ;;  %v3030_v38 = vmul.f32 %v11498_v18, %v11611_v31  ;;  %v3031_v31 = vmul.f32 %v11498_v18, %v2786_v46 }
 0x312   : > { %v3090_v27 = vadd.f32 %v3026_v21, %v2426_v25  ;;  %v3206_v58 = vpop.permute.xlu0 %3205  ;;  %v9292_v13 = vpop.eup %9291  ;;  %9305 = vpow2.f32 %v7744_v51  ;;  %v11665_v54 = vadd.f32 %v3409_v61, %v3085_v12  ;;  %v2418_v37 = vadd.f32 %v11526_v55, %v2008_v1 }
 0x313   : > { %v8858_v14 = vpop.f32.mrf.mxu0  ;;  %9307 = vrcp.f32 %v3720_v47  ;;  %v3721_v20 = vadd.f32 1.0, %v9292_v13  ;;  %v11686_v1 = vpop.f32.mrf.mxu1 }
 0x314   : > { %v11669_v17 = vadd.f32 %v3414_v4, %v3090_v27  ;;  %v2429_v21 = vadd.f32 %v11548_v26, %v8858_v14  ;;  %v7745_v8 = vmul.f32 -1.442695, %v11665_v54  ;;  %9309 = vpow2.f32 %v7747_v49 }
 0x315   : > { %v3088_v61 = vadd.f32 %v11618_v3, %v2418_v37  ;;  %v2011_v63 = vpop.f32.mrf.mxu0  ;;  %v9294_v55 = vpop.eup %9293  ;;  %9311 = vrcp.f32 %v3723_v32  ;;  %2905 = vperm.xlu1 %9254, %v11387_v45   ;;  %v3416_v3 = vmul.f32 %v11508_v24, %v3206_v58 }
 0x316   : > { %v7750_v34 = vmul.f32 -1.442695, %v11669_v17  ;;  %v3091_v23 = vadd.f32 %v3027_v33, %v2429_v21  ;;  %v2421_v4 = vadd.f32 %v11568_v52, %v2011_v63  ;;  %v3214_v26 = vpop.permute.xlu1 %3213  ;;  %v3218_v10 = vpop.permute.xlu0 %3217  ;;  %9313 = vpow2.f32 %v7745_v8 }
 0x317   : > { %v9296_v47 = vpop.eup %9295  ;;  %v11680_v25 = vadd.f32 %v3412_v5, %v3088_v61  ;;  %v8861_v15 = vpop.f32.mrf.mxu0  ;;  %9315 = vrcp.f32 %v3721_v20  ;;  %v3726_v45 = vadd.f32 1.0, %v9294_v55  ;;  %v3418_v13 = vmul.f32 %v11508_v24, %v3214_v26 }
 0x318   : > { %v3724_v51 = vadd.f32 1.0, %v9296_v47  ;;  %v3089_v12 = vadd.f32 %v11579_v41, %v2421_v4  ;;  %v11684_v33 = vadd.f32 %v3415_v22, %v3091_v23  ;;  %v9298_v52 = vpop.eup %9297  ;;  %9317 = vpow2.f32 %v7750_v34  ;;  %v10053_v22 = vld [vmem:[%s10467_s15 + $0x148] sm:$0xff]  ;;  %v2449_v63 = vpop.f32.mrf.mxu1 }
 0x319   : > { %v7748_v46 = vmul.f32 -1.442695, %v11680_v25  ;;  %v2442_v5 = vadd.f32 %v11598_v44, %v8861_v15  ;;  %v2024_v32 = vpop.f32.mrf.mxu0  ;;  %v3727_v49 = vadd.f32 1.0, %v9298_v52  ;;  %9255 = vset.pattern.permute.xlu1 %v14231_v36  ;;  %v3419_v61 = vmul.f32 %v11508_v24, %v3218_v10 }
 0x31a   : > { %9319 = vrcp.f32 %v3724_v51  ;;  %v11691_v27 = vadd.f32 %v11638_v9, %v3089_v12  ;;  %v7751_v41 = vmul.f32 -1.442695, %v11684_v33  ;;  %v3222_v58 = vpop.permute.xlu0 %3221  ;;  %v2434_v14 = vadd.f32 %v11624_v16, %v2024_v32  ;;  %3305 = vperm.xlu1 %9255, %v10053_v22   ;;  %v2791_v44 = vpop.permute.xlu1 %2790 }
 0x31b   : > { %9321 = vpow2.f32 %v7748_v46  ;;  %v3094_v37 = vadd.f32 %v3030_v38, %v2442_v5  ;;  %v8862_v20 = vpop.f32.mrf.mxu0  ;;  %v9300_v21 = vpop.eup %9299  ;;  %v3033_v15 = vmul.f32 %v11498_v18, %v11415_v29 }
 0x31c   : > { %9323 = vrcp.f32 %v3727_v49  ;;  %v7749_v9 = vmul.f32 -1.442695, %v11691_v27  ;;  %v2445_v8 = vadd.f32 %v11656_v43, %v8862_v20  ;;  %v3725_v55 = vadd.f32 1.0, %v9300_v21  ;;  %v9302_v23 = vpop.eup %9301  ;;  %v8938_v5 = vpop.f32.mrf.mxu1 }
 0x31d   : > { %9325 = vpow2.f32 %v7751_v41  ;;  %v11701_v34 = vadd.f32 %v3418_v13, %v3094_v37  ;;  %v3092_v38 = vadd.f32 %v11651_v39, %v2434_v14  ;;  %v2027_v16 = vpop.f32.mrf.mxu0  ;;  %v9304_v47 = vpop.eup %9303  ;;  %v3417_v39 = vmul.f32 %v11508_v24, %v11663_v42 }
 0x31e   : > { %9327 = vpow2.f32 %v7749_v9  ;;  %v3095_v4 = vadd.f32 %v3031_v31, %v2445_v8  ;;  %v2437_v26 = vadd.f32 %v2436_v57, %v2027_v16  ;;  %3309 = vperm.xlu1 %9255, %v11648_v59   ;;  %v2801_v51 = vpop.permute.xlu1 %2800  ;;  %v3234_v46 = vpop.permute.xlu0 %3233  ;;  %v3032_v49 = vmul.f32 %v11498_v18, %v2791_v44 }
 0x31f   : > { %9329 = vrcp.f32 %v3725_v55  ;;  %v7754_v43 = vmul.f32 -1.442695, %v11701_v34  ;;  %v11707_v10 = vadd.f32 %v3416_v3, %v3092_v38  ;;  %v8865_v12 = vpop.f32.mrf.mxu0  ;;  %v9306_v52 = vpop.eup %9305  ;;  %v3420_v41 = vmul.f32 %v11508_v24, %v3222_v58 }
 0x320   : > { %9331 = vrcp.f32 %v3726_v45  ;;  %v3093_v57 = vadd.f32 %v11583_v7, %v2437_v26  ;;  %v11713_v31 = vadd.f32 %v3419_v61, %v3095_v4  ;;  %v9308_v29 = vpop.eup %9307  ;;  %v3728_v32 = vadd.f32 1.0, %v9306_v52  ;;  %v2452_v55 = vpop.f32.mrf.mxu1  ;;  %v11730_v4 = vld [vmem:[%s10467_s15 + $0x170] sm:$0xff] }
 0x321   : > { %v7752_v3 = vmul.f32 -1.442695, %v11707_v10  ;;  %v2040_v59 = vpop.f32.mrf.mxu0  ;;  %v9310_v13 = vpop.eup %9309  ;;  %v11719_v45 = vmul.f32 %v9302_v23, %v11530_v62  ;;  %v3730_v42 = vadd.f32 1.0, %v9304_v47  ;;  %9333 = vpow2.f32 %v7754_v43 }
 0x322   : > { %v11721_v7 = vadd.f32 %v3417_v39, %v3093_v57  ;;  %v9312_v37 = vpop.eup %9311  ;;  %9335 = vrcp.f32 %v3728_v32  ;;  %v3731_v14 = vadd.f32 1.0, %v9310_v13  ;;  %v2450_v22 = vadd.f32 %v2449_v63, %v2040_v59  ;;  %9256 = vset.pattern.permute.xlu1 %v14230_v50  ;;  %v2806_v20 = vpop.permute.xlu1 %2805 }
 0x323   : > { %v8866_v44 = vpop.f32.mrf.mxu0  ;;  %v3423_v21 = vmul.f32 %v11508_v24, %v3234_v46  ;;  %v9314_v58 = vpop.eup %9313  ;;  %9337 = vpow2.f32 %v7752_v3  ;;  %v7755_v9 = vmul.f32 -1.442695, %v11713_v31  ;;  %v3035_v8 = vmul.f32 %v11498_v18, %v2806_v20  ;;  %2910 = vperm.xlu1 %9256, %v11398_v2  }
 0x324   : > { %v7753_v62 = vmul.f32 -1.442695, %v11721_v7  ;;  %v9316_v61 = vpop.eup %9315  ;;  %v3729_v63 = vadd.f32 1.0, %v9314_v58  ;;  %9339 = vrcp.f32 %v3731_v14  ;;  %v3096_v38 = vadd.f32 %v3032_v49, %v2450_v22 }
 0x325   : > { %v2461_v16 = vadd.f32 %v8938_v5, %v8866_v44  ;;  %v2043_v23 = vpop.f32.mrf.mxu0  ;;  %v9318_v26 = vpop.eup %9317  ;;  %v3034_v47 = vmul.f32 %v11498_v18, %v2801_v51  ;;  %v2458_v43 = vadd.f32 %v11686_v1, %v8865_v12  ;;  %v3915_v57 = vmul.f32 %v9312_v37, %v11551_v40 }
 0x326   : > { %9341 = vpow2.f32 %v7753_v62  ;;  %v2453_v52 = vadd.f32 %v2452_v55, %v2043_v23  ;;  %v11735_v2 = vadd.f32 %v3420_v41, %v3096_v38  ;;  %v3912_v49 = vmul.f32 %v9308_v29, %v11539_v6 }
 0x327   : > { %v9320_v39 = vpop.eup %9319  ;;  %9343 = vrcp.f32 %v3729_v63  ;;  %v3099_v46 = vadd.f32 %v3035_v8, %v2461_v16  ;;  %2920 = vperm.xlu1 %9256, %v11730_v4   ;;  %v3226_v3 = vpop.permute.xlu1 %3225  ;;  %v3913_v51 = vmul.f32 %v9316_v61, %v11561_v60  ;;  %v3098_v13 = vadd.f32 %v3034_v47, %v2458_v43 }
 0x328   : > { %v9322_v32 = vpop.eup %9321  ;;  %9345 = vrcp.f32 %v3730_v42  ;;  %v3097_v5 = vadd.f32 %v3033_v15, %v2453_v52  ;;  %v7756_v12 = vmul.f32 -1.442695, %v11735_v2  ;;  %v3421_v37 = vmul.f32 %v11508_v24, %v3226_v3  ;;  %v11746_v60 = vpop.f32.mrf.mxu0 }
 0x329   : > { %v9324_v59 = vpop.eup %9323  ;;  %v3732_v1 = vadd.f32 1.0, %v9322_v32  ;;  %9347 = vpow2.f32 %v7755_v9  ;;  %v11741_v40 = vadd.f32 %v3423_v21, %v3099_v46  ;;  %v3976_v42 = vpack.c.bf16 %v3913_v51, %v3912_v49  ;;  %v11751_v9 = vpop.f32.mrf.mxu1 }
 0x32a   : > { %v9326_v41 = vpop.eup %9325  ;;  %v3977_v14 = vpack.c.bf16 %v3915_v57, %v11719_v45  ;;  %v3734_v20 = vadd.f32 1.0, %v9318_v26  ;;  %v11748_v21 = vadd.f32 %v3421_v37, %v3097_v5  ;;  %v3916_v8 = vmul.f32 %v9320_v39, %v11590_v11  ;;  %v2056_v38 = vpop.f32.mrf.mxu0  ;;  %v10054_v39 = vld [vmem:[%s10467_s15 + $0x168] sm:$0xff] }
 0x32b   : > { %v9328_v15 = vpop.eup %9327  ;;  %9349 = vrcp.f32 %v3732_v1  ;;  %v3735_v22 = vadd.f32 1.0, %v9326_v41  ;;  %v7759_v6 = vmul.f32 -1.442695, %v11741_v40  ;;  %8995 = vmatprep.mubr.bf16.mxu0 %v3976_v42  ;;  %2925 = vperm.xlu1 %9256, %v11409_v0   ;;  %v3230_v58 = vpop.permute.xlu1 %3229  ;;  %v3919_v23 = vmul.f32 %v9324_v59, %v11603_v56 }
 0x32c   : > { %v9330_v29 = vpop.eup %9329  ;;  %v3733_v44 = vadd.f32 1.0, %v9328_v15  ;;  %9351 = vpow2.f32 %v7756_v12  ;;  %8996 = vmatmul.mubr.bf16.vlgmr.msra.gmra.mxu0 %v3977_v14  ;;  %v3422_v45 = vmul.f32 %v11508_v24, %v3230_v58  ;;  %v7757_v55 = vmul.f32 -1.442695, %v11748_v21  ;;  %v3238_v47 = vpop.permute.xlu0 %3237 }
 0x32d   : > { %v9332_v62 = vpop.eup %9331  ;;  %9353 = vrcp.f32 %v3735_v22  ;;  %v3917_v61 = vmul.f32 %v9330_v29, %v11620_v35  ;;  %v2465_v43 = vpop.f32.mrf.mxu1  ;;  %v3424_v51 = vmul.f32 %v11508_v24, %v3238_v47 }
 0x32e   : > { %9355 = vrcp.f32 %v3733_v44  ;;  %v9334_v63 = vpop.eup %9333  ;;  %v11757_v0 = vadd.f32 %v3422_v45, %v3098_v13  ;;  %v3918_v35 = vmul.f32 %v9332_v62, %v11585_v53  ;;  %v2466_v5 = vadd.f32 %v2465_v43, %v2056_v38  ;;  %v8870_v12 = vpop.f32.mrf.mxu0 }
 0x32f   : > { %9357 = vpow2.f32 %v7759_v6  ;;  %v3978_v16 = vpack.c.bf16 %v3917_v61, %v3916_v8  ;;  %v9336_v26 = vpop.eup %9335  ;;  %9257 = vset.pattern.permute.xlu1 %v14231_v36  ;;  %v3738_v1 = vadd.f32 1.0, %v9334_v63  ;;  %v8942_v22 = vpop.f32.mrf.mxu1 }
 0x330   : > { %9359 = vpow2.f32 %v7757_v55  ;;  %v9338_v11 = vpop.eup %9337  ;;  %v7758_v52 = vmul.f32 -1.442695, %v11757_v0  ;;  %3321 = vperm.xlu1 %9257, %v10054_v39   ;;  %v2811_v57 = vpop.permute.xlu1 %2810  ;;  %v3979_v49 = vpack.c.bf16 %v3919_v23, %v3918_v35  ;;  %v3920_v37 = vmul.f32 %v9336_v26, %v11644_v30  ;;  %v14246_v23 = vld [vmem:[#allocation21_spill] sm:$0xff] }
 0x331   : > { %9361 = vrcp.f32 %v3734_v20  ;;  %8999 = vmatprep.mubr.bf16.mxu0 %v3978_v16  ;;  %v9340_v46 = vpop.eup %9339  ;;  %v3736_v32 = vadd.f32 1.0, %v9338_v11  ;;  %v3036_v56 = vmul.f32 %v11498_v18, %v2811_v57  ;;  %v3250_v58 = vpop.permute.xlu0 %3249  ;;  %v2477_v55 = vadd.f32 %v8942_v22, %v8870_v12  ;;  %v11781_v35 = vld [vmem:[%s10467_s15 + $0x190] sm:$0xff] }
 0x332   : > { %9363 = vpow2.f32 %v7758_v52  ;;  %v3923_v6 = vmul.f32 %v9340_v46, %v11653_v48  ;;  %v2059_v45 = vpop.f32.mrf.mxu0  ;;  %v2468_v61 = vpop.f32.mrf.mxu1  ;;  %v3427_v38 = vmul.f32 %v11508_v24, %v3250_v58  ;;  %v3037_v26 = vmul.f32 %v11498_v18, %v14246_v23 }
 0x333   : > { %v9342_v3 = vpop.eup %9341  ;;  %9365 = vrcp.f32 %v3736_v32  ;;  %v3100_v41 = vadd.f32 %v3036_v56, %v2466_v5  ;;  %v2469_v47 = vadd.f32 %v2468_v61, %v2059_v45 }
 0x334   : > { %v9344_v59 = vpop.eup %9343  ;;  %v3737_v53 = vadd.f32 1.0, %v9342_v3  ;;  %9000 = vmatmul.mubr.bf16.gmra.mxu0 %v3979_v49  ;;  %3325 = vperm.xlu1 %9257, %v11730_v4   ;;  %v2821_v42 = vpop.permute.xlu1 %2820 }
 0x335   : > { %v9346_v13 = vpop.eup %9345  ;;  %v3921_v15 = vmul.f32 %v9344_v59, %v11665_v54  ;;  %v11770_v20 = vadd.f32 %v3424_v51, %v3100_v41  ;;  %v3038_v32 = vmul.f32 %v11498_v18, %v2821_v42 }
 0x336   : > { %v9348_v14 = vpop.eup %9347  ;;  %9367 = vrcp.f32 %v3737_v53  ;;  %v3922_v4 = vmul.f32 %v9346_v13, %v11626_v19  ;;  %v2474_v53 = vadd.f32 %v11751_v9, %v11746_v60  ;;  %v11800_v60 = vpop.f32.mrf.mxu1 }
 0x337   : > { %v3739_v29 = vadd.f32 1.0, %v9348_v14  ;;  %v3980_v44 = vpack.c.bf16 %v3921_v15, %v3920_v37  ;;  %9369 = vrcp.f32 %v3738_v1  ;;  %v7760_v11 = vmul.f32 -1.442695, %v11770_v20  ;;  %v11794_v37 = vpop.f32.mrf.mxu0  ;;  %v14247_v14 = vld [vmem:[#allocation20_spill] sm:$0xff] }
 0x338   : > { %v9350_v62 = vpop.eup %9349  ;;  %9258 = vset.pattern.permute.xlu1 %v14230_v50  ;;  %v2826_v54 = vpop.permute.xlu1 %2825  ;;  %v3981_v43 = vpack.c.bf16 %v3923_v6, %v3922_v4  ;;  %v3102_v15 = vadd.f32 %v3038_v32, %v2474_v53 }
 0x339   : > { %v9352_v30 = vpop.eup %9351  ;;  %9371 = vrcp.f32 %v3739_v29  ;;  %9003 = vmatprep.mubr.bf16.mxu0 %v3980_v44  ;;  %v3039_v63 = vmul.f32 %v11498_v18, %v2826_v54  ;;  %2930 = vperm.xlu1 %9258, %v11419_v28   ;;  %v3924_v52 = vmul.f32 %v9350_v62, %v11680_v25  ;;  %v3101_v25 = vadd.f32 %v3037_v26, %v2469_v47  ;;  %v2072_v45 = vpop.f32.mrf.mxu0 }
 0x33a   : > { %v9354_v8 = vpop.eup %9353  ;;  %v3740_v48 = vadd.f32 1.0, %v9352_v30  ;;  %v3254_v54 = vpop.permute.xlu0 %3253 }
 0x33b   : > { %v9356_v16 = vpop.eup %9355  ;;  %v3103_v39 = vadd.f32 %v3039_v63, %v2477_v55  ;;  %v3927_v59 = vmul.f32 %v9354_v8, %v11684_v33  ;;  %v2481_v61 = vpop.f32.mrf.mxu1  ;;  %v10055_v63 = vld [vmem:[%s10467_s15 + $0x188] sm:$0xff] }
 0x33c   : > { %v9358_v19 = vpop.eup %9357  ;;  %v3925_v57 = vmul.f32 %v9356_v16, %v11691_v27  ;;  %9004 = vmatmul.mubr.bf16.gmra.mxu0 %v3981_v43  ;;  %9373 = vrcp.f32 %v3740_v48  ;;  %v3428_v16 = vmul.f32 %v11508_v24, %v3254_v54  ;;  %v8874_v26 = vpop.f32.mrf.mxu0 }
 0x33d   : > { %v9360_v46 = vpop.eup %9359  ;;  %v3743_v28 = vadd.f32 1.0, %v9358_v19  ;;  %v11786_v3 = vadd.f32 %v3427_v38, %v3103_v39  ;;  %2940 = vperm.xlu1 %9258, %v11781_v35   ;;  %v3242_v49 = vpop.permute.xlu1 %3241  ;;  %9375 = vpow2.f32 %v7760_v11 }
 0x33e   : > { %v9362_v5 = vpop.eup %9361  ;;  %v3741_v56 = vadd.f32 1.0, %v9360_v46  ;;  %v3982_v51 = vpack.c.bf16 %v3925_v57, %v3924_v52  ;;  %v3425_v27 = vmul.f32 %v11508_v24, %v3242_v49  ;;  %v8946_v52 = vpop.f32.mrf.mxu1 }
 0x33f   : > { %v9364_v1 = vpop.eup %9363  ;;  %v7763_v12 = vmul.f32 -1.442695, %v11786_v3  ;;  %v3926_v33 = vmul.f32 %v9362_v5, %v11669_v17  ;;  %v3266_v57 = vpop.permute.xlu0 %3265 }
 0x340   : > { %9377 = vrcp.f32 %v3741_v56  ;;  %9007 = vmatprep.mubr.bf16.mxu0 %v3982_v51  ;;  %v9366_v41 = vpop.eup %9365  ;;  %v3742_v13 = vadd.f32 1.0, %v9364_v1  ;;  %v11796_v42 = vadd.f32 %v3425_v27, %v3101_v25  ;;  %v2075_v5 = vpop.f32.mrf.mxu0  ;;  %v3431_v51 = vmul.f32 %v11508_v24, %v3266_v57 }
 0x341   : > { %9379 = vrcp.f32 %v3743_v28  ;;  %2945 = vperm.xlu1 %9258, %v14247_v14   ;;  %v3246_v22 = vpop.permute.xlu1 %3245  ;;  %v3983_v29 = vpack.c.bf16 %v3927_v59, %v3926_v33  ;;  %v3928_v58 = vmul.f32 %v9366_v41, %v11707_v10  ;;  %v2484_v25 = vpop.f32.mrf.mxu1  ;;  %v2493_v27 = vadd.f32 %v8946_v52, %v8874_v26  ;;  %v2678_v14 = vld [vmem:[%s10467_s15 + $0x1b0] sm:$0xff] }
 0x342   : > { %9381 = vpow2.f32 %v7763_v12  ;;  %v7761_v9 = vmul.f32 -1.442695, %v11796_v42  ;;  %v3426_v44 = vmul.f32 %v11508_v24, %v3246_v22  ;;  %v10056_v12 = vld [vmem:[%s10467_s15 + $0x1a0] sm:$0xff] }
 0x343   : > { %v9368_v6 = vpop.eup %9367  ;;  %9383 = vrcp.f32 %v3742_v13 }
 0x344   : > { %v3929_v62 = vmul.f32 %v9368_v6, %v11721_v7  ;;  %v9370_v17 = vpop.eup %9369  ;;  %9385 = vpow2.f32 %v7761_v9  ;;  %9008 = vmatmul.mubr.bf16.gmra.mxu0 %v3983_v29  ;;  %v11806_v30 = vadd.f32 %v3426_v44, %v3102_v15  ;;  %v2482_v7 = vadd.f32 %v2481_v61, %v2072_v45 }
 0x345   : > { %9259 = vset.pattern.permute.xlu1 %v14231_v36  ;;  %v3930_v23 = vmul.f32 %v9370_v17, %v11701_v34  ;;  %v2485_v15 = vadd.f32 %v2484_v25, %v2075_v5 }
 0x346   : > { %v9372_v4 = vpop.eup %9371  ;;  %v3984_v8 = vpack.c.bf16 %v3929_v62, %v3928_v58  ;;  %v7762_v55 = vmul.f32 -1.442695, %v11806_v30  ;;  %3337 = vperm.xlu1 %9259, %v10055_v63   ;;  %v2831_v10 = vpop.permute.xlu1 %2830 }
 0x347   : > { %v3931_v48 = vmul.f32 %v9372_v4, %v11713_v31  ;;  %v3040_v38 = vmul.f32 %v11498_v18, %v2831_v10  ;;  %v11835_v4 = vpop.f32.mrf.mxu0  ;;  %v11842_v10 = vpop.f32.mrf.mxu1 }
 0x348   : > { %9011 = vmatprep.mubr.bf16.mxu0 %v3984_v8  ;;  %9387 = vpow2.f32 %v7762_v55  ;;  %v10057_v55 = vld [vmem:[%s10467_s15 + $0x1b8] sm:$0xff] }
 0x349   : > { %v3104_v47 = vadd.f32 %v3040_v38, %v2482_v7  ;;  %v9374_v11 = vpop.eup %9373  ;;  %v3985_v43 = vpack.c.bf16 %v3931_v48, %v3930_v23  ;;  %v2490_v48 = vadd.f32 %v11800_v60, %v11794_v37  ;;  %v2088_v23 = vpop.f32.mrf.mxu0  ;;  %v10058_v37 = vld [vmem:[%s10467_s15 + $0x1a8] sm:$0xff] }
 0x34a   : > { %3341 = vperm.xlu1 %9259, %v11781_v35   ;;  %v2841_v31 = vpop.permute.xlu1 %2840  ;;  %v9376_v19 = vpop.eup %9375  ;;  %v3932_v32 = vmul.f32 %v9374_v11, %v11735_v2 }
 0x34b   : > { %v11816_v39 = vadd.f32 %v3428_v16, %v3104_v47  ;;  %v3744_v49 = vadd.f32 1.0, %v9376_v19  ;;  %v3042_v45 = vmul.f32 %v11498_v18, %v2841_v31  ;;  %v2497_v47 = vpop.f32.mrf.mxu1  ;;  %v3270_v19 = vpop.permute.xlu0 %3269 }
 0x34c   : > { %9012 = vmatmul.mubr.bf16.gmra.mxu0 %v3985_v43  ;;  %v2498_v11 = vadd.f32 %v2497_v47, %v2088_v23  ;;  %v8878_v57 = vpop.f32.mrf.mxu0  ;;  %v10060_v47 = vld [vmem:[%s10467_s15 + $0x1d8] sm:$0xff] }
 0x34d   : > { %v9378_v46 = vpop.eup %9377  ;;  %v7764_v1 = vmul.f32 -1.442695, %v11816_v39  ;;  %9389 = vrcp.f32 %v3744_v49  ;;  %v3106_v38 = vadd.f32 %v3042_v45, %v2490_v48 }
 0x34e   : > { %v9380_v28 = vpop.eup %9379  ;;  %v3933_v34 = vmul.f32 %v9378_v46, %v11748_v21  ;;  %9260 = vset.pattern.permute.xlu1 %v14230_v50  ;;  %v2846_v35 = vpop.permute.xlu1 %2845  ;;  %v14248_v21 = vld [vmem:[#allocation23_spill] sm:$0xff]  ;;  %v3432_v46 = vmul.f32 %v11508_v24, %v3270_v19 }
 0x34f   : > { %v9382_v56 = vpop.eup %9381  ;;  %v3043_v53 = vmul.f32 %v11498_v18, %v2846_v35  ;;  %2950 = vperm.xlu1 %9260, %v10056_v12   ;;  %v3041_v41 = vmul.f32 %v11498_v18, %v14248_v21  ;;  %v3935_v13 = vmul.f32 %v9380_v28, %v11741_v40  ;;  %9391 = vpow2.f32 %v7764_v1  ;;  %v3282_v1 = vpop.permute.xlu0 %3281 }
 0x350   : > { %v9384_v59 = vpop.eup %9383  ;;  %v3986_v2 = vpack.c.bf16 %v3933_v34, %v3932_v32  ;;  %v3747_v9 = vadd.f32 1.0, %v9382_v56  ;;  %v8950_v56 = vpop.f32.mrf.mxu1 }
 0x351   : > { %v3934_v33 = vmul.f32 %v9384_v59, %v11757_v0  ;;  %v9386_v22 = vpop.eup %9385  ;;  %v3107_v6 = vadd.f32 %v3043_v53, %v2493_v27  ;;  %v3105_v17 = vadd.f32 %v3041_v41, %v2485_v15  ;;  %v2091_v59 = vpop.f32.mrf.mxu0  ;;  %v2509_v41 = vadd.f32 %v8950_v56, %v8878_v57  ;;  %v14249_v15 = vld [vmem:[#allocation22_spill] sm:$0xff]  ;;  %v10061_v57 = vld [vmem:[%s10467_s15 + $0x1c8] sm:$0xff] }
 0x352   : > { %9015 = vmatprep.mubr.bf16.mxu0 %v3986_v2  ;;  %v3745_v29 = vadd.f32 1.0, %v9386_v22  ;;  %v2500_v21 = vpop.f32.mrf.mxu1 }
 0x353   : > { %v3987_v44 = vpack.c.bf16 %v3935_v13, %v3934_v33  ;;  %v11830_v58 = vadd.f32 %v3431_v51, %v3107_v6  ;;  %2960 = vperm.xlu1 %9260, %v2678_v14   ;;  %v3258_v62 = vpop.permute.xlu1 %3257  ;;  %v3435_v13 = vmul.f32 %v11508_v24, %v3282_v1  ;;  %v10059_v33 = vld [vmem:[%s10467_s15 + $0x1c0] sm:$0xff]  ;;  %v2501_v6 = vadd.f32 %v2500_v21, %v2091_v59 }
 0x354   : > { %9393 = vrcp.f32 %v3745_v29  ;;  %v3429_v40 = vmul.f32 %v11508_v24, %v3258_v62  ;;  %v2682_v29 = vld [vmem:[%s10467_s15 + $0x1d0] sm:$0xff] }
 0x355   : > { %9016 = vmatmul.mubr.bf16.gmra.mxu0 %v3987_v44  ;;  %v9388_v0 = vpop.eup %9387  ;;  %v7767_v54 = vmul.f32 -1.442695, %v11830_v58  ;;  %9395 = vrcp.f32 %v3747_v9 }
 0x356   : > { %v3746_v8 = vadd.f32 1.0, %v9388_v0  ;;  %v11837_v61 = vadd.f32 %v3429_v40, %v3105_v17 }
 0x357   : > { %2965 = vperm.xlu1 %9260, %v10057_v55   ;;  %v3262_v63 = vpop.permute.xlu1 %3261  ;;  %v2506_v55 = vadd.f32 %v11842_v10, %v11835_v4 }
 0x358   : > { %9397 = vrcp.f32 %v3746_v8  ;;  %v7765_v7 = vmul.f32 -1.442695, %v11837_v61  ;;  %v3430_v16 = vmul.f32 %v11508_v24, %v3262_v63 }
 0x359   : > { %9399 = vpow2.f32 %v7767_v54 }
 0x35a   : > { %9401 = vpow2.f32 %v7765_v7  ;;  %v11846_v26 = vadd.f32 %v3430_v16, %v3106_v38  ;;  %v9390_v52 = vpop.eup %9389  ;;  %v11874_v7 = vpop.f32.mrf.mxu0 }
 0x35b   : > { %9261 = vset.pattern.permute.xlu1 %v14231_v36  ;;  %v3936_v49 = vmul.f32 %v9390_v52, %v11770_v20 }
 0x35c   : > { %3353 = vperm.xlu1 %9261, %v10058_v37   ;;  %v2851_v60 = vpop.permute.xlu1 %2850  ;;  %v7766_v43 = vmul.f32 -1.442695, %v11846_v26  ;;  %v9392_v32 = vpop.eup %9391 }
 0x35d   : > { %v3044_v31 = vmul.f32 %v11498_v18, %v2851_v60  ;;  %v3748_v27 = vadd.f32 1.0, %v9392_v32  ;;  %v11879_v60 = vpop.f32.mrf.mxu1  ;;  %v3286_v32 = vpop.permute.xlu0 %3285 }
 0x35e   : > { %9403 = vpow2.f32 %v7766_v43  ;;  %v2104_v43 = vpop.f32.mrf.mxu0  ;;  %v3436_v56 = vmul.f32 %v11508_v24, %v3286_v32 }
 0x35f   : > { %v3108_v28 = vadd.f32 %v3044_v31, %v2498_v11  ;;  %9405 = vrcp.f32 %v3748_v27  ;;  %v2513_v19 = vpop.f32.mrf.mxu1 }
 0x360   : > { %3357 = vperm.xlu1 %9261, %v2678_v14   ;;  %v2861_v34 = vpop.permute.xlu1 %2860  ;;  %v3045_v14 = vmul.f32 %v11498_v18, %v14249_v15 }
 0x361   : > { %v9394_v5 = vpop.eup %9393  ;;  %v11855_v25 = vadd.f32 %v3432_v46, %v3108_v28  ;;  %v3046_v54 = vmul.f32 %v11498_v18, %v2861_v34  ;;  %v2514_v28 = vadd.f32 %v2513_v19, %v2104_v43  ;;  %v10063_v19 = vld [vmem:[%s10467_s15 + $0x1f8] sm:$0xff] }
 0x362   : > { %v3937_v35 = vmul.f32 %v9394_v5, %v11796_v42  ;;  %v9396_v51 = vpop.eup %9395  ;;  %v3109_v48 = vadd.f32 %v3045_v14, %v2501_v6  ;;  %v8882_v5 = vpop.f32.mrf.mxu0 }
 0x363   : > { %v3939_v22 = vmul.f32 %v9396_v51, %v11786_v3  ;;  %v7768_v62 = vmul.f32 -1.442695, %v11855_v25  ;;  %v3110_v23 = vadd.f32 %v3046_v54, %v2506_v55  ;;  %v8954_v51 = vpop.f32.mrf.mxu1 }
 0x364   : > { %9262 = vset.pattern.permute.xlu1 %v14230_v50  ;;  %v2866_v53 = vpop.permute.xlu1 %2865  ;;  %v3988_v12 = vpack.c.bf16 %v3937_v35, %v3936_v49 }
 0x365   : > { %v9398_v2 = vpop.eup %9397  ;;  %v3047_v20 = vmul.f32 %v11498_v18, %v2866_v53  ;;  %2970 = vperm.xlu1 %9262, %v10059_v33   ;;  %v2107_v53 = vpop.f32.mrf.mxu0  ;;  %v14250_v33 = vld [vmem:[#allocation25_spill] sm:$0xff] }
 0x366   : > { %v9400_v42 = vpop.eup %9399  ;;  %v3938_v9 = vmul.f32 %v9398_v2, %v11806_v30  ;;  %9019 = vmatprep.mubr.bf16.mxu0 %v3988_v12 }
 0x367   : > { %v9402_v44 = vpop.eup %9401  ;;  %v3111_v17 = vadd.f32 %v3047_v20, %v2509_v41  ;;  %v3751_v45 = vadd.f32 1.0, %v9400_v42  ;;  %v3298_v41 = vpop.permute.xlu0 %3297  ;;  %v3049_v42 = vmul.f32 %v11498_v18, %v14250_v33 }
 0x368   : > { %v3749_v40 = vadd.f32 1.0, %v9402_v44  ;;  %v3989_v0 = vpack.c.bf16 %v3939_v22, %v3938_v9  ;;  %v2516_v20 = vpop.f32.mrf.mxu1  ;;  %v3439_v15 = vmul.f32 %v11508_v24, %v3298_v41  ;;  %v10062_v44 = vld [vmem:[%s10467_s15 + $0x1e0] sm:$0xff] }
 0x369   : > { %v11868_v8 = vadd.f32 %v3435_v13, %v3111_v17  ;;  %2980 = vperm.xlu1 %9262, %v2682_v29   ;;  %v3274_v3 = vpop.permute.xlu1 %3273  ;;  %v2517_v9 = vadd.f32 %v2516_v20, %v2107_v53  ;;  %v2686_v17 = vld [vmem:[%s10467_s15 + $0x1f0] sm:$0xff] }
 0x36a   : > { %9407 = vrcp.f32 %v3749_v40  ;;  %v3433_v30 = vmul.f32 %v11508_v24, %v3274_v3  ;;  %9020 = vmatmul.mubr.bf16.gmra.mxu0 %v3989_v0  ;;  %v11915_v43 = vpop.f32.mrf.mxu1 }
 0x36b   : > { %9409 = vpow2.f32 %v7768_v62  ;;  %v7771_v63 = vmul.f32 -1.442695, %v11868_v8  ;;  %v9404_v16 = vpop.eup %9403 }
 0x36c   : > { %v11876_v38 = vadd.f32 %v3433_v30, %v3109_v48  ;;  %9411 = vrcp.f32 %v3751_v45  ;;  %v3750_v11 = vadd.f32 1.0, %v9404_v16  ;;  %v9406_v49 = vpop.eup %9405  ;;  %v3113_v48 = vadd.f32 %v3049_v42, %v2517_v9  ;;  %v2529_v32 = vpop.f32.mrf.mxu1 }
 0x36d   : > { %2985 = vperm.xlu1 %9262, %v10060_v47   ;;  %v3278_v37 = vpop.permute.xlu1 %3277  ;;  %9413 = vpow2.f32 %v7771_v63  ;;  %v3940_v12 = vmul.f32 %v9406_v49, %v11816_v39  ;;  %v2525_v39 = vadd.f32 %v8954_v51, %v8882_v5 }
 0x36e   : > { %v7769_v4 = vmul.f32 -1.442695, %v11876_v38  ;;  %v3434_v10 = vmul.f32 %v11508_v24, %v3278_v37  ;;  %9415 = vrcp.f32 %v3750_v11  ;;  %v11911_v11 = vpop.f32.mrf.mxu0  ;;  %v8958_v41 = vpop.f32.mrf.mxu1 }
 0x370   : > { %v11883_v31 = vadd.f32 %v3434_v10, %v3110_v23  ;;  %9417 = vpow2.f32 %v7769_v4 }
 0x371   : > { %9263 = vset.pattern.permute.xlu1 %v14231_v36 }
 0x372   : > { %v7770_v52 = vmul.f32 -1.442695, %v11883_v31  ;;  %3369 = vperm.xlu1 %9263, %v10061_v57   ;;  %v2871_v46 = vpop.permute.xlu1 %2870 }
 0x373   : > { %v3048_v34 = vmul.f32 %v11498_v18, %v2871_v46 }
 0x374   : > { %9419 = vpow2.f32 %v7770_v52 }
 0x375   : > { %v3112_v35 = vadd.f32 %v3048_v34, %v2514_v28  ;;  %v3302_v34 = vpop.permute.xlu0 %3301 }
 0x376   : > { %3373 = vperm.xlu1 %9263, %v2682_v29   ;;  %v2881_v59 = vpop.permute.xlu1 %2880  ;;  %v3440_v51 = vmul.f32 %v11508_v24, %v3302_v34 }
 0x377   : > { %v9408_v27 = vpop.eup %9407  ;;  %v11892_v21 = vadd.f32 %v3436_v56, %v3112_v35  ;;  %v3050_v16 = vmul.f32 %v11498_v18, %v2881_v59  ;;  %v10064_v56 = vld [vmem:[%s10467_s15 + $0x1e8] sm:$0xff] }
 0x378   : > { %v9410_v1 = vpop.eup %9409  ;;  %v3941_v2 = vmul.f32 %v9408_v27, %v11837_v61 }
 0x379   : > { %v9412_v13 = vpop.eup %9411  ;;  %v3752_v29 = vadd.f32 1.0, %v9410_v1  ;;  %v7772_v62 = vmul.f32 -1.442695, %v11892_v21 }
 0x37a   : > { %9264 = vset.pattern.permute.xlu1 %v14230_v50  ;;  %v2886_v14 = vpop.permute.xlu1 %2885  ;;  %v3990_v22 = vpack.c.bf16 %v3941_v2, %v3940_v12  ;;  %v9414_v6 = vpop.eup %9413  ;;  %v3943_v54 = vmul.f32 %v9412_v13, %v11830_v58 }
 0x37b   : > { %v3051_v61 = vmul.f32 %v11498_v18, %v2886_v14  ;;  %2990 = vperm.xlu1 %9264, %v10062_v44   ;;  %v9416_v40 = vpop.eup %9415  ;;  %v3755_v3 = vadd.f32 1.0, %v9414_v6  ;;  %9421 = vrcp.f32 %v3752_v29 }
 0x37c   : > { %9023 = vmatprep.mubr.bf16.mxu0 %v3990_v22  ;;  %v3942_v50 = vmul.f32 %v9416_v40, %v11846_v26  ;;  %9423 = vpow2.f32 %v7772_v62  ;;  %v2522_v26 = vadd.f32 %v11879_v60, %v11874_v7  ;;  %v2120_v60 = vpop.f32.mrf.mxu0 }
 0x37d   : > { %v3115_v0 = vadd.f32 %v3051_v61, %v2525_v39  ;;  %v9418_v45 = vpop.eup %9417  ;;  %v2530_v35 = vadd.f32 %v2529_v32, %v2120_v60  ;;  %v2532_v61 = vpop.f32.mrf.mxu1 }
 0x37e   : > { %v3753_v30 = vadd.f32 1.0, %v9418_v45  ;;  %v3991_v47 = vpack.c.bf16 %v3943_v54, %v3942_v50  ;;  %v3114_v57 = vadd.f32 %v3050_v16, %v2522_v26  ;;  %v8886_v27 = vpop.f32.mrf.mxu0  ;;  %v2538_v26 = vadd.f32 %v11915_v43, %v11911_v11 }
 0x37f   : > { %v11904_v55 = vadd.f32 %v3439_v15, %v3115_v0  ;;  %3000 = vperm.xlu1 %9264, %v2686_v17   ;;  %v3290_v63 = vpop.permute.xlu1 %3289  ;;  %v3314_v15 = vpop.permute.xlu0 %3313  ;;  %v2541_v44 = vadd.f32 %v8958_v41, %v8886_v27  ;;  %v14251_v0 = vld [vmem:[#allocation24_spill] sm:$0xff] }
 0x380   : > { %v3437_v23 = vmul.f32 %v11508_v24, %v3290_v63  ;;  %9425 = vrcp.f32 %v3753_v30  ;;  %9024 = vmatmul.mubr.bf16.gmra.mxu0 %v3991_v47  ;;  %v2123_v33 = vpop.f32.mrf.mxu0  ;;  %v3443_v6 = vmul.f32 %v11508_v24, %v3314_v15  ;;  %v3053_v45 = vmul.f32 %v11498_v18, %v14251_v0 }
 0x381   : > { %v9420_v37 = vpop.eup %9419  ;;  %v7775_v58 = vmul.f32 -1.442695, %v11904_v55  ;;  %9427 = vrcp.f32 %v3755_v3 }
 0x382   : > { %v3754_v4 = vadd.f32 1.0, %v9420_v37  ;;  %v11913_v10 = vadd.f32 %v3437_v23, %v3113_v48 }
 0x383   : > { %9429 = vpow2.f32 %v7775_v58  ;;  %3005 = vperm.xlu1 %9264, %v10063_v19   ;;  %v3294_v52 = vpop.permute.xlu1 %3293 }
 0x384   : > { %9431 = vrcp.f32 %v3754_v4  ;;  %v7773_v46 = vmul.f32 -1.442695, %v11913_v10  ;;  %v3438_v7 = vmul.f32 %v11508_v24, %v3294_v52  ;;  %v11945_v4 = vpop.f32.mrf.mxu0 }
 0x386   : > { %9433 = vpow2.f32 %v7773_v46  ;;  %v11920_v28 = vadd.f32 %v3438_v7, %v3114_v57  ;;  %v8961_v46 = vpop.f32.mrf.mxu1  ;;  %v2136_v34 = vpop.f32.mrf.mxu0 }
 0x387   : > { %9266 = vset.pattern.permute.xlu1 %v14231_v36 }
 0x388   : > { %v7774_v5 = vmul.f32 -1.442695, %v11920_v28  ;;  %3385 = vperm.xlu1 %9266, %v10064_v56   ;;  %v2891_v49 = vpop.permute.xlu1 %2890  ;;  %v9422_v53 = vpop.eup %9421 }
 0x389   : > { %v3052_v59 = vmul.f32 %v11498_v18, %v2891_v49  ;;  %v9424_v2 = vpop.eup %9423  ;;  %v3944_v14 = vmul.f32 %v9422_v53, %v11855_v25  ;;  %v2545_v11 = vpop.f32.mrf.mxu1 }
 0x38a   : > { %9435 = vpow2.f32 %v7774_v5  ;;  %v3756_v39 = vadd.f32 1.0, %v9424_v2  ;;  %v2546_v49 = vadd.f32 %v2545_v11, %v2136_v34  ;;  %v8890_v27 = vpop.f32.mrf.mxu0 }
 0x38b   : > { %v3116_v1 = vadd.f32 %v3052_v59, %v2530_v35 }
 0x38c   : > { %3389 = vperm.xlu1 %9266, %v2686_v17   ;;  %v2901_v12 = vpop.permute.xlu1 %2900  ;;  %9437 = vrcp.f32 %v3756_v39 }
 0x38d   : > { %v11927_v36 = vadd.f32 %v3440_v51, %v3116_v1  ;;  %v9426_v13 = vpop.eup %9425  ;;  %v3054_v37 = vmul.f32 %v11498_v18, %v2901_v12  ;;  %v3318_v51 = vpop.permute.xlu0 %3317 }
 0x38e   : > { %v9428_v20 = vpop.eup %9427  ;;  %v3945_v42 = vmul.f32 %v9426_v13, %v11876_v38  ;;  %v2533_v38 = vadd.f32 %v2532_v61, %v2123_v33  ;;  %v3444_v1 = vmul.f32 %v11508_v24, %v3318_v51  ;;  %v8962_v13 = vpop.f32.mrf.mxu1 }
 0x38f   : > { %v7776_v62 = vmul.f32 -1.442695, %v11927_v36  ;;  %v3947_v25 = vmul.f32 %v9428_v20, %v11868_v8  ;;  %v3118_v7 = vadd.f32 %v3054_v37, %v2538_v26 }
 0x390   : > { %v9430_v22 = vpop.eup %9429  ;;  %v2906_v9 = vpop.permute.xlu1 %2905  ;;  %v3992_v40 = vpack.c.bf16 %v3945_v42, %v3944_v14  ;;  %v3117_v47 = vadd.f32 %v3053_v45, %v2533_v38  ;;  %v14252_v38 = vld [vmem:[#allocation27_spill] sm:$0xff] }
 0x391   : > { %v9432_v29 = vpop.eup %9431  ;;  %v3055_v17 = vmul.f32 %v11498_v18, %v2906_v9  ;;  %v3759_v48 = vadd.f32 1.0, %v9430_v22  ;;  %9439 = vpow2.f32 %v7776_v62  ;;  %v2139_v14 = vpop.f32.mrf.mxu0 }
 0x392   : > { %v3946_v54 = vmul.f32 %v9432_v29, %v11883_v31  ;;  %9027 = vmatprep.mubr.bf16.mxu0 %v3992_v40  ;;  %v2548_v61 = vpop.f32.mrf.mxu1  ;;  %v3330_v0 = vpop.permute.xlu0 %3329 }
 0x393   : > { %v9434_v50 = vpop.eup %9433  ;;  %v3119_v3 = vadd.f32 %v3055_v17, %v2541_v44  ;;  %v2557_v44 = vadd.f32 %v8962_v13, %v8890_v27  ;;  %v2549_v40 = vadd.f32 %v2548_v61, %v2139_v14 }
 0x394   : > { %v3757_v30 = vadd.f32 1.0, %v9434_v50  ;;  %v3993_v63 = vpack.c.bf16 %v3947_v25, %v3946_v54  ;;  %v3057_v54 = vmul.f32 %v11498_v18, %v14252_v38  ;;  %v3447_v25 = vmul.f32 %v11508_v24, %v3330_v0  ;;  %v14253_v38 = vld [vmem:[#allocation26_spill] sm:$0xff] }
 0x395   : > { %v11938_v16 = vadd.f32 %v3443_v6, %v3119_v3  ;;  %v3306_v23 = vpop.permute.xlu1 %3305 }
 0x396   : > { %9441 = vrcp.f32 %v3757_v30  ;;  %v3441_v58 = vmul.f32 %v11508_v24, %v3306_v23  ;;  %9028 = vmatmul.mubr.bf16.gmra.mxu0 %v3993_v63 }
 0x397   : > { %v9436_v31 = vpop.eup %9435  ;;  %v7779_v8 = vmul.f32 -1.442695, %v11938_v16  ;;  %9443 = vrcp.f32 %v3759_v48 }
 0x398   : > { %v3758_v19 = vadd.f32 1.0, %v9436_v31  ;;  %v11947_v52 = vadd.f32 %v3441_v58, %v3117_v47  ;;  %v3121_v47 = vadd.f32 %v3057_v54, %v2549_v40  ;;  %v2554_v31 = vadd.f32 %v8961_v46, %v11945_v4 }
 0x399   : > { %9445 = vpow2.f32 %v7779_v8  ;;  %v3310_v57 = vpop.permute.xlu1 %3309  ;;  %v9438_v59 = vpop.eup %9437  ;;  %v3061_v54 = vmul.f32 %v11498_v18, %v14253_v38 }
 0x39a   : > { %9447 = vrcp.f32 %v3758_v19  ;;  %v7777_v60 = vmul.f32 -1.442695, %v11947_v52  ;;  %v3442_v32 = vmul.f32 %v11508_v24, %v3310_v57  ;;  %v3948_v42 = vmul.f32 %v9438_v59, %v11892_v21  ;;  %v11973_v8 = vpop.f32.mrf.mxu0  ;;  %v3334_v59 = vpop.permute.xlu0 %3333 }
 0x39c   : > { %9449 = vpow2.f32 %v7777_v60  ;;  %v11951_v5 = vadd.f32 %v3442_v32, %v3118_v7  ;;  %v8965_v7 = vpop.f32.mrf.mxu1  ;;  %v2152_v11 = vpop.f32.mrf.mxu0 }
 0x39e   : > { %v7778_v43 = vmul.f32 -1.442695, %v11951_v5  ;;  %v2911_v56 = vpop.permute.xlu1 %2910  ;;  %v9440_v12 = vpop.eup %9439 }
 0x39f   : > { %v3056_v35 = vmul.f32 %v11498_v18, %v2911_v56  ;;  %v3760_v6 = vadd.f32 1.0, %v9440_v12  ;;  %v2561_v4 = vpop.f32.mrf.mxu1  ;;  %v8894_v51 = vpop.f32.mrf.mxu0 }
 0x3a0   : > { %9451 = vpow2.f32 %v7778_v43 }
 0x3a1   : > { %v3120_v53 = vadd.f32 %v3056_v35, %v2546_v49  ;;  %9453 = vrcp.f32 %v3760_v6  ;;  %v2562_v49 = vadd.f32 %v2561_v4, %v2152_v11  ;;  %v8966_v13 = vpop.f32.mrf.mxu1 }
 0x3a2   : > { %v2921_v2 = vpop.permute.xlu1 %2920 }
 0x3a3   : > { %v9442_v41 = vpop.eup %9441  ;;  %v11956_v20 = vadd.f32 %v3444_v1, %v3120_v53  ;;  %v3448_v1 = vmul.f32 %v11508_v24, %v3334_v59 }
 0x3a4   : > { %v3949_v33 = vmul.f32 %v9442_v41, %v11913_v10  ;;  %v9444_v15 = vpop.eup %9443 }
 0x3a5   : > { %v7780_v62 = vmul.f32 -1.442695, %v11956_v20  ;;  %v3951_v21 = vmul.f32 %v9444_v15, %v11904_v55 }
 0x3a6   : > { %v9446_v22 = vpop.eup %9445  ;;  %v2926_v39 = vpop.permute.xlu1 %2925  ;;  %v3994_v9 = vpack.c.bf16 %v3949_v33, %v3948_v42 }
 0x3a7   : > { %v9448_v29 = vpop.eup %9447  ;;  %v3059_v17 = vmul.f32 %v11498_v18, %v2926_v39  ;;  %v3763_v3 = vadd.f32 1.0, %v9446_v22  ;;  %9455 = vpow2.f32 %v7780_v62  ;;  %v2155_v42 = vpop.f32.mrf.mxu0  ;;  %v2573_v62 = vadd.f32 %v8966_v13, %v8894_v51 }
 0x3a8   : > { %v3950_v45 = vmul.f32 %v9448_v29, %v11920_v28  ;;  %9031 = vmatprep.mubr.bf16.mxu0 %v3994_v9  ;;  %v3058_v28 = vmul.f32 %v11498_v18, %v2921_v2 }
 0x3a9   : > { %v9450_v10 = vpop.eup %9449  ;;  %v3123_v50 = vadd.f32 %v3059_v17, %v2557_v44  ;;  %v2564_v44 = vpop.f32.mrf.mxu1 }
 0x3aa   : > { %v3761_v48 = vadd.f32 1.0, %v9450_v10  ;;  %v3995_v30 = vpack.c.bf16 %v3951_v21, %v3950_v45  ;;  %v3122_v60 = vadd.f32 %v3058_v28, %v2554_v31  ;;  %v2565_v0 = vadd.f32 %v2564_v44, %v2155_v42  ;;  %v11990_v45 = vpop.f32.mrf.mxu0  ;;  %v3346_v21 = vpop.permute.xlu0 %3345 }
 0x3ab   : > { %v11967_v63 = vadd.f32 %v3447_v25, %v3123_v50  ;;  %v3322_v23 = vpop.permute.xlu1 %3321  ;;  %v3451_v25 = vmul.f32 %v11508_v24, %v3346_v21  ;;  %v2570_v31 = vadd.f32 %v8965_v7, %v11973_v8 }
 0x3ac   : > { %9457 = vrcp.f32 %v3761_v48  ;;  %v3445_v55 = vmul.f32 %v11508_v24, %v3322_v23  ;;  %9032 = vmatmul.mubr.bf16.gmra.mxu0 %v3995_v30  ;;  %v3125_v28 = vadd.f32 %v3061_v54, %v2565_v0  ;;  %v14254_v54 = vld [vmem:[#allocation28_spill] sm:$0xff] }
 0x3ad   : > { %v9452_v37 = vpop.eup %9451  ;;  %v7783_v58 = vmul.f32 -1.442695, %v11967_v63  ;;  %9459 = vrcp.f32 %v3763_v3 }
 0x3ae   : > { %v3762_v26 = vadd.f32 1.0, %v9452_v37  ;;  %v11975_v19 = vadd.f32 %v3445_v55, %v3121_v47  ;;  %v9454_v27 = vpop.eup %9453 }
 0x3af   : > { %9461 = vpow2.f32 %v7783_v58  ;;  %v3326_v57 = vpop.permute.xlu1 %3325  ;;  %v3952_v14 = vmul.f32 %v9454_v27, %v11927_v36  ;;  %v3350_v27 = vpop.permute.xlu0 %3349 }
 0x3b0   : > { %9463 = vrcp.f32 %v3762_v26  ;;  %v7781_v32 = vmul.f32 -1.442695, %v11975_v19  ;;  %v3446_v34 = vmul.f32 %v11508_v24, %v3326_v57 }
 0x3b2   : > { %9465 = vpow2.f32 %v7781_v32  ;;  %v11979_v43 = vadd.f32 %v3446_v34, %v3122_v60  ;;  %v12005_v60 = vpop.f32.mrf.mxu1 }
 0x3b4   : > { %v7782_v46 = vmul.f32 -1.442695, %v11979_v43  ;;  %v2931_v56 = vpop.permute.xlu1 %2930  ;;  %v9456_v12 = vpop.eup %9455 }
 0x3b5   : > { %v3060_v35 = vmul.f32 %v11498_v18, %v2931_v56  ;;  %v3764_v39 = vadd.f32 1.0, %v9456_v12 }
 0x3b6   : > { %9467 = vpow2.f32 %v7782_v46 }
 0x3b7   : > { %v3124_v53 = vadd.f32 %v3060_v35, %v2562_v49  ;;  %9469 = vrcp.f32 %v3764_v39  ;;  %v2577_v49 = vpop.f32.mrf.mxu1 }
 0x3b8   : > { %v2941_v2 = vpop.permute.xlu1 %2940 }
 0x3b9   : > { %v9458_v41 = vpop.eup %9457  ;;  %v11984_v33 = vadd.f32 %v3448_v1, %v3124_v53  ;;  %v3452_v53 = vmul.f32 %v11508_v24, %v3350_v27 }
 0x3ba   : > { %v3953_v15 = vmul.f32 %v9458_v41, %v11947_v52  ;;  %v9460_v22 = vpop.eup %9459 }
 0x3bb   : > { %v7784_v17 = vmul.f32 -1.442695, %v11984_v33  ;;  %v3955_v36 = vmul.f32 %v9460_v22, %v11938_v16  ;;  %v3062_v16 = vmul.f32 %v11498_v18, %v2941_v2 }
 0x3bc   : > { %v9462_v6 = vpop.eup %9461  ;;  %v2946_v9 = vpop.permute.xlu1 %2945  ;;  %v3996_v29 = vpack.c.bf16 %v3953_v15, %v3952_v14 }
 0x3bd   : > { %v9464_v61 = vpop.eup %9463  ;;  %v3063_v40 = vmul.f32 %v11498_v18, %v2946_v9  ;;  %v3767_v3 = vadd.f32 1.0, %v9462_v6  ;;  %9471 = vpow2.f32 %v7784_v17  ;;  %v3126_v11 = vadd.f32 %v3062_v16, %v2570_v31  ;;  %v8970_v15 = vpop.f32.mrf.mxu1 }
 0x3be   : > { %v3954_v52 = vmul.f32 %v9464_v61, %v11951_v5  ;;  %9035 = vmatprep.mubr.bf16.mxu0 %v3996_v29  ;;  %v2168_v5 = vpop.f32.mrf.mxu0  ;;  %v2586_v31 = vadd.f32 %v12005_v60, %v11990_v45 }
 0x3bf   : > { %v9466_v10 = vpop.eup %9465  ;;  %v3127_v50 = vadd.f32 %v3063_v40, %v2573_v62  ;;  %v2578_v51 = vadd.f32 %v2577_v49, %v2168_v5  ;;  %v2580_v40 = vpop.f32.mrf.mxu1 }
 0x3c0   : > { %v3765_v48 = vadd.f32 1.0, %v9466_v10  ;;  %v3997_v30 = vpack.c.bf16 %v3955_v36, %v3954_v52  ;;  %v8898_v34 = vpop.f32.mrf.mxu0  ;;  %v3362_v10 = vpop.permute.xlu0 %3361 }
 0x3c1   : > { %v11997_v23 = vadd.f32 %v3451_v25, %v3127_v50  ;;  %v3338_v47 = vpop.permute.xlu1 %3337  ;;  %v2589_v0 = vadd.f32 %v8970_v15, %v8898_v34  ;;  %v3065_v25 = vmul.f32 %v11498_v18, %v14254_v54  ;;  %v3455_v50 = vmul.f32 %v11508_v24, %v3362_v10  ;;  %v14256_v54 = vld [vmem:[#allocation19_spill] sm:$0xff] }
 0x3c2   : > { %9473 = vrcp.f32 %v3765_v48  ;;  %v3449_v55 = vmul.f32 %v11508_v24, %v3338_v47  ;;  %9036 = vmatmul.mubr.bf16.gmra.mxu0 %v3997_v30  ;;  %v2171_v8 = vpop.f32.mrf.mxu0 }
 0x3c3   : > { %v9468_v37 = vpop.eup %9467  ;;  %v7787_v58 = vmul.f32 -1.442695, %v11997_v23  ;;  %9475 = vrcp.f32 %v3767_v3  ;;  %v2581_v36 = vadd.f32 %v2580_v40, %v2171_v8 }
 0x3c4   : > { %v3766_v26 = vadd.f32 1.0, %v9468_v37  ;;  %v12003_v57 = vadd.f32 %v3449_v55, %v3125_v28  ;;  %v9470_v1 = vpop.eup %9469  ;;  %v12014_v41 = vpop.f32.mrf.mxu0 }
 0x3c5   : > { %9477 = vpow2.f32 %v7787_v58  ;;  %v3342_v32 = vpop.permute.xlu1 %3341  ;;  %v3956_v6 = vmul.f32 %v9470_v1, %v11956_v20 }
 0x3c6   : > { %9479 = vrcp.f32 %v3766_v26  ;;  %v7785_v4 = vmul.f32 -1.442695, %v12003_v57  ;;  %v3450_v46 = vmul.f32 %v11508_v24, %v3342_v32  ;;  %v2184_v29 = vpop.f32.mrf.mxu0 }
 0x3c8   : > { %9481 = vpow2.f32 %v7785_v4  ;;  %v12009_v56 = vadd.f32 %v3450_v46, %v3126_v11  ;;  %v8902_v48 = vpop.f32.mrf.mxu0  ;;  %v12036_v4 = vpop.f32.mrf.mxu1 }
 0x3ca   : > { %v7786_v7 = vmul.f32 -1.442695, %v12009_v56  ;;  %v2951_v35 = vpop.permute.xlu1 %2950  ;;  %v9472_v2 = vpop.eup %9471 }
 0x3cb   : > { %v3064_v59 = vmul.f32 %v11498_v18, %v2951_v35  ;;  %v3768_v61 = vadd.f32 1.0, %v9472_v2  ;;  %v2187_v26 = vpop.f32.mrf.mxu0  ;;  %v2593_v45 = vpop.f32.mrf.mxu1 }
 0x3cc   : > { %9483 = vpow2.f32 %v7786_v7 }
 0x3cd   : > { %v3128_v12 = vadd.f32 %v3064_v59, %v2578_v51  ;;  %9485 = vrcp.f32 %v3768_v61  ;;  %v12040_v7 = vpop.f32.mrf.mxu0  ;;  %v2594_v59 = vadd.f32 %v2593_v45, %v2184_v29 }
 0x3ce   : > { %v2961_v13 = vpop.permute.xlu1 %2960 }
 0x3cf   : > { %v9474_v42 = vpop.eup %9473  ;;  %v12016_v14 = vadd.f32 %v3452_v53, %v3128_v12  ;;  %v12046_v1 = vpop.f32.mrf.mxu0 }
 0x3d0   : > { %v3957_v22 = vmul.f32 %v9474_v42, %v11975_v19  ;;  %v9476_v39 = vpop.eup %9475  ;;  %v3366_v53 = vpop.permute.xlu0 %3365 }
 0x3d1   : > { %v7788_v21 = vmul.f32 -1.442695, %v12016_v14  ;;  %v3959_v20 = vmul.f32 %v9476_v39, %v11967_v63  ;;  %v3066_v63 = vmul.f32 %v11498_v18, %v2961_v13  ;;  %v3456_v2 = vmul.f32 %v11508_v24, %v3366_v53 }
 0x3d2   : > { %v9478_v9 = vpop.eup %9477  ;;  %v2966_v44 = vpop.permute.xlu1 %2965  ;;  %v3998_v62 = vpack.c.bf16 %v3957_v22, %v3956_v6 }
 0x3d3   : > { %v9480_v17 = vpop.eup %9479  ;;  %v3067_v52 = vmul.f32 %v11498_v18, %v2966_v44  ;;  %v3771_v30 = vadd.f32 1.0, %v9478_v9  ;;  %9487 = vpow2.f32 %v7788_v21  ;;  %v3130_v46 = vadd.f32 %v3066_v63, %v2586_v31  ;;  %v8974_v6 = vpop.f32.mrf.mxu1  ;;  %v14255_v9 = vld [vmem:[#allocation29_spill] sm:$0xff] }
 0x3d4   : > { %v3958_v38 = vmul.f32 %v9480_v17, %v11979_v43  ;;  %9039 = vmatprep.mubr.bf16.mxu0 %v3998_v62  ;;  %v3129_v43 = vadd.f32 %v3065_v25, %v2581_v36  ;;  %v14112_v61 = vsub.s32 1, %v14255_v9  ;;  %v12052_v44 = vpop.f32.mrf.mxu0 }
 0x3d5   : > { %v9482_v19 = vpop.eup %9481  ;;  %v3131_v3 = vadd.f32 %v3067_v52, %v2589_v0 }
 0x3d6   : > { %v3769_v47 = vadd.f32 1.0, %v9482_v19  ;;  %v3999_v28 = vpack.c.bf16 %v3959_v20, %v3958_v38  ;;  %v2596_v38 = vpop.f32.mrf.mxu1  ;;  %v2605_v20 = vadd.f32 %v8974_v6, %v8902_v48  ;;  %v12061_v25 = vrot.slane %v14256_v54, %v14112_v61 }
 0x3d7   : > { %v12027_v5 = vadd.f32 %v3455_v50, %v3131_v3  ;;  %v3354_v16 = vpop.permute.xlu1 %3353  ;;  %v12063_v50 = vpop.f32.mrf.mxu0 }
 0x3d8   : > { %9489 = vrcp.f32 %v3769_v47  ;;  %v3453_v55 = vmul.f32 %v11508_v24, %v3354_v16  ;;  %9040 = vmatmul.mubr.bf16.gmra.mxu0 %v3999_v28  ;;  %v14257_v28 = vld [vmem:[#allocation31_spill] sm:$0xff] }
 0x3d9   : > { %v9484_v37 = vpop.eup %9483  ;;  %v7791_v58 = vmul.f32 -1.442695, %v12027_v5  ;;  %9491 = vrcp.f32 %v3771_v30  ;;  %v3069_v48 = vmul.f32 %v11498_v18, %v14257_v28 }
 0x3da   : > { %v3770_v32 = vadd.f32 1.0, %v9484_v37  ;;  %v12034_v34 = vadd.f32 %v3453_v55, %v3129_v43  ;;  %v9486_v12 = vpop.eup %9485 }
 0x3db   : > { %9493 = vpow2.f32 %v7791_v58  ;;  %v3358_v11 = vpop.permute.xlu1 %3357  ;;  %v3960_v62 = vmul.f32 %v9486_v12, %v11984_v33  ;;  %v3378_v33 = vpop.permute.xlu0 %3377 }
 0x3dc   : > { %9495 = vrcp.f32 %v3770_v32  ;;  %v7789_v49 = vmul.f32 -1.442695, %v12034_v34  ;;  %v3454_v8 = vmul.f32 %v11508_v24, %v3358_v11  ;;  %v3459_v16 = vmul.f32 %v11508_v24, %v3378_v33 }
 0x3de   : > { %9497 = vpow2.f32 %v7789_v49  ;;  %v12042_v35 = vadd.f32 %v3454_v8, %v3130_v46 }
 0x3e0   : > { %v7790_v60 = vmul.f32 -1.442695, %v12042_v35  ;;  %v2971_v51 = vpop.permute.xlu1 %2970  ;;  %v9488_v42 = vpop.eup %9487 }
 0x3e1   : > { %v3068_v27 = vmul.f32 %v11498_v18, %v2971_v51  ;;  %v3772_v21 = vadd.f32 1.0, %v9488_v42  ;;  %v2602_v51 = vadd.f32 %v12036_v4, %v12014_v41  ;;  %v12092_v41 = vpop.f32.mrf.mxu1 }
 0x3e2   : > { %9499 = vpow2.f32 %v7790_v60 }
 0x3e3   : > { %v3132_v13 = vadd.f32 %v3068_v27, %v2594_v59 }
 0x3e4   : > { %v2981_v15 = vpop.permute.xlu1 %2980 }
 0x3e5   : > { %v9490_v22 = vpop.eup %9489  ;;  %v12049_v39 = vadd.f32 %v3456_v2, %v3132_v13  ;;  %v3070_v32 = vmul.f32 %v11498_v18, %v2981_v15 }
 0x3e6   : > { %v3961_v29 = vmul.f32 %v9490_v22, %v12003_v57  ;;  %v9492_v17 = vpop.eup %9491  ;;  %v2597_v57 = vadd.f32 %v2596_v38, %v2187_v26  ;;  %v2609_v38 = vpop.f32.mrf.mxu1 }
 0x3e7   : > { %v7792_v40 = vmul.f32 -1.442695, %v12049_v39  ;;  %v3963_v3 = vmul.f32 %v9492_v17, %v11997_v23  ;;  %v3134_v42 = vadd.f32 %v3070_v32, %v2602_v51 }
 0x3e8   : > { %v9494_v0 = vpop.eup %9493  ;;  %v2986_v52 = vpop.permute.xlu1 %2985  ;;  %v4000_v36 = vpack.c.bf16 %v3961_v29, %v3960_v62  ;;  %v3133_v26 = vadd.f32 %v3069_v48, %v2597_v57  ;;  %v2610_v57 = vadd.f32 %v2609_v38, %v12046_v1 }
 0x3e9   : > { %v9496_v10 = vpop.eup %9495  ;;  %v3071_v19 = vmul.f32 %v11498_v18, %v2986_v52  ;;  %9501 = vpow2.f32 %v7792_v40  ;;  %v3775_v63 = vadd.f32 1.0, %v9494_v0 }
 0x3ea   : > { %v3962_v30 = vmul.f32 %v9496_v10, %v12009_v56  ;;  %9043 = vmatprep.mubr.bf16.mxu0 %v4000_v36  ;;  %9503 = vrcp.f32 %v3772_v21 }
 0x3eb   : > { %v9498_v47 = vpop.eup %9497  ;;  %v3135_v43 = vadd.f32 %v3071_v19, %v2605_v20 }
 0x3ec   : > { %v3773_v55 = vadd.f32 1.0, %v9498_v47  ;;  %v8997_v37 = vpop.f32.mrf.mxu0  ;;  %v4001_v58 = vpack.c.bf16 %v3963_v3, %v3962_v30  ;;  %v3382_v47 = vpop.permute.xlu0 %3381 }
 0x3ed   : > { %v12070_v31 = vadd.f32 %v3459_v16, %v3135_v43  ;;  %v12073_v23 = vadd.f32 %v8997_v37, %v12061_v25  ;;  %v3370_v56 = vpop.permute.xlu1 %3369  ;;  %v3460_v16 = vmul.f32 %v11508_v24, %v3382_v47 }
 0x3ee   : > { %9505 = vrcp.f32 %v3773_v55  ;;  %v4110_v11 = vpop.f32.mrf.mxu0  ;;  %v3457_v46 = vmul.f32 %v11508_v24, %v3370_v56  ;;  %9044 = vmatmul.mubr.bf16.gmra.mxu0 %v4001_v58 }
 0x3ef   : > { %v9500_v49 = vpop.eup %9499  ;;  %v7795_v8 = vmul.f32 -1.442695, %v12070_v31  ;;  %v7810_v45 = vmul.f32 -1.442695, %v12073_v23  ;;  %v12080_v60 = vadd.f32 %v4110_v11, %v12061_v25  ;;  %9507 = vrcp.f32 %v3775_v63 }
 0x3f0   : > { %v3774_v59 = vadd.f32 1.0, %v9500_v49  ;;  %v8998_v27 = vpop.f32.mrf.mxu0  ;;  %v12084_v53 = vadd.f32 %v3457_v46, %v3133_v26 }
 0x3f1   : > { %9509 = vpow2.f32 %v7795_v8  ;;  %v7808_v12 = vmul.f32 -1.442695, %v12080_v60  ;;  %v12088_v2 = vadd.f32 %v8998_v27, %v12061_v25  ;;  %v3374_v13 = vpop.permute.xlu1 %3373  ;;  %v8978_v8 = vpop.f32.mrf.mxu1 }
 0x3f2   : > { %9511 = vrcp.f32 %v3774_v59  ;;  %v7793_v15 = vmul.f32 -1.442695, %v12084_v53  ;;  %v4113_v22 = vpop.f32.mrf.mxu0  ;;  %v3458_v6 = vmul.f32 %v11508_v24, %v3374_v13 }
 0x3f3   : > { %9513 = vpow2.f32 %v7810_v45  ;;  %v7811_v4 = vmul.f32 -1.442695, %v12088_v2  ;;  %v12096_v29 = vadd.f32 %v4113_v22, %v12061_v25 }
 0x3f4   : > { %9515 = vpow2.f32 %v7808_v12  ;;  %v9001_v62 = vpop.f32.mrf.mxu0  ;;  %v12098_v17 = vadd.f32 %v3458_v6, %v3134_v42 }
 0x3f5   : > { %9517 = vpow2.f32 %v7811_v4  ;;  %v7809_v40 = vmul.f32 -1.442695, %v12096_v29  ;;  %v12102_v0 = vadd.f32 %v9001_v62, %v12061_v25 }
 0x3f6   : > { %9519 = vpow2.f32 %v7793_v15  ;;  %v7794_v21 = vmul.f32 -1.442695, %v12098_v17  ;;  %v4126_v52 = vpop.f32.mrf.mxu0  ;;  %v2991_v36 = vpop.permute.xlu1 %2990  ;;  %v2621_v15 = vadd.f32 %v8978_v8, %v12052_v44 }
 0x3f7   : > { %v9502_v10 = vpop.eup %9501  ;;  %9521 = vpow2.f32 %v7809_v40  ;;  %v7814_v20 = vmul.f32 -1.442695, %v12102_v0  ;;  %v12107_v19 = vadd.f32 %v4126_v52, %v12061_v25  ;;  %v3072_v3 = vmul.f32 %v11498_v18, %v2991_v36  ;;  %v3394_v36 = vpop.permute.xlu0 %3393 }
 0x3f8   : > { %9523 = vpow2.f32 %v7794_v21  ;;  %v9002_v33 = vpop.f32.mrf.mxu0  ;;  %v9504_v30 = vpop.eup %9503  ;;  %v3776_v43 = vadd.f32 1.0, %v9502_v10 }
 0x3f9   : > { %v7812_v28 = vmul.f32 -1.442695, %v12107_v19  ;;  %v12113_v48 = vadd.f32 %v9002_v33, %v12061_v25  ;;  %9525 = vpow2.f32 %v7814_v20  ;;  %v3136_v63 = vadd.f32 %v3072_v3, %v2610_v57 }
 0x3fa   : > { %v4129_v55 = vpop.f32.mrf.mxu0  ;;  %v12116_v37 = vpop.permute.xlu1 %3000  ;;  %v3964_v46 = vmul.f32 %v9504_v30, %v12016_v14 }
 0x3fb   : > { %v9506_v1 = vpop.eup %9505  ;;  %9527 = vpow2.f32 %v7812_v28  ;;  %v7815_v58 = vmul.f32 -1.442695, %v12113_v48  ;;  %v12120_v56 = vadd.f32 %v4129_v55, %v12061_v25  ;;  %v12123_v32 = vadd.f32 %v3460_v16, %v3136_v63 }
 0x3fc   : > { %v3965_v26 = vmul.f32 %v9506_v1, %v12034_v34  ;;  %v9005_v11 = vpop.f32.mrf.mxu0  ;;  %v9508_v49 = vpop.eup %9507  ;;  %v3463_v28 = vmul.f32 %v11508_v24, %v3394_v36 }
 0x3fd   : > { %9529 = vpow2.f32 %v7815_v58  ;;  %v7813_v45 = vmul.f32 -1.442695, %v12120_v56  ;;  %v12128_v51 = vadd.f32 %v9005_v11, %v12061_v25  ;;  %v7796_v27 = vmul.f32 -1.442695, %v12123_v32  ;;  %v2612_v1 = vpop.f32.mrf.mxu1 }
 0x3fe   : > { %v9510_v59 = vpop.eup %9509  ;;  %9531 = vrcp.f32 %v3776_v43  ;;  %v4142_v12 = vpop.f32.mrf.mxu0  ;;  %v4002_v34 = vpack.c.bf16 %v3965_v26, %v3964_v46  ;;  %v3967_v4 = vmul.f32 %v9508_v49, %v12027_v5  ;;  %v2613_v11 = vadd.f32 %v2612_v1, %v12063_v50 }
 0x3ff   : > { %v3006_v13 = vpop.permute.xlu1 %3005  ;;  %v9512_v42 = vpop.eup %9511  ;;  %v3779_v22 = vadd.f32 1.0, %v9510_v59  ;;  %9533 = vpow2.f32 %v7813_v45  ;;  %v7818_v14 = vmul.f32 -1.442695, %v12128_v51  ;;  %v12137_v44 = vadd.f32 %v4142_v12, %v12061_v25  ;;  %v14258_v59 = vld [vmem:[#allocation30_spill] sm:$0xff] }
 0x400   : > { %v9514_v6 = vpop.eup %9513  ;;  %v3966_v62 = vmul.f32 %v9512_v42, %v12042_v35  ;;  %9535 = vpow2.f32 %v7796_v27  ;;  %v9006_v40 = vpop.f32.mrf.mxu0  ;;  %v3075_v21 = vmul.f32 %v11498_v18, %v3006_v13  ;;  %9047 = vmatprep.mubr.bf16.mxu0 %v4002_v34  ;;  %v3073_v27 = vmul.f32 %v11498_v18, %v14258_v59 }
 0x401   : > { %v9516_v52 = vpop.eup %9515  ;;  %9537 = vrcp.f32 %v3779_v22  ;;  %v4559_v10 = vadd.f32 1.0, %v9514_v6  ;;  %v12141_v43 = vadd.f32 %v9006_v40, %v12061_v25  ;;  %v7816_v26 = vmul.f32 -1.442695, %v12137_v44 }
 0x402   : > { %v9518_v38 = vpop.eup %9517  ;;  %v4557_v20 = vadd.f32 1.0, %v9516_v52  ;;  %9539 = vpow2.f32 %v7818_v14  ;;  %v3139_v57 = vadd.f32 %v3075_v21, %v2621_v15  ;;  %v4145_v33 = vpop.f32.mrf.mxu0  ;;  %v4003_v5 = vpack.c.bf16 %v3967_v4, %v3966_v62 }
 0x403   : > { %v9520_v3 = vpop.eup %9519  ;;  %9541 = vrcp.f32 %v4559_v10  ;;  %v4560_v35 = vadd.f32 1.0, %v9518_v38  ;;  %v3386_v30 = vpop.permute.xlu1 %3385  ;;  %v3074_v12 = vmul.f32 %v11498_v18, %v12116_v37  ;;  %v7819_v15 = vmul.f32 -1.442695, %v12141_v43 }
 0x404   : > { %v9522_v47 = vpop.eup %9521  ;;  %9543 = vrcp.f32 %v4557_v20  ;;  %v3777_v16 = vadd.f32 1.0, %v9520_v3  ;;  %v9009_v63 = vpop.f32.mrf.mxu0  ;;  %9048 = vmatmul.mubr.bf16.gmra.mxu0 %v4003_v5  ;;  %v12145_v49 = vadd.f32 %v3463_v28, %v3139_v57  ;;  %v12153_v50 = vadd.f32 %v4145_v33, %v12061_v25 }
 0x405   : > { %v9524_v55 = vpop.eup %9523  ;;  %9545 = vrcp.f32 %v4560_v35  ;;  %v4558_v58 = vadd.f32 1.0, %v9522_v47  ;;  %v2618_v14 = vadd.f32 %v12092_v41, %v12040_v7  ;;  %v3461_v4 = vmul.f32 %v11508_v24, %v3386_v30 }
 0x406   : > { %9547 = vrcp.f32 %v3777_v16  ;;  %v3778_v46 = vadd.f32 1.0, %v9524_v55  ;;  %v4158_v8 = vpop.f32.mrf.mxu0  ;;  %v9526_v45 = vpop.eup %9525  ;;  %v3137_v40 = vadd.f32 %v3073_v27, %v2613_v11  ;;  %v7799_v18 = vmul.f32 -1.442695, %v12145_v49 }
 0x407   : > { %9549 = vrcp.f32 %v4558_v58  ;;  %v3390_v13 = vpop.permute.xlu1 %3389  ;;  %v4563_v42 = vadd.f32 1.0, %v9526_v45  ;;  %v12161_v10 = vadd.f32 %v9009_v63, %v12061_v25  ;;  %v5136_v7 = vsub.s32 4, %v14255_v9 }
 0x408   : > { %v9528_v34 = vpop.eup %9527  ;;  %9551 = vrcp.f32 %v3778_v46  ;;  %v9010_v22 = vpop.f32.mrf.mxu0  ;;  %v3462_v21 = vmul.f32 %v11508_v24, %v3390_v13  ;;  %v3138_v38 = vadd.f32 %v3074_v12, %v2618_v14  ;;  %v7817_v20 = vmul.f32 -1.442695, %v12153_v50 }
 0x409   : > { %v4561_v6 = vadd.f32 1.0, %v9528_v34  ;;  %9553 = vpow2.f32 %v7816_v26  ;;  %v12166_v57 = vadd.f32 %v4158_v8, %v12061_v25  ;;  %v12168_v3 = vadd.f32 %v3461_v4, %v3137_v40 }
 0x40a   : > { %v9530_v62 = vpop.eup %9529  ;;  %9555 = vrcp.f32 %v4563_v42  ;;  %v4161_v37 = vpop.f32.mrf.mxu0  ;;  %v12171_v35 = vadd.f32 %v9010_v22, %v12061_v25  ;;  %v12176_v16 = vadd.f32 %v3462_v21, %v3138_v38  ;;  %v7822_v1 = vmul.f32 -1.442695, %v12161_v10 }
 0x40b   : > { %v9532_v52 = vpop.eup %9531  ;;  %9557 = vrcp.f32 %v4561_v6  ;;  %v4564_v36 = vadd.f32 1.0, %v9530_v62  ;;  %v12174_v28 = vadd.f32 %v4161_v37, %v12061_v25  ;;  %v12183_v26 = vrot.slane %v14256_v54, %v5136_v7 }
 0x40c   : > { %v9534_v41 = vpop.eup %9533  ;;  %9559 = vpow2.f32 %v7819_v15  ;;  %v9013_v33 = vpop.f32.mrf.mxu0  ;;  %v7820_v8 = vmul.f32 -1.442695, %v12166_v57  ;;  %v3968_v59 = vmul.f32 %v9532_v52, %v12049_v39  ;;  %v7797_v13 = vmul.f32 -1.442695, %v12168_v3 }
 0x40d   : > { %v9536_v5 = vpop.eup %9535  ;;  %9561 = vrcp.f32 %v4564_v36  ;;  %v4562_v24 = vadd.f32 1.0, %v9534_v41  ;;  %v12180_v58 = vadd.f32 %v9013_v33, %v12061_v25  ;;  %v7823_v34 = vmul.f32 -1.442695, %v12171_v35 }
 0x40e   : > { %v9538_v30 = vpop.eup %9537  ;;  %v3780_v47 = vadd.f32 1.0, %v9536_v5  ;;  %9563 = vpow2.f32 %v7799_v18  ;;  %v4174_v63 = vpop.f32.mrf.mxu0  ;;  %v7821_v54 = vmul.f32 -1.442695, %v12174_v28  ;;  %v7798_v15 = vmul.f32 -1.442695, %v12176_v16 }
 0x40f   : > { %v9540_v55 = vpop.eup %9539  ;;  %9565 = vrcp.f32 %v4562_v24  ;;  %v12195_v22 = vadd.f32 %v4174_v63, %v12061_v25  ;;  %v3971_v6 = vmul.f32 %v9538_v30, %v12070_v31  ;;  %v7826_v4 = vmul.f32 -1.442695, %v12180_v58 }
 0x410   : > { %v9542_v11 = vpop.eup %9541  ;;  %9567 = vrcp.f32 %v3780_v47  ;;  %v4567_v46 = vadd.f32 1.0, %v9540_v55  ;;  %v9014_v45 = vpop.f32.mrf.mxu0 }
 0x411   : > { %v9544_v27 = vpop.eup %9543  ;;  %v12188_v12 = vmul.f32 %v9542_v11, %v12073_v23  ;;  %9569 = vpow2.f32 %v7817_v20  ;;  %v12204_v18 = vadd.f32 %v9014_v45, %v12061_v25  ;;  %v7824_v41 = vmul.f32 -1.442695, %v12195_v22 }
 0x412   : > { %v9546_v42 = vpop.eup %9545  ;;  %9571 = vrcp.f32 %v4567_v46  ;;  %v4177_v14 = vpop.f32.mrf.mxu0  ;;  %v12209_v31 = vmul.f32 %v9544_v27, %v12080_v60 }
 0x413   : > { %14259 = vst [vmem:[#allocation21_spill] sm:$0xff] %v12188_v12  ;;  %v9548_v39 = vpop.eup %9547  ;;  %v12199_v23 = vmul.f32 %v9546_v42, %v12088_v2  ;;  %9573 = vpow2.f32 %v7822_v1  ;;  %v5140_v37 = vmul.f32 %v12183_v26, %v12188_v12  ;;  %v12224_v5 = vadd.f32 %v4177_v14, %v12061_v25 }
 0x414   : > { %v9550_v62 = vpop.eup %9549  ;;  %v3969_v40 = vmul.f32 %v9548_v39, %v12084_v53  ;;  %9575 = vpow2.f32 %v7820_v8  ;;  %14261 = vst [vmem:[#allocation23_spill] sm:$0xff] %v12209_v31  ;;  %v7827_v1 = vmul.f32 -1.442695, %v12204_v18 }
 0x415   : > { %14260 = vst [vmem:[#allocation20_spill] sm:$0xff] %v12199_v23  ;;  %v9017_v21 = vpop.f32.mrf.mxu0  ;;  %v9552_v52 = vpop.eup %9551  ;;  %v8266_v2 = vpack.c.bf16 %v12199_v23, %v12188_v12  ;;  %v12214_v36 = vmul.f32 %v9550_v62, %v12096_v29  ;;  %9577 = vpow2.f32 %v7797_v13  ;;  %5206 = vadd.xlane.f32.xlu0 %v5140_v37  ;;  %v5141_v38 = vmul.f32 %v12183_v26, %v12199_v23 }
 0x416   : > { %v9554_v53 = vpop.eup %9553  ;;  %v3970_v7 = vmul.f32 %v9552_v52, %v12098_v17  ;;  %9579 = vpow2.f32 %v7823_v34  ;;  %v12230_v30 = vadd.f32 %v9017_v21, %v12061_v25  ;;  %v4004_v47 = vpack.c.bf16 %v3969_v40, %v3968_v59 }
 0x417   : > { %14262 = vst [vmem:[#allocation22_spill] sm:$0xff] %v12214_v36  ;;  %v4190_v60 = vpop.f32.mrf.mxu0  ;;  %v9556_v20 = vpop.eup %9555  ;;  %8424 = vst [vmem:[%s10480_s12 + $0x8] sm:$0xff] %v8266_v2   ;;  %v8261_v33 = vpack.c.bf16 %v12214_v36, %v12209_v31  ;;  %v4565_v29 = vadd.f32 1.0, %v9554_v53  ;;  %9581 = vpow2.f32 %v7821_v54  ;;  %5208 = vadd.xlane.f32.xlu1 %v5141_v38 }
 0x418   : > { %v9558_v17 = vpop.eup %9557  ;;  %v12227_v24 = vmul.f32 %v9556_v20, %v12102_v0  ;;  %9583 = vpow2.f32 %v7798_v15  ;;  %v12238_v11 = vadd.f32 %v4190_v60, %v12061_v25  ;;  %9051 = vmatprep.mubr.bf16.mxu0 %v4004_v47  ;;  %v4005_v45 = vpack.c.bf16 %v3971_v6, %v3970_v7 }
 0x419   : > { %v9560_v63 = vpop.eup %9559  ;;  %8262 = vst [vmem:[%s10480_s12] sm:$0xff] %v8261_v33   ;;  %v12234_v55 = vmul.f32 %v9558_v17, %v12107_v19  ;;  %9585 = vrcp.f32 %v4565_v29  ;;  %v7825_v19 = vmul.f32 -1.442695, %v12224_v5  ;;  %v7830_v42 = vmul.f32 -1.442695, %v12230_v30 }
 0x41a   : > { %v9562_v46 = vpop.eup %9561  ;;  %v4568_v0 = vadd.f32 1.0, %v9560_v63  ;;  %9587 = vpow2.f32 %v7826_v4  ;;  %v5144_v8 = vmul.f32 %v12183_v26, %v12227_v24  ;;  %9052 = vmatmul.mubr.bf16.gmra.mxu0 %v4005_v45  ;;  %v7828_v6 = vmul.f32 -1.442695, %v12238_v11 }
 0x41b   : > { %v9564_v59 = vpop.eup %9563  ;;  %v12243_v27 = vmul.f32 %v9562_v46, %v12113_v48  ;;  %9589 = vpow2.f32 %v7824_v41  ;;  %v9018_v48 = vpop.f32.mrf.mxu0  ;;  %v5142_v62 = vmul.f32 %v12183_v26, %v12234_v55 }
 0x41c   : > { %v9566_v13 = vpop.eup %9565  ;;  %9591 = vrcp.f32 %v4568_v0  ;;  %v3783_v34 = vadd.f32 1.0, %v9564_v59  ;;  %5214 = vadd.xlane.f32.xlu0 %v5144_v8  ;;  %v12267_v7 = vadd.f32 %v9018_v48, %v12061_v25 }
 0x41d   : > { %v12247_v54 = vpop.eup %9567  ;;  %v8276_v15 = vpack.c.bf16 %v12243_v27, %v12227_v24  ;;  %v12252_v14 = vmul.f32 %v9566_v13, %v12120_v56  ;;  %9593 = vpow2.f32 %v7827_v1  ;;  %v5145_v4 = vmul.f32 %v12183_v26, %v12243_v27  ;;  %v4193_v41 = vpop.f32.mrf.mxu0 }
 0x41e   : > { %v9570_v39 = vpop.eup %9569  ;;  %9595 = vrcp.f32 %v3783_v34  ;;  %v12274_v63 = vadd.f32 %v4193_v41, %v12061_v25  ;;  %v7831_v0 = vmul.f32 -1.442695, %v12267_v7 }
 0x41f   : > { %14263 = vst [vmem:[#allocation25_spill] sm:$0xff] %v12252_v14  ;;  %v9572_v40 = vpop.eup %9571  ;;  %8426 = vst [vmem:[%s10480_s12 + $0x18] sm:$0xff] %v8276_v15   ;;  %v8271_v37 = vpack.c.bf16 %v12252_v14, %v12234_v55  ;;  %v4566_v56 = vadd.f32 1.0, %v9570_v39  ;;  %9597 = vpow2.f32 %v7825_v19  ;;  %5216 = vadd.xlane.f32.xlu1 %v5145_v4  ;;  %v5143_v20 = vmul.f32 %v12183_v26, %v12252_v14 }
 0x420   : > { %v9574_v21 = vpop.eup %9573  ;;  %v12263_v52 = vmul.f32 %v9572_v40, %v12128_v51  ;;  %9599 = vpow2.f32 %v7830_v42  ;;  %5210 = vadd.xlane.f32.xlu0 %v5142_v62  ;;  %v7829_v42 = vmul.f32 -1.442695, %v12274_v63 }
 0x421   : > { %v9576_v2 = vpop.eup %9575  ;;  %8425 = vst [vmem:[%s10480_s12 + $0x10] sm:$0xff] %v8271_v37   ;;  %9601 = vrcp.f32 %v4566_v56  ;;  %v4571_v53 = vadd.f32 1.0, %v9574_v21 }
 0x422   : > { %v9578_v38 = vpop.eup %9577  ;;  %v4569_v60 = vadd.f32 1.0, %v9576_v2  ;;  %9603 = vpow2.f32 %v7828_v6  ;;  %v5148_v51 = vmul.f32 %v12183_v26, %v12263_v52 }
 0x423   : > { %v9580_v33 = vpop.eup %9579  ;;  %9605 = vrcp.f32 %v4571_v53  ;;  %v3781_v29 = vadd.f32 1.0, %v9578_v38  ;;  %5212 = vadd.xlane.f32.xlu1 %v5143_v20 }
 0x424   : > { %v9582_v17 = vpop.eup %9581  ;;  %9607 = vrcp.f32 %v4569_v60  ;;  %v4572_v47 = vadd.f32 1.0, %v9580_v33  ;;  %5222 = vadd.xlane.f32.xlu0 %v5148_v51 }
 0x425   : > { %v9584_v1 = vpop.eup %9583  ;;  %9609 = vrcp.f32 %v3781_v29  ;;  %v4570_v46 = vadd.f32 1.0, %v9582_v17 }
 0x426   : > { %v9586_v8 = vpop.eup %9585  ;;  %9611 = vrcp.f32 %v4572_v47  ;;  %v3782_v45 = vadd.f32 1.0, %v9584_v1 }
 0x427   : > { %v9588_v59 = vpop.eup %9587  ;;  %v12278_v19 = vmul.f32 %v9586_v8, %v12137_v44  ;;  %9613 = vrcp.f32 %v4570_v46 }
 0x428   : > { %v9590_v13 = vpop.eup %9589  ;;  %9615 = vrcp.f32 %v3782_v45  ;;  %v4575_v34 = vadd.f32 1.0, %v9588_v59 }
 0x429   : > { %v9592_v15 = vpop.eup %9591  ;;  %v4573_v48 = vadd.f32 1.0, %v9590_v13  ;;  %9617 = vpow2.f32 %v7831_v0  ;;  %v5146_v39 = vmul.f32 %v12183_v26, %v12278_v19 }
 0x42a   : > { %v9594_v6 = vpop.eup %9593  ;;  %v12284_v4 = vmul.f32 %v9592_v15, %v12141_v43  ;;  %9619 = vrcp.f32 %v4575_v34  ;;  %v9021_v62 = vpop.f32.mrf.mxu0 }
 0x42b   : > { %v9596_v44 = vpop.eup %9595  ;;  %9621 = vrcp.f32 %v4573_v48  ;;  %v4576_v40 = vadd.f32 1.0, %v9594_v6  ;;  %5218 = vadd.xlane.f32.xlu0 %v5146_v39  ;;  %v12287_v37 = vadd.f32 %v9021_v62, %v12061_v25 }
 0x42c   : > { %v9598_v56 = vpop.eup %9597  ;;  %v8286_v21 = vpack.c.bf16 %v12284_v4, %v12263_v52  ;;  %9623 = vpow2.f32 %v7829_v42  ;;  %v5149_v2 = vmul.f32 %v12183_v26, %v12284_v4  ;;  %v4206_v43 = vpop.f32.mrf.mxu0  ;;  %v3972_v42 = vmul.f32 %v12247_v54, %v12123_v32 }
 0x42d   : > { %v9600_v53 = vpop.eup %9599  ;;  %9625 = vrcp.f32 %v4576_v40  ;;  %v4574_v41 = vadd.f32 1.0, %v9598_v56  ;;  %v7834_v38 = vmul.f32 -1.442695, %v12287_v37  ;;  %v12295_v60 = vadd.f32 %v4206_v43, %v12061_v25 }
 0x42e   : > { %v9602_v20 = vpop.eup %9601  ;;  %8428 = vst [vmem:[%s10480_s12 + $0x28] sm:$0xff] %v8286_v21   ;;  %v4579_v51 = vadd.f32 1.0, %v9600_v53  ;;  %5224 = vadd.xlane.f32.xlu1 %v5149_v2  ;;  %v9022_v33 = vpop.f32.mrf.mxu0  ;;  %v3975_v21 = vmul.f32 %v9596_v44, %v12145_v49 }
 0x42f   : > { %v9604_v29 = vpop.eup %9603  ;;  %v12299_v17 = vmul.f32 %v9602_v20, %v12153_v50  ;;  %9627 = vrcp.f32 %v4574_v41  ;;  %v7832_v47 = vmul.f32 -1.442695, %v12295_v60  ;;  %v12303_v1 = vadd.f32 %v9022_v33, %v12061_v25 }
 0x430   : > { %v9606_v46 = vpop.eup %9605  ;;  %9629 = vrcp.f32 %v4579_v51  ;;  %v4577_v0 = vadd.f32 1.0, %v9604_v29  ;;  %v4209_v8 = vpop.f32.mrf.mxu0 }
 0x431   : > { %v9608_v45 = vpop.eup %9607  ;;  %v8281_v59 = vpack.c.bf16 %v12299_v17, %v12278_v19  ;;  %v12308_v13 = vmul.f32 %v9606_v46, %v12161_v10  ;;  %v5147_v50 = vmul.f32 %v12183_v26, %v12299_v17  ;;  %9631 = vpow2.f32 %v7834_v38 }
 0x432   : > { %v9610_v34 = vpop.eup %9609  ;;  %9633 = vrcp.f32 %v4577_v0  ;;  %v7835_v15 = vmul.f32 -1.442695, %v12303_v1  ;;  %v12316_v48 = vadd.f32 %v4209_v8, %v12061_v25  ;;  %v12320_v6 = vmul.f32 %v9608_v45, %v12166_v57 }
 0x433   : > { %v9612_v39 = vpop.eup %9611  ;;  %8427 = vst [vmem:[%s10480_s12 + $0x20] sm:$0xff] %v8281_v59   ;;  %v3973_v10 = vmul.f32 %v9610_v34, %v12168_v3  ;;  %5220 = vadd.xlane.f32.xlu1 %v5147_v50  ;;  %v5152_v62 = vmul.f32 %v12183_v26, %v12308_v13  ;;  %9635 = vpow2.f32 %v7832_v47 }
 0x434   : > { %v9614_v40 = vpop.eup %9613  ;;  %v12326_v32 = vmul.f32 %v9612_v39, %v12171_v35  ;;  %9637 = vpow2.f32 %v7835_v15  ;;  %v7833_v54 = vmul.f32 -1.442695, %v12316_v48 }
 0x435   : > { %v9616_v56 = vpop.eup %9615  ;;  %v12331_v57 = vmul.f32 %v9614_v40, %v12174_v28  ;;  %5230 = vadd.xlane.f32.xlu0 %v5152_v62  ;;  %v4006_v3 = vpack.c.bf16 %v3973_v10, %v3972_v42  ;;  %v5150_v28 = vmul.f32 %v12183_v26, %v12320_v6 }
 0x436   : > { %v9618_v2 = vpop.eup %9617  ;;  %v8296_v43 = vpack.c.bf16 %v12326_v32, %v12308_v13  ;;  %v3974_v35 = vmul.f32 %v9616_v56, %v12176_v16  ;;  %v5153_v53 = vmul.f32 %v12183_v26, %v12326_v32  ;;  %9639 = vpow2.f32 %v7833_v54 }
 0x437   : > { %v9620_v41 = vpop.eup %9619  ;;  %v8291_v49 = vpack.c.bf16 %v12331_v57, %v12320_v6  ;;  %v4580_v44 = vadd.f32 1.0, %v9618_v2  ;;  %9055 = vmatprep.mubr.bf16.mxu0 %v4006_v3  ;;  %v5151_v47 = vmul.f32 %v12183_v26, %v12331_v57 }
 0x438   : > { %v9622_v38 = vpop.eup %9621  ;;  %8430 = vst [vmem:[%s10480_s12 + $0x38] sm:$0xff] %v8296_v43   ;;  %v12344_v20 = vmul.f32 %v9620_v41, %v12180_v58  ;;  %5232 = vadd.xlane.f32.xlu1 %v5153_v53  ;;  %v4007_v16 = vpack.c.bf16 %v3975_v21, %v3974_v35 }
 0x439   : > { %v9624_v51 = vpop.eup %9623  ;;  %8429 = vst [vmem:[%s10480_s12 + $0x30] sm:$0xff] %v8291_v49   ;;  %9641 = vrcp.f32 %v4580_v44  ;;  %5226 = vadd.xlane.f32.xlu0 %v5150_v28  ;;  %v12352_v0 = vmul.f32 %v9622_v38, %v12195_v22 }
 0x43a   : > { %14264 = vst [vmem:[#allocation24_spill] sm:$0xff] %v12344_v20  ;;  %v9626_v33 = vpop.eup %9625  ;;  %v4578_v29 = vadd.f32 1.0, %v9624_v51  ;;  %v5156_v46 = vmul.f32 %v12183_v26, %v12344_v20  ;;  %9056 = vmatmul.mubr.bf16.gmra.mxu0 %v4007_v16 }
 0x43b   : > { %14265 = vst [vmem:[#allocation27_spill] sm:$0xff] %v12352_v0  ;;  %v12355_v58 = vmul.f32 %v9626_v33, %v12204_v18  ;;  %v5154_v10 = vmul.f32 %v12183_v26, %v12352_v0 }
 0x43c   : > { %v9628_v8 = vpop.eup %9627  ;;  %9643 = vrcp.f32 %v4578_v29  ;;  %5228 = vadd.xlane.f32.xlu1 %v5151_v47 }
 0x43d   : > { %14266 = vst [vmem:[#allocation26_spill] sm:$0xff] %v12355_v58  ;;  %v9630_v45 = vpop.eup %9629  ;;  %v8306_v59 = vpack.c.bf16 %v12355_v58, %v12344_v20  ;;  %v12360_v50 = vmul.f32 %v9628_v8, %v12224_v5  ;;  %5238 = vadd.xlane.f32.xlu0 %v5156_v46  ;;  %v5157_v34 = vmul.f32 %v12183_v26, %v12355_v58 }
 0x43e   : > { %v9632_v22 = vpop.eup %9631  ;;  %v12365_v42 = vmul.f32 %v9630_v45, %v12230_v30 }
 0x43f   : > { %14267 = vst [vmem:[#allocation28_spill] sm:$0xff] %v12360_v50  ;;  %v9634_v18 = vpop.eup %9633  ;;  %8432 = vst [vmem:[%s10480_s12 + $0x48] sm:$0xff] %v8306_v59   ;;  %v8301_v15 = vpack.c.bf16 %v12360_v50, %v12352_v0  ;;  %v4583_v39 = vadd.f32 1.0, %v9632_v22  ;;  %v5155_v21 = vmul.f32 %v12183_v26, %v12360_v50 }
 0x440   : > { %v9636_v62 = vpop.eup %9635  ;;  %5240 = vadd.xlane.f32.xlu1 %v5157_v34  ;;  %v5160_v30 = vmul.f32 %v12183_v26, %v12365_v42  ;;  %v12376_v54 = vmul.f32 %v9634_v18, %v12238_v11  ;;  %v9025_v3 = vpop.f32.mrf.mxu0 }
 0x441   : > { %v9638_v5 = vpop.eup %9637  ;;  %8431 = vst [vmem:[%s10480_s12 + $0x40] sm:$0xff] %v8301_v15   ;;  %9645 = vrcp.f32 %v4583_v39  ;;  %v4581_v40 = vadd.f32 1.0, %v9636_v62  ;;  %5234 = vadd.xlane.f32.xlu0 %v5154_v10  ;;  %v12381_v43 = vadd.f32 %v9025_v3, %v12061_v25 }
 0x442   : > { %v4584_v56 = vadd.f32 1.0, %v9638_v5  ;;  %v4222_v53 = vpop.f32.mrf.mxu0  ;;  %v5158_v44 = vmul.f32 %v12183_v26, %v12376_v54 }
 0x443   : > { %v9640_v2 = vpop.eup %9639  ;;  %9647 = vrcp.f32 %v4581_v40  ;;  %v7838_v41 = vmul.f32 -1.442695, %v12381_v43  ;;  %v12385_v11 = vadd.f32 %v4222_v53, %v12061_v25 }
 0x444   : > { %9649 = vrcp.f32 %v4584_v56  ;;  %v4582_v35 = vadd.f32 1.0, %v9640_v2  ;;  %5236 = vadd.xlane.f32.xlu1 %v5155_v21  ;;  %v9026_v28 = vpop.f32.mrf.mxu0 }
 0x445   : > { %5246 = vadd.xlane.f32.xlu0 %v5160_v30  ;;  %v7836_v16 = vmul.f32 -1.442695, %v12385_v11  ;;  %v12394_v51 = vadd.f32 %v9026_v28, %v12061_v25 }
 0x446   : > { %v9642_v49 = vpop.eup %9641  ;;  %9651 = vrcp.f32 %v4582_v35  ;;  %v4225_v33 = vpop.f32.mrf.mxu0 }
 0x447   : > { %v12390_v38 = vmul.f32 %v9642_v49, %v12267_v7  ;;  %9653 = vpow2.f32 %v7838_v41  ;;  %v7839_v7 = vmul.f32 -1.442695, %v12394_v51  ;;  %v12405_v45 = vadd.f32 %v4225_v33, %v12061_v25 }
 0x448   : > { %9655 = vpow2.f32 %v7836_v16 }
 0x449   : > { %v9644_v29 = vpop.eup %9643  ;;  %v8316_v47 = vpack.c.bf16 %v12390_v38, %v12365_v42  ;;  %v5161_v46 = vmul.f32 %v12183_v26, %v12390_v38  ;;  %5242 = vadd.xlane.f32.xlu0 %v5158_v44  ;;  %9657 = vpow2.f32 %v7839_v7  ;;  %v7837_v34 = vmul.f32 -1.442695, %v12405_v45 }
 0x44a   : > { %v12402_v8 = vmul.f32 %v9644_v29, %v12274_v63 }
 0x44b   : > { %8434 = vst [vmem:[%s10480_s12 + $0x58] sm:$0xff] %v8316_v47   ;;  %5248 = vadd.xlane.f32.xlu1 %v5161_v46  ;;  %9659 = vpow2.f32 %v7837_v34 }
 0x44c   : > { %14268 = vst [vmem:[#allocation31_spill] sm:$0xff] %v12402_v8  ;;  %v8311_v59 = vpack.c.bf16 %v12402_v8, %v12376_v54  ;;  %v5159_v22 = vmul.f32 %v12183_v26, %v12402_v8 }
 0x44e   : > { %v9646_v18 = vpop.eup %9645  ;;  %8433 = vst [vmem:[%s10480_s12 + $0x50] sm:$0xff] %v8311_v59  }
 0x44f   : > { %v12415_v63 = vmul.f32 %v9646_v18, %v12287_v37  ;;  %5244 = vadd.xlane.f32.xlu1 %v5159_v22 }
 0x450   : > { %v9648_v15 = vpop.eup %9647 }
 0x451   : > { %v9650_v39 = vpop.eup %9649  ;;  %v12418_v10 = vmul.f32 %v9648_v15, %v12295_v60  ;;  %v5164_v62 = vmul.f32 %v12183_v26, %v12415_v63 }
 0x452   : > { %v12423_v5 = vmul.f32 %v9650_v39, %v12303_v1 }
 0x453   : > { %14269 = vst [vmem:[#allocation30_spill] sm:$0xff] %v12418_v10  ;;  %v9652_v40 = vpop.eup %9651  ;;  %5254 = vadd.xlane.f32.xlu0 %v5164_v62  ;;  %v5162_v3 = vmul.f32 %v12183_v26, %v12418_v10 }
 0x454   : > { %14270 = vst [vmem:[#allocation32_spill] sm:$0xff] %v12423_v5  ;;  %v9654_v30 = vpop.eup %9653  ;;  %v8326_v37 = vpack.c.bf16 %v12423_v5, %v12415_v63  ;;  %v12428_v56 = vmul.f32 %v9652_v40, %v12316_v48  ;;  %v5165_v60 = vmul.f32 %v12183_v26, %v12423_v5  ;;  %v10100_v5 = vld [vmem:[%s10467_s15 + $0x168] sm:$0xff] }
 0x455   : > { %v4587_v21 = vadd.f32 1.0, %v9654_v30  ;;  %v9656_v2 = vpop.eup %9655 }
 0x456   : > { %14271 = vst [vmem:[#allocation33_spill] sm:$0xff] %v12428_v56  ;;  %8436 = vst [vmem:[%s10480_s12 + $0x68] sm:$0xff] %v8326_v37   ;;  %v8321_v1 = vpack.c.bf16 %v12428_v56, %v12418_v10  ;;  %5256 = vadd.xlane.f32.xlu1 %v5165_v60  ;;  %v9029_v35 = vpop.f32.mrf.mxu0  ;;  %v4585_v53 = vadd.f32 1.0, %v9656_v2  ;;  %v9658_v41 = vpop.eup %9657  ;;  %v5163_v44 = vmul.f32 %v12183_v26, %v12428_v56  ;;  %v10098_v56 = vld [vmem:[%s10467_s15 + $0x1e8] sm:$0xff]  ;;  %v10099_v10 = vld [vmem:[%s10467_s15] sm:$0xff] }
 0x457   : > { %9661 = vrcp.f32 %v4587_v21  ;;  %5250 = vadd.xlane.f32.xlu0 %v5162_v3  ;;  %v12438_v48 = vadd.f32 %v9029_v35, %v12061_v25  ;;  %v4588_v28 = vadd.f32 1.0, %v9658_v41 }
 0x458   : > { %8435 = vst [vmem:[%s10480_s12 + $0x60] sm:$0xff] %v8321_v1   ;;  %v4238_v49 = vpop.f32.mrf.mxu0  ;;  %9663 = vrcp.f32 %v4585_v53  ;;  %v9660_v47 = vpop.eup %9659 }
 0x459   : > { %v7842_v16 = vmul.f32 -1.442695, %v12438_v48  ;;  %v12445_v33 = vadd.f32 %v4238_v49, %v12061_v25  ;;  %9665 = vrcp.f32 %v4588_v28  ;;  %v4586_v59 = vadd.f32 1.0, %v9660_v47 }
 0x45a   : > { %5252 = vadd.xlane.f32.xlu1 %v5163_v44  ;;  %v9030_v29 = vpop.f32.mrf.mxu0 }
 0x45b   : > { %v7840_v46 = vmul.f32 -1.442695, %v12445_v33  ;;  %v12449_v7 = vadd.f32 %v9030_v29, %v12061_v25  ;;  %9667 = vpow2.f32 %v7842_v16 }
 0x45c   : > { %v4241_v34 = vpop.f32.mrf.mxu0 }
 0x45d   : > { %9669 = vpow2.f32 %v7840_v46  ;;  %v7843_v22 = vmul.f32 -1.442695, %v12449_v7  ;;  %v12453_v18 = vadd.f32 %v4241_v34, %v12061_v25 }
 0x45e   : > { %9671 = vrcp.f32 %v4586_v59 }
 0x45f   : > { %9673 = vpow2.f32 %v7843_v22  ;;  %v7841_v15 = vmul.f32 -1.442695, %v12453_v18 }
 0x461   : > { %9675 = vpow2.f32 %v7841_v15 }
 0x464   : > { %v9662_v39 = vpop.eup %9661 }
 0x465   : > { %v12457_v62 = vmul.f32 %v9662_v39, %v12381_v43  ;;  %v9664_v40 = vpop.eup %9663 }
 0x466   : > { %v12460_v30 = vmul.f32 %v9664_v40, %v12385_v11  ;;  %v9666_v60 = vpop.eup %9665 }
 0x467   : > { %v5168_v37 = vmul.f32 %v12183_v26, %v12457_v62  ;;  %v12465_v3 = vmul.f32 %v9666_v60, %v12394_v51  ;;  %v5139_v60 = vmul.f32 %v12183_v26, %v12214_v36 }
 0x468   : > { %v9668_v21 = vpop.eup %9667  ;;  %v5166_v2 = vmul.f32 %v12183_v26, %v12460_v30 }
 0x469   : > { %5262 = vadd.xlane.f32.xlu1 %v5168_v37  ;;  %v4591_v43 = vadd.f32 1.0, %v9668_v21  ;;  %v8336_v11 = vpack.c.bf16 %v12465_v3, %v12457_v62  ;;  %v5169_v16 = vmul.f32 %v12183_v26, %v12465_v3  ;;  %v5138_v37 = vmul.f32 %v12183_v26, %v12209_v31 }
 0x46a   : > { %v9670_v1 = vpop.eup %9669  ;;  %5258 = vadd.xlane.f32.xlu0 %v5166_v2 }
 0x46b   : > { %v9672_v35 = vpop.eup %9671  ;;  %v4589_v53 = vadd.f32 1.0, %v9670_v1  ;;  %8438 = vst [vmem:[%s10480_s12 + $0x78] sm:$0xff] %v8336_v11   ;;  %9677 = vrcp.f32 %v4591_v43 }
 0x46c   : > { %v9674_v41 = vpop.eup %9673  ;;  %v12472_v49 = vmul.f32 %v9672_v35, %v12405_v45  ;;  %v9033_v44 = vpop.f32.mrf.mxu0 }
 0x46d   : > { %v4592_v51 = vadd.f32 1.0, %v9674_v41  ;;  %v12476_v28 = vadd.f32 %v9033_v44, %v12061_v25  ;;  %9679 = vrcp.f32 %v4589_v53 }
 0x46e   : > { %v9676_v29 = vpop.eup %9675  ;;  %v8331_v47 = vpack.c.bf16 %v12472_v49, %v12460_v30  ;;  %v5167_v45 = vmul.f32 %v12183_v26, %v12472_v49  ;;  %v4254_v46 = vpop.f32.mrf.mxu0  ;;  %5264 = vadd.xlane.f32.xlu0 %v5169_v16 }
 0x46f   : > { %9681 = vrcp.f32 %v4592_v51  ;;  %v4590_v59 = vadd.f32 1.0, %v9676_v29  ;;  %v7846_v34 = vmul.f32 -1.442695, %v12476_v28  ;;  %v12486_v22 = vadd.f32 %v4254_v46, %v12061_v25 }
 0x470   : > { %8437 = vst [vmem:[%s10480_s12 + $0x70] sm:$0xff] %v8331_v47   ;;  %5260 = vadd.xlane.f32.xlu1 %v5167_v45  ;;  %v9034_v15 = vpop.f32.mrf.mxu0 }
 0x471   : > { %9683 = vrcp.f32 %v4590_v59  ;;  %v7844_v39 = vmul.f32 -1.442695, %v12486_v22  ;;  %v4266_v40 = vadd.f32 %v9034_v15, %v12061_v25 }
 0x472   : > { %9685 = vpow2.f32 %v7846_v34  ;;  %v4257_v21 = vpop.f32.mrf.mxu0  ;;  %5202 = vadd.xlane.f32.xlu0 %v5138_v37 }
 0x473   : > { %9687 = vpow2.f32 %v7844_v39  ;;  %v7847_v2 = vmul.f32 -1.442695, %v4266_v40  ;;  %v4258_v1 = vadd.f32 %v4257_v21, %v12061_v25 }
 0x474   : > { %5204 = vadd.xlane.f32.xlu1 %v5139_v60 }
 0x475   : > { %9689 = vpow2.f32 %v7847_v2  ;;  %v7845_v43 = vmul.f32 -1.442695, %v4258_v1 }
 0x477   : > { %9691 = vpow2.f32 %v7845_v43 }
 0x478   : > { %v9678_v35 = vpop.eup %9677 }
 0x479   : > { %v12497_v41 = vmul.f32 %v9678_v35, %v12438_v48 }
 0x47a   : > { %v9680_v11 = vpop.eup %9679 }
 0x47b   : > { %14272 = vst [vmem:[#allocation34_spill] sm:$0xff] %v12497_v41  ;;  %v12503_v29 = vmul.f32 %v9680_v11, %v12445_v33 }
 0x47c   : > { %v9682_v53 = vpop.eup %9681 }
 0x47d   : > { %v12500_v44 = vmul.f32 %v9682_v53, %v12449_v7  ;;  %14274 = vst [vmem:[#allocation36_spill] sm:$0xff] %v12503_v29 }
 0x47e   : > { %v9684_v51 = vpop.eup %9683 }
 0x47f   : > { %14273 = vst [vmem:[#allocation35_spill] sm:$0xff] %v12500_v44  ;;  %v9686_v16 = vpop.eup %9685  ;;  %v8346_v47 = vpack.c.bf16 %v12500_v44, %v12497_v41  ;;  %v12508_v45 = vmul.f32 %v9684_v51, %v12453_v18 }
 0x480   : > { %v9688_v46 = vpop.eup %9687  ;;  %v4595_v59 = vadd.f32 1.0, %v9686_v16 }
 0x481   : > { %14275 = vst [vmem:[#allocation37_spill] sm:$0xff] %v12508_v45  ;;  %8440 = vst [vmem:[%s10480_s12 + $0x88] sm:$0xff] %v8346_v47   ;;  %v8341_v48 = vpack.c.bf16 %v12508_v45, %v12503_v29  ;;  %v4593_v34 = vadd.f32 1.0, %v9688_v46 }
 0x482   : > { %v9690_v7 = vpop.eup %9689  ;;  %v9037_v15 = vpop.f32.mrf.mxu0  ;;  %9693 = vrcp.f32 %v4595_v59 }
 0x483   : > { %8439 = vst [vmem:[%s10480_s12 + $0x80] sm:$0xff] %v8341_v48   ;;  %v4596_v39 = vadd.f32 1.0, %v9690_v7  ;;  %v4279_v33 = vadd.f32 %v9037_v15, %v12061_v25  ;;  %9695 = vrcp.f32 %v4593_v34 }
 0x484   : > { %v9692_v37 = vpop.eup %9691  ;;  %v4270_v60 = vpop.f32.mrf.mxu0 }
 0x485   : > { %9697 = vrcp.f32 %v4596_v39  ;;  %v4594_v18 = vadd.f32 1.0, %v9692_v37  ;;  %v7850_v21 = vmul.f32 -1.442695, %v4279_v33  ;;  %v4271_v2 = vadd.f32 %v4270_v60, %v12061_v25 }
 0x486   : > { %v9038_v43 = vpop.f32.mrf.mxu0 }
 0x487   : > { %9699 = vrcp.f32 %v4594_v18  ;;  %v7848_v35 = vmul.f32 -1.442695, %v4271_v2  ;;  %v4282_v11 = vadd.f32 %v9038_v43, %v12061_v25 }
 0x488   : > { %9701 = vpow2.f32 %v7850_v21  ;;  %v4273_v53 = vpop.f32.mrf.mxu0 }
 0x489   : > { %9703 = vpow2.f32 %v7848_v35  ;;  %v7851_v51 = vmul.f32 -1.442695, %v4282_v11  ;;  %v4274_v16 = vadd.f32 %v4273_v53, %v12061_v25 }
 0x48b   : > { %9705 = vpow2.f32 %v7851_v51  ;;  %v7849_v47 = vmul.f32 -1.442695, %v4274_v16 }
 0x48d   : > { %9707 = vpow2.f32 %v7849_v47 }
 0x48f   : > { %v9694_v46 = vpop.eup %9693 }
 0x490   : > { %v9696_v59 = vpop.eup %9695  ;;  %v12519_v34 = vmul.f32 %v9694_v46, %v12476_v28 }
 0x491   : > { %v12524_v37 = vmul.f32 %v9696_v59, %v12486_v22 }
 0x492   : > { %v9698_v48 = vpop.eup %9697  ;;  %14276 = vst [vmem:[#allocation38_spill] sm:$0xff] %v12519_v34 }
 0x493   : > { %v12521_v7 = vmul.f32 %v9698_v48, %v4266_v40  ;;  %14278 = vst [vmem:[#allocation40_spill] sm:$0xff] %v12524_v37 }
 0x494   : > { %v9700_v15 = vpop.eup %9699 }
 0x495   : > { %14277 = vst [vmem:[#allocation39_spill] sm:$0xff] %v12521_v7  ;;  %v9702_v39 = vpop.eup %9701  ;;  %v8356_v60 = vpack.c.bf16 %v12521_v7, %v12519_v34  ;;  %v12528_v18 = vmul.f32 %v9700_v15, %v4258_v1 }
 0x496   : > { %v9704_v21 = vpop.eup %9703  ;;  %v4599_v43 = vadd.f32 1.0, %v9702_v39 }
 0x497   : > { %14279 = vst [vmem:[#allocation41_spill] sm:$0xff] %v12528_v18  ;;  %8442 = vst [vmem:[%s10480_s12 + $0x98] sm:$0xff] %v8356_v60   ;;  %v8351_v35 = vpack.c.bf16 %v12528_v18, %v12524_v37  ;;  %v4597_v28 = vadd.f32 1.0, %v9704_v21 }
 0x498   : > { %v9706_v53 = vpop.eup %9705  ;;  %9709 = vrcp.f32 %v4599_v43  ;;  %v9041_v40 = vpop.f32.mrf.mxu0 }
 0x499   : > { %8441 = vst [vmem:[%s10480_s12 + $0x90] sm:$0xff] %v8351_v35   ;;  %9711 = vrcp.f32 %v4597_v28  ;;  %v4600_v51 = vadd.f32 1.0, %v9706_v53  ;;  %v12535_v22 = vadd.f32 %v9041_v40, %v12061_v25 }
 0x49a   : > { %v9708_v47 = vpop.eup %9707  ;;  %v4286_v46 = vpop.f32.mrf.mxu0 }
 0x49b   : > { %9713 = vrcp.f32 %v4600_v51  ;;  %v4598_v1 = vadd.f32 1.0, %v9708_v47  ;;  %v7854_v59 = vmul.f32 -1.442695, %v12535_v22  ;;  %v4287_v48 = vadd.f32 %v4286_v46, %v12061_v25 }
 0x49c   : > { %v9042_v15 = vpop.f32.mrf.mxu0 }
 0x49d   : > { %9715 = vrcp.f32 %v4598_v1  ;;  %v7852_v39 = vmul.f32 -1.442695, %v4287_v48  ;;  %v4298_v60 = vadd.f32 %v9042_v15, %v12061_v25 }
 0x49e   : > { %9717 = vpow2.f32 %v7854_v59  ;;  %v4289_v21 = vpop.f32.mrf.mxu0 }
 0x49f   : > { %9719 = vpow2.f32 %v7852_v39  ;;  %v7855_v43 = vmul.f32 -1.442695, %v4298_v60  ;;  %v4290_v35 = vadd.f32 %v4289_v21, %v12061_v25 }
 0x4a1   : > { %9721 = vpow2.f32 %v7855_v43  ;;  %v7853_v28 = vmul.f32 -1.442695, %v4290_v35 }
 0x4a3   : > { %9723 = vpow2.f32 %v7853_v28 }
 0x4a5   : > { %v9710_v53 = vpop.eup %9709 }
 0x4a6   : > { %v9712_v40 = vpop.eup %9711  ;;  %v12541_v51 = vmul.f32 %v9710_v53, %v4279_v33 }
 0x4a7   : > { %v12543_v46 = vmul.f32 %v9712_v40, %v4271_v2 }
 0x4a8   : > { %14280 = vst [vmem:[#allocation42_spill] sm:$0xff] %v12541_v51  ;;  %v9714_v47 = vpop.eup %9713  ;;  %v5180_v1 = vmul.f32 %v12183_v26, %v12541_v51 }
 0x4a9   : > { %14281 = vst [vmem:[#allocation43_spill] sm:$0xff] %v12543_v46  ;;  %v12547_v59 = vmul.f32 %v9714_v47, %v4282_v11  ;;  %v5178_v53 = vmul.f32 %v12183_v26, %v12543_v46 }
 0x4aa   : > { %v9716_v15 = vpop.eup %9715  ;;  %5286 = vadd.xlane.f32.xlu0 %v5180_v1 }
 0x4ab   : > { %14282 = vst [vmem:[#allocation44_spill] sm:$0xff] %v12547_v59  ;;  %v9718_v39 = vpop.eup %9717  ;;  %v8366_v21 = vpack.c.bf16 %v12547_v59, %v12541_v51  ;;  %v12551_v43 = vmul.f32 %v9716_v15, %v4274_v16  ;;  %v5181_v33 = vmul.f32 %v12183_v26, %v12547_v59 }
 0x4ac   : > { %v9720_v28 = vpop.eup %9719  ;;  %v4603_v2 = vadd.f32 1.0, %v9718_v39 }
 0x4ad   : > { %14283 = vst [vmem:[#allocation45_spill] sm:$0xff] %v12551_v43  ;;  %8444 = vst [vmem:[%s10480_s12 + $0xa8] sm:$0xff] %v8366_v21   ;;  %v8361_v11 = vpack.c.bf16 %v12551_v43, %v12543_v46  ;;  %v4601_v40 = vadd.f32 1.0, %v9720_v28  ;;  %5288 = vadd.xlane.f32.xlu1 %v5181_v33 }
 0x4ae   : > { %v9722_v47 = vpop.eup %9721  ;;  %9725 = vrcp.f32 %v4603_v2  ;;  %5282 = vadd.xlane.f32.xlu0 %v5178_v53  ;;  %v9045_v1 = vpop.f32.mrf.mxu0 }
 0x4af   : > { %8443 = vst [vmem:[%s10480_s12 + $0xa0] sm:$0xff] %v8361_v11   ;;  %9727 = vrcp.f32 %v4601_v40  ;;  %v4604_v16 = vadd.f32 1.0, %v9722_v47  ;;  %v12562_v61 = vadd.f32 %v9045_v1, %v12061_v25 }
 0x4b0   : > { %v9724_v15 = vpop.eup %9723  ;;  %v4302_v39 = vpop.f32.mrf.mxu0 }
 0x4b1   : > { %9729 = vrcp.f32 %v4604_v16  ;;  %v4602_v59 = vadd.f32 1.0, %v9724_v15  ;;  %v12565_v46 = vadd.f32 %v4302_v39, %v12061_v25  ;;  %v7858_v33 = vmul.f32 -1.442695, %v12562_v61 }
 0x4b2   : > { %v9046_v21 = vpop.f32.mrf.mxu0 }
 0x4b3   : > { %9731 = vrcp.f32 %v4602_v59  ;;  %v4314_v2 = vadd.f32 %v9046_v21, %v12061_v25  ;;  %v7856_v11 = vmul.f32 -1.442695, %v12565_v46 }
 0x4b4   : > { %v4305_v28 = vpop.f32.mrf.mxu0  ;;  %9733 = vpow2.f32 %v7858_v33 }
 0x4b5   : > { %v4306_v53 = vadd.f32 %v4305_v28, %v12061_v25  ;;  %v7859_v40 = vmul.f32 -1.442695, %v4314_v2  ;;  %9735 = vpow2.f32 %v7856_v11 }
 0x4b7   : > { %v7857_v47 = vmul.f32 -1.442695, %v4306_v53  ;;  %9737 = vpow2.f32 %v7859_v40 }
 0x4b9   : > { %9739 = vpow2.f32 %v7857_v47 }
 0x4bb   : > { %v9726_v1 = vpop.eup %9725 }
 0x4bc   : > { %v9728_v16 = vpop.eup %9727  ;;  %v12572_v59 = vmul.f32 %v9726_v1, %v12535_v22 }
 0x4bd   : > { %v12574_v39 = vmul.f32 %v9728_v16, %v4287_v48 }
 0x4be   : > { %14284 = vst [vmem:[#allocation46_spill] sm:$0xff] %v12572_v59  ;;  %v9730_v15 = vpop.eup %9729  ;;  %v5184_v21 = vmul.f32 %v12183_v26, %v12572_v59 }
 0x4bf   : > { %14285 = vst [vmem:[#allocation47_spill] sm:$0xff] %v12574_v39  ;;  %v12578_v28 = vmul.f32 %v9730_v15, %v4298_v60  ;;  %v5182_v48 = vmul.f32 %v12183_v26, %v12574_v39 }
 0x4c0   : > { %v9732_v33 = vpop.eup %9731  ;;  %5294 = vadd.xlane.f32.xlu0 %v5184_v21 }
 0x4c1   : > { %14286 = vst [vmem:[#allocation48_spill] sm:$0xff] %v12578_v28  ;;  %v8376_v11 = vpack.c.bf16 %v12578_v28, %v12572_v59  ;;  %v12582_v51 = vmul.f32 %v9732_v33, %v4290_v35  ;;  %v5185_v22 = vmul.f32 %v12183_v26, %v12578_v28  ;;  %v9734_v60 = vpop.eup %9733 }
 0x4c2   : > { %v4607_v1 = vadd.f32 1.0, %v9734_v60  ;;  %v9736_v16 = vpop.eup %9735 }
 0x4c3   : > { %14287 = vst [vmem:[#allocation49_spill] sm:$0xff] %v12582_v51  ;;  %8446 = vst [vmem:[%s10480_s12 + $0xb8] sm:$0xff] %v8376_v11   ;;  %v8371_v40 = vpack.c.bf16 %v12582_v51, %v12574_v39  ;;  %5296 = vadd.xlane.f32.xlu1 %v5185_v22  ;;  %v5183_v47 = vmul.f32 %v12183_v26, %v12582_v51  ;;  %v4605_v15 = vadd.f32 1.0, %v9736_v16 }
 0x4c4   : > { %5290 = vadd.xlane.f32.xlu0 %v5182_v48  ;;  %v9049_v35 = vpop.f32.mrf.mxu0  ;;  %v9738_v21 = vpop.eup %9737  ;;  %9741 = vrcp.f32 %v4607_v1 }
 0x4c5   : > { %8445 = vst [vmem:[%s10480_s12 + $0xb0] sm:$0xff] %v8371_v40   ;;  %v4608_v28 = vadd.f32 1.0, %v9738_v21  ;;  %9743 = vrcp.f32 %v4605_v15  ;;  %v12595_v22 = vadd.f32 %v9049_v35, %v12061_v25 }
 0x4c6   : > { %v9740_v33 = vpop.eup %9739  ;;  %v4318_v11 = vpop.f32.mrf.mxu0 }
 0x4c7   : > { %5292 = vadd.xlane.f32.xlu1 %v5183_v47  ;;  %v4606_v59 = vadd.f32 1.0, %v9740_v33  ;;  %9745 = vrcp.f32 %v4608_v28  ;;  %v12598_v40 = vadd.f32 %v4318_v11, %v12061_v25  ;;  %v7862_v60 = vmul.f32 -1.442695, %v12595_v22 }
 0x4c8   : > { %v9050_v48 = vpop.f32.mrf.mxu0 }
 0x4c9   : > { %9747 = vrcp.f32 %v4606_v59  ;;  %v4330_v16 = vadd.f32 %v9050_v48, %v12061_v25  ;;  %v7860_v1 = vmul.f32 -1.442695, %v12598_v40 }
 0x4ca   : > { %v4321_v47 = vpop.f32.mrf.mxu0  ;;  %9749 = vpow2.f32 %v7862_v60 }
 0x4cb   : > { %v12604_v21 = vadd.f32 %v4321_v47, %v12061_v25  ;;  %v7863_v59 = vmul.f32 -1.442695, %v4330_v16  ;;  %9751 = vpow2.f32 %v7860_v1 }
 0x4cd   : > { %v7861_v33 = vmul.f32 -1.442695, %v12604_v21  ;;  %9753 = vpow2.f32 %v7863_v59 }
 0x4cf   : > { %9755 = vpow2.f32 %v7861_v33 }
 0x4d1   : > { %v9742_v28 = vpop.eup %9741 }
 0x4d2   : > { %v9744_v35 = vpop.eup %9743  ;;  %v12608_v51 = vmul.f32 %v9742_v28, %v12562_v61 }
 0x4d3   : > { %v12613_v39 = vmul.f32 %v9744_v35, %v12565_v46  ;;  %v10301_v35 = vmov 2  }
 0x4d4   : > { %v9746_v15 = vpop.eup %9745  ;;  %14288 = vst [vmem:[#allocation50_spill] sm:$0xff] %v12608_v51  ;;  %9267 = vset.pattern.permute.xlu0 %v10301_v35  ;;  %9268 = vset.pattern.permute.xlu1 %v10301_v35 }
 0x4d5   : > { %v12610_v48 = vmul.f32 %v9746_v15, %v4314_v2  ;;  %14290 = vst [vmem:[#allocation52_spill] sm:$0xff] %v12613_v39 }
 0x4d6   : > { %v9748_v11 = vpop.eup %9747 }
 0x4d7   : > { %14289 = vst [vmem:[#allocation51_spill] sm:$0xff] %v12610_v48  ;;  %v12615_v47 = vmul.f32 %v9748_v11, %v4306_v53  ;;  %v8386_v1 = vpack.c.bf16 %v12610_v48, %v12608_v51  ;;  %v9750_v53 = vpop.eup %9749 }
 0x4d8   : > { %v4611_v28 = vadd.f32 1.0, %v9750_v53  ;;  %v9752_v15 = vpop.eup %9751 }
 0x4d9   : > { %14291 = vst [vmem:[#allocation53_spill] sm:$0xff] %v12615_v47  ;;  %v8381_v36 = vpack.c.bf16 %v12615_v47, %v12613_v39  ;;  %8448 = vst [vmem:[%s10480_s12 + $0xc8] sm:$0xff] %v8386_v1  }
 0x4da   : > { %v9053_v60 = vpop.f32.mrf.mxu0  ;;  %v9754_v1 = vpop.eup %9753 }
 0x4db   : > { %v12620_v31 = vadd.f32 %v9053_v60, %v12061_v25  ;;  %8447 = vst [vmem:[%s10480_s12 + $0xc0] sm:$0xff] %v8381_v36   ;;  %v4609_v60 = vadd.f32 1.0, %v9752_v15  ;;  %v4612_v0 = vadd.f32 1.0, %v9754_v1 }
 0x4dc   : > { %v4334_v2 = vpop.f32.mrf.mxu0 }
 0x4dd   : > { %v7866_v61 = vmul.f32 -1.442695, %v12620_v31  ;;  %v12628_v46 = vadd.f32 %v4334_v2, %v12061_v25  ;;  %v9756_v2 = vpop.eup %9755 }
 0x4de   : > { %v9054_v59 = vpop.f32.mrf.mxu0 }
 0x4df   : > { %9757 = vpow2.f32 %v7866_v61  ;;  %v7864_v11 = vmul.f32 -1.442695, %v12628_v46  ;;  %v12632_v33 = vadd.f32 %v9054_v59, %v12061_v25  ;;  %v4610_v61 = vadd.f32 1.0, %v9756_v2 }
 0x4e0   : > { %9759 = vrcp.f32 %v4611_v28  ;;  %v4337_v36 = vpop.f32.mrf.mxu0 }
 0x4e1   : > { %9761 = vpow2.f32 %v7864_v11  ;;  %v7867_v53 = vmul.f32 -1.442695, %v12632_v33  ;;  %v12636_v35 = vadd.f32 %v4337_v36, %v12061_v25 }
 0x4e2   : > { %9763 = vrcp.f32 %v4609_v60 }
 0x4e3   : > { %9765 = vrcp.f32 %v4612_v0  ;;  %v7865_v59 = vmul.f32 -1.442695, %v12636_v35 }
 0x4e4   : > { %9767 = vrcp.f32 %v4610_v61 }
 0x4e5   : > { %9769 = vpow2.f32 %v7867_v53 }
 0x4ec   : > { %v9758_v50 = vpop.eup %9757 }
 0x4ed   : > { %v4615_v15 = vadd.f32 1.0, %v9758_v50  ;;  %v9760_v28 = vpop.eup %9759 }
 0x4ee   : > { %v9762_v1 = vpop.eup %9761  ;;  %v12640_v2 = vmul.f32 %v9760_v28, %v12595_v22 }
 0x4ef   : > { %9771 = vrcp.f32 %v4615_v15  ;;  %v9764_v11 = vpop.eup %9763  ;;  %v4613_v60 = vadd.f32 1.0, %v9762_v1 }
 0x4f0   : > { %9773 = vpow2.f32 %v7865_v59  ;;  %v9766_v0 = vpop.eup %9765  ;;  %14292 = vst [vmem:[#allocation54_spill] sm:$0xff] %v12640_v2  ;;  %v12646_v50 = vmul.f32 %v9764_v11, %v12598_v40 }
 0x4f1   : > { %v12642_v23 = vmul.f32 %v9766_v0, %v4330_v16  ;;  %9775 = vrcp.f32 %v4613_v60  ;;  %v9768_v61 = vpop.eup %9767 }
 0x4f2   : > { %14294 = vst [vmem:[#allocation56_spill] sm:$0xff] %v12646_v50  ;;  %v12651_v15 = vmul.f32 %v9768_v61, %v12604_v21  ;;  %v9770_v22 = vpop.eup %9769 }
 0x4f3   : > { %14293 = vst [vmem:[#allocation55_spill] sm:$0xff] %v12642_v23  ;;  %v8396_v59 = vpack.c.bf16 %v12642_v23, %v12640_v2  ;;  %v4616_v0 = vadd.f32 1.0, %v9770_v22 }
 0x4f4   : > { %14295 = vst [vmem:[#allocation57_spill] sm:$0xff] %v12651_v15  ;;  %v8391_v60 = vpack.c.bf16 %v12651_v15, %v12646_v50 }
 0x4f5   : > { %8450 = vst [vmem:[%s10480_s12 + $0xd8] sm:$0xff] %v8396_v59   ;;  %9777 = vrcp.f32 %v4616_v0 }
 0x4f6   : > { %8449 = vst [vmem:[%s10480_s12 + $0xd0] sm:$0xff] %v8391_v60  }
 0x4fa   : > { %v9057_v36 = vpop.f32.mrf.mxu0 }
 0x4fb   : > { %v4359_v53 = vadd.f32 %v9057_v36, %v12061_v25 }
 0x4fc   : > { %v4350_v1 = vpop.f32.mrf.mxu0  ;;  %v9772_v11 = vpop.eup %9771 }
 0x4fd   : > { %v7870_v28 = vmul.f32 -1.442695, %v4359_v53  ;;  %v4351_v16 = vadd.f32 %v4350_v1, %v12061_v25  ;;  %v9774_v21 = vpop.eup %9773  ;;  %v12660_v61 = vmul.f32 %v9772_v11, %v12620_v31 }
 0x4fe   : > { %v9058_v36 = vpop.f32.mrf.mxu0  ;;  %v4614_v59 = vadd.f32 1.0, %v9774_v21  ;;  %v9776_v60 = vpop.eup %9775 }
 0x4ff   : > { %v7868_v12 = vmul.f32 -1.442695, %v4351_v16  ;;  %v4362_v40 = vadd.f32 %v9058_v36, %v12061_v25  ;;  %14296 = vst [vmem:[#allocation58_spill] sm:$0xff] %v12660_v61  ;;  %9779 = vpow2.f32 %v7870_v28  ;;  %v5196_v22 = vmul.f32 %v12183_v26, %v12660_v61 }
 0x500   : > { %v4353_v58 = vpop.f32.mrf.mxu0  ;;  %v12666_v0 = vmul.f32 %v9776_v60, %v12628_v46 }
 0x501   : > { %v4354_v1 = vadd.f32 %v4353_v58, %v12061_v25  ;;  %v7871_v14 = vmul.f32 -1.442695, %v4362_v40  ;;  %9781 = vpow2.f32 %v7868_v12  ;;  %5318 = vadd.xlane.f32.xlu0 %v5196_v22 }
 0x502   : > { %9783 = vrcp.f32 %v4614_v59  ;;  %14297 = vst [vmem:[#allocation59_spill] sm:$0xff] %v12666_v0  ;;  %v5194_v31 = vmul.f32 %v12183_v26, %v12666_v0  ;;  %v9778_v25 = vpop.eup %9777 }
 0x503   : > { %v7869_v20 = vmul.f32 -1.442695, %v4354_v1  ;;  %9785 = vpow2.f32 %v7871_v14  ;;  %v12671_v12 = vmul.f32 %v9778_v25, %v12632_v33 }
 0x504   : > { %5314 = vadd.xlane.f32.xlu1 %v5194_v31 }
 0x505   : > { %9787 = vpow2.f32 %v7869_v20  ;;  %14298 = vst [vmem:[#allocation60_spill] sm:$0xff] %v12671_v12  ;;  %v8406_v14 = vpack.c.bf16 %v12671_v12, %v12660_v61  ;;  %v5197_v46 = vmul.f32 %v12183_v26, %v12671_v12 }
 0x507   : > { %8452 = vst [vmem:[%s10480_s12 + $0xe8] sm:$0xff] %v8406_v14  }
 0x508   : > { %5320 = vadd.xlane.f32.xlu1 %v5197_v46 }
 0x50c   : > { %v9780_v58 = vpop.eup %9779 }
 0x50d   : > { %v4619_v28 = vadd.f32 1.0, %v9780_v58 }
 0x50e   : > { %v9782_v36 = vpop.eup %9781 }
 0x50f   : > { %v9784_v11 = vpop.eup %9783  ;;  %9789 = vrcp.f32 %v4619_v28  ;;  %v4617_v20 = vadd.f32 1.0, %v9782_v36 }
 0x510   : > { %v12679_v21 = vmul.f32 %v9784_v11, %v12636_v35  ;;  %v9786_v59 = vpop.eup %9785 }
 0x511   : > { %9791 = vrcp.f32 %v4617_v20  ;;  %v4620_v22 = vadd.f32 1.0, %v9786_v59 }
 0x512   : > { %14299 = vst [vmem:[#allocation61_spill] sm:$0xff] %v12679_v21  ;;  %v8401_v33 = vpack.c.bf16 %v12679_v21, %v12666_v0  ;;  %v5195_v60 = vmul.f32 %v12183_v26, %v12679_v21  ;;  %v9788_v31 = vpop.eup %9787  ;;  %v10085_v0 = vld [vmem:[%s10467_s15 + $0xa8] sm:$0xff] }
 0x513   : > { %9793 = vrcp.f32 %v4620_v22  ;;  %v4618_v25 = vadd.f32 1.0, %v9788_v31  ;;  %v5179_v31 = vmul.f32 %v12183_v26, %v12551_v43  ;;  %v10084_v43 = vld [vmem:[%s10467_s15 + $0x30] sm:$0xff] }
 0x514   : > { %8451 = vst [vmem:[%s10480_s12 + $0xe0] sm:$0xff] %v8401_v33   ;;  %5316 = vadd.xlane.f32.xlu0 %v5195_v60 }
 0x515   : > { %9795 = vrcp.f32 %v4618_v25  ;;  %v5190_v25 = vmul.f32 %v12183_v26, %v12646_v50  ;;  %v10077_v50 = vld [vmem:[%s10467_s15 + $0xc8] sm:$0xff] }
 0x51c   : > { %v9790_v58 = vpop.eup %9789 }
 0x51d   : > { %v12686_v35 = vmul.f32 %v9790_v58, %v4359_v53  ;;  %v5193_v58 = vmul.f32 %v12183_v26, %v12642_v23  ;;  %v10082_v23 = vld [vmem:[%s10467_s15 + $0x48] sm:$0xff] }
 0x51e   : > { %v9792_v28 = vpop.eup %9791 }
 0x51f   : > { %14300 = vst [vmem:[#allocation62_spill] sm:$0xff] %v12686_v35  ;;  %v12688_v36 = vmul.f32 %v9792_v28, %v4351_v16  ;;  %v5200_v14 = vmul.f32 %v12183_v26, %v12686_v35  ;;  %v5174_v28 = vmul.f32 %v12183_v26, %v12524_v37  ;;  %v10075_v37 = vld [vmem:[%s10467_s15 + $0xc0] sm:$0xff] }
 0x520   : > { %v9794_v46 = vpop.eup %9793 }
 0x521   : > { %14301 = vst [vmem:[#allocation63_spill] sm:$0xff] %v12688_v36  ;;  %5326 = vadd.xlane.f32.xlu0 %v5200_v14  ;;  %v12692_v11 = vmul.f32 %v9794_v46, %v4362_v40  ;;  %v5198_v59 = vmul.f32 %v12183_v26, %v12688_v36  ;;  %v5192_v40 = vmul.f32 %v12183_v26, %v12640_v2 }
 0x522   : > { %v9796_v20 = vpop.eup %9795  ;;  %v5177_v14 = vmul.f32 %v12183_v26, %v12521_v7  ;;  %v5188_v46 = vmul.f32 %v12183_v26, %v12608_v51 }
 0x523   : > { %14302 = vst [vmem:[#allocation64_spill] sm:$0xff] %v12692_v11  ;;  %v8416_v33 = vpack.c.bf16 %v12692_v11, %v12686_v35  ;;  %v12698_v53 = vmul.f32 %v9796_v20, %v4354_v1  ;;  %v5201_v16 = vmul.f32 %v12183_v26, %v12692_v11  ;;  %v5176_v1 = vmul.f32 %v12183_v26, %v12519_v34  ;;  %v12724_v20 = vpop.xlane.xlu0 %5206 }
 0x525   : > { %14303 = vst [vmem:[#allocation65_spill] sm:$0xff] %v12698_v53  ;;  %5322 = vadd.xlane.f32.xlu0 %v5198_v59  ;;  %8454 = vst [vmem:[%s10480_s12 + $0xf8] sm:$0xff] %v8416_v33   ;;  %v8411_v22 = vpack.c.bf16 %v12698_v53, %v12688_v36  ;;  %5328 = vadd.xlane.f32.xlu1 %v5201_v16  ;;  %v5199_v60 = vmul.f32 %v12183_v26, %v12698_v53 }
 0x526   : > { %v5191_v59 = vmul.f32 %v12183_v26, %v12651_v15  ;;  %v5172_v33 = vmul.f32 %v12183_v26, %v12497_v41 }
 0x527   : > { %8453 = vst [vmem:[%s10480_s12 + $0xf0] sm:$0xff] %v8411_v22   ;;  %v12730_v16 = vpop.xlane.xlu0 %5214  ;;  %v5175_v22 = vmul.f32 %v12183_v26, %v12528_v18 }
 0x529   : > { %5310 = vadd.xlane.f32.xlu0 %v5192_v40  ;;  %5324 = vadd.xlane.f32.xlu1 %v5199_v60  ;;  %v5186_v40 = vmul.f32 %v12183_v26, %v12613_v39  ;;  %v5189_v60 = vmul.f32 %v12183_v26, %v12610_v48  ;;  %v10068_v39 = vld [vmem:[%s10467_s15 + $0x70] sm:$0xff]  ;;  %v10072_v48 = vld [vmem:[%s10467_s15 + $0x60] sm:$0xff] }
 0x52d   : > { %5278 = vadd.xlane.f32.xlu0 %v5176_v1  ;;  %5284 = vadd.xlane.f32.xlu1 %v5179_v31  ;;  %v12738_v1 = vpop.xlane.xlu0 %5210  ;;  %v12740_v31 = vpop.xlane.xlu1 %5208 }
 0x531   : > { %5306 = vadd.xlane.f32.xlu0 %v5190_v25  ;;  %5312 = vadd.xlane.f32.xlu1 %v5193_v58  ;;  %v5170_v25 = vmul.f32 %v12183_v26, %v12503_v29  ;;  %v5173_v58 = vmul.f32 %v12183_v26, %v12500_v44  ;;  %v10066_v29 = vld [vmem:[%s10467_s15 + $0xf8] sm:$0xff] }
 0x535   : > { %5274 = vadd.xlane.f32.xlu0 %v5174_v28  ;;  %5280 = vadd.xlane.f32.xlu1 %v5177_v14  ;;  %v12746_v28 = vpop.xlane.xlu1 %5216  ;;  %v12748_v14 = vpop.xlane.xlu0 %5222 }
 0x539   : > { %5302 = vadd.xlane.f32.xlu0 %v5188_v46  ;;  %5308 = vadd.xlane.f32.xlu1 %v5191_v59  ;;  %v5187_v46 = vmul.f32 %v12183_v26, %v12615_v47  ;;  %v5171_v59 = vmul.f32 %v12183_v26, %v12508_v45  ;;  %v10067_v45 = vld [vmem:[%s10467_s15 + $0xe0] sm:$0xff]  ;;  %v10069_v47 = vld [vmem:[%s10467_s15 + $0xe8] sm:$0xff] }
 0x53d   : > { %5270 = vadd.xlane.f32.xlu0 %v5172_v33  ;;  %5276 = vadd.xlane.f32.xlu1 %v5175_v22  ;;  %v12754_v33 = vpop.xlane.xlu1 %5212  ;;  %v12756_v22 = vpop.xlane.xlu0 %5218 }
 0x541   : > { %5298 = vadd.xlane.f32.xlu0 %v5186_v40  ;;  %5304 = vadd.xlane.f32.xlu1 %v5189_v60  ;;  %v12758_v40 = vpop.xlane.xlu1 %5224  ;;  %v12760_v60 = vpop.xlane.xlu0 %5230 }
 0x545   : > { %5266 = vadd.xlane.f32.xlu0 %v5170_v25  ;;  %5272 = vadd.xlane.f32.xlu1 %v5173_v58  ;;  %v12762_v25 = vpop.xlane.xlu1 %5220  ;;  %v12764_v58 = vpop.xlane.xlu0 %5226 }
 0x549   : > { %5300 = vadd.xlane.f32.xlu1 %v5187_v46  ;;  %v10065_v46 = vld [vmem:[%s10467_s15 + $0xf0] sm:$0xff]  ;;  %v12767_v26 = vpop.xlane.xlu1 %5232 }
 0x54d   : > { %5268 = vadd.xlane.f32.xlu1 %v5171_v59  ;;  %v12771_v59 = vpop.xlane.xlu0 %5238  ;;  %v12775_v41 = vpop.xlane.xlu1 %5228 }
 0x551   : > { %v12777_v44 = vpop.xlane.xlu0 %5234  ;;  %v12783_v51 = vpop.xlane.xlu1 %5240 }
 0x55b   : > { %5964 = vperm.xlu0 %9267, %v10065_v46   ;;  %v10070_v46 = vld [vmem:[%s10467_s15 + $0x78] sm:$0xff] }
 0x55e   : > { %5968 = vperm.xlu1 %9268, %v10066_v29   ;;  %v10071_v29 = vld [vmem:[%s10467_s15 + $0xd0] sm:$0xff] }
 0x55f   : > { %5956 = vperm.xlu0 %9267, %v10067_v45   ;;  %v12781_v45 = vpop.xlane.xlu0 %5246 }
 0x562   : > { %5900 = vperm.xlu1 %9268, %v10068_v39   ;;  %v10073_v39 = vld [vmem:[%s10467_s15 + $0xd8] sm:$0xff] }
 0x563   : > { %5960 = vperm.xlu0 %9267, %v10069_v47   ;;  %v10074_v47 = vld [vmem:[%s10467_s15 + $0x68] sm:$0xff]  ;;  %v12789_v18 = vpop.xlane.xlu0 %5242 }
 0x566   : > { %5904 = vperm.xlu1 %9268, %v10070_v46   ;;  %v12791_v46 = vpop.xlane.xlu1 %5236 }
 0x567   : > { %5948 = vperm.xlu0 %9267, %v10071_v29   ;;  %v10076_v29 = vld [vmem:[%s10467_s15 + $0x50] sm:$0xff]  ;;  %v12795_v15 = vpop.xlane.xlu0 %5254 }
 0x56a   : > { %5892 = vperm.xlu1 %9268, %v10072_v48   ;;  %v12797_v48 = vpop.xlane.xlu1 %5248 }
 0x56b   : > { %5952 = vperm.xlu0 %9267, %v10073_v39   ;;  %v10078_v39 = vld [vmem:[%s10467_s15 + $0x58] sm:$0xff] }
 0x56e   : > { %5896 = vperm.xlu1 %9268, %v10074_v47   ;;  %v10079_v47 = vld [vmem:[%s10467_s15 + $0xb0] sm:$0xff]  ;;  %v12803_v34 = vpop.xlane.xlu1 %5244 }
 0x56f   : > { %5940 = vperm.xlu0 %9267, %v10075_v37   ;;  %v12801_v37 = vpop.xlane.xlu0 %5250 }
 0x572   : > { %5884 = vperm.xlu1 %9268, %v10076_v29   ;;  %v10080_v29 = vld [vmem:[%s10467_s15 + $0x40] sm:$0xff]  ;;  %v12809_v2 = vpop.xlane.xlu1 %5256 }
 0x573   : > { %5944 = vperm.xlu0 %9267, %v10077_v50   ;;  %v10081_v50 = vld [vmem:[%s10467_s15 + $0xb8] sm:$0xff]  ;;  %v12807_v7 = vpop.xlane.xlu0 %5258 }
 0x576   : > { %5888 = vperm.xlu1 %9268, %v10078_v39   ;;  %v10083_v39 = vld [vmem:[%s10467_s15 + $0xa0] sm:$0xff]  ;;  %v12823_v12 = vpop.xlane.xlu1 %5252 }
 0x577   : > { %5932 = vperm.xlu0 %9267, %v10079_v47   ;;  %v12813_v47 = vstv %s7936_s21  ;;  %s6781_s21 = sld [smem:[#allocation5]] (!%p8097_p11) }
 0x578   : > { %v5334_v21 = vadd.f32 %v12813_v47, %v12740_v31  ;;  %v5335_v31 = vadd.f32 %v12813_v47, %v12738_v1  ;;  %v5341_v1 = vadd.f32 %v12813_v47, %v12748_v14  ;;  %v5340_v14 = vadd.f32 %v12813_v47, %v12762_v25 }
 0x57a   : > { %5876 = vperm.xlu1 %9268, %v10080_v29   ;;  %v5333_v29 = vadd.f32 %v12813_v47, %v12724_v20  ;;  %v5338_v20 = vadd.f32 %v12813_v47, %v12746_v28  ;;  %v7940_v36 = vmul.f32 -1.442695, %v5334_v21  ;;  %v12831_v53 = vpop.xlane.xlu1 %5262 }
 0x57b   : > { %5936 = vperm.xlu0 %9267, %v10081_v50   ;;  %v12819_v50 = vpop.xlane.xlu0 %5264 }
 0x57c   : > { %v7944_v28 = vmul.f32 -1.442695, %v5338_v20  ;;  %v7947_v20 = vmul.f32 -1.442695, %v5341_v1  ;;  %v10095_v1 = vld [vmem:[%s10467_s15 + $0x18] sm:$0xff] }
 0x57e   : > { %5880 = vperm.xlu1 %9268, %v10082_v23   ;;  %v5337_v23 = vadd.f32 %v12813_v47, %v12730_v16  ;;  %v5336_v16 = vadd.f32 %v12813_v47, %v12754_v33  ;;  %v12841_v21 = vpop.xlane.xlu1 %5260  ;;  %v5339_v33 = vadd.f32 %v12813_v47, %v12756_v22  ;;  %v10092_v22 = vld [vmem:[%s10467_s15 + $0x8] sm:$0xff] }
 0x57f   : > { %5924 = vperm.xlu0 %9267, %v10083_v39   ;;  %v10086_v39 = vld [vmem:[%s10467_s15 + $0x38] sm:$0xff]  ;;  %v12835_v61 = vpop.xlane.xlu0 %5202 }
 0x580   : > { %v7943_v35 = vmul.f32 -1.442695, %v5337_v23  ;;  %v7942_v23 = vmul.f32 -1.442695, %v5336_v16  ;;  %v10093_v16 = vld [vmem:[%s10467_s15 + $0x10] sm:$0xff] }
 0x582   : > { %5868 = vperm.xlu1 %9268, %v10084_v43   ;;  %v10087_v43 = vld [vmem:[%s10467_s15 + $0x20] sm:$0xff] }
 0x583   : > { %5928 = vperm.xlu0 %9267, %v10085_v0   ;;  %v7939_v0 = vmul.f32 -1.442695, %v5333_v29  ;;  %v10089_v29 = vld [vmem:[%s10467_s15 + $0x28] sm:$0xff]  ;;  %v12845_v11 = vpop.xlane.xlu0 %5286 }
 0x585   : > { %9797 = vpow2.f32 %v7939_v0  ;;  %v10091_v0 = vld [vmem:[%s10467_s15 + $0x98] sm:$0xff] }
 0x586   : > { %5872 = vperm.xlu1 %9268, %v10086_v39   ;;  %v10088_v39 = vld [vmem:[%s10467_s15 + $0x90] sm:$0xff]  ;;  %9799 = vpow2.f32 %v7940_v36  ;;  %v5342_v36 = vadd.f32 %v12813_v47, %v12758_v40  ;;  %v5345_v40 = vadd.f32 %v12813_v47, %v12760_v60  ;;  %v5346_v60 = vadd.f32 %v12813_v47, %v12767_v26 }
 0x587   : > { %5860 = vperm.xlu0 %9267, %v10087_v43   ;;  %v7941_v43 = vmul.f32 -1.442695, %v5335_v31  ;;  %9801 = vpow2.f32 %v7943_v35  ;;  %v7945_v35 = vmul.f32 -1.442695, %v5339_v33  ;;  %v12855_v31 = vpop.xlane.xlu1 %5204 }
 0x588   : > { %9803 = vpow2.f32 %v7944_v28  ;;  %v12859_v28 = vpop.xlane.xlu0 %5282 }
 0x589   : > { %9805 = vpow2.f32 %v7941_v43  ;;  %v10094_v43 = vld [vmem:[%s10467_s15 + $0x1f8] sm:$0xff] }
 0x58a   : > { %5916 = vperm.xlu1 %9268, %v10088_v39   ;;  %v10090_v39 = vld [vmem:[%s10467_s15 + $0x88] sm:$0xff]  ;;  %9807 = vpow2.f32 %v7942_v23 }
 0x58b   : > { %5864 = vperm.xlu0 %9267, %v10089_v29   ;;  %v7948_v29 = vmul.f32 -1.442695, %v5342_v36  ;;  %9809 = vpow2.f32 %v7947_v20  ;;  %v12863_v25 = vpop.xlane.xlu1 %5288  ;;  %v10096_v20 = vld [vmem:[%s10467_s15 + $0x178] sm:$0xff] }
 0x58c   : > { %9811 = vpow2.f32 %v7945_v35  ;;  %v12867_v23 = vpop.xlane.xlu0 %5294  ;;  %v10097_v35 = vld [vmem:[%s10467_s15 + $0x80] sm:$0xff] }
 0x58d   : > { %9813 = vpow2.f32 %v7948_v29 }
 0x58e   : > { %5912 = vperm.xlu1 %9268, %v10090_v39   ;;  %v7946_v39 = vmul.f32 -1.442695, %v5340_v14 }
 0x58f   : > { %5920 = vperm.xlu0 %9267, %v10091_v0   ;;  %v7951_v0 = vmul.f32 -1.442695, %v5345_v40  ;;  %v12871_v14 = vpop.xlane.xlu1 %5296  ;;  %v7952_v40 = vmul.f32 -1.442695, %v5346_v60 }
 0x590   : > { %9815 = vpow2.f32 %v7946_v39  ;;  %v5343_v39 = vadd.f32 %v12813_v47, %v12764_v58  ;;  %v5349_v58 = vadd.f32 %v12813_v47, %v12771_v59 }
 0x591   : > { %9817 = vpow2.f32 %v7951_v0  ;;  %v5344_v0 = vadd.f32 %v12813_v47, %v12775_v41 }
 0x592   : > { %5848 = vperm.xlu1 %9268, %v10092_v22   ;;  %v9798_v33 = vpop.eup %9797  ;;  %v7955_v59 = vmul.f32 -1.442695, %v5349_v58  ;;  %v5361_v58 = vadd.f32 %v12813_v47, %v12831_v53  ;;  %v10105_v53 = vld [vmem:[%s10467_s15 + $0x1e0] sm:$0xff] }
 0x593   : > { %5852 = vperm.xlu0 %9267, %v10093_v16   ;;  %v9800_v36 = vpop.eup %9799  ;;  %v5589_v16 = vadd.f32 1.0, %v9798_v33  ;;  %v12885_v60 = vpop.xlane.xlu1 %5292 }
 0x594   : > { %v9802_v22 = vpop.eup %9801 }
 0x595   : > { %v9804_v29 = vpop.eup %9803  ;;  %v5593_v8 = vadd.f32 1.0, %v9802_v22  ;;  %9819 = vrcp.f32 %v5589_v16  ;;  %v10101_v16 = vld [vmem:[%s10467_s15 + $0x1f0] sm:$0xff] }
 0x596   : > { %6096 = vperm.xlu1 %9268, %v10094_v43   ;;  %v5590_v43 = vadd.f32 1.0, %v9800_v36  ;;  %v9806_v26 = vpop.eup %9805  ;;  %v5594_v33 = vadd.f32 1.0, %v9804_v29  ;;  %v7949_v36 = vmul.f32 -1.442695, %v5343_v39  ;;  %v7950_v29 = vmul.f32 -1.442695, %v5344_v0 }
 0x597   : > { %5856 = vperm.xlu0 %9267, %v10095_v1   ;;  %v12877_v1 = vpop.xlane.xlu0 %5290  ;;  %v12891_v39 = vpop.xlane.xlu1 %5314  ;;  %v10103_v0 = vld [vmem:[%s10467_s15 + $0x170] sm:$0xff] }
 0x598   : > { %9821 = vrcp.f32 %v5590_v43 }
 0x599   : > { %9823 = vpow2.f32 %v7952_v40 }
 0x59a   : > { %6032 = vperm.xlu1 %9268, %v10096_v20   ;;  %v9808_v20 = vpop.eup %9807  ;;  %9825 = vrcp.f32 %v5593_v8  ;;  %v5353_v8 = vadd.f32 %v12813_v47, %v12781_v45 }
 0x59b   : > { %5908 = vperm.xlu0 %9267, %v10097_v35   ;;  %v5591_v35 = vadd.f32 1.0, %v9806_v26  ;;  %v9810_v22 = vpop.eup %9809  ;;  %9827 = vrcp.f32 %v5594_v33  ;;  %v5350_v33 = vadd.f32 %v12813_v47, %v12783_v51 }
 0x59c   : > { %v9812_v41 = vpop.eup %9811  ;;  %9829 = vpow2.f32 %v7949_v36  ;;  %v5597_v26 = vadd.f32 1.0, %v9810_v22  ;;  %v5347_v22 = vadd.f32 %v12813_v47, %v12777_v44 }
 0x59d   : > { %v9814_v43 = vpop.eup %9813  ;;  %9831 = vrcp.f32 %v5591_v35 }
 0x59e   : > { %6088 = vperm.xlu1 %9268, %v10098_v56   ;;  %v12887_v56 = vpop.xlane.xlu0 %5318  ;;  %v9816_v40 = vpop.eup %9815  ;;  %v5598_v36 = vadd.f32 1.0, %v9814_v43  ;;  %v5362_v43 = vadd.f32 %v12813_v47, %v12819_v50  ;;  %v7953_v50 = vmul.f32 -1.442695, %v5347_v22  ;;  %v6175_v22 = vsub.s32 0, %v14255_v9 }
 0x59f   : > { %5844 = vperm.xlu0 %9267, %v10099_v10   ;;  %v5592_v10 = vadd.f32 1.0, %v9808_v20  ;;  %v5596_v35 = vadd.f32 1.0, %v9816_v40  ;;  %v9818_v45 = vpop.eup %9817 }
 0x5a0   : > { %v5601_v44 = vadd.f32 1.0, %v9818_v45  ;;  %v10107_v45 = vld [vmem:[%s10467_s15 + $0x160] sm:$0xff] }
 0x5a1   : > { %9833 = vrcp.f32 %v5592_v10  ;;  %v7959_v10 = vmul.f32 -1.442695, %v5353_v8 }
 0x5a2   : > { %6024 = vperm.xlu1 %9268, %v10100_v5   ;;  %v12895_v20 = vpop.xlane.xlu0 %5316  ;;  %v5595_v5 = vadd.f32 1.0, %v9812_v41  ;;  %9835 = vpow2.f32 %v7950_v29  ;;  %v7956_v41 = vmul.f32 -1.442695, %v5350_v33  ;;  %v10104_v29 = vld [vmem:[%s10467_s15 + $0x158] sm:$0xff]  ;;  %v12913_v40 = vpop.eup %9819 }
 0x5a3   : > { %6092 = vperm.xlu0 %9267, %v10101_v16   ;;  %v10102_v16 = vld [vmem:[%s10467_s15 + $0x1d8] sm:$0xff]  ;;  %9837 = vpow2.f32 %v7955_v59  ;;  %v7967_v59 = vmul.f32 -1.442695, %v5361_v58  ;;  %14304 = vst [vmem:[#allocation66_spill] sm:$0xff] %v12913_v40  ;;  %v5354_v40 = vadd.f32 %v12813_v47, %v12797_v48  ;;  %v14313_v48 = vmov 0 }
 0x5a4   : > { %9839 = vrcp.f32 %v5597_v26  ;;  %v5348_v26 = vadd.f32 %v12813_v47, %v12791_v46  ;;  %v12932_v46 = vld [vmem:[%s14307_s20] sm:$0xf] }
 0x5a5   : > { %9841 = vrcp.f32 %v5595_v5  ;;  %v12917_v8 = vpop.eup %9821 }
 0x5a6   : > { %6080 = vperm.xlu1 %9268, %v10102_v16   ;;  %v12909_v16 = vpop.xlane.xlu1 %5320  ;;  %9843 = vrcp.f32 %v5598_v36  ;;  %14305 = vst [vmem:[#allocation67_spill] sm:$0xff] %v12917_v8  ;;  %v9824_v33 = vpop.eup %9823  ;;  %v7968_v36 = vmul.f32 -1.442695, %v5362_v43  ;;  %v14308_v43 = vsub.s32 1, %v14255_v9 }
 0x5a7   : > { %6028 = vperm.xlu0 %9267, %v10103_v0   ;;  %9845 = vrcp.f32 %v5596_v35  ;;  %v5359_v0 = vadd.f32 %v12813_v47, %v12807_v7  ;;  %v10106_v35 = vld [vmem:[%s10467_s15 + $0x1c8] sm:$0xff]  ;;  %v5360_v7 = vadd.f32 %v12813_v47, %v12841_v21  ;;  %v5602_v8 = vadd.f32 1.0, %v9824_v33  ;;  %v10109_v33 = vld [vmem:[%s10467_s15 + $0x1d0] sm:$0xff] }
 0x5a8   : > { %9847 = vpow2.f32 %v7959_v10  ;;  %v12935_v10 = vpop.eup %9825 }
 0x5a9   : > { %9849 = vpow2.f32 %v7956_v41  ;;  %v12940_v41 = vadd.s32 8, %v14255_v9 }
 0x5aa   : > { %v12905_v51 = vpop.xlane.xlu0 %5326  ;;  %6016 = vperm.xlu1 %9268, %v10104_v29   ;;  %9851 = vpow2.f32 %v7967_v59  ;;  %v12945_v29 = vrot.slane %v12932_v46, %v14308_v43  ;;  %v5351_v59 = vadd.f32 %v12813_v47, %v12789_v18  ;;  %v10108_v18 = vld [vmem:[%s10467_s15 + $0x148] sm:$0xff] }
 0x5ab   : > { %6084 = vperm.xlu0 %9267, %v10105_v53   ;;  %v12947_v53 = vpop.eup %9827  ;;  %9853 = vrcp.f32 %v5601_v44 }
 0x5ac   : > { %14309 = vst [vmem:[#allocation69_spill] sm:$0xff] %v12945_v29  ;;  %v9830_v21 = vpop.eup %9829  ;;  %vm6190_vm4 = vcmp.eq.s32.totalorder %v14255_v9, %v12945_v29  ;;  %vm6194_vm9 = vcmp.eq.s32.totalorder %v12940_v41, %v12945_v29  ;;  %9855 = vpow2.f32 %v7968_v36  ;;  %v7966_v29 = vmul.f32 -1.442695, %v5360_v7 }
 0x5ad   : > { %v12962_v44 = vpop.eup %9831  ;;  %vm12968_vm10 = vmpackc.low %vm6194_vm9, %vm6190_vm4  ;;  %9857 = vpow2.f32 %v7953_v50  ;;  %v5599_v36 = vadd.f32 1.0, %v9830_v21  ;;  %v7960_v50 = vmul.f32 -1.442695, %v5354_v40  ;;  %v5357_v7 = vadd.f32 %v12813_v47, %v12795_v15 }
 0x5ae   : > { %v12919_v5 = vpop.xlane.xlu0 %5322  ;;  %v12923_v58 = vpop.xlane.xlu1 %5328  ;;  %6072 = vperm.xlu1 %9268, %v10106_v35   ;;  %v7954_v35 = vmul.f32 -1.442695, %v5348_v26  ;;  %v7965_v26 = vmul.f32 -1.442695, %v5359_v0  ;;  %v14314_v48 = vsel %vm12968_vm10, 4294967295, %v14313_v48  ;;  %v5352_v15 = vadd.f32 %v12813_v47, %v12803_v34 }
 0x5af   : > { %14306 = vst [vmem:[#allocation68_spill] sm:$0xff] %v12919_v5  ;;  %6020 = vperm.xlu0 %9267, %v10107_v45   ;;  %v12952_v45 = vrot.slane %v12932_v46, %v6175_v22  ;;  %14315 = vst [vmem:[#allocation73_spill] sm:$0xff] %v14314_v48  ;;  %v12974_v43 = vpop.eup %9833  ;;  %v5356_v34 = vadd.f32 %v12813_v47, %v12823_v12 }
 0x5b0   : > { %14316 = vst [vmem:[#allocation74_spill] sm:$0xff] %v12974_v43  ;;  %v9836_v0 = vpop.eup %9835  ;;  %9859 = vpow2.f32 %v7954_v35  ;;  %v7957_v43 = vmul.f32 -1.442695, %v5351_v59  ;;  %v10110_v35 = vld [vmem:[%s10467_s15 + $0x1b8] sm:$0xff] }
 0x5b1   : > { %14310 = vst [vmem:[#allocation70_spill] sm:$0xff] %v12952_v45  ;;  %vm6189_vm11 = vcmp.eq.s32.totalorder %v14255_v9, %v12952_v45  ;;  %vm6193_vm12 = vcmp.eq.s32.totalorder %v12940_v41, %v12952_v45  ;;  %9861 = vrcp.f32 %v5602_v8  ;;  %v5358_v45 = vadd.f32 %v12813_v47, %v12809_v2 }
 0x5b2   : > { %v12956_v5 = vpop.xlane.xlu0 %5310  ;;  %6008 = vperm.xlu1 %9268, %v10108_v18   ;;  %v12965_v22 = vpop.xlane.xlu1 %5324  ;;  %vm12981_vm13 = vmpackc.low %vm6193_vm12, %vm6189_vm11  ;;  %v14317_v18 = vmov 0  ;;  %9863 = vpow2.f32 %v7965_v26  ;;  %v5600_v40 = vadd.f32 1.0, %v9836_v0  ;;  %v5355_v26 = vadd.f32 %v12813_v47, %v12801_v37 }
 0x5b3   : > { %14311 = vst [vmem:[#allocation71_spill] sm:$0xff] %v12956_v5  ;;  %14312 = vst [vmem:[#allocation72_spill] sm:$0xff] %v12965_v22  ;;  %6076 = vperm.xlu0 %9267, %v10109_v33   ;;  %v14161_v5 = vmov 1.0|1.0   ;;  %v14318_v18 = vsel %vm12981_vm13, 4294967295, %v14317_v18  ;;  %v9838_v33 = vpop.eup %9837  ;;  %9865 = vpow2.f32 %v7966_v29  ;;  %v10112_v29 = vld [vmem:[%s10467_s15 + $0x138] sm:$0xff] }
 0x5b4   : > { %8034 = vmatprep.mubr.msk.bf16.mxu1 %vm12968_vm10, %v14161_v5  ;;  %14319 = vst [vmem:[#allocation75_spill] sm:$0xff] %v14318_v18  ;;  %v12989_v5 = vpop.eup %9839  ;;  %v10111_v18 = vld [vmem:[%s10467_s15 + $0x150] sm:$0xff]  ;;  %9867 = vrcp.f32 %v5599_v36  ;;  %v5605_v2 = vadd.f32 1.0, %v9838_v33  ;;  %v7964_v0 = vmul.f32 -1.442695, %v5358_v45  ;;  %v10113_v36 = vld [vmem:[%s10467_s15 + $0x1c0] sm:$0xff]  ;;  %v5332_v45 = vadd.f32 %v12813_v47, %v12855_v31 }
 0x5b5   : > { %v12997_v8 = vpop.eup %9841  ;;  %9869 = vpow2.f32 %v7960_v50  ;;  %v7958_v33 = vmul.f32 -1.442695, %v5352_v15 }
 0x5b6   : > { %v12987_v48 = vpop.xlane.xlu0 %5278  ;;  %6064 = vperm.xlu1 %9268, %v10110_v35   ;;  %v12994_v21 = vpop.xlane.xlu1 %5284  ;;  %9871 = vpow2.f32 %v7957_v43 }
 0x5b7   : > { %14320 = vst [vmem:[#allocation76_spill] sm:$0xff] %v12987_v48  ;;  %14321 = vst [vmem:[#allocation77_spill] sm:$0xff] %v12994_v21  ;;  %6012 = vperm.xlu0 %9267, %v10111_v18   ;;  %v13001_v59 = vpop.eup %9843  ;;  %v7963_v18 = vmul.f32 -1.442695, %v5357_v7  ;;  %9873 = vrcp.f32 %v5600_v40  ;;  %v7961_v7 = vmul.f32 -1.442695, %v5355_v26 }
 0x5b8   : > { %v13005_v35 = vpop.eup %9845  ;;  %9875 = vrcp.f32 %v5605_v2  ;;  %v10114_v40 = vld [vmem:[%s10467_s15 + $0x1a8] sm:$0xff]  ;;  %v10115_v2 = vld [vmem:[%s10467_s15 + $0x140] sm:$0xff] }
 0x5b9   : > { %v9848_v48 = vpop.eup %9847  ;;  %9877 = vpow2.f32 %v7963_v18 }
 0x5ba   : > { %v13007_v21 = vpop.xlane.xlu0 %5306  ;;  %6000 = vperm.xlu1 %9268, %v10112_v29   ;;  %v13012_v22 = vpop.xlane.xlu1 %5312  ;;  %v5609_v12 = vadd.f32 1.0, %v9848_v48  ;;  %v5331_v29 = vadd.f32 %v12813_v47, %v12835_v61  ;;  %9879 = vpow2.f32 %v7964_v0  ;;  %v5373_v48 = vadd.f32 %v12813_v47, %v12845_v11 }
 0x5bb   : > { %14322 = vst [vmem:[#allocation78_spill] sm:$0xff] %v13007_v21  ;;  %14323 = vst [vmem:[#allocation79_spill] sm:$0xff] %v13012_v22  ;;  %6068 = vperm.xlu0 %9267, %v10113_v36   ;;  %v13015_v37 = vpop.eup %9849  ;;  %v7962_v36 = vmul.f32 -1.442695, %v5356_v34  ;;  %9881 = vpow2.f32 %v7958_v33  ;;  %v7938_v61 = vmul.f32 -1.442695, %v5332_v45  ;;  %v5374_v0 = vadd.f32 %v12813_v47, %v12863_v25 }
 0x5bc   : > { %v9852_v50 = vpop.eup %9851  ;;  %9883 = vpow2.f32 %v7961_v7  ;;  %v10117_v45 = vld [vmem:[%s10467_s15 + $0x1b0] sm:$0xff] }
 0x5bd   : > { %v13019_v43 = vpop.eup %9853  ;;  %v5617_v31 = vadd.f32 1.0, %v9852_v50  ;;  %9885 = vrcp.f32 %v5609_v12  ;;  %v7979_v12 = vmul.f32 -1.442695, %v5373_v48  ;;  %v10118_v48 = vld [vmem:[%s10467_s15 + $0x198] sm:$0xff] }
 0x5be   : > { %v13023_v21 = vpop.xlane.xlu0 %5274  ;;  %6056 = vperm.xlu1 %9268, %v10114_v40   ;;  %v13026_v15 = vpop.xlane.xlu1 %5280  ;;  %v7937_v40 = vmul.f32 -1.442695, %v5331_v29 }
 0x5bf   : > { %14324 = vst [vmem:[#allocation80_spill] sm:$0xff] %v13023_v21  ;;  %14325 = vst [vmem:[#allocation81_spill] sm:$0xff] %v13026_v15  ;;  %6004 = vperm.xlu0 %9267, %v10115_v2   ;;  %v9856_v26 = vpop.eup %9855  ;;  %v5371_v2 = vadd.f32 %v12813_v47, %v12859_v28  ;;  %9887 = vpow2.f32 %v7962_v36  ;;  %v10116_v21 = vld [vmem:[%s10467_s15 + $0x128] sm:$0xff]  ;;  %v7980_v28 = vmul.f32 -1.442695, %v5374_v0 }
 0x5c0   : > { %v13031_v18 = vpop.eup %9857  ;;  %v5618_v11 = vadd.f32 1.0, %v9856_v26  ;;  %9889 = vrcp.f32 %v5617_v31  ;;  %v5378_v31 = vadd.f32 %v12813_v47, %v12871_v14 }
 0x5c1   : > { %v13035_v34 = vpop.eup %9859  ;;  %9891 = vpow2.f32 %v7938_v61  ;;  %v7977_v36 = vmul.f32 -1.442695, %v5371_v2  ;;  %v10119_v61 = vld [vmem:[%s10467_s15 + $0x130] sm:$0xff] }
 0x5c2   : > { %v13039_v33 = vpop.xlane.xlu0 %5302  ;;  %v13041_v50 = vpop.eup %9861  ;;  %5992 = vperm.xlu1 %9268, %v10116_v21   ;;  %9893 = vpow2.f32 %v7937_v40 }
 0x5c3   : > { %14326 = vst [vmem:[#allocation82_spill] sm:$0xff] %v13039_v33  ;;  %v13044_v7 = vpop.xlane.xlu1 %5308  ;;  %6060 = vperm.xlu0 %9267, %v10117_v45   ;;  %v9864_v25 = vpop.eup %9863  ;;  %v5377_v33 = vadd.f32 %v12813_v47, %v12867_v23  ;;  %9895 = vrcp.f32 %v5618_v11  ;;  %v5375_v11 = vadd.f32 %v12813_v47, %v12877_v1 }
 0x5c4   : > { %14327 = vst [vmem:[#allocation83_spill] sm:$0xff] %v13044_v7  ;;  %v9866_v29 = vpop.eup %9865  ;;  %v5615_v7 = vadd.f32 1.0, %v9864_v25  ;;  %9897 = vpow2.f32 %v7979_v12  ;;  %v10121_v12 = vld [vmem:[%s10467_s15 + $0x1a0] sm:$0xff] }
 0x5c5   : > { %v13049_v15 = vpop.eup %9867  ;;  %v5616_v0 = vadd.f32 1.0, %v9866_v29  ;;  %9899 = vpow2.f32 %v7980_v28  ;;  %v7983_v2 = vmul.f32 -1.442695, %v5377_v33 }
 0x5c6   : > { %v13051_v21 = vpop.xlane.xlu0 %5270  ;;  %v9870_v26 = vpop.eup %9869  ;;  %6048 = vperm.xlu1 %9268, %v10118_v48   ;;  %9901 = vpow2.f32 %v7977_v36 }
 0x5c7   : > { %14328 = vst [vmem:[#allocation84_spill] sm:$0xff] %v13051_v21  ;;  %v13056_v45 = vpop.xlane.xlu1 %5276  ;;  %5996 = vperm.xlu0 %9267, %v10119_v61   ;;  %v9872_v23 = vpop.eup %9871  ;;  %v5610_v14 = vadd.f32 1.0, %v9870_v26  ;;  %9903 = vrcp.f32 %v5615_v7  ;;  %v7984_v21 = vmul.f32 -1.442695, %v5378_v31  ;;  %v7981_v26 = vmul.f32 -1.442695, %v5375_v11 }
 0x5c8   : > { %14329 = vst [vmem:[#allocation85_spill] sm:$0xff] %v13056_v45  ;;  %v13059_v40 = vpop.eup %9873  ;;  %v10120_v45 = vld [vmem:[%s10467_s15 + $0x118] sm:$0xff]  ;;  %v5607_v33 = vadd.f32 1.0, %v9872_v23  ;;  %9905 = vrcp.f32 %v5616_v0  ;;  %v5606_v0 = vadd.f32 1.0, %v13015_v37 }
 0x5c9   : > { %v13063_v25 = vpop.eup %9875  ;;  %9907 = vpow2.f32 %v7983_v2 }
 0x5ca   : > { %v9878_v48 = vpop.eup %9877  ;;  %5984 = vperm.xlu1 %9268, %v10120_v45   ;;  %v13069_v28 = vpop.xlane.xlu0 %5298  ;;  %9909 = vrcp.f32 %v5610_v14 }
 0x5cb   : > { %v13066_v61 = vpop.xlane.xlu1 %5304  ;;  %6052 = vperm.xlu0 %9267, %v10121_v12   ;;  %v9880_v29 = vpop.eup %9879  ;;  %14331 = vst [vmem:[#allocation87_spill] sm:$0xff] %v13069_v28  ;;  %v5613_v7 = vadd.f32 1.0, %v9878_v48  ;;  %9911 = vpow2.f32 %v7984_v21  ;;  %v10123_v12 = vld [vmem:[%s10467_s15 + $0x120] sm:$0xff]  ;;  %v5603_v48 = vadd.f32 1.0, %v13031_v18  ;;  %v10125_v28 = vld [vmem:[%s10467_s15 + $0x190] sm:$0xff]  ;;  %v13088_v18 = vmul.f32 %v12935_v10, %v12227_v24 }
 0x5cc   : > { %14330 = vst [vmem:[#allocation86_spill] sm:$0xff] %v13066_v61  ;;  %v9882_v1 = vpop.eup %9881  ;;  %v5614_v45 = vadd.f32 1.0, %v9880_v29  ;;  %v10122_v61 = vld [vmem:[%s10467_s15 + $0x188] sm:$0xff]  ;;  %9913 = vrcp.f32 %v5607_v33  ;;  %v5604_v29 = vadd.f32 1.0, %v13035_v34  ;;  %v13092_v34 = vmul.f32 %v12947_v53, %v12243_v27 }
 0x5cd   : > { %v9884_v36 = vpop.eup %9883  ;;  %9915 = vpow2.f32 %v7981_v26  ;;  %v13107_v27 = vmul.f32 %v13001_v59, %v12284_v4  ;;  %v13111_v53 = vmul.f32 %v12997_v8, %v12278_v19  ;;  %v13122_v19 = vmul.f32 %v13041_v50, %v12326_v32 }
 0x5ce   : > { %v13071_v31 = vpop.eup %9885  ;;  %6040 = vperm.xlu1 %9268, %v10122_v61   ;;  %v5611_v11 = vadd.f32 1.0, %v9884_v36  ;;  %9917 = vrcp.f32 %v5613_v7  ;;  %v13079_v21 = vpop.xlane.xlu0 %5266  ;;  %v5608_v36 = vadd.f32 1.0, %v9882_v1  ;;  %v13100_v1 = vmul.f32 %v12962_v44, %v12234_v55 }
 0x5cf   : > { %v13074_v22 = vpop.xlane.xlu1 %5272  ;;  %5988 = vperm.xlu0 %9267, %v10123_v12   ;;  %v9888_v23 = vpop.eup %9887  ;;  %9919 = vrcp.f32 %v5614_v45  ;;  %v5376_v55 = vadd.f32 %v12813_v47, %v12885_v60  ;;  %v13117_v44 = vmul.f32 %v13019_v43, %v12308_v13  ;;  %v5389_v60 = vadd.f32 %v12813_v47, %v12887_v56 }
 0x5d0   : > { %14332 = vst [vmem:[#allocation88_spill] sm:$0xff] %v13074_v22  ;;  %v9890_v2 = vpop.eup %9889  ;;  %v10124_v22 = vld [vmem:[%s10467_s15 + $0x108] sm:$0xff]  ;;  %9921 = vrcp.f32 %v5606_v0  ;;  %v5612_v33 = vadd.f32 1.0, %v9888_v23  ;;  %v10126_v0 = vld [vmem:[%s10467_s15 + $0x110] sm:$0xff]  ;;  %v13134_v32 = vmul.f32 %v13059_v40, %v12331_v57  ;;  %v13138_v50 = vmul.f32 %v13005_v35, %v12299_v17 }
 0x5d1   : > { %v9892_v14 = vpop.eup %9891  ;;  %9923 = vrcp.f32 %v5611_v11  ;;  %v5809_v4 = vmul.f32 %v9890_v2, %v12457_v62  ;;  %v13130_v62 = vmul.f32 %v13049_v15, %v12320_v6  ;;  %v7995_v57 = vmul.f32 -1.442695, %v5389_v60 }
 0x5d2   : > { %v9894_v61 = vpop.eup %9893  ;;  %5976 = vperm.xlu1 %9268, %v10124_v22   ;;  %9925 = vrcp.f32 %v5603_v48  ;;  %v5588_v7 = vadd.f32 1.0, %v9892_v14  ;;  %v13146_v35 = vmul.f32 %v13071_v31, %v12365_v42 }
 0x5d3   : > { %v13083_v12 = vpop.xlane.xlu1 %5300  ;;  %6044 = vperm.xlu0 %9267, %v10125_v28   ;;  %v9896_v37 = vpop.eup %9895  ;;  %v13096_v28 = vmul.f32 %v12989_v5, %v12263_v52  ;;  %9927 = vrcp.f32 %v5604_v29  ;;  %v5587_v24 = vadd.f32 1.0, %v9894_v61  ;;  %v10127_v29 = vld [vmem:[%s10467_s15 + $0x180] sm:$0xff] }
 0x5d4   : > { %v9898_v26 = vpop.eup %9897  ;;  %9929 = vrcp.f32 %v5612_v33  ;;  %v5810_v48 = vmul.f32 %v9896_v37, %v12465_v3  ;;  %v7982_v3 = vmul.f32 -1.442695, %v5376_v55 }
 0x5d5   : > { %v9900_v22 = vpop.eup %9899  ;;  %v5629_v5 = vadd.f32 1.0, %v9898_v26  ;;  %9931 = vrcp.f32 %v5608_v36 }
 0x5d6   : > { %v5965_v45 = vpop.permute.xlu0 %5964  ;;  %v9902_v23 = vpop.eup %9901  ;;  %v5630_v14 = vadd.f32 1.0, %v9900_v22  ;;  %9933 = vrcp.f32 %v5588_v7 }
 0x5d7   : > { %v13102_v10 = vpop.xlane.xlu1 %5268  ;;  %5980 = vperm.xlu0 %9267, %v10126_v0   ;;  %v9904_v52 = vpop.eup %9903  ;;  %v5627_v59 = vadd.f32 1.0, %v9902_v23  ;;  %9935 = vrcp.f32 %v5587_v24  ;;  %v6129_v2 = vmul.f32 %v5965_v45, %v5809_v4  ;;  %v5387_v45 = vadd.f32 %v12813_v47, %v12891_v39  ;;  %v10128_v0 = vld [vmem:[%s10467_s15 + $0x100] sm:$0xff] }
 0x5d8   : > { %v9906_v11 = vpop.eup %9905  ;;  %9937 = vrcp.f32 %v5629_v5  ;;  %v5807_v6 = vmul.f32 %v9904_v52, %v12460_v30  ;;  %v5390_v52 = vadd.f32 %v12813_v47, %v12909_v16 }
 0x5d9   : > { %v9908_v8 = vpop.eup %9907  ;;  %9939 = vrcp.f32 %v5630_v14  ;;  %v5808_v15 = vmul.f32 %v9906_v11, %v12472_v49 }
 0x5da   : > { %v5957_v61 = vpop.permute.xlu0 %5956  ;;  %v9910_v13 = vpop.eup %9909  ;;  %v5633_v26 = vadd.f32 1.0, %v9908_v8  ;;  %9941 = vrcp.f32 %v5627_v59 }
 0x5db   : > { %v5969_v43 = vpop.permute.xlu1 %5968  ;;  %6036 = vperm.xlu0 %9267, %v10127_v29   ;;  %v9912_v56 = vpop.eup %9911  ;;  %v6127_v23 = vmul.f32 %v5957_v61, %v5807_v6  ;;  %9943 = vpow2.f32 %v7982_v3  ;;  %v13160_v39 = vmul.f32 %v9910_v13, %v12390_v38  ;;  %v14334_v29 = vld [vmem:[#allocation32_spill] sm:$0xff]  ;;  %v7996_v38 = vmul.f32 -1.442695, %v5390_v52  ;;  %v14335_v6 = vld [vmem:[#allocation30_spill] sm:$0xff] }
 0x5dc   : > { %v6130_v37 = vmul.f32 %v5969_v43, %v5810_v48  ;;  %v9914_v33 = vpop.eup %9913  ;;  %v5634_v7 = vadd.f32 1.0, %v9912_v56  ;;  %9945 = vrcp.f32 %v5633_v26  ;;  %v7993_v48 = vmul.f32 -1.442695, %v5387_v45 }
 0x5dd   : > { %v9916_v36 = vpop.eup %9915  ;;  %9947 = vpow2.f32 %v7995_v57  ;;  %v13163_v16 = vmul.f32 %v9914_v33, %v12376_v54 }
 0x5de   : > { %v13142_v40 = vpack.c.bf16 %v6130_v37, %v6129_v2  ;;  %v5961_v17 = vpop.permute.xlu0 %5960  ;;  %v9918_v22 = vpop.eup %9917  ;;  %v5631_v55 = vadd.f32 1.0, %v9916_v36  ;;  %9949 = vrcp.f32 %v5634_v7  ;;  %v5393_v7 = vadd.f32 %v12813_v47, %v12905_v51 }
 0x5df   : > { %v5901_v24 = vpop.permute.xlu1 %5900  ;;  %v6128_v30 = vmul.f32 %v5961_v17, %v5808_v15  ;;  %5972 = vperm.xlu0 %9267, %v10128_v0   ;;  %v9920_v49 = vpop.eup %9919  ;;  %v5805_v43 = vmul.f32 %v9918_v22, %v12415_v63  ;;  %v5388_v63 = vadd.f32 %v12813_v47, %v12895_v20  ;;  %v14168_v17 = vsub.s32 2, %v14255_v9 }
 0x5e0   : > { %v6363_v5 = vunpack.c.l.bf16 %v13142_v40  ;;  %v6364_v42 = vunpack.c.h.bf16 %v13142_v40  ;;  %v13155_v31 = vpop.eup %9921  ;;  %v5806_v56 = vmul.f32 %v9920_v49, %v14334_v29  ;;  %v6113_v13 = vmul.f32 %v5901_v24, %v13117_v44 }
 0x5e1   : > { %v13157_v11 = vpack.c.bf16 %v6128_v30, %v6127_v23  ;;  %v9924_v14 = vpop.eup %9923  ;;  %9951 = vrcp.f32 %v5631_v55 }
 0x5e2   : > { %v6428_v4 = vsub.f32 %v6130_v37, %v6364_v42  ;;  %v5949_v8 = vpop.permute.xlu0 %5948  ;;  %v6427_v59 = vsub.f32 %v6129_v2, %v6363_v5  ;;  %v13165_v60 = vpop.eup %9925  ;;  %v5803_v15 = vmul.f32 %v9924_v14, %v14335_v6  ;;  %9953 = vpow2.f32 %v7993_v48  ;;  %v14337_v5 = vld [vmem:[#allocation33_spill] sm:$0xff] }
 0x5e3   : > { %14333 = vst [vmem:[#allocation89_spill] sm:$0xff] %v13157_v11  ;;  %v5905_v61 = vpop.permute.xlu1 %5904  ;;  %v13169_v3 = vpop.eup %9927  ;;  %v6361_v54 = vunpack.c.l.bf16 %v13157_v11  ;;  %v6362_v33 = vunpack.c.h.bf16 %v13157_v11  ;;  %v6125_v45 = vmul.f32 %v5949_v8, %v5805_v43  ;;  %9955 = vpow2.f32 %v7996_v38 }
 0x5e4   : > { %v6114_v37 = vmul.f32 %v5905_v61, %v13122_v19  ;;  %v6476_v2 = vpack.c.bf16 %v6428_v4, %v6427_v59  ;;  %v9930_v26 = vpop.eup %9929  ;;  %v14167_v19 = vsub.s32 3, %v14255_v9  ;;  %v7994_v48 = vmul.f32 -1.442695, %v5388_v63 }
 0x5e5   : > { %v13176_v36 = vpop.eup %9931  ;;  %v5804_v42 = vmul.f32 %v9930_v26, %v14337_v5  ;;  %v6426_v14 = vsub.f32 %v6128_v30, %v6362_v33  ;;  %v6425_v59 = vsub.f32 %v6127_v23, %v6361_v54  ;;  %v7999_v38 = vmul.f32 -1.442695, %v5393_v7 }
 0x5e6   : > { %v13180_v57 = vpack.c.bf16 %v6114_v37, %v6113_v13  ;;  %8591 = vmatprep.subr.bf16.mxu1 %v6476_v2  ;;  %v5953_v44 = vpop.permute.xlu0 %5952  ;;  %v13184_v22 = vpop.eup %9933  ;;  %v13200_v51 = vrot.slane %v12932_v46, %v14167_v19  ;;  %v5394_v23 = vadd.f32 %v12813_v47, %v12923_v58  ;;  %v14339_v2 = vld [vmem:[#allocation68_spill] sm:$0xff]  ;;  %v13216_v33 = vadd.s32 16, %v14255_v9 }
 0x5e7   : > { %v5893_v24 = vpop.permute.xlu1 %5892  ;;  %v6126_v0 = vmul.f32 %v5953_v44, %v5806_v56  ;;  %v13188_v49 = vpop.eup %9935  ;;  %v13207_v56 = vrot.slane %v12932_v46, %v14168_v17  ;;  %v5391_v26 = vadd.f32 %v12813_v47, %v14339_v2  ;;  %v6475_v7 = vpack.c.bf16 %v6426_v14, %v6425_v59 }
 0x5e8   : > { %14336 = vst [vmem:[#allocation32_spill] sm:$0xff] %v13180_v57  ;;  %v6347_v20 = vunpack.c.l.bf16 %v13180_v57  ;;  %v6348_v52 = vunpack.c.h.bf16 %v13180_v57  ;;  %v13193_v55 = vpop.eup %9937  ;;  %v13223_v58 = vadd.s32 24, %v14255_v9  ;;  %vm6192_vm14 = vcmp.eq.s32.totalorder %v14255_v9, %v13200_v51 }
 0x5e9   : > { %v13195_v4 = vpack.c.bf16 %v6126_v0, %v6125_v45  ;;  %v13202_v8 = vpop.eup %9939  ;;  %vm6196_vm15 = vcmp.eq.s32.totalorder %v12940_v41, %v13200_v51  ;;  %vm6191_vm0 = vcmp.eq.s32.totalorder %v14255_v9, %v13207_v56  ;;  %vm6195_vm1 = vcmp.eq.s32.totalorder %v12940_v41, %v13207_v56 }
 0x5ea   : > { %v6411_v61 = vsub.f32 %v6113_v13, %v6347_v20  ;;  %v6412_v43 = vsub.f32 %v6114_v37, %v6348_v52  ;;  %v5941_v29 = vpop.permute.xlu0 %5940  ;;  %v13209_v30 = vpop.eup %9941  ;;  %v6111_v37 = vmul.f32 %v5893_v24, %v13130_v62  ;;  %vm13237_vm2 = vmpackc.low %vm6196_vm15, %vm6192_vm14  ;;  %vm6200_vm3 = vcmp.eq.s32.totalorder %v13216_v33, %v13200_v51 }
 0x5eb   : > { %14338 = vst [vmem:[#allocation30_spill] sm:$0xff] %v13195_v4  ;;  %v5897_v54 = vpop.permute.xlu1 %5896  ;;  %v6360_v6 = vunpack.c.h.bf16 %v13195_v4  ;;  %v9944_v63 = vpop.eup %9943  ;;  %v6359_v44 = vunpack.c.l.bf16 %v13195_v4  ;;  %v6123_v24 = vmul.f32 %v5941_v29, %v5803_v15  ;;  %vm6204_vm5 = vcmp.eq.s32.totalorder %v13223_v58, %v13200_v51  ;;  %vm13252_vm6 = vmpackc.low %vm6195_vm1, %vm6191_vm0 }
 0x5ec   : > { %v6468_v13 = vpack.c.bf16 %v6412_v43, %v6411_v61  ;;  %v6112_v46 = vmul.f32 %v5897_v54, %v13134_v32  ;;  %v13227_v20 = vpop.eup %9945  ;;  %v5632_v43 = vadd.f32 1.0, %v9944_v63  ;;  %vm13258_vm7 = vmpackc.low %vm6204_vm5, %vm6200_vm3  ;;  %vm6199_vm8 = vcmp.eq.s32.totalorder %v13216_v33, %v13207_v56 }
 0x5ed   : > { %v9948_v32 = vpop.eup %9947  ;;  %v6424_v2 = vsub.f32 %v6126_v0, %v6360_v6  ;;  %v6423_v54 = vsub.f32 %v6125_v45, %v6359_v44  ;;  %vm6203_vm4 = vcmp.eq.s32.totalorder %v13223_v58, %v13207_v56  ;;  %9957 = vpow2.f32 %v7994_v48 }
 0x5ee   : > { %v13229_v52 = vpack.c.bf16 %v6112_v46, %v6111_v37  ;;  %8592 = vmatpush3.bf16.msra.mxu1 %v6468_v13  ;;  %v5945_v62 = vpop.permute.xlu0 %5944  ;;  %v13245_v61 = vpop.eup %9949  ;;  %v14346_v13 = vmov 0  ;;  %v5645_v6 = vadd.f32 1.0, %v9948_v32  ;;  %vm13268_vm9 = vmpackc.low %vm6203_vm4, %vm6199_vm8  ;;  %v14349_v19 = vmov 0  ;;  %v14352_v32 = vld [vmem:[#allocation71_spill] sm:$0xff] }
 0x5ef   : > { %v5885_v5 = vpop.permute.xlu1 %5884  ;;  %8593 = vmatprep.subr.bf16.mxu1 %v6475_v7  ;;  %v6124_v14 = vmul.f32 %v5945_v62, %v5804_v42  ;;  %v14347_v13 = vsel %vm13258_vm7, 4294967295, %v14346_v13  ;;  %v13266_v0 = vpop.eup %9951  ;;  %v14350_v19 = vsel %vm13268_vm9, 4294967295, %v14349_v19  ;;  %9959 = vpow2.f32 %v7999_v38 }
 0x5f0   : > { %14340 = vst [vmem:[#allocation33_spill] sm:$0xff] %v13229_v52  ;;  %v6345_v41 = vunpack.c.l.bf16 %v13229_v52  ;;  %v6346_v15 = vunpack.c.h.bf16 %v13229_v52  ;;  %14348 = vst [vmem:[#allocation90_spill] sm:$0xff] %v14347_v13  ;;  %v8000_v45 = vmul.f32 -1.442695, %v5394_v23  ;;  %v7997_v44 = vmul.f32 -1.442695, %v5391_v26  ;;  %v9954_v52 = vpop.eup %9953 }
 0x5f1   : > { %v13256_v29 = vpack.c.bf16 %v6124_v14, %v6123_v24  ;;  %14351 = vst [vmem:[#allocation91_spill] sm:$0xff] %v14350_v19  ;;  %v13273_v4 = vadd.s32 32, %v14255_v9  ;;  %v6109_v13 = vmul.f32 %v5885_v5, %v13096_v28  ;;  %v6474_v26 = vpack.c.bf16 %v6424_v2, %v6423_v54 }
 0x5f2   : > { %v6409_v63 = vsub.f32 %v6111_v37, %v6345_v41  ;;  %v6410_v7 = vsub.f32 %v6112_v46, %v6346_v15  ;;  %v5933_v62 = vpop.permute.xlu0 %5932  ;;  %v13278_v37 = vadd.s32 40, %v14255_v9  ;;  %v9956_v46 = vpop.eup %9955  ;;  %v5385_v41 = vadd.f32 %v12813_v47, %v14352_v32  ;;  %v14353_v15 = vld [vmem:[#allocation72_spill] sm:$0xff] }
 0x5f3   : > { %14345 = vst [vmem:[#allocation68_spill] sm:$0xff] %v13256_v29  ;;  %v5889_v17 = vpop.permute.xlu1 %5888  ;;  %v6357_v38 = vunpack.c.l.bf16 %v13256_v29  ;;  %v6358_v23 = vunpack.c.h.bf16 %v13256_v29  ;;  %v5392_v19 = vadd.f32 %v12813_v47, %v14353_v15  ;;  %vm6208_vm11 = vcmp.eq.s32.totalorder %v13273_v4, %v13200_v51 }
 0x5f4   : > { %v6467_v11 = vpack.c.bf16 %v6410_v7, %v6409_v63  ;;  %v6110_v48 = vmul.f32 %v5889_v17, %v13107_v27  ;;  %vm6212_vm12 = vcmp.eq.s32.totalorder %v13278_v37, %v13200_v51  ;;  %v6121_v27 = vmul.f32 %v5933_v62, %v13146_v35  ;;  %v14358_v35 = vld [vmem:[#allocation31_spill] sm:$0xff] }
 0x5f5   : > { %vm13294_vm14 = vmpackc.low %vm6212_vm12, %vm6208_vm11  ;;  %v14355_v2 = vmov 0  ;;  %vm6207_vm15 = vcmp.eq.s32.totalorder %v13273_v4, %v13207_v56  ;;  %vm6211_vm0 = vcmp.eq.s32.totalorder %v13278_v37, %v13207_v56  ;;  %9961 = vpow2.f32 %v8000_v45 }
 0x5f6   : > { %v13286_v63 = vpack.c.bf16 %v6110_v48, %v6109_v13  ;;  %8594 = vmatpush3.bf16.msra.mxu1 %v6467_v11  ;;  %v5937_v28 = vpop.permute.xlu0 %5936  ;;  %v14356_v2 = vsel %vm13294_vm14, 4294967295, %v14355_v2  ;;  %v5800_v7 = vmul.f32 %v13176_v36, %v14358_v35  ;;  %vm13306_vm1 = vmpackc.low %vm6211_vm0, %vm6207_vm15  ;;  %9963 = vrcp.f32 %v5632_v43 }
 0x5f7   : > { %v5877_v17 = vpop.permute.xlu1 %5876  ;;  %8595 = vmatprep.subr.bf16.mxu1 %v6474_v26  ;;  %v6122_v5 = vmul.f32 %v5937_v28, %v13160_v39  ;;  %14357 = vst [vmem:[#allocation72_spill] sm:$0xff] %v14356_v2  ;;  %v14359_v39 = vmov 0  ;;  %v6422_v62 = vsub.f32 %v6124_v14, %v6358_v23  ;;  %v6421_v26 = vsub.f32 %v6123_v24, %v6357_v38  ;;  %v14362_v24 = vld [vmem:[#allocation76_spill] sm:$0xff] }
 0x5f8   : > { %14354 = vst [vmem:[#allocation71_spill] sm:$0xff] %v13286_v63  ;;  %v6343_v11 = vunpack.c.l.bf16 %v13286_v63  ;;  %v6344_v54 = vunpack.c.h.bf16 %v13286_v63  ;;  %v14360_v39 = vsel %vm13306_vm1, 4294967295, %v14359_v39  ;;  %9965 = vrcp.f32 %v5645_v6 }
 0x5f9   : > { %14361 = vst [vmem:[#allocation31_spill] sm:$0xff] %v14360_v39  ;;  %v13310_v32 = vpack.c.bf16 %v6122_v5, %v6121_v27  ;;  %v5643_v15 = vadd.f32 1.0, %v9954_v52  ;;  %9967 = vpow2.f32 %v7997_v44  ;;  %v7998_v2 = vmul.f32 -1.442695, %v5392_v19 }
 0x5fa   : > { %v6407_v28 = vsub.f32 %v6109_v13, %v6343_v11  ;;  %v6408_v45 = vsub.f32 %v6110_v48, %v6344_v54  ;;  %v5925_v29 = vpop.permute.xlu0 %5924  ;;  %v7991_v63 = vmul.f32 -1.442695, %v5385_v41  ;;  %v13313_v36 = vadd.s32 48, %v14255_v9 }
 0x5fb   : > { %v5881_v57 = vpop.permute.xlu1 %5880  ;;  %v6107_v39 = vmul.f32 %v5877_v17, %v13111_v53  ;;  %v13318_v43 = vadd.s32 56, %v14255_v9  ;;  %v5369_v52 = vadd.f32 %v12813_v47, %v14362_v24  ;;  %v6355_v13 = vunpack.c.l.bf16 %v13310_v32  ;;  %v9958_v9 = vpop.eup %9957 }
 0x5fc   : > { %v6466_v35 = vpack.c.bf16 %v6408_v45, %v6407_v28  ;;  %v6108_v14 = vmul.f32 %v5881_v57, %v13138_v50  ;;  %v6356_v19 = vunpack.c.h.bf16 %v13310_v32  ;;  %v6473_v6 = vpack.c.bf16 %v6422_v62, %v6421_v26  ;;  %v9960_v23 = vpop.eup %9959 }
 0x5fd   : > { %vm6216_vm3 = vcmp.eq.s32.totalorder %v13313_v36, %v13200_v51  ;;  %vm6220_vm5 = vcmp.eq.s32.totalorder %v13318_v43, %v13200_v51  ;;  %vm6215_vm8 = vcmp.eq.s32.totalorder %v13313_v36, %v13207_v56  ;;  %v5646_v53 = vadd.f32 1.0, %v9956_v46  ;;  %v14365_v51 = vld [vmem:[#allocation77_spill] sm:$0xff] }
 0x5fe   : > { %v13324_v44 = vpack.c.bf16 %v6108_v14, %v6107_v39  ;;  %8596 = vmatpush3.bf16.msra.mxu1 %v6466_v35  ;;  %v5929_v48 = vpop.permute.xlu0 %5928  ;;  %v6119_v50 = vmul.f32 %v5925_v29, %v13163_v16  ;;  %vm13333_vm4 = vmpackc.low %vm6220_vm5, %vm6216_vm3  ;;  %vm6219_vm11 = vcmp.eq.s32.totalorder %v13318_v43, %v13207_v56  ;;  %9969 = vpow2.f32 %v7998_v2  ;;  %v14369_v35 = vld [vmem:[#allocation24_spill] sm:$0xff] }
 0x5ff   : > { %v5869_v57 = vpop.permute.xlu1 %5868  ;;  %8597 = vmatprep.subr.bf16.mxu1 %v6473_v6  ;;  %v6120_v41 = vmul.f32 %v5929_v48, %v5800_v7  ;;  %v5372_v17 = vadd.f32 %v12813_v47, %v14365_v51  ;;  %vm13343_vm12 = vmpackc.low %vm6219_vm11, %vm6215_vm8  ;;  %v14366_v16 = vmov 0  ;;  %9971 = vrcp.f32 %v5643_v15  ;;  %v14370_v6 = vld [vmem:[#allocation25_spill] sm:$0xff]  ;;  %v14371_v48 = vld [vmem:[#allocation74_spill] sm:$0xff] }
 0x600   : > { %v6341_v11 = vunpack.c.l.bf16 %v13324_v44  ;;  %v6342_v46 = vunpack.c.h.bf16 %v13324_v44  ;;  %v14367_v16 = vsel %vm13343_vm12, 4294967295, %v14366_v16  ;;  %v6420_v29 = vsub.f32 %v6122_v5, %v6356_v19 }
 0x601   : > { %14368 = vst [vmem:[#allocation76_spill] sm:$0xff] %v14367_v16  ;;  %v13347_v54 = vpack.c.bf16 %v6120_v41, %v6119_v50  ;;  %v6419_v7 = vsub.f32 %v6121_v27, %v6355_v13  ;;  %9973 = vpow2.f32 %v7991_v63  ;;  %v7975_v56 = vmul.f32 -1.442695, %v5369_v52  ;;  %v14372_v52 = vld [vmem:[#allocation79_spill] sm:$0xff] }
 0x602   : > { %v6405_v62 = vsub.f32 %v6107_v39, %v6341_v11  ;;  %v6406_v2 = vsub.f32 %v6108_v14, %v6342_v46  ;;  %v5861_v26 = vpop.permute.xlu0 %5860  ;;  %9975 = vrcp.f32 %v5646_v53  ;;  %v5644_v28 = vadd.f32 1.0, %v9958_v9  ;;  %v9962_v63 = vpop.eup %9961  ;;  %v14374_v11 = vld [vmem:[#allocation78_spill] sm:$0xff] }
 0x603   : > { %v5873_v45 = vpop.permute.xlu1 %5872  ;;  %v5797_v24 = vmul.f32 %v13063_v25, %v14369_v35  ;;  %v5784_v51 = vmul.f32 %v14371_v48, %v14370_v6  ;;  %v7978_v16 = vmul.f32 -1.442695, %v5372_v17  ;;  %v6105_v5 = vmul.f32 %v5869_v57, %v13088_v18  ;;  %v13359_v9 = vpop.eup %9963  ;;  %v14373_v18 = vld [vmem:[#allocation26_spill] sm:$0xff]  ;;  %v14376_v48 = vld [vmem:[#allocation81_spill] sm:$0xff] }
 0x604   : > { %v6465_v15 = vpack.c.bf16 %v6406_v2, %v6405_v62  ;;  %v6106_v27 = vmul.f32 %v5873_v45, %v13092_v34  ;;  %v5386_v39 = vadd.f32 %v12813_v47, %v14372_v52  ;;  %v6353_v14 = vunpack.c.l.bf16 %v13347_v54 }
 0x605   : > { %v6354_v13 = vunpack.c.h.bf16 %v13347_v54  ;;  %v6472_v19 = vpack.c.bf16 %v6420_v29, %v6419_v7  ;;  %v5649_v25 = vadd.f32 1.0, %v9960_v23  ;;  %9977 = vpow2.f32 %v7975_v56  ;;  %v13365_v57 = vpop.eup %9965 }
 0x606   : > { %v13361_v53 = vpack.c.bf16 %v6106_v27, %v6105_v5  ;;  %8598 = vmatpush3.bf16.msra.mxu1 %v6465_v15  ;;  %v5865_v17 = vpop.permute.xlu0 %5864  ;;  %v5798_v34 = vmul.f32 %v13155_v31, %v14373_v18  ;;  %9979 = vrcp.f32 %v5644_v28  ;;  %v5383_v46 = vadd.f32 %v12813_v47, %v14374_v11  ;;  %v9968_v23 = vpop.eup %9967 }
 0x607   : > { %v6103_v62 = vmul.f32 %v5861_v26, %v13100_v1  ;;  %v5917_v29 = vpop.permute.xlu1 %5916  ;;  %8599 = vmatprep.subr.bf16.mxu1 %v6472_v19  ;;  %v6104_v7 = vmul.f32 %v5865_v17, %v5784_v51  ;;  %v5650_v56 = vadd.f32 1.0, %v9962_v63  ;;  %9981 = vpow2.f32 %v7978_v16 }
 0x608   : > { %v6339_v2 = vunpack.c.l.bf16 %v13361_v53  ;;  %v6340_v45 = vunpack.c.h.bf16 %v13361_v53  ;;  %v7992_v35 = vmul.f32 -1.442695, %v5386_v39  ;;  %v6418_v31 = vsub.f32 %v6120_v41, %v6354_v13  ;;  %v14377_v41 = vld [vmem:[#allocation80_spill] sm:$0xff] }
 0x609   : > { %v13372_v6 = vpack.c.bf16 %v6104_v7, %v6103_v62  ;;  %v6417_v28 = vsub.f32 %v6119_v50, %v6353_v14  ;;  %9983 = vrcp.f32 %v5649_v25  ;;  %v5370_v15 = vadd.f32 %v12813_v47, %v14376_v48 }
 0x60a   : > { %v6403_v1 = vsub.f32 %v6105_v5, %v6339_v2  ;;  %v6404_v26 = vsub.f32 %v6106_v27, %v6340_v45  ;;  %v5921_v52 = vpop.permute.xlu0 %5920  ;;  %v6117_v51 = vmul.f32 %v5917_v29, %v5797_v24  ;;  %9985 = vrcp.f32 %v5650_v56  ;;  %v14379_v29 = vld [vmem:[#allocation21_spill] sm:$0xff]  ;;  %v14380_v2 = vld [vmem:[#allocation66_spill] sm:$0xff] }
 0x60b   : > { %14375 = vst [vmem:[#allocation77_spill] sm:$0xff] %v13372_v6  ;;  %v6337_v63 = vunpack.c.l.bf16 %v13372_v6  ;;  %v6338_v16 = vunpack.c.h.bf16 %v13372_v6  ;;  %v5913_v19 = vpop.permute.xlu1 %5912  ;;  %v6118_v17 = vmul.f32 %v5921_v52, %v5798_v34  ;;  %v7989_v39 = vmul.f32 -1.442695, %v5383_v46  ;;  %v9970_v14 = vpop.eup %9969  ;;  %v14383_v52 = vld [vmem:[#allocation67_spill] sm:$0xff] }
 0x60c   : > { %v5367_v13 = vadd.f32 %v12813_v47, %v14377_v41  ;;  %v6464_v50 = vpack.c.bf16 %v6404_v26, %v6403_v1  ;;  %v6471_v5 = vpack.c.bf16 %v6418_v31, %v6417_v28  ;;  %v13382_v27 = vpop.eup %9971  ;;  %v5647_v24 = vadd.f32 1.0, %v9968_v23  ;;  %v14381_v23 = vld [vmem:[#allocation83_spill] sm:$0xff]  ;;  %v14382_v28 = vld [vmem:[#allocation20_spill] sm:$0xff]  ;;  %v14384_v41 = vld [vmem:[#allocation82_spill] sm:$0xff] }
 0x60d   : > { %v6401_v25 = vsub.f32 %v6103_v62, %v6337_v63  ;;  %v6402_v18 = vsub.f32 %v6104_v7, %v6338_v16  ;;  %v13380_v11 = vpack.c.bf16 %v6118_v17, %v6117_v51  ;;  %9987 = vpow2.f32 %v7992_v35 }
 0x60e   : > { %8600 = vmatpush3.bf16.msra.mxu1 %v6464_v50  ;;  %v5781_v34 = vmul.f32 %v14380_v2, %v14379_v29  ;;  %v5853_v56 = vpop.permute.xlu0 %5852  ;;  %v9974_v46 = vpop.eup %9973  ;;  %v7976_v45 = vmul.f32 -1.442695, %v5370_v15  ;;  %v5648_v31 = vadd.f32 1.0, %v9970_v14  ;;  %9989 = vpow2.f32 %v7989_v39  ;;  %v14385_v29 = vld [vmem:[#allocation28_spill] sm:$0xff]  ;;  %v14386_v39 = vld [vmem:[#allocation27_spill] sm:$0xff] }
 0x60f   : > { %14378 = vst [vmem:[#allocation24_spill] sm:$0xff] %v13380_v11  ;;  %v6463_v48 = vpack.c.bf16 %v6402_v18, %v6401_v25  ;;  %v6351_v1 = vunpack.c.l.bf16 %v13380_v11  ;;  %v6352_v62 = vunpack.c.h.bf16 %v13380_v11  ;;  %v5849_v7 = vpop.permute.xlu1 %5848  ;;  %8601 = vmatprep.subr.bf16.mxu1 %v6471_v5  ;;  %v13388_v26 = vpop.eup %9975  ;;  %v5384_v35 = vadd.f32 %v12813_v47, %v14381_v23 }
 0x610   : > { %v5782_v63 = vmul.f32 %v14383_v52, %v14382_v28  ;;  %v7973_v16 = vmul.f32 -1.442695, %v5367_v13  ;;  %v5381_v15 = vadd.f32 %v12813_v47, %v14384_v41  ;;  %9991 = vrcp.f32 %v5647_v24 }
 0x611   : > { %v6416_v50 = vsub.f32 %v6118_v17, %v6352_v62  ;;  %v6415_v25 = vsub.f32 %v6117_v51, %v6351_v1  ;;  %v5641_v18 = vadd.f32 1.0, %v9974_v46  ;;  %v5796_v5 = vmul.f32 %v13169_v3, %v14385_v29  ;;  %v14387_v17 = vld [vmem:[#allocation22_spill] sm:$0xff]  ;;  %v14388_v46 = vld [vmem:[#allocation23_spill] sm:$0xff]  ;;  %v14390_v62 = vld [vmem:[#allocation85_spill] sm:$0xff] }
 0x612   : > { %8602 = vmatpush3.bf16.msra.mxu1 %v6463_v48  ;;  %v5857_v14 = vpop.permute.xlu0 %5856  ;;  %v5795_v2 = vmul.f32 %v13165_v60, %v14386_v39  ;;  %v9978_v23 = vpop.eup %9977  ;;  %9993 = vpow2.f32 %v7976_v45  ;;  %v6101_v11 = vmul.f32 %v5853_v56, %v5781_v34  ;;  %v7990_v51 = vmul.f32 -1.442695, %v5384_v35  ;;  %v14389_v34 = vld [vmem:[#allocation46_spill] sm:$0xff]  ;;  %v14391_v35 = vld [vmem:[#allocation48_spill] sm:$0xff] }
 0x613   : > { %v6097_v28 = vpop.permute.xlu1 %6096  ;;  %v6102_v13 = vmul.f32 %v5857_v14, %v5782_v63  ;;  %v6470_v52 = vpack.c.bf16 %v6416_v50, %v6415_v25  ;;  %v13400_v6 = vpop.eup %9979  ;;  %9995 = vrcp.f32 %v5648_v31  ;;  %v5780_v24 = vmul.f32 %v13184_v22, %v14387_v17  ;;  %v14393_v14 = vld [vmem:[#allocation87_spill] sm:$0xff] }
 0x614   : > { %v5779_v3 = vmul.f32 %v13188_v49, %v14388_v46  ;;  %v9982_v48 = vpop.eup %9981  ;;  %9997 = vpow2.f32 %v7973_v16  ;;  %v7987_v1 = vmul.f32 -1.442695, %v5381_v15  ;;  %v13410_v56 = vmul.f32 %v13227_v20, %v14389_v34  ;;  %v14392_v20 = vld [vmem:[#allocation84_spill] sm:$0xff]  ;;  %v14394_v34 = vld [vmem:[#allocation47_spill] sm:$0xff] }
 0x615   : > { %v13406_v60 = vpack.c.bf16 %v6102_v13, %v6101_v11  ;;  %8603 = vmatprep.subr.bf16.mxu1 %v6470_v52  ;;  %9999 = vrcp.f32 %v5641_v18  ;;  %v5625_v45 = vadd.f32 1.0, %v9978_v23  ;;  %v5368_v31 = vadd.f32 %v12813_v47, %v14390_v62 }
 0x616   : > { %v5826_v22 = vmul.f32 %v13245_v61, %v14391_v35  ;;  %v5909_v63 = vpop.permute.xlu0 %5908  ;;  %v9984_v49 = vpop.eup %9983  ;;  %v6116_v41 = vmul.f32 %v5913_v19, %v5796_v5  ;;  %v5628_v29 = vadd.f32 1.0, %v9982_v48  ;;  %10001 = vpow2.f32 %v7990_v51 }
 0x617   : > { %v6335_v16 = vunpack.c.l.bf16 %v13406_v60  ;;  %v6336_v15 = vunpack.c.h.bf16 %v13406_v60  ;;  %v6033_v50 = vpop.permute.xlu1 %6032  ;;  %v6115_v25 = vmul.f32 %v5909_v63, %v5795_v2  ;;  %v5365_v18 = vadd.f32 %v12813_v47, %v14392_v20  ;;  %v9986_v23 = vpop.eup %9985 }
 0x618   : > { %v5379_v39 = vadd.f32 %v12813_v47, %v14393_v14  ;;  %10003 = vpow2.f32 %v7987_v1  ;;  %v7974_v19 = vmul.f32 -1.442695, %v5368_v31  ;;  %v6100_v5 = vmul.f32 %v5849_v7, %v5780_v24 }
 0x619   : > { %v6399_v61 = vsub.f32 %v6101_v11, %v6335_v16  ;;  %v6400_v52 = vsub.f32 %v6102_v13, %v6336_v15  ;;  %v13422_v17 = vpack.c.bf16 %v6116_v41, %v6115_v25  ;;  %10005 = vrcp.f32 %v5625_v45  ;;  %v14395_v16 = vld [vmem:[#allocation64_spill] sm:$0xff] }
 0x61a   : > { %v5845_v46 = vpop.permute.xlu0 %5844  ;;  %v13426_v2 = vmul.f32 %v13266_v0, %v14394_v34  ;;  %v9988_v51 = vpop.eup %9987  ;;  %10007 = vrcp.f32 %v5628_v29  ;;  %v7971_v11 = vmul.f32 -1.442695, %v5365_v18  ;;  %v7985_v13 = vmul.f32 -1.442695, %v5379_v39  ;;  %v14396_v0 = vld [vmem:[#allocation62_spill] sm:$0xff] }
 0x61b   : > { %v6462_v48 = vpack.c.bf16 %v6400_v52, %v6399_v61  ;;  %v6349_v62 = vunpack.c.l.bf16 %v13422_v17  ;;  %v6350_v35 = vunpack.c.h.bf16 %v13422_v17  ;;  %v6089_v63 = vpop.permute.xlu1 %6088  ;;  %v6099_v1 = vmul.f32 %v5845_v46, %v5779_v3  ;;  %v9990_v31 = vpop.eup %9989  ;;  %v14397_v61 = vld [vmem:[#allocation49_spill] sm:$0xff]  ;;  %v14398_v29 = vld [vmem:[#allocation58_spill] sm:$0xff] }
 0x61c   : > { %v5842_v45 = vmul.f32 %v9986_v23, %v14395_v16  ;;  %v5841_v15 = vmul.f32 %v9984_v49, %v14396_v0  ;;  %10009 = vpow2.f32 %v7974_v19  ;;  %v13436_v52 = vmul.f32 %v13359_v9, %v14397_v61  ;;  %v14403_v61 = vld [vmem:[#allocation65_spill] sm:$0xff] }
 0x61d   : > { %v6413_v7 = vsub.f32 %v6115_v25, %v6349_v62  ;;  %v13431_v24 = vpack.c.bf16 %v6100_v5, %v6099_v1  ;;  %8604 = vmatpush3.bf16.msra.mxu1 %v6462_v48  ;;  %v6414_v20 = vsub.f32 %v6116_v41, %v6350_v35  ;;  %v13440_v18 = vmul.f32 %v13365_v57, %v14398_v29  ;;  %v9992_v39 = vpop.eup %9991  ;;  %v14399_v48 = vld [vmem:[#allocation86_spill] sm:$0xff] }
 0x61e   : > { %v6162_v14 = vmul.f32 %v6097_v28, %v5842_v45  ;;  %v6093_v3 = vpop.permute.xlu0 %6092  ;;  %v5642_v19 = vadd.f32 1.0, %v9988_v51  ;;  %v5639_v28 = vadd.f32 1.0, %v9990_v31  ;;  %10011 = vpow2.f32 %v7971_v11  ;;  %v14401_v51 = vld [vmem:[#allocation69_spill] sm:$0xff] }
 0x61f   : > { %v6333_v25 = vunpack.c.l.bf16 %v13431_v24  ;;  %v6334_v23 = vunpack.c.h.bf16 %v13431_v24  ;;  %v6025_v46 = vpop.permute.xlu1 %6024  ;;  %v6161_v34 = vmul.f32 %v6093_v3, %v5841_v15  ;;  %v6469_v49 = vpack.c.bf16 %v6414_v20, %v6413_v7  ;;  %v9994_v41 = vpop.eup %9993 }
 0x620   : > { %v5382_v9 = vadd.f32 %v12813_v47, %v14399_v48  ;;  %v9996_v62 = vpop.eup %9995  ;;  %10013 = vpow2.f32 %v7985_v13  ;;  %v5363_v0 = vadd.f32 %v12813_v47, %v13079_v21  ;;  %v6146_v7 = vmul.f32 %v6033_v50, %v5826_v22  ;;  %v14402_v22 = vld [vmem:[#allocation88_spill] sm:$0xff] }
 0x621   : > { %v6397_v35 = vsub.f32 %v6099_v1, %v6333_v25  ;;  %v6398_v57 = vsub.f32 %v6100_v5, %v6334_v23  ;;  %v13446_v16 = vpack.c.bf16 %v6162_v14, %v6161_v34  ;;  %8605 = vmatprep.subr.bf16.mxu1 %v6469_v49  ;;  %v13448_v45 = vpop.eup %9997  ;;  %vm6198_vm15 = vcmp.eq.s32.totalorder %v13216_v33, %v14401_v51  ;;  %v14405_v49 = vld [vmem:[#allocation63_spill] sm:$0xff] }
 0x622   : > { %v6029_v15 = vpop.permute.xlu0 %6028  ;;  %vm6202_vm0 = vcmp.eq.s32.totalorder %v13223_v58, %v14401_v51  ;;  %v13456_v11 = vpop.eup %9999  ;;  %10015 = vrcp.f32 %v5642_v19  ;;  %v7988_v21 = vmul.f32 -1.442695, %v5382_v9  ;;  %v5366_v50 = vadd.f32 %v12813_v47, %v14402_v22  ;;  %v14408_v9 = vld [vmem:[#allocation70_spill] sm:$0xff] }
 0x623   : > { %14400 = vst [vmem:[#allocation25_spill] sm:$0xff] %v13446_v16  ;;  %v6461_v1 = vpack.c.bf16 %v6398_v57, %v6397_v35  ;;  %v6395_v5 = vunpack.c.l.bf16 %v13446_v16  ;;  %v6396_v13 = vunpack.c.h.bf16 %v13446_v16  ;;  %v6081_v31 = vpop.permute.xlu1 %6080  ;;  %v6145_v20 = vmul.f32 %v6029_v15, %v13410_v56  ;;  %v10002_v29 = vpop.eup %10001  ;;  %vm13475_vm3 = vmpackc.low %vm6202_vm0, %vm6198_vm15 }
 0x624   : > { %v5840_v3 = vmul.f32 %v9996_v62, %v14403_v61  ;;  %v5839_v48 = vmul.f32 %v9992_v39, %v14405_v49  ;;  %10017 = vrcp.f32 %v5639_v28  ;;  %v7969_v16 = vmul.f32 -1.442695, %v5363_v0 }
 0x625   : > { %v6459_v25 = vsub.f32 %v6161_v34, %v6395_v5  ;;  %v13464_v23 = vpack.c.bf16 %v6146_v7, %v6145_v20  ;;  %8606 = vmatpush3.bf16.msra.mxu1 %v6461_v1  ;;  %v6460_v35 = vsub.f32 %v6162_v14, %v6396_v13  ;;  %v13467_v57 = vpop.eup %10003  ;;  %v14406_v34 = vmov 0 }
 0x626   : > { %v6160_v56 = vmul.f32 %v6089_v63, %v5840_v3  ;;  %v6085_v19 = vpop.permute.xlu0 %6084  ;;  %v14407_v34 = vsel %vm13475_vm3, 4294967295, %v14406_v34  ;;  %vm6197_vm5 = vcmp.eq.s32.totalorder %v13216_v33, %v14408_v9  ;;  %v13481_v14 = vpop.eup %10005  ;;  %10019 = vpow2.f32 %v7988_v21 }
 0x627   : > { %14404 = vst [vmem:[#allocation74_spill] sm:$0xff] %v13464_v23  ;;  %v6379_v39 = vunpack.c.l.bf16 %v13464_v23  ;;  %v6380_v63 = vunpack.c.h.bf16 %v13464_v23  ;;  %v6017_v28 = vpop.permute.xlu1 %6016  ;;  %v6159_v62 = vmul.f32 %v6085_v19, %v5839_v48  ;;  %v6492_v0 = vpack.c.bf16 %v6460_v35, %v6459_v25  ;;  %v13492_v22 = vpop.eup %10007 }
 0x628   : > { %v7972_v15 = vmul.f32 -1.442695, %v5366_v50  ;;  %v5380_v1 = vadd.f32 %v12813_v47, %v13083_v12  ;;  %v14409_v5 = vmov 1.0|1.0   ;;  %vm6201_vm8 = vcmp.eq.s32.totalorder %v13223_v58, %v14408_v9 }
 0x629   : > { %8036 = vmatmul.mubr.msk.bf16.vlgmr.msra.gmra.mxu1 %vm12981_vm13, %v14409_v5  ;;  %v5626_v61 = vadd.f32 1.0, %v9994_v41  ;;  %v6443_v3 = vsub.f32 %v6145_v20, %v6379_v39  ;;  %v6444_v49 = vsub.f32 %v6146_v7, %v6380_v63  ;;  %v13494_v23 = vpack.c.bf16 %v6160_v56, %v6159_v62  ;;  %8631 = vmatprep.subr.bf16.mxu1 %v6492_v0  ;;  %v10010_v41 = vpop.eup %10009  ;;  %vm13521_vm0 = vmpackc.low %vm6201_vm8, %vm6197_vm5 }
 0x62a   : > { %8038 = vmatprep.mubr.msk.bf16.mxu1 %vm13475_vm3, %v14409_v5  ;;  %10021 = vpow2.f32 %v7969_v16  ;;  %v6144_v12 = vmul.f32 %v6025_v46, %v13436_v52  ;;  %v6021_v21 = vpop.permute.xlu0 %6020  ;;  %vm6206_vm11 = vcmp.eq.s32.totalorder %v13273_v4, %v14401_v51  ;;  %vm6210_vm15 = vcmp.eq.s32.totalorder %v13278_v37, %v14401_v51  ;;  %v14411_v46 = vld [vmem:[#allocation60_spill] sm:$0xff] }
 0x62b   : > { %v6484_v20 = vpack.c.bf16 %v6444_v49, %v6443_v3  ;;  %v6393_v7 = vunpack.c.l.bf16 %v13494_v23  ;;  %v6394_v50 = vunpack.c.h.bf16 %v13494_v23  ;;  %v6073_v25 = vpop.permute.xlu1 %6072  ;;  %v6143_v48 = vmul.f32 %v6021_v21, %v13426_v2  ;;  %v13511_v19 = vpop.eup %10011  ;;  %vm13535_vm3 = vmpackc.low %vm6210_vm15, %vm6206_vm11 }
 0x62c   : > { %10023 = vpow2.f32 %v7972_v15  ;;  %v7986_v16 = vmul.f32 -1.442695, %v5380_v1  ;;  %v5364_v52 = vadd.f32 %v12813_v47, %v13102_v10  ;;  %v5838_v35 = vmul.f32 %v13388_v26, %v14411_v46 }
 0x62d   : > { %v5640_v39 = vadd.f32 1.0, %v10002_v29  ;;  %v6457_v63 = vsub.f32 %v6159_v62, %v6393_v7  ;;  %v13513_v0 = vpack.c.bf16 %v6144_v12, %v6143_v48  ;;  %8632 = vmatpush3.bf16.msra.mxu1 %v6484_v20  ;;  %v6458_v3 = vsub.f32 %v6160_v56, %v6394_v50  ;;  %v13525_v47 = vpop.eup %10013  ;;  %v14414_v29 = vld [vmem:[#allocation42_spill] sm:$0xff] }
 0x62e   : > { %v14412_v2 = vmov 0  ;;  %10025 = vrcp.f32 %v5626_v61  ;;  %v6158_v10 = vmul.f32 %v6081_v31, %v5838_v35  ;;  %v6077_v26 = vpop.permute.xlu0 %6076  ;;  %v5821_v62 = vmul.f32 %v13193_v55, %v14414_v29  ;;  %v14417_v61 = vld [vmem:[#allocation44_spill] sm:$0xff] }
 0x62f   : > { %v14413_v2 = vsel %vm13521_vm0, 4294967295, %v14412_v2  ;;  %v14415_v33 = vmov 0  ;;  %v6377_v58 = vunpack.c.l.bf16 %v13513_v0  ;;  %v6378_v56 = vunpack.c.h.bf16 %v13513_v0  ;;  %v6009_v15 = vpop.permute.xlu1 %6008  ;;  %v13549_v21 = vpop.eup %10015 }
 0x630   : > { %v14416_v33 = vsel %vm13535_vm3, 4294967295, %v14415_v33  ;;  %v6157_v31 = vmul.f32 %v6077_v26, %v13440_v18  ;;  %v6491_v1 = vpack.c.bf16 %v6458_v3, %v6457_v63  ;;  %10027 = vpow2.f32 %v7986_v16  ;;  %v14419_v3 = vld [vmem:[#allocation59_spill] sm:$0xff] }
 0x631   : > { %v7970_v55 = vmul.f32 -1.442695, %v5364_v52  ;;  %v5822_v49 = vmul.f32 %v13202_v8, %v14417_v61  ;;  %8040 = vmatmul.mubr.msk.bf16.gmra.mxu1 %vm13521_vm0, %v14409_v5  ;;  %vm6205_vm5 = vcmp.eq.s32.totalorder %v13273_v4, %v14408_v9  ;;  %10029 = vrcp.f32 %v5640_v39  ;;  %v14418_v39 = vld [vmem:[#allocation61_spill] sm:$0xff] }
 0x632   : > { %v6441_v20 = vsub.f32 %v6143_v48, %v6377_v58  ;;  %v6442_v7 = vsub.f32 %v6144_v12, %v6378_v56  ;;  %v13551_v50 = vpack.c.bf16 %v6158_v10, %v6157_v31  ;;  %8633 = vmatprep.subr.bf16.mxu1 %v6491_v1  ;;  %8042 = vmatprep.mubr.msk.bf16.mxu1 %vm13535_vm3, %v14409_v5  ;;  %v6013_v18 = vpop.permute.xlu0 %6012  ;;  %v13562_v48 = vpop.eup %10017  ;;  %v5623_v58 = vadd.f32 1.0, %v13448_v45 }
 0x633   : > { %v6142_v8 = vmul.f32 %v6017_v28, %v5822_v49  ;;  %vm6209_vm8 = vcmp.eq.s32.totalorder %v13278_v37, %v14408_v9  ;;  %vm6214_vm11 = vcmp.eq.s32.totalorder %v13313_v36, %v14401_v51  ;;  %v6065_v46 = vpop.permute.xlu1 %6064  ;;  %v6141_v35 = vmul.f32 %v6013_v18, %v5821_v62  ;;  %v10020_v29 = vpop.eup %10019  ;;  %v14425_v49 = vld [vmem:[#allocation45_spill] sm:$0xff] }
 0x634   : > { %v6483_v12 = vpack.c.bf16 %v6442_v7, %v6441_v20  ;;  %v6391_v16 = vunpack.c.l.bf16 %v13551_v50  ;;  %v6392_v52 = vunpack.c.h.bf16 %v13551_v50  ;;  %v5624_v28 = vadd.f32 1.0, %v10010_v41  ;;  %vm13579_vm15 = vmpackc.low %vm6209_vm8, %vm6205_vm5  ;;  %v14426_v7 = vld [vmem:[#allocation43_spill] sm:$0xff] }
 0x635   : > { %10031 = vpow2.f32 %v7970_v55  ;;  %v5836_v63 = vmul.f32 %v13400_v6, %v14418_v39  ;;  %v5835_v26 = vmul.f32 %v13382_v27, %v14419_v3  ;;  %v13571_v1 = vpack.c.bf16 %v6142_v8, %v6141_v35 }
 0x636   : > { %v6455_v56 = vsub.f32 %v6157_v31, %v6391_v16  ;;  %8634 = vmatpush3.bf16.msra.mxu1 %v6483_v12  ;;  %v6456_v61 = vsub.f32 %v6158_v10, %v6392_v52  ;;  %v5637_v6 = vadd.f32 1.0, %v13467_v57  ;;  %v6069_v62 = vpop.permute.xlu0 %6068  ;;  %vm14422_vm3 = vcmp.eq.s32.totalorder %v13318_v43, %v14401_v51 }
 0x637   : > { %v6156_v27 = vmul.f32 %v6073_v25, %v5836_v63  ;;  %vm13590_vm0 = vmpackc.low %vm14422_vm3, %vm6214_vm11  ;;  %v10022_v4 = vpop.eup %10021  ;;  %v6375_v37 = vunpack.c.l.bf16 %v13571_v1  ;;  %v6376_v10 = vunpack.c.h.bf16 %v13571_v1  ;;  %v6001_v31 = vpop.permute.xlu1 %6000  ;;  %v6155_v55 = vmul.f32 %v6069_v62, %v5835_v26 }
 0x638   : > { %v6490_v57 = vpack.c.bf16 %v6456_v61, %v6455_v56  ;;  %10033 = vrcp.f32 %v5624_v28  ;;  %v5638_v25 = vadd.f32 1.0, %v10020_v29  ;;  %v5820_v20 = vmul.f32 %v13492_v22, %v14425_v49  ;;  %v14427_v29 = vld [vmem:[#allocation55_spill] sm:$0xff] }
 0x639   : > { %v5819_v51 = vmul.f32 %v13209_v30, %v14426_v7  ;;  %8044 = vmatmul.mubr.msk.bf16.gmra.mxu1 %vm13579_vm15, %v14409_v5  ;;  %v10024_v18 = vpop.eup %10023  ;;  %10035 = vrcp.f32 %v5623_v58  ;;  %v6439_v12 = vsub.f32 %v6141_v35, %v6375_v37  ;;  %v6440_v16 = vsub.f32 %v6142_v8, %v6376_v10  ;;  %v14428_v58 = vld [vmem:[#allocation54_spill] sm:$0xff] }
 0x63a   : > { %v13603_v52 = vpack.c.bf16 %v6156_v27, %v6155_v55  ;;  %8635 = vmatprep.subr.bf16.mxu1 %v6490_v57  ;;  %8046 = vmatprep.mubr.msk.bf16.mxu1 %vm13590_vm0, %v14409_v5  ;;  %10037 = vrcp.f32 %v5637_v6  ;;  %v6140_v22 = vmul.f32 %v6009_v15, %v5820_v20  ;;  %v6005_v28 = vpop.permute.xlu0 %6004  ;;  %vm6213_vm3 = vcmp.eq.s32.totalorder %v13313_v36, %v14408_v9 }
 0x63b   : > { %vm6217_vm5 = vcmp.eq.s32.totalorder %v13318_v43, %v14408_v9  ;;  %v10026_v30 = vpop.eup %10025  ;;  %v6482_v39 = vpack.c.bf16 %v6440_v16, %v6439_v12  ;;  %v6057_v63 = vpop.permute.xlu1 %6056  ;;  %v6139_v3 = vmul.f32 %v6005_v28, %v5819_v51  ;;  %10039 = vrcp.f32 %v5638_v25  ;;  %v14431_v51 = vld [vmem:[#allocation39_spill] sm:$0xff]  ;;  %v14432_v9 = vld [vmem:[#allocation38_spill] sm:$0xff] }
 0x63c   : > { %v6389_v8 = vunpack.c.l.bf16 %v13603_v52  ;;  %v6390_v35 = vunpack.c.h.bf16 %v13603_v52  ;;  %v5622_v26 = vadd.f32 1.0, %v10024_v18  ;;  %v5834_v15 = vmul.f32 %v13549_v21, %v14427_v29  ;;  %vm13627_vm8 = vmpackc.low %vm6217_vm5, %vm6213_vm3 }
 0x63d   : > { %v5833_v56 = vmul.f32 %v13456_v11, %v14428_v58  ;;  %v10028_v61 = vpop.eup %10027  ;;  %v5621_v6 = vadd.f32 1.0, %v13511_v19  ;;  %v13619_v37 = vpack.c.bf16 %v6140_v22, %v6139_v3  ;;  %8636 = vmatpush3.bf16.msra.mxu1 %v6482_v39  ;;  %v5635_v11 = vadd.f32 1.0, %v13525_v47 }
 0x63e   : > { %v6453_v62 = vsub.f32 %v6155_v55, %v6389_v8  ;;  %v6454_v10 = vsub.f32 %v6156_v27, %v6390_v35  ;;  %v10030_v21 = vpop.eup %10029  ;;  %v6154_v25 = vmul.f32 %v6065_v46, %v5834_v15  ;;  %v6061_v19 = vpop.permute.xlu0 %6060  ;;  %10041 = vrcp.f32 %v5622_v26 }
 0x63f   : > { %v6373_v55 = vunpack.c.l.bf16 %v13619_v37  ;;  %v6374_v49 = vunpack.c.h.bf16 %v13619_v37  ;;  %v5993_v27 = vpop.permute.xlu1 %5992  ;;  %v6153_v20 = vmul.f32 %v6061_v19, %v5833_v56  ;;  %v5636_v36 = vadd.f32 1.0, %v10028_v61 }
 0x640   : > { %v6489_v7 = vpack.c.bf16 %v6454_v10, %v6453_v62  ;;  %v5818_v43 = vmul.f32 %v10026_v30, %v14431_v51  ;;  %v5817_v18 = vmul.f32 %v13481_v14, %v14432_v9  ;;  %10043 = vrcp.f32 %v5621_v6  ;;  %v14434_v6 = vld [vmem:[#allocation56_spill] sm:$0xff] }
 0x641   : > { %8048 = vmatmul.mubr.msk.bf16.gmra.mxu1 %vm13627_vm8, %v14409_v5  ;;  %v6437_v46 = vsub.f32 %v6139_v3, %v6373_v55  ;;  %v6438_v12 = vsub.f32 %v6140_v22, %v6374_v49  ;;  %v13640_v16 = vpack.c.bf16 %v6154_v25, %v6153_v20  ;;  %10045 = vrcp.f32 %v5635_v11  ;;  %v14433_v22 = vld [vmem:[#allocation57_spill] sm:$0xff] }
 0x642   : > { %v10032_v47 = vpop.eup %10031  ;;  %8637 = vmatprep.subr.bf16.mxu1 %v6489_v7  ;;  %8050 = vmatprep.mubr.msk.bf16.mxu1 %vm13237_vm2, %v14409_v5  ;;  %v5619_v28 = vadd.f32 1.0, %v10022_v4  ;;  %v6138_v30 = vmul.f32 %v6001_v31, %v5818_v43  ;;  %v5997_v39 = vpop.permute.xlu0 %5996  ;;  %10047 = vrcp.f32 %v5636_v36  ;;  %v5832_v29 = vmul.f32 %v10030_v21, %v14433_v22 }
 0x643   : > { %v6481_v14 = vpack.c.bf16 %v6438_v12, %v6437_v46  ;;  %v6387_v8 = vunpack.c.l.bf16 %v13640_v16  ;;  %v6388_v35 = vunpack.c.h.bf16 %v13640_v16  ;;  %v6137_v26 = vmul.f32 %v5997_v39, %v5817_v18  ;;  %v6049_v56 = vpop.permute.xlu1 %6048 }
 0x644   : > { %v5620_v3 = vadd.f32 1.0, %v10032_v47  ;;  %v5831_v4 = vmul.f32 %v13562_v48, %v14434_v6  ;;  %10049 = vrcp.f32 %v5619_v28  ;;  %v6152_v10 = vmul.f32 %v6057_v63, %v5832_v29  ;;  %v14436_v48 = vld [vmem:[#allocation40_spill] sm:$0xff] }
 0x645   : > { %v10034_v15 = vpop.eup %10033  ;;  %v6451_v58 = vsub.f32 %v6153_v20, %v6387_v8  ;;  %v13648_v61 = vpack.c.bf16 %v6138_v30, %v6137_v26  ;;  %8638 = vmatpush3.bf16.msra.mxu1 %v6481_v14  ;;  %v6452_v31 = vsub.f32 %v6154_v25, %v6388_v35  ;;  %v14435_v20 = vld [vmem:[#allocation41_spill] sm:$0xff]  ;;  %v14437_v8 = vld [vmem:[#allocation51_spill] sm:$0xff]  ;;  %vm14461_vm11 = vnez %v14407_v34 }
 0x646   : > { %v10036_v62 = vpop.eup %10035  ;;  %v6053_v11 = vpop.permute.xlu0 %6052  ;;  %10051 = vrcp.f32 %v5620_v3  ;;  %v5816_v36 = vmul.f32 %v10034_v15, %v14435_v20 }
 0x647   : > { %v10038_v19 = vpop.eup %10037  ;;  %v6371_v55 = vunpack.c.l.bf16 %v13648_v61  ;;  %v6372_v49 = vunpack.c.h.bf16 %v13648_v61  ;;  %v6151_v21 = vmul.f32 %v6053_v11, %v5831_v4  ;;  %v6488_v7 = vpack.c.bf16 %v6452_v31, %v6451_v58  ;;  %v5985_v12 = vpop.permute.xlu1 %5984 }
 0x648   : > { %v10040_v51 = vpop.eup %10039  ;;  %v5815_v25 = vmul.f32 %v10036_v62, %v14436_v48  ;;  %v6136_v63 = vmul.f32 %v5993_v27, %v5816_v36 }
 0x649   : > { %v6435_v43 = vsub.f32 %v6137_v26, %v6371_v55  ;;  %v6436_v9 = vsub.f32 %v6138_v30, %v6372_v49  ;;  %v13655_v18 = vpack.c.bf16 %v6152_v10, %v6151_v21  ;;  %8639 = vmatprep.subr.bf16.mxu1 %v6488_v7  ;;  %v5830_v35 = vmul.f32 %v10040_v51, %v14437_v8  ;;  %v14438_v30 = vld [vmem:[#allocation50_spill] sm:$0xff]  ;;  %v14439_v49 = vld [vmem:[#allocation35_spill] sm:$0xff] }
 0x64a   : > { %v5989_v47 = vpop.permute.xlu0 %5988  ;;  %v5829_v29 = vmul.f32 %v10038_v19, %v14438_v30 }
 0x64b   : > { %v6480_v46 = vpack.c.bf16 %v6436_v9, %v6435_v43  ;;  %v6385_v28 = vunpack.c.l.bf16 %v13655_v18  ;;  %v6386_v39 = vunpack.c.h.bf16 %v13655_v18  ;;  %v6135_v14 = vmul.f32 %v5989_v47, %v5815_v25  ;;  %v10042_v3 = vpop.eup %10041 }
 0x64c   : > { %v6150_v27 = vmul.f32 %v6049_v56, %v5830_v35  ;;  %v5814_v7 = vmul.f32 %v10042_v3, %v14439_v49 }
 0x64d   : > { %v6449_v22 = vsub.f32 %v6151_v21, %v6385_v28  ;;  %v13661_v26 = vpack.c.bf16 %v6136_v63, %v6135_v14  ;;  %8640 = vmatpush3.bf16.msra.mxu1 %v6480_v46  ;;  %v6450_v15 = vsub.f32 %v6152_v10, %v6386_v39  ;;  %v10044_v58 = vpop.eup %10043  ;;  %v6041_v21 = vpop.permute.xlu1 %6040  ;;  %v14440_v10 = vld [vmem:[#allocation34_spill] sm:$0xff]  ;;  %v14441_v39 = vld [vmem:[#allocation53_spill] sm:$0xff] }
 0x64e   : > { %v6045_v6 = vpop.permute.xlu0 %6044  ;;  %v10046_v4 = vpop.eup %10045  ;;  %v5813_v19 = vmul.f32 %v10044_v58, %v14440_v10  ;;  %v6134_v56 = vmul.f32 %v5985_v12, %v5814_v7 }
 0x64f   : > { %v6369_v31 = vunpack.c.l.bf16 %v13661_v26  ;;  %v6370_v62 = vunpack.c.h.bf16 %v13661_v26  ;;  %v6149_v11 = vmul.f32 %v6045_v6, %v5829_v29  ;;  %v6487_v55 = vpack.c.bf16 %v6450_v15, %v6449_v22  ;;  %v10048_v20 = vpop.eup %10047 }
 0x650   : > { %v5828_v8 = vmul.f32 %v10048_v20, %v14441_v39 }
 0x651   : > { %v6433_v36 = vsub.f32 %v6135_v14, %v6369_v31  ;;  %v6434_v51 = vsub.f32 %v6136_v63, %v6370_v62  ;;  %v13667_v43 = vpack.c.bf16 %v6150_v27, %v6149_v11  ;;  %8641 = vmatprep.subr.bf16.mxu1 %v6487_v55  ;;  %v10050_v48 = vpop.eup %10049  ;;  %v14442_v63 = vld [vmem:[#allocation52_spill] sm:$0xff]  ;;  %v5977_v15 = vpop.permute.xlu1 %5976  ;;  %v14443_v55 = vld [vmem:[#allocation37_spill] sm:$0xff] }
 0x652   : > { %v5981_v9 = vpop.permute.xlu0 %5980  ;;  %v5827_v22 = vmul.f32 %v10046_v4, %v14442_v63  ;;  %v6148_v29 = vmul.f32 %v6041_v21, %v5828_v8 }
 0x653   : > { %v6479_v25 = vpack.c.bf16 %v6434_v51, %v6433_v36  ;;  %v6383_v47 = vunpack.c.l.bf16 %v13667_v43  ;;  %v6384_v46 = vunpack.c.h.bf16 %v13667_v43  ;;  %v6133_v28 = vmul.f32 %v5981_v9, %v5813_v19  ;;  %v10052_v35 = vpop.eup %10051  ;;  %v14444_v36 = vld [vmem:[#allocation36_spill] sm:$0xff] }
 0x654   : > { %v5812_v49 = vmul.f32 %v10052_v35, %v14443_v55  ;;  %v5811_v51 = vmul.f32 %v10050_v48, %v14444_v36  ;;  %v14445_v48 = vld [vmem:[#allocation32_spill] sm:$0xff] }
 0x655   : > { %v6447_v3 = vsub.f32 %v6149_v11, %v6383_v47  ;;  %v13673_v14 = vpack.c.bf16 %v6134_v56, %v6133_v28  ;;  %8642 = vmatpush3.bf16.msra.mxu1 %v6479_v25  ;;  %v6448_v30 = vsub.f32 %v6150_v27, %v6384_v46 }
 0x656   : > { %v6037_v12 = vpop.permute.xlu0 %6036  ;;  %v6132_v4 = vmul.f32 %v5977_v15, %v5812_v49 }
 0x657   : > { %v6367_v58 = vunpack.c.l.bf16 %v13673_v14  ;;  %v6368_v6 = vunpack.c.h.bf16 %v13673_v14  ;;  %v6147_v31 = vmul.f32 %v6037_v12, %v5827_v22  ;;  %v6486_v62 = vpack.c.bf16 %v6448_v30, %v6447_v3  ;;  %v14447_v22 = vld [vmem:[#allocation89_spill] sm:$0xff] }
 0x658   : > { %v14448_v30 = vld [vmem:[#allocation33_spill] sm:$0xff] }
 0x659   : > { %v6431_v7 = vsub.f32 %v6133_v28, %v6367_v58  ;;  %v6432_v20 = vsub.f32 %v6134_v56, %v6368_v6  ;;  %v13679_v11 = vpack.c.bf16 %v6148_v29, %v6147_v31  ;;  %8643 = vmatprep.subr.bf16.mxu1 %v6486_v62  ;;  %v14453_v58 = vld [vmem:[#allocation68_spill] sm:$0xff] }
 0x65a   : > { %v5973_v27 = vpop.permute.xlu0 %5972  ;;  %v14456_v62 = vld [vmem:[#allocation24_spill] sm:$0xff] }
 0x65b   : > { %v6478_v21 = vpack.c.bf16 %v6432_v20, %v6431_v7  ;;  %v6381_v10 = vunpack.c.l.bf16 %v13679_v11  ;;  %v6382_v19 = vunpack.c.h.bf16 %v13679_v11  ;;  %v6131_v9 = vmul.f32 %v5973_v27, %v5811_v51 }
 0x65d   : > { %v6445_v25 = vsub.f32 %v6147_v31, %v6381_v10  ;;  %v6317_v47 = vpack.c.bf16 %v6132_v4, %v6131_v9  ;;  %8644 = vmatpush3.bf16.msra.mxu1 %v6478_v21  ;;  %v6446_v46 = vsub.f32 %v6148_v29, %v6382_v19  ;;  %v14449_v29 = vld [vmem:[#allocation30_spill] sm:$0xff]  ;;  %v14455_v31 = vld [vmem:[#allocation77_spill] sm:$0xff] }
 0x65f   : > { %v6365_v39 = vunpack.c.l.bf16 %v6317_v47  ;;  %v6366_v28 = vunpack.c.h.bf16 %v6317_v47  ;;  %v6485_v56 = vpack.c.bf16 %v6446_v46, %v6445_v25 }
 0x661   : > { %v6429_v8 = vsub.f32 %v6131_v9, %v6365_v39  ;;  %v6430_v35 = vsub.f32 %v6132_v4, %v6366_v28  ;;  %8645 = vmatprep.subr.bf16.mxu1 %v6485_v56 }
 0x663   : > { %v6477_v3 = vpack.c.bf16 %v6430_v35, %v6429_v8 }
 0x665   : > { %8646 = vmatpush3.bf16.msra.mxu1 %v6477_v3 }
 0x666   : > { %8671 = vmatprep.subr.bf16.mxu1 %v13142_v40  ;;  %v14451_v40 = vld [vmem:[#allocation71_spill] sm:$0xff] }
 0x668   : > { %8052 = vmatmul.mubr.msk.bf16.vlgmr.msra.gmra.mxu1 %vm13252_vm6, %v14409_v5 }
 0x669   : > { %8672 = vmatpush3.bf16.msra.mxu1 %v14445_v48  ;;  %8054 = vmatprep.mubr.msk.bf16.mxu1 %vm13258_vm7, %v14409_v5 }
 0x66a   : > { %8673 = vmatprep.subr.bf16.mxu1 %v14447_v22 }
 0x66d   : > { %8674 = vmatpush3.bf16.msra.mxu1 %v14448_v30 }
 0x66e   : > { %8675 = vmatprep.subr.bf16.mxu1 %v14449_v29 }
 0x670   : > { %8056 = vmatmul.mubr.msk.bf16.gmra.mxu1 %vm13268_vm9, %v14409_v5 }
 0x671   : > { %8676 = vmatpush3.bf16.msra.mxu1 %v14451_v40  ;;  %8058 = vmatprep.mubr.msk.bf16.mxu1 %vm13294_vm14, %v14409_v5 }
 0x672   : > { %8677 = vmatprep.subr.bf16.mxu1 %v14453_v58 }
 0x675   : > { %8678 = vmatpush3.bf16.msra.mxu1 %v13324_v44 }
 0x676   : > { %8679 = vmatprep.subr.bf16.mxu1 %v13310_v32 }
 0x678   : > { %8060 = vmatmul.mubr.msk.bf16.gmra.mxu1 %vm13306_vm1, %v14409_v5 }
 0x679   : > { %8680 = vmatpush3.bf16.msra.mxu1 %v13361_v53  ;;  %8062 = vmatprep.mubr.msk.bf16.mxu1 %vm13333_vm4, %v14409_v5  ;;  %v14459_v53 = vld [vmem:[#allocation25_spill] sm:$0xff] }
 0x67a   : > { %8681 = vmatprep.subr.bf16.mxu1 %v13347_v54  ;;  %v14460_v54 = vld [vmem:[#allocation74_spill] sm:$0xff] }
 0x67d   : > { %8682 = vmatpush3.bf16.msra.mxu1 %v14455_v31 }
 0x67e   : > { %8683 = vmatprep.subr.bf16.mxu1 %v14456_v62 }
 0x680   : > { %8064 = vmatmul.mubr.msk.bf16.gmra.mxu1 %vm13343_vm12, %v14409_v5 }
 0x681   : > { %8684 = vmatpush3.bf16.msra.mxu1 %v13406_v60  ;;  %8066 = vmatprep.mubr.msk.bf16.mxu1 %vm12968_vm10, %v14409_v5  ;;  %vm14462_vm10 = vnez %v14413_v2 }
 0x682   : > { %8685 = vmatprep.subr.bf16.mxu1 %v13422_v17 }
 0x685   : > { %8686 = vmatpush3.bf16.msra.mxu1 %v13431_v24 }
 0x686   : > { %8711 = vmatprep.subr.bf16.mxu1 %v14459_v53 }
 0x688   : > { %8068 = vmatmul.mubr.msk.bf16.vlgmr.msra.gmra.mxu1 %vm12981_vm13, %v14409_v5  ;;  %vm14463_vm13 = vnez %v14416_v33 }
 0x689   : > { %8712 = vmatpush3.bf16.msra.mxu1 %v14460_v54  ;;  %8070 = vmatprep.mubr.msk.bf16.mxu1 %vm14461_vm11, %v14409_v5 }
 0x68a   : > { %8713 = vmatprep.subr.bf16.mxu1 %v13494_v23 }
 0x68d   : > { %8714 = vmatpush3.bf16.msra.mxu1 %v13513_v0 }
 0x68e   : > { %8715 = vmatprep.subr.bf16.mxu1 %v13551_v50 }
 0x690   : > { %8072 = vmatmul.mubr.msk.bf16.gmra.mxu1 %vm14462_vm10, %v14409_v5 }
 0x691   : > { %8716 = vmatpush3.bf16.msra.mxu1 %v13571_v1  ;;  %8074 = vmatprep.mubr.msk.bf16.mxu1 %vm14463_vm13, %v14409_v5 }
 0x692   : > { %8717 = vmatprep.subr.bf16.mxu1 %v13603_v52 }
 0x695   : > { %8718 = vmatpush3.bf16.msra.mxu1 %v13619_v37 }
 0x696   : > { %8719 = vmatprep.subr.bf16.mxu1 %v13640_v16 }
 0x698   : > { %8076 = vmatmul.mubr.msk.bf16.gmra.mxu1 %vm13579_vm15, %v14409_v5 }
 0x699   : > { %8720 = vmatpush3.bf16.msra.mxu1 %v13648_v61  ;;  %8078 = vmatprep.mubr.msk.bf16.mxu1 %vm13590_vm0, %v14409_v5 }
 0x69a   : > { %8721 = vmatprep.subr.bf16.mxu1 %v13655_v18 }
 0x69d   : > { %8722 = vmatpush3.bf16.msra.mxu1 %v13661_v26 }
 0x69e   : > { %8723 = vmatprep.subr.bf16.mxu1 %v13667_v43 }
 0x6a0   : > { %8080 = vmatmul.mubr.msk.bf16.gmra.mxu1 %vm13627_vm8, %v14409_v5 }
 0x6a1   : > { %8724 = vmatpush3.bf16.msra.mxu1 %v13673_v14  ;;  %8082 = vmatprep.mubr.msk.bf16.mxu1 %vm13237_vm2, %v14409_v5 }
 0x6a2   : > { %8725 = vmatprep.subr.bf16.mxu1 %v13679_v11 }
 0x6a5   : > { %8726 = vmatpush3.bf16.msra.mxu1 %v6317_v47 }
 0x6a8   : > { %8084 = vmatmul.mubr.msk.bf16.vlgmr.msra.gmra.mxu1 %vm13252_vm6, %v14409_v5 }
 0x6a9   : > { %8086 = vmatprep.mubr.msk.bf16.mxu1 %vm13258_vm7, %v14409_v5 }
 0x6b0   : > { %8088 = vmatmul.mubr.msk.bf16.gmra.mxu1 %vm13268_vm9, %v14409_v5 }
 0x6b1   : > { %8090 = vmatprep.mubr.msk.bf16.mxu1 %vm13294_vm14, %v14409_v5 }
 0x6b8   : > { %8092 = vmatmul.mubr.msk.bf16.gmra.mxu1 %vm13306_vm1, %v14409_v5 }
 0x6b9   : > { %8094 = vmatprep.mubr.msk.bf16.mxu1 %vm13333_vm4, %v14409_v5 }
 0x6c0   : > { %8096 = vmatmul.mubr.msk.bf16.gmra.mxu1 %vm13343_vm12, %v14409_v5 }
 0x6e9   : > { %v8607_v59 = vpop.f32.mrf.mxu1 }
 0x6eb   : > { %v8608_v42 = vpop.f32.mrf.mxu1 }
 0x6ec   : > { %v8609_v60 = vadd.f32 %v8608_v42, %v8607_v59  ;;  %v6493_v42 = vld [vmem:[#allocation2 + $0x30] sm:$0xff] }
 0x6ed   : > { %v8610_v17 = vpop.f32.mrf.mxu1 }
 0x6ef   : > { %v8611_v24 = vpop.f32.mrf.mxu1 }
 0x6f0   : > { %v8612_v23 = vadd.f32 %v8611_v24, %v8610_v17 }
 0x6f1   : > { %v8613_v34 = vpop.f32.mrf.mxu1 }
 0x6f3   : > { %v8614_v13 = vpop.f32.mrf.mxu1 }
 0x6f4   : > { %v13784_v0 = vadd.f32 %v8614_v13, %v8613_v34 }
 0x6f5   : > { %v8616_v2 = vpop.f32.mrf.mxu1 }
 0x6f7   : > { %v8617_v33 = vpop.f32.mrf.mxu1 }
 0x6f8   : > { %v13786_v50 = vadd.f32 %v8617_v33, %v8616_v2 }
 0x6f9   : > { %v8619_v38 = vpop.f32.mrf.mxu1 }
 0x6fb   : > { %v8620_v1 = vpop.f32.mrf.mxu1 }
 0x6fc   : > { %v13788_v41 = vadd.f32 %v8620_v1, %v8619_v38 }
 0x6fd   : > { %v8622_v45 = vpop.f32.mrf.mxu1 }
 0x6ff   : > { %v8623_v5 = vpop.f32.mrf.mxu1 }
 0x700   : > { %v13790_v52 = vadd.f32 %v8623_v5, %v8622_v45  ;;  %v6494_v5 = vld [vmem:[#allocation2] sm:$0xff] }
 0x701   : > { %v8625_v37 = vpop.f32.mrf.mxu1 }
 0x703   : > { %v8626_v57 = vpop.f32.mrf.mxu1 }
 0x704   : > { %v13792_v16 = vadd.f32 %v8626_v57, %v8625_v37 }
 0x705   : > { %v8628_v61 = vpop.f32.mrf.mxu1 }
 0x707   : > { %v8629_v18 = vpop.f32.mrf.mxu1 }
 0x708   : > { %v13794_v26 = vadd.f32 %v8629_v18, %v8628_v61 }
 0x728   : > { %v8647_v43 = vpop.f32.mrf.mxu1 }
 0x72a   : > { %v8648_v14 = vpop.f32.mrf.mxu1 }
 0x72b   : > { %v8649_v15 = vadd.f32 %v8648_v14, %v8647_v43 }
 0x72c   : > { %v8650_v55 = vpop.f32.mrf.mxu1 }
 0x72d   : > { %v6601_v62 = vadd.f32 %v8649_v15, %v8609_v60 }
 0x72e   : > { %v8651_v49 = vpop.f32.mrf.mxu1 }
 0x72f   : > { %v8652_v44 = vadd.f32 %v8651_v49, %v8650_v55 }
 0x730   : > { %v8653_v7 = vpop.f32.mrf.mxu1 }
 0x731   : > { %v6604_v24 = vadd.f32 %v8652_v44, %v8612_v23  ;;  %v6495_v23 = vld [vmem:[#allocation2 + $0x18] sm:$0xff] }
 0x732   : > { %v8654_v20 = vpop.f32.mrf.mxu1 }
 0x733   : > { %v8655_v34 = vadd.f32 %v8654_v20, %v8653_v7 }
 0x734   : > { %v8656_v11 = vpop.f32.mrf.mxu1 }
 0x735   : > { %v6609_v57 = vadd.f32 %v8655_v34, %v13784_v0 }
 0x736   : > { %v8657_v36 = vpop.f32.mrf.mxu1 }
 0x737   : > { %v8658_v60 = vadd.f32 %v8657_v36, %v8656_v11  ;;  %v6496_v11 = vld [vmem:[#allocation2 + $0x10] sm:$0xff] }
 0x738   : > { %v8659_v51 = vpop.f32.mrf.mxu1 }
 0x739   : > { %v6612_v20 = vadd.f32 %v8658_v60, %v13786_v50 }
 0x73a   : > { %v8660_v4 = vpop.f32.mrf.mxu1 }
 0x73c   : > { %v13796_v27 = vpop.f32.mrf.mxu1 }
 0x73e   : > { %v13798_v21 = vpop.f32.mrf.mxu1 }
 0x740   : > { %v13800_v10 = vpop.f32.mrf.mxu1 }
 0x742   : > { %v13802_v19 = vpop.f32.mrf.mxu1 }
 0x744   : > { %v13804_v9 = vpop.f32.mrf.mxu1 }
 0x746   : > { %v13806_v25 = vpop.f32.mrf.mxu1 }
 0x748   : > { %v8687_v47 = vpop.f32.mrf.mxu1 }
 0x74a   : > { %v8688_v46 = vpop.f32.mrf.mxu1 }
 0x74b   : > { %v8689_v6 = vadd.f32 %v8688_v46, %v8687_v47  ;;  %v8661_v47 = vadd.f32 %v8660_v4, %v8659_v51 }
 0x74c   : > { %v8690_v39 = vpop.f32.mrf.mxu1 }
 0x74d   : > { %v6666_v53 = vadd.f32 %v8689_v6, %v6601_v62  ;;  %v6617_v15 = vadd.f32 %v8661_v47, %v13788_v41  ;;  %v6497_v62 = vld [vmem:[#allocation2 + $0x8] sm:$0xff] }
 0x74e   : > { %v8691_v28 = vpop.f32.mrf.mxu1 }
 0x74f   : > { %v8692_v54 = vadd.f32 %v8691_v28, %v8690_v39 }
 0x750   : > { %v8693_v56 = vpop.f32.mrf.mxu1 }
 0x751   : > { %v6669_v33 = vadd.f32 %v8692_v54, %v6604_v24 }
 0x752   : > { %v8694_v8 = vpop.f32.mrf.mxu1 }
 0x753   : > { %v8695_v38 = vadd.f32 %v8694_v8, %v8693_v56 }
 0x754   : > { %v8696_v35 = vpop.f32.mrf.mxu1 }
 0x755   : > { %v6674_v43 = vadd.f32 %v8695_v38, %v6609_v57 }
 0x756   : > { %v8697_v3 = vpop.f32.mrf.mxu1 }
 0x757   : > { %v8698_v14 = vadd.f32 %v8697_v3, %v8696_v35  ;;  %v8664_v35 = vadd.f32 %v13798_v21, %v13796_v27 }
 0x758   : > { %v8699_v48 = vpop.f32.mrf.mxu1 }
 0x759   : > { %v6677_v28 = vadd.f32 %v8698_v14, %v6612_v20 }
 0x75a   : > { %v8700_v63 = vpop.f32.mrf.mxu1 }
 0x75b   : > { %v8701_v56 = vadd.f32 %v8700_v63, %v8699_v48  ;;  %v6620_v48 = vadd.f32 %v8664_v35, %v13790_v52  ;;  %v8667_v63 = vadd.f32 %v13802_v19, %v13800_v10 }
 0x75c   : > { %v8702_v22 = vpop.f32.mrf.mxu1 }
 0x75e   : > { %v8703_v30 = vpop.f32.mrf.mxu1 }
 0x75f   : > { %v8704_v50 = vadd.f32 %v8703_v30, %v8702_v22  ;;  %v6625_v30 = vadd.f32 %v8667_v63, %v13792_v16 }
 0x760   : > { %v13808_v29 = vpop.f32.mrf.mxu1 }
 0x762   : > { %v13810_v12 = vpop.f32.mrf.mxu1 }
 0x763   : > { %v8707_v27 = vadd.f32 %v13810_v12, %v13808_v29 }
 0x764   : > { %v13812_v40 = vpop.f32.mrf.mxu1 }
 0x765   : > { %v6690_v10 = vadd.f32 %v8707_v27, %v6625_v30 }
 0x766   : > { %v13814_v58 = vpop.f32.mrf.mxu1 }
 0x767   : > { %v8710_v19 = vadd.f32 %v13814_v58, %v13812_v40 }
 0x768   : > { %v8727_v31 = vpop.f32.mrf.mxu1 }
 0x76a   : > { %v8728_v32 = vpop.f32.mrf.mxu1 }
 0x76b   : > { %v8729_v59 = vadd.f32 %v8728_v32, %v8727_v31  ;;  %v6682_v31 = vadd.f32 %v8701_v56, %v6617_v15 }
 0x76c   : > { %v8730_v17 = vpop.f32.mrf.mxu1 }
 0x76d   : > { %v6731_v13 = vadd.f32 %v8729_v59, %v6666_v53  ;;  %v6685_v53 = vadd.f32 %v8704_v50, %v6620_v48  ;;  %v6498_v59 = vld [vmem:[#allocation2 + $0x20] sm:$0xff] }
 0x76e   : > { %v8731_v2 = vpop.f32.mrf.mxu1 }
 0x76f   : > { %v6761_v1 = vadd.f32 %v6731_v13, %v6493_v42  ;;  %v8732_v45 = vadd.f32 %v8731_v2, %v8730_v17  ;;  %v8670_v42 = vadd.f32 %v13806_v25, %v13804_v9  ;;  %v6499_v13 = vld [vmem:[#allocation2 + $0x28] sm:$0xff]  ;;  %v6500_v9 = vld [vmem:[#allocation2 + $0x38] sm:$0xff] }
 0x770   : > { %v8733_v37 = vpop.f32.mrf.mxu1 }
 0x771   : > { %6769 = vst [vmem:[#allocation2 + $0x30] sm:$0xff] %v6761_v1  ;;  %v6734_v61 = vadd.f32 %v8732_v45, %v6669_v33  ;;  %v6628_v12 = vadd.f32 %v8670_v42, %v13794_v26 }
 0x772   : > { %v8734_v18 = vpop.f32.mrf.mxu1 }
 0x773   : > { %v6762_v55 = vadd.f32 %v6734_v61, %v6494_v5  ;;  %v8735_v49 = vadd.f32 %v8734_v18, %v8733_v37  ;;  %v6693_v16 = vadd.f32 %v8710_v19, %v6628_v12 }
 0x774   : > { %v8736_v7 = vpop.f32.mrf.mxu1 }
 0x775   : > { %6770 = vst [vmem:[#allocation2] sm:$0xff] %v6762_v55  ;;  %v6739_v46 = vadd.f32 %v8735_v49, %v6674_v43 }
 0x776   : > { %v8737_v39 = vpop.f32.mrf.mxu1 }
 0x777   : > { %v6763_v8 = vadd.f32 %v6739_v46, %v6495_v23  ;;  %v8738_v0 = vadd.f32 %v8737_v39, %v8736_v7 }
 0x778   : > { %v8739_v36 = vpop.f32.mrf.mxu1 }
 0x779   : > { %6771 = vst [vmem:[#allocation2 + $0x18] sm:$0xff] %v6763_v8  ;;  %v6742_v3 = vadd.f32 %v8738_v0, %v6677_v28 }
 0x77a   : > { %v8740_v6 = vpop.f32.mrf.mxu1 }
 0x77b   : > { %v6764_v51 = vadd.f32 %v6742_v3, %v6496_v11  ;;  %v8741_v4 = vadd.f32 %v8740_v6, %v8739_v36 }
 0x77c   : > { %v8742_v44 = vpop.f32.mrf.mxu1 }
 0x77d   : > { %6772 = vst [vmem:[#allocation2 + $0x10] sm:$0xff] %v6764_v51  ;;  %v6747_v32 = vadd.f32 %v8741_v4, %v6682_v31 }
 0x77e   : > { %v8743_v41 = vpop.f32.mrf.mxu1 }
 0x77f   : > { %v6765_v21 = vadd.f32 %v6747_v32, %v6497_v62  ;;  %v8744_v54 = vadd.f32 %v8743_v41, %v8742_v44 }
 0x780   : > { %v8745_v22 = vpop.f32.mrf.mxu1 }
 0x781   : > { %6773 = vst [vmem:[#allocation2 + $0x8] sm:$0xff] %v6765_v21  ;;  %v6750_v52 = vadd.f32 %v8744_v54, %v6685_v53 }
 0x782   : > { %v8746_v17 = vpop.f32.mrf.mxu1 }
 0x783   : > { %v6766_v24 = vadd.f32 %v6750_v52, %v6498_v59  ;;  %v8747_v34 = vadd.f32 %v8746_v17, %v8745_v22 }
 0x784   : > { %v8748_v29 = vpop.f32.mrf.mxu1 }
 0x785   : > { %6774 = vst [vmem:[#allocation2 + $0x20] sm:$0xff] %v6766_v24  ;;  %v6755_v2 = vadd.f32 %v8747_v34, %v6690_v10 }
 0x786   : > { %v8749_v33 = vpop.f32.mrf.mxu1 }
 0x787   : > { %v6767_v38 = vadd.f32 %v6755_v2, %v6499_v13  ;;  %v8750_v1 = vadd.f32 %v8749_v33, %v8748_v29 }
 0x789   : > { %6775 = vst [vmem:[#allocation2 + $0x28] sm:$0xff] %v6767_v38  ;;  %v6758_v25 = vadd.f32 %v8750_v1, %v6693_v16  ;;  %6780 = sbr.rel (%p8097_p11) target bundleno = 2422 (0x976), region = 84 }
 0x78b   : > { %v6768_v45 = vadd.f32 %v6758_v25, %v6500_v9 }
 0x78d   : > { %6776 = vst [vmem:[#allocation2 + $0x38] sm:$0xff] %v6768_v45 }
 0x78e   : > { %v10131_v40 = vld [vmem:[%s14075_s10 + $0x38] sm:$0xff]   ;;  %v10133_v58 = vld [vmem:[%s14075_s10 + $0x30] sm:$0xff]   ;;  %v10135_v37 = vld [vmem:[%s14075_s10 + $0x28] sm:$0xff]   ;;  %v6798_v0 = vstv %s6781_s21  ;;  %v10303_v38 = vmov 0  }
 0x78f   : > { %v10132_v26 = vld [vmem:[%s14074_s9 + $0x38] sm:$0xff]   ;;  %9059 = vmatprep.subr.bf16.mxu0 %v10131_v40  ;;  %v10134_v5 = vld [vmem:[%s14074_s9 + $0x30] sm:$0xff]   ;;  %v10136_v57 = vld [vmem:[%s14074_s9 + $0x28] sm:$0xff]   ;;  %10130 = vset.pattern.permute.xlu1 %v10303_v38 }
 0x790   : > { %9083 = vmatprep.subr.bf16.mxu1 %v10132_v26  ;;  %9060 = vmatpush3.bf16.msra.mxu0 %v10131_v40  ;;  %v10137_v60 = vld [vmem:[%s14075_s10 + $0x20] sm:$0xff]   ;;  %v10139_v18 = vld [vmem:[%s14075_s10 + $0x18] sm:$0xff]   ;;  %v10141_v14 = vld [vmem:[%s14075_s10 + $0x10] sm:$0xff]  }
 0x791   : > { %9084 = vmatpush3.bf16.msra.mxu1 %v10132_v26  ;;  %9061 = vmatprep.subr.bf16.mxu0 %v10133_v58  ;;  %v10138_v61 = vld [vmem:[%s14074_s9 + $0x20] sm:$0xff]   ;;  %v10140_v43 = vld [vmem:[%s14074_s9 + $0x18] sm:$0xff]   ;;  %v10142_v49 = vld [vmem:[%s14074_s9 + $0x10] sm:$0xff]  }
 0x792   : > { %9085 = vmatprep.subr.bf16.mxu1 %v10134_v5  ;;  %v13869_v55 = vld [vmem:[%s14069_s4] sm:$0xff]  ;;  %v13877_v23 = vld [vmem:[%s14069_s4 + $0x8] sm:$0xff]  ;;  %v6790_v46 = vld [vmem:[#allocation2 + $0x30] sm:$0xff]  ;;  %10129 = vset.pattern.permute.xlu0 %v10303_v38 }
 0x793   : > { %v6811_v7 = vpack.c.bf16 %v13877_v23, %v13869_v55  ;;  %v10143_v20 = vld [vmem:[%s14075_s10 + $0x8] sm:$0xff]   ;;  %v6791_v39 = vld [vmem:[#allocation2] sm:$0xff]  ;;  %v6792_v28 = vld [vmem:[#allocation2 + $0x18] sm:$0xff]  ;;  %v6799_v35 = vmul.f32 %v6798_v0, %v6790_v46 }
 0x794   : > { %9062 = vmatpush3.bf16.msra.mxu0 %v10133_v58  ;;  %v10144_v47 = vld [vmem:[%s14074_s9 + $0x8] sm:$0xff]   ;;  %v6793_v56 = vld [vmem:[#allocation2 + $0x10] sm:$0xff]  ;;  %v10145_v8 = vld [vmem:[%s14075_s10] sm:$0xff]   ;;  %v6800_v3 = vmul.f32 %v6798_v0, %v6791_v39  ;;  %v6801_v31 = vmul.f32 %v6798_v0, %v6792_v28 }
 0x795   : > { %9086 = vmatpush3.bf16.msra.mxu1 %v10134_v5  ;;  %9063 = vmatprep.subr.bf16.mxu0 %v10135_v37  ;;  %v6794_v11 = vld [vmem:[#allocation2 + $0x8] sm:$0xff]  ;;  %v6795_v36 = vld [vmem:[#allocation2 + $0x20] sm:$0xff]  ;;  %v6802_v50 = vmul.f32 %v6798_v0, %v6793_v56  ;;  %v13896_v62 = vld [vmem:[%s14069_s4 + $0x10] sm:$0xff] }
 0x796   : > { %9087 = vmatprep.subr.bf16.mxu1 %v10136_v57  ;;  %9099 = vmatprep.mubr.bf16.mxu1 %v6811_v7  ;;  %v10146_v15 = vld [vmem:[%s14074_s9] sm:$0xff]   ;;  %v6807_v6 = vpack.c.bf16 %v6800_v3, %v6799_v35  ;;  %v6803_v51 = vmul.f32 %v6798_v0, %v6794_v11  ;;  %v6804_v4 = vmul.f32 %v6798_v0, %v6795_v36  ;;  %v13901_v44 = vld [vmem:[%s14069_s4 + $0x18] sm:$0xff]  ;;  %v13911_v63 = vld [vmem:[%s14069_s4 + $0x28] sm:$0xff] }
 0x797   : > { %v13906_v48 = vld [vmem:[%s14069_s4 + $0x20] sm:$0xff]  ;;  %v6808_v32 = vpack.c.bf16 %v6802_v50, %v6801_v31  ;;  %v6812_v41 = vpack.c.bf16 %v13901_v44, %v13896_v62  ;;  %v6796_v27 = vld [vmem:[#allocation2 + $0x28] sm:$0xff]  ;;  %v6797_v21 = vld [vmem:[#allocation2 + $0x38] sm:$0xff] }
 0x798   : > { %9064 = vmatpush3.bf16.msra.mxu0 %v10135_v37  ;;  %9075 = vmatprep.mubr.bf16.mxu0 %v6807_v6  ;;  %v6809_v53 = vpack.c.bf16 %v6804_v4, %v6803_v51  ;;  %v6813_v54 = vpack.c.bf16 %v13911_v63, %v13906_v48  ;;  %v6805_v59 = vmul.f32 %v6798_v0, %v6796_v27  ;;  %v13920_v30 = vld [vmem:[%s14069_s4 + $0x30] sm:$0xff]  ;;  %v13925_v42 = vld [vmem:[%s14069_s4 + $0x38] sm:$0xff]  ;;  %v10149_v24 = vld [vmem:[%s14076_s11 + $0x28] sm:$0xff]  }
 0x799   : > { %9088 = vmatpush3.bf16.msra.mxu1 %v10136_v57  ;;  %9065 = vmatprep.subr.bf16.mxu0 %v10137_v60  ;;  %v6806_v22 = vmul.f32 %v6798_v0, %v6797_v21  ;;  %v6814_v17 = vpack.c.bf16 %v13925_v42, %v13920_v30  ;;  %v10147_v10 = vld [vmem:[%s14076_s11 + $0x38] sm:$0xff]   ;;  %v10148_v19 = vld [vmem:[%s14076_s11 + $0x30] sm:$0xff]   ;;  %v10150_v34 = vld [vmem:[%s14076_s11 + $0x20] sm:$0xff]  }
 0x79a   : > { %9089 = vmatprep.subr.bf16.mxu1 %v10138_v61  ;;  %v10151_v13 = vld [vmem:[%s14076_s11 + $0x18] sm:$0xff]   ;;  %v10152_v29 = vld [vmem:[%s14076_s11 + $0x10] sm:$0xff]   ;;  %v10153_v12 = vld [vmem:[%s14076_s11 + $0x8] sm:$0xff]  }
 0x79b   : > { %v6810_v52 = vpack.c.bf16 %v6806_v22, %v6805_v59  ;;  %v10154_v2 = vld [vmem:[%s14076_s11] sm:$0xff]   ;;  %v7296_v33 = vld [vmem:[%s14070_s5 + $0x10] sm:$0xff]  ;;  %v7297_v1 = vld [vmem:[%s14070_s5 + $0x18] sm:$0xff] }
 0x79c   : > { %9066 = vmatpush3.bf16.msra.mxu0 %v10137_v60  ;;  %v7294_v16 = vld [vmem:[%s14070_s5] sm:$0xff]  ;;  %7314 = vperm.xlu1 %10130, %v7296_v33   ;;  %v7295_v9 = vld [vmem:[%s14070_s5 + $0x8] sm:$0xff]  ;;  %v7301_v40 = vld [vmem:[%s14070_s5 + $0x38] sm:$0xff] }
 0x79d   : > { %9090 = vmatpush3.bf16.msra.mxu1 %v10138_v61  ;;  %9067 = vmatprep.subr.bf16.mxu0 %v10139_v18  ;;  %v7299_v25 = vld [vmem:[%s14070_s5 + $0x28] sm:$0xff]  ;;  %v7298_v45 = vld [vmem:[%s14070_s5 + $0x20] sm:$0xff]  ;;  %v7300_v26 = vld [vmem:[%s14070_s5 + $0x30] sm:$0xff] }
 0x79e   : > { %9091 = vmatprep.subr.bf16.mxu1 %v10140_v43  ;;  %7304 = vperm.xlu0 %10129, %v7294_v16   ;;  %v14464_v5 = vld [vmem:[#allocation29_spill] sm:$0xff]  ;;  %v14466_v57 = vld [vmem:[#allocation19_spill] sm:$0xff] }
 0x79f   : > { %v14465_v37 = vsub.s32 2, %v14464_v5 }
 0x7a0   : > { %9068 = vmatpush3.bf16.msra.mxu0 %v10139_v18  ;;  %7319 = vperm.xlu1 %10130, %v7297_v1  }
 0x7a1   : > { %9092 = vmatpush3.bf16.msra.mxu1 %v10140_v43  ;;  %9069 = vmatprep.subr.bf16.mxu0 %v10141_v14  ;;  %v7076_v60 = vrot.slane %v14466_v57, %v14465_v37 }
 0x7a2   : > { %9093 = vmatprep.subr.bf16.mxu1 %v10142_v49  ;;  %7309 = vperm.xlu0 %10129, %v7295_v9  }
 0x7a4   : > { %9070 = vmatpush3.bf16.msra.mxu0 %v10141_v14  ;;  %7329 = vperm.xlu1 %10130, %v7299_v25  }
 0x7a5   : > { %9094 = vmatpush3.bf16.msra.mxu1 %v10142_v49  ;;  %9071 = vmatprep.subr.bf16.mxu0 %v10143_v20 }
 0x7a6   : > { %9095 = vmatprep.subr.bf16.mxu1 %v10144_v47  ;;  %7324 = vperm.xlu0 %10129, %v7298_v45  }
 0x7a8   : > { %9072 = vmatpush3.bf16.msra.mxu0 %v10143_v20  ;;  %7339 = vperm.xlu1 %10130, %v7301_v40  }
 0x7a9   : > { %9096 = vmatpush3.bf16.msra.mxu1 %v10144_v47  ;;  %9073 = vmatprep.subr.bf16.mxu0 %v10145_v8 }
 0x7aa   : > { %9097 = vmatprep.subr.bf16.mxu1 %v10146_v15  ;;  %7334 = vperm.xlu0 %10129, %v7300_v26  }
 0x7ac   : > { %9074 = vmatpush3.bf16.msra.mxu0 %v10145_v8 }
 0x7ad   : > { %9098 = vmatpush3.bf16.msra.mxu1 %v10146_v15  ;;  %9107 = vmatprep.subr.bf16.mxu0 %v10147_v10 }
 0x7ae   : > { %9131 = vmatprep.subr.bf16.mxu1 %v10147_v10 }
 0x7af   : > { %9076 = vmatmul.mubr.bf16.vlgmr.msra.gmra.mxu0 %v6808_v32 }
 0x7b0   : > { %9100 = vmatmul.mubr.bf16.vlgmr.msra.gmra.mxu1 %v6812_v41  ;;  %9079 = vmatprep.mubr.bf16.mxu0 %v6809_v53 }
 0x7b1   : > { %9103 = vmatprep.mubr.bf16.mxu1 %v6813_v54  ;;  %9108 = vmatpush3.bf16.msra.mxu0 %v10147_v10 }
 0x7b2   : > { %9139 = vmatpush3.bf16.msra.mxu1 %v10147_v10  ;;  %9109 = vmatprep.subr.bf16.mxu0 %v10148_v19 }
 0x7b3   : > { %9132 = vmatprep.subr.bf16.mxu1 %v10148_v19 }
 0x7b5   : > { %9110 = vmatpush3.bf16.msra.mxu0 %v10148_v19 }
 0x7b6   : > { %9140 = vmatpush3.bf16.msra.mxu1 %v10148_v19  ;;  %9111 = vmatprep.subr.bf16.mxu0 %v10149_v24 }
 0x7b7   : > { %9080 = vmatmul.mubr.bf16.gmra.mxu0 %v6810_v52  ;;  %9133 = vmatprep.subr.bf16.mxu1 %v10149_v24 }
 0x7b8   : > { %9104 = vmatmul.mubr.bf16.gmra.mxu1 %v6814_v17 }
 0x7b9   : > { %9112 = vmatpush3.bf16.msra.mxu0 %v10149_v24 }
 0x7ba   : > { %9141 = vmatpush3.bf16.msra.mxu1 %v10149_v24  ;;  %9113 = vmatprep.subr.bf16.mxu0 %v10150_v34 }
 0x7bb   : > { %9134 = vmatprep.subr.bf16.mxu1 %v10150_v34 }
 0x7bd   : > { %9114 = vmatpush3.bf16.msra.mxu0 %v10150_v34 }
 0x7be   : > { %9142 = vmatpush3.bf16.msra.mxu1 %v10150_v34  ;;  %9115 = vmatprep.subr.bf16.mxu0 %v10151_v13 }
 0x7bf   : > { %9135 = vmatprep.subr.bf16.mxu1 %v10151_v13 }
 0x7c1   : > { %9116 = vmatpush3.bf16.msra.mxu0 %v10151_v13 }
 0x7c2   : > { %9143 = vmatpush3.bf16.msra.mxu1 %v10151_v13  ;;  %9117 = vmatprep.subr.bf16.mxu0 %v10152_v29 }
 0x7c3   : > { %9136 = vmatprep.subr.bf16.mxu1 %v10152_v29 }
 0x7c5   : > { %9118 = vmatpush3.bf16.msra.mxu0 %v10152_v29 }
 0x7c6   : > { %9144 = vmatpush3.bf16.msra.mxu1 %v10152_v29  ;;  %9119 = vmatprep.subr.bf16.mxu0 %v10153_v12 }
 0x7c7   : > { %9137 = vmatprep.subr.bf16.mxu1 %v10153_v12 }
 0x7c9   : > { %9120 = vmatpush3.bf16.msra.mxu0 %v10153_v12 }
 0x7ca   : > { %9145 = vmatpush3.bf16.msra.mxu1 %v10153_v12  ;;  %9121 = vmatprep.subr.bf16.mxu0 %v10154_v2 }
 0x7cb   : > { %9138 = vmatprep.subr.bf16.mxu1 %v10154_v2 }
 0x7cd   : > { %9122 = vmatpush3.bf16.msra.mxu0 %v10154_v2 }
 0x7ce   : > { %9146 = vmatpush3.bf16.msra.mxu1 %v10154_v2 }
 0x86f   : > { %v9077_v58 = vpop.f32.mrf.mxu0 }
 0x870   : > { %v9101_v61 = vpop.f32.mrf.mxu1 }
 0x871   : > { %v7051_v18 = vadd.f32 %v9101_v61, %v9077_v58  ;;  %v6929_v43 = vpop.f32.mrf.mxu0 }
 0x872   : > { %v7042_v14 = vpop.f32.mrf.mxu1 }
 0x873   : > { %v13980_v49 = vadd.f32 %v7076_v60, %v7051_v18  ;;  %v7043_v7 = vadd.f32 %v7042_v14, %v6929_v43  ;;  %v9078_v20 = vpop.f32.mrf.mxu0 }
 0x874   : > { %v9102_v47 = vpop.f32.mrf.mxu1 }
 0x875   : > { %v8116_v46 = vmul.f32 -1.442695, %v13980_v49  ;;  %v13983_v39 = vadd.f32 %v7076_v60, %v7043_v7  ;;  %v7054_v28 = vadd.f32 %v9102_v47, %v9078_v20  ;;  %v6932_v56 = vpop.f32.mrf.mxu0 }
 0x876   : > { %v7045_v8 = vpop.f32.mrf.mxu1 }
 0x877   : > { %v8114_v0 = vmul.f32 -1.442695, %v13983_v39  ;;  %v7080_v11 = vadd.f32 %v7076_v60, %v7054_v28  ;;  %v7046_v36 = vadd.f32 %v7045_v8, %v6932_v56  ;;  %v9081_v15 = vpop.f32.mrf.mxu0  ;;  %10155 = vpow2.f32 %v8116_v46 }
 0x878   : > { %v9105_v35 = vpop.f32.mrf.mxu1 }
 0x879   : > { %10157 = vpow2.f32 %v8114_v0  ;;  %v8117_v3 = vmul.f32 -1.442695, %v7080_v11  ;;  %v7078_v6 = vadd.f32 %v7076_v60, %v7046_v36  ;;  %v7067_v31 = vadd.f32 %v9105_v35, %v9081_v15  ;;  %v6945_v50 = vpop.f32.mrf.mxu0 }
 0x87a   : > { %v7058_v51 = vpop.f32.mrf.mxu1 }
 0x87b   : > { %10159 = vpow2.f32 %v8117_v3  ;;  %v8115_v4 = vmul.f32 -1.442695, %v7078_v6  ;;  %v13986_v32 = vadd.f32 %v7076_v60, %v7067_v31  ;;  %v7059_v41 = vadd.f32 %v7058_v51, %v6945_v50  ;;  %v9082_v53 = vpop.f32.mrf.mxu0 }
 0x87c   : > { %v9106_v27 = vpop.f32.mrf.mxu1 }
 0x87d   : > { %10161 = vpow2.f32 %v8115_v4  ;;  %v8120_v21 = vmul.f32 -1.442695, %v13986_v32  ;;  %v7081_v54 = vadd.f32 %v7076_v60, %v7059_v41  ;;  %v7070_v59 = vadd.f32 %v9106_v27, %v9082_v53  ;;  %v6948_v22 = vpop.f32.mrf.mxu0 }
 0x87e   : > { %v7061_v52 = vpop.f32.mrf.mxu1 }
 0x87f   : > { %v8118_v17 = vmul.f32 -1.442695, %v7081_v54  ;;  %v7084_v10 = vadd.f32 %v7076_v60, %v7070_v59  ;;  %v7062_v19 = vadd.f32 %v7061_v52, %v6948_v22  ;;  %10163 = vpow2.f32 %v8120_v21 }
 0x881   : > { %10165 = vpow2.f32 %v8118_v17  ;;  %v8121_v24 = vmul.f32 -1.442695, %v7084_v10  ;;  %v7082_v34 = vadd.f32 %v7076_v60, %v7062_v19 }
 0x883   : > { %10167 = vpow2.f32 %v8121_v24  ;;  %v8119_v13 = vmul.f32 -1.442695, %v7082_v34 }
 0x884   : > { %v10156_v29 = vpop.eup %10155 }
 0x885   : > { %10169 = vpow2.f32 %v8119_v13  ;;  %v7111_v16 = vadd.f32 1.0, %v10156_v29 }
 0x886   : > { %v10158_v12 = vpop.eup %10157 }
 0x887   : > { %v7109_v2 = vadd.f32 1.0, %v10158_v12 }
 0x888   : > { %v10160_v33 = vpop.eup %10159 }
 0x889   : > { %v7112_v38 = vadd.f32 1.0, %v10160_v33  ;;  %10171 = vrcp.f32 %v7109_v2 }
 0x88a   : > { %v10162_v1 = vpop.eup %10161 }
 0x88b   : > { %10173 = vrcp.f32 %v7112_v38  ;;  %v7110_v9 = vadd.f32 1.0, %v10162_v1 }
 0x88c   : > { %10175 = vrcp.f32 %v7111_v16  ;;  %v10164_v25 = vpop.eup %10163 }
 0x88d   : > { %10177 = vrcp.f32 %v7110_v9  ;;  %v7115_v58 = vadd.f32 1.0, %v10164_v25 }
 0x88e   : > { %v10166_v45 = vpop.eup %10165 }
 0x88f   : > { %v7113_v40 = vadd.f32 1.0, %v10166_v45 }
 0x890   : > { %v10168_v26 = vpop.eup %10167 }
 0x891   : > { %v7116_v37 = vadd.f32 1.0, %v10168_v26  ;;  %10179 = vrcp.f32 %v7113_v40 }
 0x892   : > { %v10170_v60 = vpop.eup %10169 }
 0x893   : > { %10181 = vrcp.f32 %v7116_v37  ;;  %v7114_v61 = vadd.f32 1.0, %v10170_v60 }
 0x894   : > { %10183 = vrcp.f32 %v7115_v58 }
 0x895   : > { %10185 = vrcp.f32 %v7114_v61 }
 0x896   : > { %v10172_v18 = vpop.eup %10171 }
 0x897   : > { %v7133_v47 = vmul.f32 %v10172_v18, %v13983_v39  ;;  %v7305_v39 = vpop.permute.xlu0 %7304 }
 0x898   : > { %v10174_v43 = vpop.eup %10173 }
 0x899   : > { %v10176_v14 = vpop.eup %10175  ;;  %v7136_v20 = vmul.f32 %v10174_v43, %v7080_v11 }
 0x89a   : > { %v10178_v7 = vpop.eup %10177  ;;  %v7135_v28 = vmul.f32 %v10176_v14, %v13980_v49  ;;  %v14467_v49 = vsub.s32 3, %v14464_v5 }
 0x89b   : > { %v7134_v46 = vmul.f32 %v10178_v7, %v7078_v6  ;;  %v7315_v6 = vpop.permute.xlu1 %7314  ;;  %v7310_v53 = vpop.permute.xlu0 %7309 }
 0x89c   : > { %v7142_v8 = vpack.c.bf16 %v7136_v20, %v7135_v28  ;;  %v7285_v41 = vrot.slane %v14466_v57, %v14467_v49 }
 0x89d   : > { %v7141_v56 = vpack.c.bf16 %v7134_v46, %v7133_v47 }
 0x89e   : > { %v10180_v0 = vpop.eup %10179 }
 0x89f   : > { %9123 = vmatprep.mubr.bf16.mxu0 %v7141_v56  ;;  %v7137_v31 = vmul.f32 %v10180_v0, %v7081_v54  ;;  %v7320_v52 = vpop.permute.xlu1 %7319  ;;  %v7325_v24 = vpop.permute.xlu0 %7324 }
 0x8a0   : > { %v10182_v36 = vpop.eup %10181  ;;  %9124 = vmatmul.mubr.bf16.vlgmr.msra.gmra.mxu0 %v7142_v8 }
 0x8a1   : > { %v10184_v15 = vpop.eup %10183  ;;  %v7140_v3 = vmul.f32 %v10182_v36, %v7084_v10 }
 0x8a2   : > { %v10186_v35 = vpop.eup %10185  ;;  %v7139_v51 = vmul.f32 %v10184_v15, %v13986_v32 }
 0x8a3   : > { %v7138_v50 = vmul.f32 %v10186_v35, %v7082_v34  ;;  %v7335_v1 = vpop.permute.xlu0 %7334 }
 0x8a4   : > { %v7144_v11 = vpack.c.bf16 %v7140_v3, %v7139_v51 }
 0x8a5   : > { %v7143_v4 = vpack.c.bf16 %v7138_v50, %v7137_v31 }
 0x8a7   : > { %9127 = vmatprep.mubr.bf16.mxu1 %v7143_v4 }
 0x8a8   : > { %9128 = vmatmul.mubr.bf16.vlgmr.msra.gmra.mxu1 %v7144_v11 }
 0x960   : > { %v9125_v27 = vpop.f32.mrf.mxu0 }
 0x961   : > { %v7276_v21 = vadd.f32 %v9125_v27, %v13896_v62 }
 0x962   : > { %v7243_v59 = vpop.f32.mrf.mxu0 }
 0x963   : > { %v7288_v22 = vadd.f32 %v7285_v41, %v7276_v21  ;;  %v7274_v54 = vadd.f32 %v7243_v59, %v13869_v55  ;;  %v7330_v55 = vpop.permute.xlu1 %7329 }
 0x964   : > { %v9126_v32 = vpop.f32.mrf.mxu0 }
 0x965   : > { %v7344_v17 = vmul.f32 %v7315_v6, %v7288_v22  ;;  %v7286_v10 = vadd.f32 %v7285_v41, %v7274_v54  ;;  %v7277_v19 = vadd.f32 %v9126_v32, %v13901_v44 }
 0x966   : > { %v7246_v34 = vpop.f32.mrf.mxu0 }
 0x967   : > { %7352 = vst [vmem:[#allocation9 + $0x10] sm:$0xff] %v7344_v17  ;;  %v7342_v5 = vmul.f32 %v7305_v39, %v7286_v10  ;;  %v7289_v13 = vadd.f32 %v7285_v41, %v7277_v19  ;;  %v7275_v57 = vadd.f32 %v7246_v34, %v13877_v23  ;;  %v7340_v37 = vpop.permute.xlu1 %7339 }
 0x968   : > { %v9129_v29 = vpop.f32.mrf.mxu1 }
 0x969   : > { %7350 = vst [vmem:[#allocation9] sm:$0xff] %v7342_v5  ;;  %v7345_v62 = vmul.f32 %v7320_v52, %v7289_v13  ;;  %v7287_v12 = vadd.f32 %v7285_v41, %v7275_v57  ;;  %v7280_v2 = vadd.f32 %v9129_v29, %v13920_v30 }
 0x96a   : > { %v7259_v33 = vpop.f32.mrf.mxu1 }
 0x96b   : > { %7353 = vst [vmem:[#allocation9 + $0x18] sm:$0xff] %v7345_v62  ;;  %v7343_v16 = vmul.f32 %v7310_v53, %v7287_v12  ;;  %v7292_v38 = vadd.f32 %v7285_v41, %v7280_v2  ;;  %v7278_v44 = vadd.f32 %v7259_v33, %v13906_v48 }
 0x96c   : > { %v9130_v9 = vpop.f32.mrf.mxu1 }
 0x96d   : > { %7351 = vst [vmem:[#allocation9 + $0x8] sm:$0xff] %v7343_v16  ;;  %v7348_v25 = vmul.f32 %v7335_v1, %v7292_v38  ;;  %v7290_v45 = vadd.f32 %v7285_v41, %v7278_v44  ;;  %v7281_v23 = vadd.f32 %v9130_v9, %v13925_v42 }
 0x96e   : > { %v7262_v40 = vpop.f32.mrf.mxu1 }
 0x96f   : > { %7356 = vst [vmem:[#allocation9 + $0x30] sm:$0xff] %v7348_v25  ;;  %v7346_v26 = vmul.f32 %v7325_v24, %v7290_v45  ;;  %v7293_v58 = vadd.f32 %v7285_v41, %v7281_v23  ;;  %v7279_v30 = vadd.f32 %v7262_v40, %v13911_v63 }
 0x971   : > { %7354 = vst [vmem:[#allocation9 + $0x20] sm:$0xff] %v7346_v26  ;;  %v7349_v60 = vmul.f32 %v7340_v37, %v7293_v58  ;;  %v7291_v61 = vadd.f32 %v7285_v41, %v7279_v30 }
 0x973   : > { %7357 = vst [vmem:[#allocation9 + $0x38] sm:$0xff] %v7349_v60  ;;  %v7347_v18 = vmul.f32 %v7330_v55, %v7291_v61 }
 0x975   : > { %7355 = vst [vmem:[#allocation9 + $0x28] sm:$0xff] %v7347_v18 }
 0x976 PF: > { %s8217_s18 = sshll.u32 %s10406_s17, 12  ;;  %s7372_s19 = sshll.u32 %s10480_s12, 4  ;;  %s14010_s19 = int_to_ptr.vmem [resolvable:$true] %s7372_s19 }
 0x977   : > { %s14007_s22 = scalar_lea.hbm %s14078_s13, %s8217_s18  ;;  %s14468_s24 = sand.u32 1, %s10286_s30  }
 0x978   : > { %s14014_s26 = scalar_lea.sflag [#allocation6], %s14468_s24  ;;  %s10202_s25 = scalar_lea.vmem %s14010_s19, 4096 }
 0x979   : > { %p10203_p12 = scmp.ne.s32.totalorder %s14010_s19, %s10202_s25  ;;  %s10304_s21 = smov [#allocation8]  }
 0x97a   : > { %s10206_s20 = sshll.u32 %s10304_s21, 4  ;;  %s10207_s20 = int_to_ptr.vmem [resolvable:$false] %s10206_s20 }
 0x97b   : > { %p10204_p13 = pnand %p10203_p12, %p10425_p5  ;;  %s10208_s15 = scalar_lea.vmem %s10207_s20, 8192 }
 0x97c   : > { %p10209_p1 = scmp.lt.s32.totalorder %s14010_s19, %s10207_s20  ;;  %p10210_p3 = scmp.lt.s32.totalorder %s10208_s15, %s10202_s25 }
 0x97d   : > { %p10205_p0 = pneg %p10204_p13 }
 0x97e   : > { %p10211_p4 = por %p10210_p3, %p10209_p1 }
 0x980   : > { %p10212_p7 = pnand %p10211_p4, %p10205_p0 }
 0x982   : > { %10215 = shalt.err (!%p10212_p7)
}
 0x983   : > { %s10216_s12 = scalar_lea.hbm %s14007_s22, 4096  ;;  %s10220_s18 = scalar_lea.hbm %s14078_s13, 12288 }
 0x984   : > { %p10217_p8 = scmp.ne.s32.totalorder %s14007_s22, %s10216_s12  ;;  %p10221_p10 = scmp.lt.s32.totalorder %s14007_s22, %s14078_s13 }
 0x985   : > { %p10222_p11 = scmp.lt.s32.totalorder %s10220_s18, %s10216_s12 }
 0x986   : > { %p10218_p2 = pnand %p10217_p8, %p10425_p5 }
 0x987   : > { %p10223_p12 = por %p10222_p11, %p10221_p10 }
 0x988   : > { %p10219_p9 = pneg %p10218_p2 }
 0x98a   : > { %p10224_p13 = pnand %p10223_p12, %p10219_p9 }
 0x98c   : > { %10227 = shalt.err (!%p10224_p13)
}
 0x98d   : > { %s10305_s24 = smov 64   ;;  %s10306_s25 = smov 4  }
 0x98e   : > { %9151 = dma.vmem_to_hbm [thread:$0]  (%p10425_p5), %s14010_s19, 4096, %s14007_s22, %s14014_s26, %s10305_s24, %s10305_s24, %s10306_s25  }
 0x98f   : > { %s10307_s21 = smov [#allocation9]   ;;  %p14469_p1 = scmp.eq.s32.totalorder %s10406_s17, 2 }
 0x990   : > { %s7385_s20 = sshll.u32 %s10307_s21, 4  ;;  %s7386_s20 = int_to_ptr.vmem [resolvable:$true] %s7385_s20 }
 0x991   : > { %s10228_s15 = scalar_lea.vmem %s7386_s20, 1024  ;;  %p10235_p7 = scmp.lt.s32.totalorder %s7386_s20, %s7386_s20 }
 0x992   : > { %p10229_p0 = scmp.ne.s32.totalorder %s7386_s20, %s10228_s15  ;;  %p10236_p8 = scmp.lt.s32.totalorder %s10228_s15, %s10228_s15 }
 0x994   : > { %p10230_p3 = pnand %p10229_p0, %p14469_p1  ;;  %p10237_p2 = por %p10236_p8, %p10235_p7 }
 0x996   : > { %p10231_p4 = pneg %p10230_p3 }
 0x998   : > { %p10238_p9 = pnand %p10237_p2, %p10231_p4 }
 0x99a   : > { %10241 = shalt.err (!%p10238_p9)
}
 0x99b   : > { %s10308_s12 = smov 128   ;;  %s10309_s28 = smov 8  }
 0x99c   : > { %p14470_p10 = pmov %p14469_p1  ;;  %p14471_p5 = pmov %p14469_p1 }
 0x99e   : > { %9153 = dma.vmem_to_hbm [thread:$0]  (%p14470_p10), %s7386_s20, 1024, %s14079_s14, [#allocation10], %s10308_s12, %s10308_s12, %s10309_s28  }
 0x99f   : > { %10273 = dma.done.wait (%p14471_p5), [#allocation10], 1024   ;;  %p14472_p11 = pmov %p14469_p1 }
 0x9a1   : > { %10275 = vsyncadd (%p14472_p11), [#allocation10], 4294966272 }
 0x9a2 PF: > { %s14473_s19 = sld [smem:[#allocation14_spill]]  ;;  %p9169_p12 = scmp.ge.s32.totalorder %s10294_s16, 2 }
 0x9a4   : > { %p9162_p13 = pnand %p9169_p12, %p10429_p6 }
 0x9a6   : > { %p9163_p0 = pneg %p9162_p13 }
 0x9a8   : > { %s7404_s27 = sand.u32 1, %s14473_s19  }
 0x9a9   : > { %s7405_s18 = scalar_lea.sflag [#allocation6], %s7404_s27 }
 0x9aa   : > { %10277 = dma.done.wait (%p9163_p0), %s7405_s18, 4096  }
 0x9ab   : > { %10279 = vsyncadd (%p9163_p0), %s7405_s18, 4294963200  ;;  %s14475_s16 = sld [smem:[#allocation16_spill]]  ;;  %s14478_s29 = smov %s10286_s30 }
 0x9ac   : > { %s14476_s0 = sld [smem:[#allocation15_spill]] }
 0x9ad   : > { %s14477_s15 = sld [smem:[#allocation17_spill]] }
 0x9b1   : > { %p27_p1 = scmp.ge.s32.totalorder %s14475_s16, 5  }
 0x9b2   : > { %s14479_s30 = smov %s14476_s0 }
 0x9b3   :  { %29 = sbr.rel (!%p27_p1) target bundleno = 8 (0x8), region = 134 }
 0x9b8   :  { %7410 = vsyncpa [#allocation6], 1 }
 0x9b9   :  { %7412 = vsyncpa [#allocation6 + $0x1], 1 }
 0x9ba   :  { %7413 = vsyncpa [#allocation10], 1 }
 0x9bb   :  { %7414 = vsyncpa [#allocation7], 1 }
 0x9bc   :  { %7416 = vsyncpa [#allocation7 + $0x1], 1 }

</bundles_post_ra>
